<compile_context>
chip_gen: v7x
topology: tpu7x:2x2x1
jax: 0.10.0
libtpu: 0.0.40
codegen_flags: <defaults>
</compile_context>

<pallas_src>
import functools
import math

import numpy as np
import jax
import jax.numpy as jnp
from jax.experimental import pallas as pl
from jax.experimental.pallas import tpu as pltpu


def _round_up(x, m):
    return ((x + m - 1) // m) * m


_PARALLEL = pltpu.CompilerParams(dimension_semantics=("parallel",))


# ----------------------------------------------------------------------------
# Compile-time constant masks (passed as tiny inputs; avoids in-kernel div/mod)
# ----------------------------------------------------------------------------
def _interior_mask(h, w):
    """(R,1) f32 mask: 1 on interior pixels of a zero-haloed (h+2, w+2) grid."""
    m = np.zeros((h + 2, w + 2), np.float32)
    m[1:h + 1, 1:w + 1] = 1.0
    return jnp.asarray(m.reshape((h + 2) * (w + 2), 1))


def _phase_interior_mask(ho, wo):
    """(2,2,(ho+2)*(wo+2),1) mask: phase (p,q) positions mapping to interior
    pixels of the underlying (2*ho, 2*wo) image (padded grid coords 2a+p,2b+q)."""
    out = np.zeros((2, 2, (ho + 2) * (wo + 2), 1), np.float32)
    for p in range(2):
        for q in range(2):
            m = np.zeros((ho + 2, wo + 2), np.float32)
            a_lo, a_hi = (1, ho) if p == 0 else (0, ho - 1)
            b_lo, b_hi = (1, wo) if q == 0 else (0, wo - 1)
            m[a_lo:a_hi + 1, b_lo:b_hi + 1] = 1.0
            out[p, q, :, 0] = m.reshape(-1)
    return jnp.asarray(out)


def _col_mask(m_rows, pitch, wvalid):
    """(m_rows,1) mask: 1 where the flattened output row is a valid column."""
    r = np.arange(m_rows) % pitch
    return jnp.asarray((r < wvalid).astype(np.float32).reshape(m_rows, 1))


# ----------------------------------------------------------------------------
# Pallas kernels
# ----------------------------------------------------------------------------
def _conv1_pool_kernel(cols_ref, w_ref, b_ref, vmask_ref, cmask_ref,
                       o_ref, scr_ref, *, hp, wp):
    """conv1(3x3/s2)+BN+ReLU fused with maxpool(3x3/s2,pad=1).

    cols: (1,2,2,RP,9*Cin) phase-ordered im2col of the input image.
    o   : (1,RP,c0) zero-haloed, row-flattened pooled output (pitch wp+2).
    """
    pitch = wp + 2
    m_rows = hp * pitch - 2
    w = w_ref[...]
    b = b_ref[...]
    for p in range(2):
        for q in range(2):
            y = jnp.dot(cols_ref[0, p, q], w, preferred_element_type=jnp.float32)
            y = jnp.maximum(y + b, 0.0) * vmask_ref[p, q]     # zero at pool-pad ring
            scr_ref[p, q] = y
    mx = None
    for dy in range(3):
        for dx in range(3):
            off = (dy // 2) * pitch + (dx // 2)
            tap = scr_ref[dy % 2, dx % 2, off:off + m_rows, :]
            mx = tap if mx is None else jnp.maximum(mx, tap)
    mx = mx * cmask_ref[...]
    o_ref[0] = jnp.zeros(o_ref.shape[1:], o_ref.dtype)
    o_ref[0, pitch + 1:pitch + 1 + m_rows, :] = mx.astype(o_ref.dtype)


def _block_s1_kernel(x_ref, p1w_ref, p1b_ref, fw_ref, fb_ref,
                     imask_ref, cmask_ref, o_ref, t_ref, *, h, w):
    """Stride-1 InvertedResidual: chunk -> pw1+BN+ReLU -> folded(dw+BN->pw2+BN)+ReLU.

    x: (1,(h+2)*(w+2),2*bf) bf16 zero-haloed flattened activation.
    o: (1,2,(h+2)*(w+2),bf)  group0 = x1 pass-through, group1 = branch2.
    """
    pitch = w + 2
    m_rows = h * pitch - 2
    bf = p1w_ref.shape[0]
    x2 = x_ref[0, :, bf:]
    t = jnp.dot(x2, p1w_ref[...], preferred_element_type=jnp.float32)
    t = jnp.maximum(t + p1b_ref[...], 0.0) * imask_ref[...]   # re-zero halo
    t_ref[...] = t
    acc = jnp.zeros((m_rows, bf), jnp.float32)
    for dy in range(3):
        for dx in range(3):
            off = dy * pitch + dx
            tap = t_ref[off:off + m_rows, :].astype(jnp.bfloat16)
            acc = acc + jnp.dot(tap, fw_ref[3 * dy + dx],
                                preferred_element_type=jnp.float32)
    b2 = jnp.maximum(acc + fb_ref[...], 0.0) * cmask_ref[...]
    o_ref[0, 0] = x_ref[0, :, :bf]                            # halo already zero
    o_ref[0, 1] = jnp.zeros(o_ref.shape[2:], o_ref.dtype)
    o_ref[0, 1, pitch + 1:pitch + 1 + m_rows, :] = b2.astype(o_ref.dtype)


def _block_s2_kernel(xp_ref, f1w_ref, f1b_ref, p1w_ref, p1b_ref, f2w_ref, f2b_ref,
                     pmask_ref, cmask_ref, o_ref, t_ref, *, ho, wo):
    """Stride-2 InvertedResidual, both branches fused.

    xp: (1,2,2,(ho+2)*(wo+2),C) 2x2 spatial-phase split of the padded input.
    o : (1,2,(ho+2)*(wo+2),bf)  group0 = branch1, group1 = branch2.
    """
    pitch = wo + 2
    m_rows = ho * pitch - 2
    bf = f2w_ref.shape[-1]
    p1w = p1w_ref[...]
    p1b = p1b_ref[...]
    # branch2 pw1 (1x1 commutes with spatial subsampling -> run per phase)
    for p in range(2):
        for q in range(2):
            t = jnp.dot(xp_ref[0, p, q], p1w, preferred_element_type=jnp.float32)
            t = jnp.maximum(t + p1b, 0.0) * pmask_ref[p, q]
            t_ref[p, q] = t
    acc1 = jnp.zeros((m_rows, bf), jnp.float32)
    acc2 = jnp.zeros((m_rows, bf), jnp.float32)
    for dy in range(3):
        for dx in range(3):
            k = 3 * dy + dx
            off = (dy // 2) * pitch + (dx // 2)
            x_tap = xp_ref[0, dy % 2, dx % 2, off:off + m_rows, :]
            acc1 = acc1 + jnp.dot(x_tap, f1w_ref[k],
                                  preferred_element_type=jnp.float32)
            t_tap = t_ref[dy % 2, dx % 2, off:off + m_rows, :].astype(jnp.bfloat16)
            acc2 = acc2 + jnp.dot(t_tap, f2w_ref[k],
                                  preferred_element_type=jnp.float32)
    b1 = jnp.maximum(acc1 + f1b_ref[...], 0.0) * cmask_ref[...]
    b2 = jnp.maximum(acc2 + f2b_ref[...], 0.0) * cmask_ref[...]
    o_ref[0, 0] = jnp.zeros(o_ref.shape[2:], o_ref.dtype)
    o_ref[0, 1] = jnp.zeros(o_ref.shape[2:], o_ref.dtype)
    o_ref[0, 0, pitch + 1:pitch + 1 + m_rows, :] = b1.astype(o_ref.dtype)
    o_ref[0, 1, pitch + 1:pitch + 1 + m_rows, :] = b2.astype(o_ref.dtype)


def _head_kernel(x_ref, w5_ref, b5_ref, fw_ref, fb_ref, o_ref):
    """conv5(1x1)+BN+ReLU -> global average pool -> FC (lane-padded classes)."""
    y = jnp.dot(x_ref[0], w5_ref[...], preferred_element_type=jnp.float32)
    y = jnp.maximum(y + b5_ref[...], 0.0)                      # (HW, C5)
    pooled = jnp.mean(y, axis=0, keepdims=True)                # (1, C5)
    logits = jnp.dot(pooled.astype(jnp.bfloat16), fw_ref[...],
                     preferred_element_type=jnp.float32) + fb_ref[...]
    o_ref[0] = logits


# ----------------------------------------------------------------------------
# pallas_call wrappers
# ----------------------------------------------------------------------------
def conv1_pool(cols, w, b, hp, wp):
    n = cols.shape[0]
    k = cols.shape[-1]
    rp = (hp + 2) * (wp + 2)
    c0 = w.shape[1]
    pitch = wp + 2
    m_rows = hp * pitch - 2
    vmask = _phase_interior_mask(hp, wp)
    cmask = _col_mask(m_rows, pitch, wp)
    kern = functools.partial(_conv1_pool_kernel, hp=hp, wp=wp)
    return pl.pallas_call(
        kern,
        out_shape=jax.ShapeDtypeStruct((n, rp, c0), jnp.bfloat16),
        grid=(n,),
        in_specs=[
            pl.BlockSpec((1, 2, 2, rp, k), lambda i: (i, 0, 0, 0, 0)),
            pl.BlockSpec((k, c0), lambda i: (0, 0)),
            pl.BlockSpec((1, c0), lambda i: (0, 0)),
            pl.BlockSpec((2, 2, rp, 1), lambda i: (0, 0, 0, 0)),
            pl.BlockSpec((m_rows, 1), lambda i: (0, 0)),
        ],
        out_specs=pl.BlockSpec((1, rp, c0), lambda i: (i, 0, 0)),
        scratch_shapes=[pltpu.VMEM((2, 2, rp, c0), jnp.float32)],
        compiler_params=_PARALLEL,
        cost_estimate=pl.CostEstimate(
            flops=2 * n * 4 * rp * k * c0, transcendentals=0,
            bytes_accessed=n * rp * (4 * k + c0) * 2),
    )(cols, w, b, vmask, cmask)


def block_s1(x_flat, p, h, w):
    n, r, c = x_flat.shape
    bf = c // 2
    pitch = w + 2
    m_rows = h * pitch - 2
    imask = _interior_mask(h, w)
    cmask = _col_mask(m_rows, pitch, w)
    kern = functools.partial(_block_s1_kernel, h=h, w=w)
    return pl.pallas_call(
        kern,
        out_shape=jax.ShapeDtypeStruct((n, 2, r, bf), jnp.bfloat16),
        grid=(n,),
        in_specs=[
            pl.BlockSpec((1, r, c), lambda i: (i, 0, 0)),
            pl.BlockSpec((bf, bf), lambda i: (0, 0)),
            pl.BlockSpec((1, bf), lambda i: (0, 0)),
            pl.BlockSpec((9, bf, bf), lambda i: (0, 0, 0)),
            pl.BlockSpec((1, bf), lambda i: (0, 0)),
            pl.BlockSpec((r, 1), lambda i: (0, 0)),
            pl.BlockSpec((m_rows, 1), lambda i: (0, 0)),
        ],
        out_specs=pl.BlockSpec((1, 2, r, bf), lambda i: (i, 0, 0, 0)),
        scratch_shapes=[pltpu.VMEM((r, bf), jnp.float32)],
        compiler_params=_PARALLEL,
        cost_estimate=pl.CostEstimate(
            flops=2 * n * (r + 9 * m_rows) * bf * bf, transcendentals=0,
            bytes_accessed=4 * n * r * bf * 2),
    )(x_flat, p['p1w'], p['p1b'], p['f2w'], p['f2b'], imask, cmask)


def block_s2(phases, p, ho, wo):
    n = phases.shape[0]
    c = phases.shape[-1]
    r2 = phases.shape[3]
    bf = p['f2w'].shape[-1]
    pitch = wo + 2
    m_rows = ho * pitch - 2
    pmask = _phase_interior_mask(ho, wo)
    cmask = _col_mask(m_rows, pitch, wo)
    kern = functools.partial(_block_s2_kernel, ho=ho, wo=wo)
    return pl.pallas_call(
        kern,
        out_shape=jax.ShapeDtypeStruct((n, 2, r2, bf), jnp.bfloat16),
        grid=(n,),
        in_specs=[
            pl.BlockSpec((1, 2, 2, r2, c), lambda i: (i, 0, 0, 0, 0)),
            pl.BlockSpec((9, c, bf), lambda i: (0, 0, 0)),
            pl.BlockSpec((1, bf), lambda i: (0, 0)),
            pl.BlockSpec((c, bf), lambda i: (0, 0)),
            pl.BlockSpec((1, bf), lambda i: (0, 0)),
            pl.BlockSpec((9, bf, bf), lambda i: (0, 0, 0)),
            pl.BlockSpec((1, bf), lambda i: (0, 0)),
            pl.BlockSpec((2, 2, r2, 1), lambda i: (0, 0, 0, 0)),
            pl.BlockSpec((m_rows, 1), lambda i: (0, 0)),
        ],
        out_specs=pl.BlockSpec((1, 2, r2, bf), lambda i: (i, 0, 0, 0)),
        scratch_shapes=[pltpu.VMEM((2, 2, r2, bf), jnp.float32)],
        compiler_params=_PARALLEL,
        cost_estimate=pl.CostEstimate(
            flops=2 * n * (4 * r2 * c * bf + 9 * m_rows * bf * (c + bf)),
            transcendentals=0,
            bytes_accessed=n * r2 * (4 * c + 2 * bf) * 2),
    )(phases, p['f1w'], p['f1b'], p['p1w'], p['p1b'], p['f2w'], p['f2b'],
      pmask, cmask)


def head(x, w5, b5, fcw, fcb):
    n, hw, c = x.shape
    c5 = w5.shape[1]
    ncp = fcw.shape[1]
    out = pl.pallas_call(
        _head_kernel,
        out_shape=jax.ShapeDtypeStruct((n, 1, ncp), jnp.float32),
        grid=(n,),
        in_specs=[
            pl.BlockSpec((1, hw, c), lambda i: (i, 0, 0)),
            pl.BlockSpec((c, c5), lambda i: (0, 0)),
            pl.BlockSpec((1, c5), lambda i: (0, 0)),
            pl.BlockSpec((c5, ncp), lambda i: (0, 0)),
            pl.BlockSpec((1, ncp), lambda i: (0, 0)),
        ],
        out_specs=pl.BlockSpec((1, 1, ncp), lambda i: (i, 0, 0)),
        compiler_params=_PARALLEL,
    )(x, w5, b5, fcw, fcb)
    return out[:, 0, :]


# ----------------------------------------------------------------------------
# Thin XLA layout glue (concat+channel_shuffle interleave, stride-2 phase split)
# ----------------------------------------------------------------------------
def _interleave_groups(grouped):
    # (N,2,R,bf) -> (N,R,2*bf): out[...,2j]=group0[j], out[...,2j+1]=group1[j]
    n, _, r, bf = grouped.shape
    return jnp.transpose(grouped, (0, 2, 3, 1)).reshape(n, r, 2 * bf)


def _to_phases(flat, h, w):
    # zero-haloed (N,(h+2)*(w+2),C) -> (N,2,2,(h//2+2)*(w//2+2),C) phase split
    n, _, c = flat.shape
    ho, wo = h // 2, w // 2
    x = flat.reshape(n, h + 2, w + 2, c)
    x = x.reshape(n, ho + 1, 2, wo + 1, 2, c)
    x = jnp.transpose(x, (0, 2, 4, 1, 3, 5))
    x = jnp.pad(x, ((0, 0), (0, 0), (0, 0), (0, 1), (0, 1), (0, 0)))
    return x.reshape(n, 2, 2, (ho + 2) * (wo + 2), c)


def _conv1_cols(x_nhwc):
    # phase-ordered im2col for the fused conv1+maxpool kernel (input is tiny)
    n, hh, ww, cin = x_nhwc.shape
    ho, wo = hh // 2, ww // 2
    hp, wp = ho // 2, wo // 2
    xp = jnp.pad(x_nhwc, ((0, 0), (1, 1), (1, 1), (0, 0)))
    cols = jnp.concatenate(
        [xp[:, dy:dy + 2 * ho:2, dx:dx + 2 * wo:2, :]
         for dy in range(3) for dx in range(3)], axis=-1)          # (N,ho,wo,9*cin)
    colsp = jnp.pad(cols, ((0, 0), (1, 1), (1, 1), (0, 0)))        # pool-padded grid
    ph = colsp.reshape(n, hp + 1, 2, wp + 1, 2, 9 * cin)
    ph = jnp.transpose(ph, (0, 2, 4, 1, 3, 5))
    ph = jnp.pad(ph, ((0, 0), (0, 0), (0, 0), (0, 1), (0, 1), (0, 0)))
    ph = ph.reshape(n, 2, 2, (hp + 2) * (wp + 2), 9 * cin).astype(jnp.bfloat16)
    return ph, hp, wp


# ----------------------------------------------------------------------------
# ShuffleNetV2 forward
# ----------------------------------------------------------------------------
def shufflenet_v2_forward(params, x_nchw):
    x = jnp.transpose(x_nchw, (0, 2, 3, 1)).astype(jnp.float32)   # NCHW -> NHWC
    cols, hp, wp = _conv1_cols(x)
    cur = conv1_pool(cols, params['conv1_w'], params['conv1_b'], hp, wp)
    h, w = hp, wp
    for stage in ('stage2', 'stage3', 'stage4'):
        for i, bp in enumerate(params[stage]):
            if i == 0:
                phases = _to_phases(cur, h, w)
                h, w = h // 2, w // 2
                grouped = block_s2(phases, bp, h, w)
            else:
                grouped = block_s1(cur, bp, h, w)
            cur = _interleave_groups(grouped)                     # channel_shuffle(2)
    n, _, c = cur.shape
    xin = cur.reshape(n, h + 2, w + 2, c)[:, 1:h + 1, 1:w + 1, :].reshape(n, h * w, c)
    return head(xin, params['conv5_w'], params['conv5_b'],
                params['fc_w'], params['fc_b'])                   # (N, padded_classes)


# ----------------------------------------------------------------------------
# Deterministic synthetic parameters (BN folded, dw->pw folded, bf16 weights)
# ----------------------------------------------------------------------------
def init_params(key, stages_repeats, stages_out_channels, num_classes):
    keys = iter(jax.random.split(key, 512))

    def nk():
        return next(keys)

    def rnd(shape, fan_in):
        return jax.random.normal(nk(), shape, jnp.float32) / math.sqrt(fan_in)

    def bn(c):
        g = 1.0 + 0.1 * jax.random.normal(nk(), (c,))
        beta = 0.1 * jax.random.normal(nk(), (c,))
        mean = 0.1 * jax.random.normal(nk(), (c,))
        var = 1.0 + 0.1 * jnp.abs(jax.random.normal(nk(), (c,)))
        s = g / jnp.sqrt(var + 1e-5)
        b = beta - mean * s
        return s, b

    def fold_dw_pw(cin, cout):
        # depthwise3x3 (tap-major t=3*dy+dx) + BN, folded into 1x1 conv + BN
        dw_w = rnd((9, cin), 9.0)
        dw_s, dw_b = bn(cin)
        pw_w = rnd((cin, cout), cin)
        pw_s, pw_b = bn(cout)
        fw = (dw_s[None, :, None] * dw_w[:, :, None]) * pw_w[None, :, :] * pw_s[None, None, :]
        fb = pw_s * (dw_b @ pw_w) + pw_b
        return fw.astype(jnp.bfloat16), fb.reshape(1, cout).astype(jnp.float32)

    def pw_bn(cin, cout):
        w = rnd((cin, cout), cin)
        s, b = bn(cout)
        return (w * s[None, :]).astype(jnp.bfloat16), b.reshape(1, cout).astype(jnp.float32)

    def make_block(inp, oup, stride):
        bf = oup // 2
        p = {}
        if stride > 1:
            p['f1w'], p['f1b'] = fold_dw_pw(inp, bf)
        in2 = inp if stride > 1 else bf
        p['p1w'], p['p1b'] = pw_bn(in2, bf)
        p['f2w'], p['f2b'] = fold_dw_pw(bf, bf)
        return p

    params = {}
    c0 = stages_out_channels[0]
    w1 = rnd((27, c0), 27.0)
    s1, b1 = bn(c0)
    params['conv1_w'] = (w1 * s1[None, :]).astype(jnp.bfloat16)
    params['conv1_b'] = b1.reshape(1, c0).astype(jnp.float32)

    input_channels = c0
    for name, repeats, out_ch in zip(('stage2', 'stage3', 'stage4'),
                                     stages_repeats, stages_out_channels[1:]):
        blocks = [make_block(input_channels, out_ch, 2)]
        for _ in range(repeats - 1):
            blocks.append(make_block(out_ch, out_ch, 1))
        params[name] = blocks
        input_channels = out_ch

    c_last = stages_out_channels[-1]
    params['conv5_w'], params['conv5_b'] = pw_bn(input_channels, c_last)

    ncp = max(128, _round_up(num_classes, 128))                   # lane-dense FC output
    fc_w = rnd((c_last, num_classes), c_last)
    fc_b = 0.1 * jax.random.normal(nk(), (num_classes,))
    params['fc_w'] = jnp.pad(fc_w, ((0, 0), (0, ncp - num_classes))).astype(jnp.bfloat16)
    params['fc_b'] = jnp.pad(fc_b, (0, ncp - num_classes)).reshape(1, ncp).astype(jnp.float32)
    return params


# ----------------------------------------------------------------------------
if __name__ == "__main__":
    key = jax.random.PRNGKey(0)
    kx, kp = jax.random.split(key)

    stages_repeats = [2, 2, 2]
    stages_out_channels = [8, 16, 32, 64, 128]
    num_classes = 10

    x = jax.random.normal(kx, (2, 3, 32, 32), dtype=jnp.float32)  # NCHW like PyTorch
    params = init_params(kp, stages_repeats, stages_out_channels, num_classes)

    fwd = jax.jit(shufflenet_v2_forward)
    logits_padded = jax.block_until_ready(fwd(params, x))
    logits = logits_padded[:, :num_classes]

    assert logits.shape == (2, num_classes), logits.shape
    assert bool(jnp.all(jnp.isfinite(logits)))
    print("KERNEL_OK")
</pallas_src>

<mosaic_0001>
module attributes {stable_mosaic.version = 11 : i64} {
  func.func @_conv1_pool_kernel(%arg0: i32, %arg1: memref<1x2x2x100x27xbf16, #tpu.memory_space<vmem>>, %arg2: memref<27x8xbf16, #tpu.memory_space<vmem>>, %arg3: memref<1x8xf32, #tpu.memory_space<vmem>>, %arg4: memref<2x2x100x1xf32, #tpu.memory_space<vmem>>, %arg5: memref<78x1xf32, #tpu.memory_space<vmem>>, %arg6: memref<1x100x8xbf16, #tpu.memory_space<vmem>>, %arg7: memref<2x2x100x8xf32, #tpu.memory_space<vmem>>) attributes {dimension_semantics = [#tpu.dimension_semantics<parallel>], iteration_bounds = array<i64: 2>, scalar_prefetch = 0 : i64, scratch_operands = 1 : i64, tpu.core_type = #tpu.core_type<tc>, window_params = [{transform_indices = @transform_0, window_bounds = array<i64: 1, 2, 2, 100, 27>}, {pipeline_mode = #tpu.pipeline_mode<synchronous>, transform_indices = @transform_1, window_bounds = array<i64: 27, 8>}, {pipeline_mode = #tpu.pipeline_mode<synchronous>, transform_indices = @transform_2, window_bounds = array<i64: 1, 8>}, {pipeline_mode = #tpu.pipeline_mode<synchronous>, transform_indices = @transform_3, window_bounds = array<i64: 2, 2, 100, 1>}, {pipeline_mode = #tpu.pipeline_mode<synchronous>, transform_indices = @transform_4, window_bounds = array<i64: 78, 1>}, {transform_indices = @transform_5, window_bounds = array<i64: 1, 100, 8>}]} {
    %c0 = arith.constant 0 : index
    %c0_0 = arith.constant 0 : index
    %0 = vector.load %arg2[%c0, %c0_0] : memref<27x8xbf16, #tpu.memory_space<vmem>>, vector<27x8xbf16>
    %c0_1 = arith.constant 0 : index
    %c0_2 = arith.constant 0 : index
    %1 = vector.load %arg3[%c0_1, %c0_2] : memref<1x8xf32, #tpu.memory_space<vmem>>, vector<1x8xf32>
    %c0_3 = arith.constant 0 : index
    %c0_4 = arith.constant 0 : index
    %c0_5 = arith.constant 0 : index
    %c0_6 = arith.constant 0 : index
    %c0_7 = arith.constant 0 : index
    %2 = vector.load %arg1[%c0_3, %c0_4, %c0_5, %c0_6, %c0_7] : memref<1x2x2x100x27xbf16, #tpu.memory_space<vmem>>, vector<1x1x1x100x27xbf16>
    %3 = vector.shape_cast %2 : vector<1x1x1x100x27xbf16> to vector<100x27xbf16>
    %cst = arith.constant dense<0.000000e+00> : vector<100x8xf32>
    %4 = tpu.matmul %3, %0, %cst {dimension_numbers = #tpu.dot_dimension_numbers<[1], [0], [0], [1], [0, 0, 1, 1], [], []>} : vector<100x27xbf16>, vector<27x8xbf16>, vector<100x8xf32> -> vector<100x8xf32>
    %5 = vector.broadcast %1 : vector<1x8xf32> to vector<100x8xf32>
    %6 = arith.addf %4, %5 : vector<100x8xf32>
    %cst_8 = arith.constant 0.000000e+00 : f32
    %7 = vector.broadcast %cst_8 : f32 to vector<100x8xf32>
    %8 = arith.maximumf %6, %7 : vector<100x8xf32>
    %c0_9 = arith.constant 0 : index
    %c0_10 = arith.constant 0 : index
    %c0_11 = arith.constant 0 : index
    %c0_12 = arith.constant 0 : index
    %9 = vector.load %arg4[%c0_9, %c0_10, %c0_11, %c0_12] : memref<2x2x100x1xf32, #tpu.memory_space<vmem>>, vector<1x1x100x1xf32>
    %10 = vector.shape_cast %9 : vector<1x1x100x1xf32> to vector<100x1xf32>
    %11 = vector.broadcast %10 : vector<100x1xf32> to vector<100x8xf32>
    %12 = arith.mulf %8, %11 : vector<100x8xf32>
    %c0_13 = arith.constant 0 : index
    %c0_14 = arith.constant 0 : index
    %c0_15 = arith.constant 0 : index
    %c0_16 = arith.constant 0 : index
    %13 = vector.load %arg7[%c0_13, %c0_14, %c0_15, %c0_16] : memref<2x2x100x8xf32, #tpu.memory_space<vmem>>, vector<1x1x100x8xf32>
    %14 = vector.shape_cast %13 : vector<1x1x100x8xf32> to vector<100x8xf32>
    %15 = vector.shape_cast %12 : vector<100x8xf32> to vector<1x1x100x8xf32>
    tpu.vector_store %arg7[%c0_13, %c0_14, %c0_15, %c0_16], %15 {strides = array<i32>} : memref<2x2x100x8xf32, #tpu.memory_space<vmem>>, vector<1x1x100x8xf32>,
    %c0_17 = arith.constant 0 : index
    %c0_18 = arith.constant 0 : index
    %c1 = arith.constant 1 : index
    %c0_19 = arith.constant 0 : index
    %c0_20 = arith.constant 0 : index
    %16 = vector.load %arg1[%c0_17, %c0_18, %c1, %c0_19, %c0_20] : memref<1x2x2x100x27xbf16, #tpu.memory_space<vmem>>, vector<1x1x1x100x27xbf16>
    %17 = vector.shape_cast %16 : vector<1x1x1x100x27xbf16> to vector<100x27xbf16>
    %cst_21 = arith.constant dense<0.000000e+00> : vector<100x8xf32>
    %18 = tpu.matmul %17, %0, %cst_21 {dimension_numbers = #tpu.dot_dimension_numbers<[1], [0], [0], [1], [0, 0, 1, 1], [], []>} : vector<100x27xbf16>, vector<27x8xbf16>, vector<100x8xf32> -> vector<100x8xf32>
    %19 = vector.broadcast %1 : vector<1x8xf32> to vector<100x8xf32>
    %20 = arith.addf %18, %19 : vector<100x8xf32>
    %cst_22 = arith.constant 0.000000e+00 : f32
    %21 = vector.broadcast %cst_22 : f32 to vector<100x8xf32>
    %22 = arith.maximumf %20, %21 : vector<100x8xf32>
    %c0_23 = arith.constant 0 : index
    %c1_24 = arith.constant 1 : index
    %c0_25 = arith.constant 0 : index
    %c0_26 = arith.constant 0 : index
    %23 = vector.load %arg4[%c0_23, %c1_24, %c0_25, %c0_26] : memref<2x2x100x1xf32, #tpu.memory_space<vmem>>, vector<1x1x100x1xf32>
    %24 = vector.shape_cast %23 : vector<1x1x100x1xf32> to vector<100x1xf32>
    %25 = vector.broadcast %24 : vector<100x1xf32> to vector<100x8xf32>
    %26 = arith.mulf %22, %25 : vector<100x8xf32>
    %c0_27 = arith.constant 0 : index
    %c1_28 = arith.constant 1 : index
    %c0_29 = arith.constant 0 : index
    %c0_30 = arith.constant 0 : index
    %27 = vector.load %arg7[%c0_27, %c1_28, %c0_29, %c0_30] : memref<2x2x100x8xf32, #tpu.memory_space<vmem>>, vector<1x1x100x8xf32>
    %28 = vector.shape_cast %27 : vector<1x1x100x8xf32> to vector<100x8xf32>
    %29 = vector.shape_cast %26 : vector<100x8xf32> to vector<1x1x100x8xf32>
    tpu.vector_store %arg7[%c0_27, %c1_28, %c0_29, %c0_30], %29 {strides = array<i32>} : memref<2x2x100x8xf32, #tpu.memory_space<vmem>>, vector<1x1x100x8xf32>,
    %c0_31 = arith.constant 0 : index
    %c1_32 = arith.constant 1 : index
    %c0_33 = arith.constant 0 : index
    %c0_34 = arith.constant 0 : index
    %c0_35 = arith.constant 0 : index
    %30 = vector.load %arg1[%c0_31, %c1_32, %c0_33, %c0_34, %c0_35] : memref<1x2x2x100x27xbf16, #tpu.memory_space<vmem>>, vector<1x1x1x100x27xbf16>
    %31 = vector.shape_cast %30 : vector<1x1x1x100x27xbf16> to vector<100x27xbf16>
    %cst_36 = arith.constant dense<0.000000e+00> : vector<100x8xf32>
    %32 = tpu.matmul %31, %0, %cst_36 {dimension_numbers = #tpu.dot_dimension_numbers<[1], [0], [0], [1], [0, 0, 1, 1], [], []>} : vector<100x27xbf16>, vector<27x8xbf16>, vector<100x8xf32> -> vector<100x8xf32>
    %33 = vector.broadcast %1 : vector<1x8xf32> to vector<100x8xf32>
    %34 = arith.addf %32, %33 : vector<100x8xf32>
    %cst_37 = arith.constant 0.000000e+00 : f32
    %35 = vector.broadcast %cst_37 : f32 to vector<100x8xf32>
    %36 = arith.maximumf %34, %35 : vector<100x8xf32>
    %c1_38 = arith.constant 1 : index
    %c0_39 = arith.constant 0 : index
    %c0_40 = arith.constant 0 : index
    %c0_41 = arith.constant 0 : index
    %37 = vector.load %arg4[%c1_38, %c0_39, %c0_40, %c0_41] : memref<2x2x100x1xf32, #tpu.memory_space<vmem>>, vector<1x1x100x1xf32>
    %38 = vector.shape_cast %37 : vector<1x1x100x1xf32> to vector<100x1xf32>
    %39 = vector.broadcast %38 : vector<100x1xf32> to vector<100x8xf32>
    %40 = arith.mulf %36, %39 : vector<100x8xf32>
    %c1_42 = arith.constant 1 : index
    %c0_43 = arith.constant 0 : index
    %c0_44 = arith.constant 0 : index
    %c0_45 = arith.constant 0 : index
    %41 = vector.load %arg7[%c1_42, %c0_43, %c0_44, %c0_45] : memref<2x2x100x8xf32, #tpu.memory_space<vmem>>, vector<1x1x100x8xf32>
    %42 = vector.shape_cast %41 : vector<1x1x100x8xf32> to vector<100x8xf32>
    %43 = vector.shape_cast %40 : vector<100x8xf32> to vector<1x1x100x8xf32>
    tpu.vector_store %arg7[%c1_42, %c0_43, %c0_44, %c0_45], %43 {strides = array<i32>} : memref<2x2x100x8xf32, #tpu.memory_space<vmem>>, vector<1x1x100x8xf32>,
    %c0_46 = arith.constant 0 : index
    %c1_47 = arith.constant 1 : index
    %c1_48 = arith.constant 1 : index
    %c0_49 = arith.constant 0 : index
    %c0_50 = arith.constant 0 : index
    %44 = vector.load %arg1[%c0_46, %c1_47, %c1_48, %c0_49, %c0_50] : memref<1x2x2x100x27xbf16, #tpu.memory_space<vmem>>, vector<1x1x1x100x27xbf16>
    %45 = vector.shape_cast %44 : vector<1x1x1x100x27xbf16> to vector<100x27xbf16>
    %cst_51 = arith.constant dense<0.000000e+00> : vector<100x8xf32>
    %46 = tpu.matmul %45, %0, %cst_51 {dimension_numbers = #tpu.dot_dimension_numbers<[1], [0], [0], [1], [0, 0, 1, 1], [], []>} : vector<100x27xbf16>, vector<27x8xbf16>, vector<100x8xf32> -> vector<100x8xf32>
    %47 = vector.broadcast %1 : vector<1x8xf32> to vector<100x8xf32>
    %48 = arith.addf %46, %47 : vector<100x8xf32>
    %cst_52 = arith.constant 0.000000e+00 : f32
    %49 = vector.broadcast %cst_52 : f32 to vector<100x8xf32>
    %50 = arith.maximumf %48, %49 : vector<100x8xf32>
    %c1_53 = arith.constant 1 : index
    %c1_54 = arith.constant 1 : index
    %c0_55 = arith.constant 0 : index
    %c0_56 = arith.constant 0 : index
    %51 = vector.load %arg4[%c1_53, %c1_54, %c0_55, %c0_56] : memref<2x2x100x1xf32, #tpu.memory_space<vmem>>, vector<1x1x100x1xf32>
    %52 = vector.shape_cast %51 : vector<1x1x100x1xf32> to vector<100x1xf32>
    %53 = vector.broadcast %52 : vector<100x1xf32> to vector<100x8xf32>
    %54 = arith.mulf %50, %53 : vector<100x8xf32>
    %c1_57 = arith.constant 1 : index
    %c1_58 = arith.constant 1 : index
    %c0_59 = arith.constant 0 : index
    %c0_60 = arith.constant 0 : index
    %55 = vector.load %arg7[%c1_57, %c1_58, %c0_59, %c0_60] : memref<2x2x100x8xf32, #tpu.memory_space<vmem>>, vector<1x1x100x8xf32>
    %56 = vector.shape_cast %55 : vector<1x1x100x8xf32> to vector<100x8xf32>
    %57 = vector.shape_cast %54 : vector<100x8xf32> to vector<1x1x100x8xf32>
    tpu.vector_store %arg7[%c1_57, %c1_58, %c0_59, %c0_60], %57 {strides = array<i32>} : memref<2x2x100x8xf32, #tpu.memory_space<vmem>>, vector<1x1x100x8xf32>,
    %c0_61 = arith.constant 0 : index
    %c0_62 = arith.constant 0 : index
    %c0_63 = arith.constant 0 : index
    %c0_64 = arith.constant 0 : index
    %58 = vector.load %arg7[%c0_61, %c0_62, %c0_63, %c0_64] : memref<2x2x100x8xf32, #tpu.memory_space<vmem>>, vector<1x1x78x8xf32>
    %59 = vector.shape_cast %58 : vector<1x1x78x8xf32> to vector<78x8xf32>
    %c0_65 = arith.constant 0 : index
    %c1_66 = arith.constant 1 : index
    %c0_67 = arith.constant 0 : index
    %c0_68 = arith.constant 0 : index
    %60 = vector.load %arg7[%c0_65, %c1_66, %c0_67, %c0_68] : memref<2x2x100x8xf32, #tpu.memory_space<vmem>>, vector<1x1x78x8xf32>
    %61 = vector.shape_cast %60 : vector<1x1x78x8xf32> to vector<78x8xf32>
    %62 = arith.maximumf %59, %61 : vector<78x8xf32>
    %c0_69 = arith.constant 0 : index
    %c0_70 = arith.constant 0 : index
    %c1_71 = arith.constant 1 : index
    %c0_72 = arith.constant 0 : index
    %63 = vector.load %arg7[%c0_69, %c0_70, %c1_71, %c0_72] : memref<2x2x100x8xf32, #tpu.memory_space<vmem>>, vector<1x1x78x8xf32>
    %64 = vector.shape_cast %63 : vector<1x1x78x8xf32> to vector<78x8xf32>
    %65 = arith.maximumf %62, %64 : vector<78x8xf32>
    %c1_73 = arith.constant 1 : index
    %c0_74 = arith.constant 0 : index
    %c0_75 = arith.constant 0 : index
    %c0_76 = arith.constant 0 : index
    %66 = vector.load %arg7[%c1_73, %c0_74, %c0_75, %c0_76] : memref<2x2x100x8xf32, #tpu.memory_space<vmem>>, vector<1x1x78x8xf32>
    %67 = vector.shape_cast %66 : vector<1x1x78x8xf32> to vector<78x8xf32>
    %68 = arith.maximumf %65, %67 : vector<78x8xf32>
    %c1_77 = arith.constant 1 : index
    %c1_78 = arith.constant 1 : index
    %c0_79 = arith.constant 0 : index
    %c0_80 = arith.constant 0 : index
    %69 = vector.load %arg7[%c1_77, %c1_78, %c0_79, %c0_80] : memref<2x2x100x8xf32, #tpu.memory_space<vmem>>, vector<1x1x78x8xf32>
    %70 = vector.shape_cast %69 : vector<1x1x78x8xf32> to vector<78x8xf32>
    %71 = arith.maximumf %68, %70 : vector<78x8xf32>
    %c1_81 = arith.constant 1 : index
    %c0_82 = arith.constant 0 : index
    %c1_83 = arith.constant 1 : index
    %c0_84 = arith.constant 0 : index
    %72 = vector.load %arg7[%c1_81, %c0_82, %c1_83, %c0_84] : memref<2x2x100x8xf32, #tpu.memory_space<vmem>>, vector<1x1x78x8xf32>
    %73 = vector.shape_cast %72 : vector<1x1x78x8xf32> to vector<78x8xf32>
    %74 = arith.maximumf %71, %73 : vector<78x8xf32>
    %c0_85 = arith.constant 0 : index
    %c0_86 = arith.constant 0 : index
    %c10 = arith.constant 10 : index
    %c0_87 = arith.constant 0 : index
    %75 = vector.load %arg7[%c0_85, %c0_86, %c10, %c0_87] : memref<2x2x100x8xf32, #tpu.memory_space<vmem>>, vector<1x1x78x8xf32>
    %76 = vector.shape_cast %75 : vector<1x1x78x8xf32> to vector<78x8xf32>
    %77 = arith.maximumf %74, %76 : vector<78x8xf32>
    %c0_88 = arith.constant 0 : index
    %c1_89 = arith.constant 1 : index
    %c10_90 = arith.constant 10 : index
    %c0_91 = arith.constant 0 : index
    %78 = vector.load %arg7[%c0_88, %c1_89, %c10_90, %c0_91] : memref<2x2x100x8xf32, #tpu.memory_space<vmem>>, vector<1x1x78x8xf32>
    %79 = vector.shape_cast %78 : vector<1x1x78x8xf32> to vector<78x8xf32>
    %80 = arith.maximumf %77, %79 : vector<78x8xf32>
    %c0_92 = arith.constant 0 : index
    %c0_93 = arith.constant 0 : index
    %c11 = arith.constant 11 : index
    %c0_94 = arith.constant 0 : index
    %81 = vector.load %arg7[%c0_92, %c0_93, %c11, %c0_94] : memref<2x2x100x8xf32, #tpu.memory_space<vmem>>, vector<1x1x78x8xf32>
    %82 = vector.shape_cast %81 : vector<1x1x78x8xf32> to vector<78x8xf32>
    %83 = arith.maximumf %80, %82 : vector<78x8xf32>
    %c0_95 = arith.constant 0 : index
    %c0_96 = arith.constant 0 : index
    %84 = vector.load %arg5[%c0_95, %c0_96] : memref<78x1xf32, #tpu.memory_space<vmem>>, vector<78x1xf32>
    %85 = vector.broadcast %84 : vector<78x1xf32> to vector<78x8xf32>
    %86 = arith.mulf %83, %85 : vector<78x8xf32>
    %cst_97 = arith.constant 0.000000e+00 : bf16
    %87 = vector.broadcast %cst_97 : bf16 to vector<100x8xbf16>
    %c0_98 = arith.constant 0 : index
    %c0_99 = arith.constant 0 : index
    %c0_100 = arith.constant 0 : index
    %88 = vector.load %arg6[%c0_98, %c0_99, %c0_100] : memref<1x100x8xbf16, #tpu.memory_space<vmem>>, vector<1x100x8xbf16>
    %89 = vector.shape_cast %88 : vector<1x100x8xbf16> to vector<100x8xbf16>
    %90 = vector.shape_cast %87 : vector<100x8xbf16> to vector<1x100x8xbf16>
    tpu.vector_store %arg6[%c0_98, %c0_99, %c0_100], %90 {strides = array<i32>} : memref<1x100x8xbf16, #tpu.memory_space<vmem>>, vector<1x100x8xbf16>,
    %91 = arith.truncf %86 : vector<78x8xf32> to vector<78x8xbf16>
    %c0_101 = arith.constant 0 : index
    %c11_102 = arith.constant 11 : index
    %c0_103 = arith.constant 0 : index
    %92 = vector.load %arg6[%c0_101, %c11_102, %c0_103] : memref<1x100x8xbf16, #tpu.memory_space<vmem>>, vector<1x78x8xbf16>
    %93 = vector.shape_cast %92 : vector<1x78x8xbf16> to vector<78x8xbf16>
    %94 = vector.shape_cast %91 : vector<78x8xbf16> to vector<1x78x8xbf16>
    tpu.vector_store %arg6[%c0_101, %c11_102, %c0_103], %94 {strides = array<i32>} : memref<1x100x8xbf16, #tpu.memory_space<vmem>>, vector<1x78x8xbf16>,
    return
  }
  func.func @transform_0(%arg0: i32) -> (i32, i32, i32, i32, i32) {
    %c0_i32 = arith.constant 0 : i32
    %c0_i32_0 = arith.constant 0 : i32
    %c0_i32_1 = arith.constant 0 : i32
    %c0_i32_2 = arith.constant 0 : i32
    %c0_i32_3 = arith.constant 0 : i32
    return %arg0, %c0_i32, %c0_i32_0, %c0_i32_1, %c0_i32_2 : i32, i32, i32, i32, i32
  }
  func.func @transform_1(%arg0: i32) -> (i32, i32) {
    %c0_i32 = arith.constant 0 : i32
    %c0_i32_0 = arith.constant 0 : i32
    %c0_i32_1 = arith.constant 0 : i32
    return %c0_i32, %c0_i32_0 : i32, i32
  }
  func.func @transform_2(%arg0: i32) -> (i32, i32) {
    %c0_i32 = arith.constant 0 : i32
    %c0_i32_0 = arith.constant 0 : i32
    %c0_i32_1 = arith.constant 0 : i32
    return %c0_i32, %c0_i32_0 : i32, i32
  }
  func.func @transform_3(%arg0: i32) -> (i32, i32, i32, i32) {
    %c0_i32 = arith.constant 0 : i32
    %c0_i32_0 = arith.constant 0 : i32
    %c0_i32_1 = arith.constant 0 : i32
    %c0_i32_2 = arith.constant 0 : i32
    %c0_i32_3 = arith.constant 0 : i32
    return %c0_i32, %c0_i32_0, %c0_i32_1, %c0_i32_2 : i32, i32, i32, i32
  }
  func.func @transform_4(%arg0: i32) -> (i32, i32) {
    %c0_i32 = arith.constant 0 : i32
    %c0_i32_0 = arith.constant 0 : i32
    %c0_i32_1 = arith.constant 0 : i32
    return %c0_i32, %c0_i32_0 : i32, i32
  }
  func.func @transform_5(%arg0: i32) -> (i32, i32, i32) {
    %c0_i32 = arith.constant 0 : i32
    %c0_i32_0 = arith.constant 0 : i32
    %c0_i32_1 = arith.constant 0 : i32
    return %arg0, %c0_i32, %c0_i32_0 : i32, i32, i32
  }
}

module attributes {stable_mosaic.version = 11 : i64} {
  func.func @_block_s2_kernel(%arg0: i32, %arg1: memref<1x2x2x36x8xbf16, #tpu.memory_space<vmem>>, %arg2: memref<9x8x8xbf16, #tpu.memory_space<vmem>>, %arg3: memref<1x8xf32, #tpu.memory_space<vmem>>, %arg4: memref<8x8xbf16, #tpu.memory_space<vmem>>, %arg5: memref<1x8xf32, #tpu.memory_space<vmem>>, %arg6: memref<9x8x8xbf16, #tpu.memory_space<vmem>>, %arg7: memref<1x8xf32, #tpu.memory_space<vmem>>, %arg8: memref<2x2x36x1xf32, #tpu.memory_space<vmem>>, %arg9: memref<22x1xf32, #tpu.memory_space<vmem>>, %arg10: memref<1x2x36x8xbf16, #tpu.memory_space<vmem>>, %arg11: memref<2x2x36x8xf32, #tpu.memory_space<vmem>>) attributes {dimension_semantics = [#tpu.dimension_semantics<parallel>], iteration_bounds = array<i64: 2>, scalar_prefetch = 0 : i64, scratch_operands = 1 : i64, tpu.core_type = #tpu.core_type<tc>, window_params = [{transform_indices = @transform_0, window_bounds = array<i64: 1, 2, 2, 36, 8>}, {pipeline_mode = #tpu.pipeline_mode<synchronous>, transform_indices = @transform_1, window_bounds = array<i64: 9, 8, 8>}, {pipeline_mode = #tpu.pipeline_mode<synchronous>, transform_indices = @transform_2, window_bounds = array<i64: 1, 8>}, {pipeline_mode = #tpu.pipeline_mode<synchronous>, transform_indices = @transform_3, window_bounds = array<i64: 8, 8>}, {pipeline_mode = #tpu.pipeline_mode<synchronous>, transform_indices = @transform_4, window_bounds = array<i64: 1, 8>}, {pipeline_mode = #tpu.pipeline_mode<synchronous>, transform_indices = @transform_5, window_bounds = array<i64: 9, 8, 8>}, {pipeline_mode = #tpu.pipeline_mode<synchronous>, transform_indices = @transform_6, window_bounds = array<i64: 1, 8>}, {pipeline_mode = #tpu.pipeline_mode<synchronous>, transform_indices = @transform_7, window_bounds = array<i64: 2, 2, 36, 1>}, {pipeline_mode = #tpu.pipeline_mode<synchronous>, transform_indices = @transform_8, window_bounds = array<i64: 22, 1>}, {transform_indices = @transform_9, window_bounds = array<i64: 1, 2, 36, 8>}]} {
    %c0 = arith.constant 0 : index
    %c0_0 = arith.constant 0 : index
    %0 = vector.load %arg4[%c0, %c0_0] : memref<8x8xbf16, #tpu.memory_space<vmem>>, vector<8x8xbf16>
    %c0_1 = arith.constant 0 : index
    %c0_2 = arith.constant 0 : index
    %1 = vector.load %arg5[%c0_1, %c0_2] : memref<1x8xf32, #tpu.memory_space<vmem>>, vector<1x8xf32>
    %c0_3 = arith.constant 0 : index
    %c0_4 = arith.constant 0 : index
    %c0_5 = arith.constant 0 : index
    %c0_6 = arith.constant 0 : index
    %c0_7 = arith.constant 0 : index
    %2 = vector.load %arg1[%c0_3, %c0_4, %c0_5, %c0_6, %c0_7] : memref<1x2x2x36x8xbf16, #tpu.memory_space<vmem>>, vector<1x1x1x36x8xbf16>
    %3 = vector.shape_cast %2 : vector<1x1x1x36x8xbf16> to vector<36x8xbf16>
    %cst = arith.constant dense<0.000000e+00> : vector<36x8xf32>
    %4 = tpu.matmul %3, %0, %cst {dimension_numbers = #tpu.dot_dimension_numbers<[1], [0], [0], [1], [0, 0, 1, 1], [], []>} : vector<36x8xbf16>, vector<8x8xbf16>, vector<36x8xf32> -> vector<36x8xf32>
    %5 = vector.broadcast %1 : vector<1x8xf32> to vector<36x8xf32>
    %6 = arith.addf %4, %5 : vector<36x8xf32>
    %cst_8 = arith.constant 0.000000e+00 : f32
    %7 = vector.broadcast %cst_8 : f32 to vector<36x8xf32>
    %8 = arith.maximumf %6, %7 : vector<36x8xf32>
    %c0_9 = arith.constant 0 : index
    %c0_10 = arith.constant 0 : index
    %c0_11 = arith.constant 0 : index
    %c0_12 = arith.constant 0 : index
    %9 = vector.load %arg8[%c0_9, %c0_10, %c0_11, %c0_12] : memref<2x2x36x1xf32, #tpu.memory_space<vmem>>, vector<1x1x36x1xf32>
    %10 = vector.shape_cast %9 : vector<1x1x36x1xf32> to vector<36x1xf32>
    %11 = vector.broadcast %10 : vector<36x1xf32> to vector<36x8xf32>
    %12 = arith.mulf %8, %11 : vector<36x8xf32>
    %c0_13 = arith.constant 0 : index
    %c0_14 = arith.constant 0 : index
    %c0_15 = arith.constant 0 : index
    %c0_16 = arith.constant 0 : index
    %13 = vector.load %arg11[%c0_13, %c0_14, %c0_15, %c0_16] : memref<2x2x36x8xf32, #tpu.memory_space<vmem>>, vector<1x1x36x8xf32>
    %14 = vector.shape_cast %13 : vector<1x1x36x8xf32> to vector<36x8xf32>
    %15 = vector.shape_cast %12 : vector<36x8xf32> to vector<1x1x36x8xf32>
    tpu.vector_store %arg11[%c0_13, %c0_14, %c0_15, %c0_16], %15 {strides = array<i32>} : memref<2x2x36x8xf32, #tpu.memory_space<vmem>>, vector<1x1x36x8xf32>,
    %c0_17 = arith.constant 0 : index
    %c0_18 = arith.constant 0 : index
    %c1 = arith.constant 1 : index
    %c0_19 = arith.constant 0 : index
    %c0_20 = arith.constant 0 : index
    %16 = vector.load %arg1[%c0_17, %c0_18, %c1, %c0_19, %c0_20] : memref<1x2x2x36x8xbf16, #tpu.memory_space<vmem>>, vector<1x1x1x36x8xbf16>
    %17 = vector.shape_cast %16 : vector<1x1x1x36x8xbf16> to vector<36x8xbf16>
    %cst_21 = arith.constant dense<0.000000e+00> : vector<36x8xf32>
    %18 = tpu.matmul %17, %0, %cst_21 {dimension_numbers = #tpu.dot_dimension_numbers<[1], [0], [0], [1], [0, 0, 1, 1], [], []>} : vector<36x8xbf16>, vector<8x8xbf16>, vector<36x8xf32> -> vector<36x8xf32>
    %19 = vector.broadcast %1 : vector<1x8xf32> to vector<36x8xf32>
    %20 = arith.addf %18, %19 : vector<36x8xf32>
    %cst_22 = arith.constant 0.000000e+00 : f32
    %21 = vector.broadcast %cst_22 : f32 to vector<36x8xf32>
    %22 = arith.maximumf %20, %21 : vector<36x8xf32>
    %c0_23 = arith.constant 0 : index
    %c1_24 = arith.constant 1 : index
    %c0_25 = arith.constant 0 : index
    %c0_26 = arith.constant 0 : index
    %23 = vector.load %arg8[%c0_23, %c1_24, %c0_25, %c0_26] : memref<2x2x36x1xf32, #tpu.memory_space<vmem>>, vector<1x1x36x1xf32>
    %24 = vector.shape_cast %23 : vector<1x1x36x1xf32> to vector<36x1xf32>
    %25 = vector.broadcast %24 : vector<36x1xf32> to vector<36x8xf32>
    %26 = arith.mulf %22, %25 : vector<36x8xf32>
    %c0_27 = arith.constant 0 : index
    %c1_28 = arith.constant 1 : index
    %c0_29 = arith.constant 0 : index
    %c0_30 = arith.constant 0 : index
    %27 = vector.load %arg11[%c0_27, %c1_28, %c0_29, %c0_30] : memref<2x2x36x8xf32, #tpu.memory_space<vmem>>, vector<1x1x36x8xf32>
    %28 = vector.shape_cast %27 : vector<1x1x36x8xf32> to vector<36x8xf32>
    %29 = vector.shape_cast %26 : vector<36x8xf32> to vector<1x1x36x8xf32>
    tpu.vector_store %arg11[%c0_27, %c1_28, %c0_29, %c0_30], %29 {strides = array<i32>} : memref<2x2x36x8xf32, #tpu.memory_space<vmem>>, vector<1x1x36x8xf32>,
    %c0_31 = arith.constant 0 : index
    %c1_32 = arith.constant 1 : index
    %c0_33 = arith.constant 0 : index
    %c0_34 = arith.constant 0 : index
    %c0_35 = arith.constant 0 : index
    %30 = vector.load %arg1[%c0_31, %c1_32, %c0_33, %c0_34, %c0_35] : memref<1x2x2x36x8xbf16, #tpu.memory_space<vmem>>, vector<1x1x1x36x8xbf16>
    %31 = vector.shape_cast %30 : vector<1x1x1x36x8xbf16> to vector<36x8xbf16>
    %cst_36 = arith.constant dense<0.000000e+00> : vector<36x8xf32>
    %32 = tpu.matmul %31, %0, %cst_36 {dimension_numbers = #tpu.dot_dimension_numbers<[1], [0], [0], [1], [0, 0, 1, 1], [], []>} : vector<36x8xbf16>, vector<8x8xbf16>, vector<36x8xf32> -> vector<36x8xf32>
    %33 = vector.broadcast %1 : vector<1x8xf32> to vector<36x8xf32>
    %34 = arith.addf %32, %33 : vector<36x8xf32>
    %cst_37 = arith.constant 0.000000e+00 : f32
    %35 = vector.broadcast %cst_37 : f32 to vector<36x8xf32>
    %36 = arith.maximumf %34, %35 : vector<36x8xf32>
    %c1_38 = arith.constant 1 : index
    %c0_39 = arith.constant 0 : index
    %c0_40 = arith.constant 0 : index
    %c0_41 = arith.constant 0 : index
    %37 = vector.load %arg8[%c1_38, %c0_39, %c0_40, %c0_41] : memref<2x2x36x1xf32, #tpu.memory_space<vmem>>, vector<1x1x36x1xf32>
    %38 = vector.shape_cast %37 : vector<1x1x36x1xf32> to vector<36x1xf32>
    %39 = vector.broadcast %38 : vector<36x1xf32> to vector<36x8xf32>
    %40 = arith.mulf %36, %39 : vector<36x8xf32>
    %c1_42 = arith.constant 1 : index
    %c0_43 = arith.constant 0 : index
    %c0_44 = arith.constant 0 : index
    %c0_45 = arith.constant 0 : index
    %41 = vector.load %arg11[%c1_42, %c0_43, %c0_44, %c0_45] : memref<2x2x36x8xf32, #tpu.memory_space<vmem>>, vector<1x1x36x8xf32>
    %42 = vector.shape_cast %41 : vector<1x1x36x8xf32> to vector<36x8xf32>
    %43 = vector.shape_cast %40 : vector<36x8xf32> to vector<1x1x36x8xf32>
    tpu.vector_store %arg11[%c1_42, %c0_43, %c0_44, %c0_45], %43 {strides = array<i32>} : memref<2x2x36x8xf32, #tpu.memory_space<vmem>>, vector<1x1x36x8xf32>,
    %c0_46 = arith.constant 0 : index
    %c1_47 = arith.constant 1 : index
    %c1_48 = arith.constant 1 : index
    %c0_49 = arith.constant 0 : index
    %c0_50 = arith.constant 0 : index
    %44 = vector.load %arg1[%c0_46, %c1_47, %c1_48, %c0_49, %c0_50] : memref<1x2x2x36x8xbf16, #tpu.memory_space<vmem>>, vector<1x1x1x36x8xbf16>
    %45 = vector.shape_cast %44 : vector<1x1x1x36x8xbf16> to vector<36x8xbf16>
    %cst_51 = arith.constant dense<0.000000e+00> : vector<36x8xf32>
    %46 = tpu.matmul %45, %0, %cst_51 {dimension_numbers = #tpu.dot_dimension_numbers<[1], [0], [0], [1], [0, 0, 1, 1], [], []>} : vector<36x8xbf16>, vector<8x8xbf16>, vector<36x8xf32> -> vector<36x8xf32>
    %47 = vector.broadcast %1 : vector<1x8xf32> to vector<36x8xf32>
    %48 = arith.addf %46, %47 : vector<36x8xf32>
    %cst_52 = arith.constant 0.000000e+00 : f32
    %49 = vector.broadcast %cst_52 : f32 to vector<36x8xf32>
    %50 = arith.maximumf %48, %49 : vector<36x8xf32>
    %c1_53 = arith.constant 1 : index
    %c1_54 = arith.constant 1 : index
    %c0_55 = arith.constant 0 : index
    %c0_56 = arith.constant 0 : index
    %51 = vector.load %arg8[%c1_53, %c1_54, %c0_55, %c0_56] : memref<2x2x36x1xf32, #tpu.memory_space<vmem>>, vector<1x1x36x1xf32>
    %52 = vector.shape_cast %51 : vector<1x1x36x1xf32> to vector<36x1xf32>
    %53 = vector.broadcast %52 : vector<36x1xf32> to vector<36x8xf32>
    %54 = arith.mulf %50, %53 : vector<36x8xf32>
    %c1_57 = arith.constant 1 : index
    %c1_58 = arith.constant 1 : index
    %c0_59 = arith.constant 0 : index
    %c0_60 = arith.constant 0 : index
    %55 = vector.load %arg11[%c1_57, %c1_58, %c0_59, %c0_60] : memref<2x2x36x8xf32, #tpu.memory_space<vmem>>, vector<1x1x36x8xf32>
    %56 = vector.shape_cast %55 : vector<1x1x36x8xf32> to vector<36x8xf32>
    %57 = vector.shape_cast %54 : vector<36x8xf32> to vector<1x1x36x8xf32>
    tpu.vector_store %arg11[%c1_57, %c1_58, %c0_59, %c0_60], %57 {strides = array<i32>} : memref<2x2x36x8xf32, #tpu.memory_space<vmem>>, vector<1x1x36x8xf32>,
    %cst_61 = arith.constant 0.000000e+00 : f32
    %58 = vector.broadcast %cst_61 : f32 to vector<22x8xf32>
    %cst_62 = arith.constant 0.000000e+00 : f32
    %59 = vector.broadcast %cst_62 : f32 to vector<22x8xf32>
    %c0_63 = arith.constant 0 : index
    %c0_64 = arith.constant 0 : index
    %c0_65 = arith.constant 0 : index
    %c0_66 = arith.constant 0 : index
    %c0_67 = arith.constant 0 : index
    %60 = vector.load %arg1[%c0_63, %c0_64, %c0_65, %c0_66, %c0_67] : memref<1x2x2x36x8xbf16, #tpu.memory_space<vmem>>, vector<1x1x1x22x8xbf16>
    %61 = vector.shape_cast %60 : vector<1x1x1x22x8xbf16> to vector<22x8xbf16>
    %c0_68 = arith.constant 0 : index
    %c0_69 = arith.constant 0 : index
    %c0_70 = arith.constant 0 : index
    %62 = vector.load %arg2[%c0_68, %c0_69, %c0_70] : memref<9x8x8xbf16, #tpu.memory_space<vmem>>, vector<1x8x8xbf16>
    %63 = vector.shape_cast %62 : vector<1x8x8xbf16> to vector<8x8xbf16>
    %cst_71 = arith.constant dense<0.000000e+00> : vector<22x8xf32>
    %64 = tpu.matmul %61, %63, %cst_71 {dimension_numbers = #tpu.dot_dimension_numbers<[1], [0], [0], [1], [0, 0, 1, 1], [], []>} : vector<22x8xbf16>, vector<8x8xbf16>, vector<22x8xf32> -> vector<22x8xf32>
    %65 = arith.addf %58, %64 : vector<22x8xf32>
    %c0_72 = arith.constant 0 : index
    %c0_73 = arith.constant 0 : index
    %c0_74 = arith.constant 0 : index
    %c0_75 = arith.constant 0 : index
    %66 = vector.load %arg11[%c0_72, %c0_73, %c0_74, %c0_75] : memref<2x2x36x8xf32, #tpu.memory_space<vmem>>, vector<1x1x22x8xf32>
    %67 = vector.shape_cast %66 : vector<1x1x22x8xf32> to vector<22x8xf32>
    %68 = arith.truncf %67 : vector<22x8xf32> to vector<22x8xbf16>
    %c0_76 = arith.constant 0 : index
    %c0_77 = arith.constant 0 : index
    %c0_78 = arith.constant 0 : index
    %69 = vector.load %arg6[%c0_76, %c0_77, %c0_78] : memref<9x8x8xbf16, #tpu.memory_space<vmem>>, vector<1x8x8xbf16>
    %70 = vector.shape_cast %69 : vector<1x8x8xbf16> to vector<8x8xbf16>
    %cst_79 = arith.constant dense<0.000000e+00> : vector<22x8xf32>
    %71 = tpu.matmul %68, %70, %cst_79 {dimension_numbers = #tpu.dot_dimension_numbers<[1], [0], [0], [1], [0, 0, 1, 1], [], []>} : vector<22x8xbf16>, vector<8x8xbf16>, vector<22x8xf32> -> vector<22x8xf32>
    %72 = arith.addf %59, %71 : vector<22x8xf32>
    %c0_80 = arith.constant 0 : index
    %c0_81 = arith.constant 0 : index
    %c1_82 = arith.constant 1 : index
    %c0_83 = arith.constant 0 : index
    %c0_84 = arith.constant 0 : index
    %73 = vector.load %arg1[%c0_80, %c0_81, %c1_82, %c0_83, %c0_84] : memref<1x2x2x36x8xbf16, #tpu.memory_space<vmem>>, vector<1x1x1x22x8xbf16>
    %74 = vector.shape_cast %73 : vector<1x1x1x22x8xbf16> to vector<22x8xbf16>
    %c1_85 = arith.constant 1 : index
    %c0_86 = arith.constant 0 : index
    %c0_87 = arith.constant 0 : index
    %75 = vector.load %arg2[%c1_85, %c0_86, %c0_87] : memref<9x8x8xbf16, #tpu.memory_space<vmem>>, vector<1x8x8xbf16>
    %76 = vector.shape_cast %75 : vector<1x8x8xbf16> to vector<8x8xbf16>
    %cst_88 = arith.constant dense<0.000000e+00> : vector<22x8xf32>
    %77 = tpu.matmul %74, %76, %cst_88 {dimension_numbers = #tpu.dot_dimension_numbers<[1], [0], [0], [1], [0, 0, 1, 1], [], []>} : vector<22x8xbf16>, vector<8x8xbf16>, vector<22x8xf32> -> vector<22x8xf32>
    %78 = arith.addf %65, %77 : vector<22x8xf32>
    %c0_89 = arith.constant 0 : index
    %c1_90 = arith.constant 1 : index
    %c0_91 = arith.constant 0 : index
    %c0_92 = arith.constant 0 : index
    %79 = vector.load %arg11[%c0_89, %c1_90, %c0_91, %c0_92] : memref<2x2x36x8xf32, #tpu.memory_space<vmem>>, vector<1x1x22x8xf32>
    %80 = vector.shape_cast %79 : vector<1x1x22x8xf32> to vector<22x8xf32>
    %81 = arith.truncf %80 : vector<22x8xf32> to vector<22x8xbf16>
    %c1_93 = arith.constant 1 : index
    %c0_94 = arith.constant 0 : index
    %c0_95 = arith.constant 0 : index
    %82 = vector.load %arg6[%c1_93, %c0_94, %c0_95] : memref<9x8x8xbf16, #tpu.memory_space<vmem>>, vector<1x8x8xbf16>
    %83 = vector.shape_cast %82 : vector<1x8x8xbf16> to vector<8x8xbf16>
    %cst_96 = arith.constant dense<0.000000e+00> : vector<22x8xf32>
    %84 = tpu.matmul %81, %83, %cst_96 {dimension_numbers = #tpu.dot_dimension_numbers<[1], [0], [0], [1], [0, 0, 1, 1], [], []>} : vector<22x8xbf16>, vector<8x8xbf16>, vector<22x8xf32> -> vector<22x8xf32>
    %85 = arith.addf %72, %84 : vector<22x8xf32>
    %c0_97 = arith.constant 0 : index
    %c0_98 = arith.constant 0 : index
    %c0_99 = arith.constant 0 : index
    %c1_100 = arith.constant 1 : index
    %c0_101 = arith.constant 0 : index
    %86 = vector.load %arg1[%c0_97, %c0_98, %c0_99, %c1_100, %c0_101] : memref<1x2x2x36x8xbf16, #tpu.memory_space<vmem>>, vector<1x1x1x22x8xbf16>
    %87 = vector.shape_cast %86 : vector<1x1x1x22x8xbf16> to vector<22x8xbf16>
    %c2 = arith.constant 2 : index
    %c0_102 = arith.constant 0 : index
    %c0_103 = arith.constant 0 : index
    %88 = vector.load %arg2[%c2, %c0_102, %c0_103] : memref<9x8x8xbf16, #tpu.memory_space<vmem>>, vector<1x8x8xbf16>
    %89 = vector.shape_cast %88 : vector<1x8x8xbf16> to vector<8x8xbf16>
    %cst_104 = arith.constant dense<0.000000e+00> : vector<22x8xf32>
    %90 = tpu.matmul %87, %89, %cst_104 {dimension_numbers = #tpu.dot_dimension_numbers<[1], [0], [0], [1], [0, 0, 1, 1], [], []>} : vector<22x8xbf16>, vector<8x8xbf16>, vector<22x8xf32> -> vector<22x8xf32>
    %91 = arith.addf %78, %90 : vector<22x8xf32>
    %c0_105 = arith.constant 0 : index
    %c0_106 = arith.constant 0 : index
    %c1_107 = arith.constant 1 : index
    %c0_108 = arith.constant 0 : index
    %92 = vector.load %arg11[%c0_105, %c0_106, %c1_107, %c0_108] : memref<2x2x36x8xf32, #tpu.memory_space<vmem>>, vector<1x1x22x8xf32>
    %93 = vector.shape_cast %92 : vector<1x1x22x8xf32> to vector<22x8xf32>
    %94 = arith.truncf %93 : vector<22x8xf32> to vector<22x8xbf16>
    %c2_109 = arith.constant 2 : index
    %c0_110 = arith.constant 0 : index
    %c0_111 = arith.constant 0 : index
    %95 = vector.load %arg6[%c2_109, %c0_110, %c0_111] : memref<9x8x8xbf16, #tpu.memory_space<vmem>>, vector<1x8x8xbf16>
    %96 = vector.shape_cast %95 : vector<1x8x8xbf16> to vector<8x8xbf16>
    %cst_112 = arith.constant dense<0.000000e+00> : vector<22x8xf32>
    %97 = tpu.matmul %94, %96, %cst_112 {dimension_numbers = #tpu.dot_dimension_numbers<[1], [0], [0], [1], [0, 0, 1, 1], [], []>} : vector<22x8xbf16>, vector<8x8xbf16>, vector<22x8xf32> -> vector<22x8xf32>
    %98 = arith.addf %85, %97 : vector<22x8xf32>
    %c0_113 = arith.constant 0 : index
    %c1_114 = arith.constant 1 : index
    %c0_115 = arith.constant 0 : index
    %c0_116 = arith.constant 0 : index
    %c0_117 = arith.constant 0 : index
    %99 = vector.load %arg1[%c0_113, %c1_114, %c0_115, %c0_116, %c0_117] : memref<1x2x2x36x8xbf16, #tpu.memory_space<vmem>>, vector<1x1x1x22x8xbf16>
    %100 = vector.shape_cast %99 : vector<1x1x1x22x8xbf16> to vector<22x8xbf16>
    %c3 = arith.constant 3 : index
    %c0_118 = arith.constant 0 : index
    %c0_119 = arith.constant 0 : index
    %101 = vector.load %arg2[%c3, %c0_118, %c0_119] : memref<9x8x8xbf16, #tpu.memory_space<vmem>>, vector<1x8x8xbf16>
    %102 = vector.shape_cast %101 : vector<1x8x8xbf16> to vector<8x8xbf16>
    %cst_120 = arith.constant dense<0.000000e+00> : vector<22x8xf32>
    %103 = tpu.matmul %100, %102, %cst_120 {dimension_numbers = #tpu.dot_dimension_numbers<[1], [0], [0], [1], [0, 0, 1, 1], [], []>} : vector<22x8xbf16>, vector<8x8xbf16>, vector<22x8xf32> -> vector<22x8xf32>
    %104 = arith.addf %91, %103 : vector<22x8xf32>
    %c1_121 = arith.constant 1 : index
    %c0_122 = arith.constant 0 : index
    %c0_123 = arith.constant 0 : index
    %c0_124 = arith.constant 0 : index
    %105 = vector.load %arg11[%c1_121, %c0_122, %c0_123, %c0_124] : memref<2x2x36x8xf32, #tpu.memory_space<vmem>>, vector<1x1x22x8xf32>
    %106 = vector.shape_cast %105 : vector<1x1x22x8xf32> to vector<22x8xf32>
    %107 = arith.truncf %106 : vector<22x8xf32> to vector<22x8xbf16>
    %c3_125 = arith.constant 3 : index
    %c0_126 = arith.constant 0 : index
    %c0_127 = arith.constant 0 : index
    %108 = vector.load %arg6[%c3_125, %c0_126, %c0_127] : memref<9x8x8xbf16, #tpu.memory_space<vmem>>, vector<1x8x8xbf16>
    %109 = vector.shape_cast %108 : vector<1x8x8xbf16> to vector<8x8xbf16>
    %cst_128 = arith.constant dense<0.000000e+00> : vector<22x8xf32>
    %110 = tpu.matmul %107, %109, %cst_128 {dimension_numbers = #tpu.dot_dimension_numbers<[1], [0], [0], [1], [0, 0, 1, 1], [], []>} : vector<22x8xbf16>, vector<8x8xbf16>, vector<22x8xf32> -> vector<22x8xf32>
    %111 = arith.addf %98, %110 : vector<22x8xf32>
    %c0_129 = arith.constant 0 : index
    %c1_130 = arith.constant 1 : index
    %c1_131 = arith.constant 1 : index
    %c0_132 = arith.constant 0 : index
    %c0_133 = arith.constant 0 : index
    %112 = vector.load %arg1[%c0_129, %c1_130, %c1_131, %c0_132, %c0_133] : memref<1x2x2x36x8xbf16, #tpu.memory_space<vmem>>, vector<1x1x1x22x8xbf16>
    %113 = vector.shape_cast %112 : vector<1x1x1x22x8xbf16> to vector<22x8xbf16>
    %c4 = arith.constant 4 : index
    %c0_134 = arith.constant 0 : index
    %c0_135 = arith.constant 0 : index
    %114 = vector.load %arg2[%c4, %c0_134, %c0_135] : memref<9x8x8xbf16, #tpu.memory_space<vmem>>, vector<1x8x8xbf16>
    %115 = vector.shape_cast %114 : vector<1x8x8xbf16> to vector<8x8xbf16>
    %cst_136 = arith.constant dense<0.000000e+00> : vector<22x8xf32>
    %116 = tpu.matmul %113, %115, %cst_136 {dimension_numbers = #tpu.dot_dimension_numbers<[1], [0], [0], [1], [0, 0, 1, 1], [], []>} : vector<22x8xbf16>, vector<8x8xbf16>, vector<22x8xf32> -> vector<22x8xf32>
    %117 = arith.addf %104, %116 : vector<22x8xf32>
    %c1_137 = arith.constant 1 : index
    %c1_138 = arith.constant 1 : index
    %c0_139 = arith.constant 0 : index
    %c0_140 = arith.constant 0 : index
    %118 = vector.load %arg11[%c1_137, %c1_138, %c0_139, %c0_140] : memref<2x2x36x8xf32, #tpu.memory_space<vmem>>, vector<1x1x22x8xf32>
    %119 = vector.shape_cast %118 : vector<1x1x22x8xf32> to vector<22x8xf32>
    %120 = arith.truncf %119 : vector<22x8xf32> to vector<22x8xbf16>
    %c4_141 = arith.constant 4 : index
    %c0_142 = arith.constant 0 : index
    %c0_143 = arith.constant 0 : index
    %121 = vector.load %arg6[%c4_141, %c0_142, %c0_143] : memref<9x8x8xbf16, #tpu.memory_space<vmem>>, vector<1x8x8xbf16>
    %122 = vector.shape_cast %121 : vector<1x8x8xbf16> to vector<8x8xbf16>
    %cst_144 = arith.constant dense<0.000000e+00> : vector<22x8xf32>
    %123 = tpu.matmul %120, %122, %cst_144 {dimension_numbers = #tpu.dot_dimension_numbers<[1], [0], [0], [1], [0, 0, 1, 1], [], []>} : vector<22x8xbf16>, vector<8x8xbf16>, vector<22x8xf32> -> vector<22x8xf32>
    %124 = arith.addf %111, %123 : vector<22x8xf32>
    %c0_145 = arith.constant 0 : index
    %c1_146 = arith.constant 1 : index
    %c0_147 = arith.constant 0 : index
    %c1_148 = arith.constant 1 : index
    %c0_149 = arith.constant 0 : index
    %125 = vector.load %arg1[%c0_145, %c1_146, %c0_147, %c1_148, %c0_149] : memref<1x2x2x36x8xbf16, #tpu.memory_space<vmem>>, vector<1x1x1x22x8xbf16>
    %126 = vector.shape_cast %125 : vector<1x1x1x22x8xbf16> to vector<22x8xbf16>
    %c5 = arith.constant 5 : index
    %c0_150 = arith.constant 0 : index
    %c0_151 = arith.constant 0 : index
    %127 = vector.load %arg2[%c5, %c0_150, %c0_151] : memref<9x8x8xbf16, #tpu.memory_space<vmem>>, vector<1x8x8xbf16>
    %128 = vector.shape_cast %127 : vector<1x8x8xbf16> to vector<8x8xbf16>
    %cst_152 = arith.constant dense<0.000000e+00> : vector<22x8xf32>
    %129 = tpu.matmul %126, %128, %cst_152 {dimension_numbers = #tpu.dot_dimension_numbers<[1], [0], [0], [1], [0, 0, 1, 1], [], []>} : vector<22x8xbf16>, vector<8x8xbf16>, vector<22x8xf32> -> vector<22x8xf32>
    %130 = arith.addf %117, %129 : vector<22x8xf32>
    %c1_153 = arith.constant 1 : index
    %c0_154 = arith.constant 0 : index
    %c1_155 = arith.constant 1 : index
    %c0_156 = arith.constant 0 : index
    %131 = vector.load %arg11[%c1_153, %c0_154, %c1_155, %c0_156] : memref<2x2x36x8xf32, #tpu.memory_space<vmem>>, vector<1x1x22x8xf32>
    %132 = vector.shape_cast %131 : vector<1x1x22x8xf32> to vector<22x8xf32>
    %133 = arith.truncf %132 : vector<22x8xf32> to vector<22x8xbf16>
    %c5_157 = arith.constant 5 : index
    %c0_158 = arith.constant 0 : index
    %c0_159 = arith.constant 0 : index
    %134 = vector.load %arg6[%c5_157, %c0_158, %c0_159] : memref<9x8x8xbf16, #tpu.memory_space<vmem>>, vector<1x8x8xbf16>
    %135 = vector.shape_cast %134 : vector<1x8x8xbf16> to vector<8x8xbf16>
    %cst_160 = arith.constant dense<0.000000e+00> : vector<22x8xf32>
    %136 = tpu.matmul %133, %135, %cst_160 {dimension_numbers = #tpu.dot_dimension_numbers<[1], [0], [0], [1], [0, 0, 1, 1], [], []>} : vector<22x8xbf16>, vector<8x8xbf16>, vector<22x8xf32> -> vector<22x8xf32>
    %137 = arith.addf %124, %136 : vector<22x8xf32>
    %c0_161 = arith.constant 0 : index
    %c0_162 = arith.constant 0 : index
    %c0_163 = arith.constant 0 : index
    %c6 = arith.constant 6 : index
    %c0_164 = arith.constant 0 : index
    %138 = vector.load %arg1[%c0_161, %c0_162, %c0_163, %c6, %c0_164] : memref<1x2x2x36x8xbf16, #tpu.memory_space<vmem>>, vector<1x1x1x22x8xbf16>
    %139 = vector.shape_cast %138 : vector<1x1x1x22x8xbf16> to vector<22x8xbf16>
    %c6_165 = arith.constant 6 : index
    %c0_166 = arith.constant 0 : index
    %c0_167 = arith.constant 0 : index
    %140 = vector.load %arg2[%c6_165, %c0_166, %c0_167] : memref<9x8x8xbf16, #tpu.memory_space<vmem>>, vector<1x8x8xbf16>
    %141 = vector.shape_cast %140 : vector<1x8x8xbf16> to vector<8x8xbf16>
    %cst_168 = arith.constant dense<0.000000e+00> : vector<22x8xf32>
    %142 = tpu.matmul %139, %141, %cst_168 {dimension_numbers = #tpu.dot_dimension_numbers<[1], [0], [0], [1], [0, 0, 1, 1], [], []>} : vector<22x8xbf16>, vector<8x8xbf16>, vector<22x8xf32> -> vector<22x8xf32>
    %143 = arith.addf %130, %142 : vector<22x8xf32>
    %c0_169 = arith.constant 0 : index
    %c0_170 = arith.constant 0 : index
    %c6_171 = arith.constant 6 : index
    %c0_172 = arith.constant 0 : index
    %144 = vector.load %arg11[%c0_169, %c0_170, %c6_171, %c0_172] : memref<2x2x36x8xf32, #tpu.memory_space<vmem>>, vector<1x1x22x8xf32>
    %145 = vector.shape_cast %144 : vector<1x1x22x8xf32> to vector<22x8xf32>
    %146 = arith.truncf %145 : vector<22x8xf32> to vector<22x8xbf16>
    %c6_173 = arith.constant 6 : index
    %c0_174 = arith.constant 0 : index
    %c0_175 = arith.constant 0 : index
    %147 = vector.load %arg6[%c6_173, %c0_174, %c0_175] : memref<9x8x8xbf16, #tpu.memory_space<vmem>>, vector<1x8x8xbf16>
    %148 = vector.shape_cast %147 : vector<1x8x8xbf16> to vector<8x8xbf16>
    %cst_176 = arith.constant dense<0.000000e+00> : vector<22x8xf32>
    %149 = tpu.matmul %146, %148, %cst_176 {dimension_numbers = #tpu.dot_dimension_numbers<[1], [0], [0], [1], [0, 0, 1, 1], [], []>} : vector<22x8xbf16>, vector<8x8xbf16>, vector<22x8xf32> -> vector<22x8xf32>
    %150 = arith.addf %137, %149 : vector<22x8xf32>
    %c0_177 = arith.constant 0 : index
    %c0_178 = arith.constant 0 : index
    %c1_179 = arith.constant 1 : index
    %c6_180 = arith.constant 6 : index
    %c0_181 = arith.constant 0 : index
    %151 = vector.load %arg1[%c0_177, %c0_178, %c1_179, %c6_180, %c0_181] : memref<1x2x2x36x8xbf16, #tpu.memory_space<vmem>>, vector<1x1x1x22x8xbf16>
    %152 = vector.shape_cast %151 : vector<1x1x1x22x8xbf16> to vector<22x8xbf16>
    %c7 = arith.constant 7 : index
    %c0_182 = arith.constant 0 : index
    %c0_183 = arith.constant 0 : index
    %153 = vector.load %arg2[%c7, %c0_182, %c0_183] : memref<9x8x8xbf16, #tpu.memory_space<vmem>>, vector<1x8x8xbf16>
    %154 = vector.shape_cast %153 : vector<1x8x8xbf16> to vector<8x8xbf16>
    %cst_184 = arith.constant dense<0.000000e+00> : vector<22x8xf32>
    %155 = tpu.matmul %152, %154, %cst_184 {dimension_numbers = #tpu.dot_dimension_numbers<[1], [0], [0], [1], [0, 0, 1, 1], [], []>} : vector<22x8xbf16>, vector<8x8xbf16>, vector<22x8xf32> -> vector<22x8xf32>
    %156 = arith.addf %143, %155 : vector<22x8xf32>
    %c0_185 = arith.constant 0 : index
    %c1_186 = arith.constant 1 : index
    %c6_187 = arith.constant 6 : index
    %c0_188 = arith.constant 0 : index
    %157 = vector.load %arg11[%c0_185, %c1_186, %c6_187, %c0_188] : memref<2x2x36x8xf32, #tpu.memory_space<vmem>>, vector<1x1x22x8xf32>
    %158 = vector.shape_cast %157 : vector<1x1x22x8xf32> to vector<22x8xf32>
    %159 = arith.truncf %158 : vector<22x8xf32> to vector<22x8xbf16>
    %c7_189 = arith.constant 7 : index
    %c0_190 = arith.constant 0 : index
    %c0_191 = arith.constant 0 : index
    %160 = vector.load %arg6[%c7_189, %c0_190, %c0_191] : memref<9x8x8xbf16, #tpu.memory_space<vmem>>, vector<1x8x8xbf16>
    %161 = vector.shape_cast %160 : vector<1x8x8xbf16> to vector<8x8xbf16>
    %cst_192 = arith.constant dense<0.000000e+00> : vector<22x8xf32>
    %162 = tpu.matmul %159, %161, %cst_192 {dimension_numbers = #tpu.dot_dimension_numbers<[1], [0], [0], [1], [0, 0, 1, 1], [], []>} : vector<22x8xbf16>, vector<8x8xbf16>, vector<22x8xf32> -> vector<22x8xf32>
    %163 = arith.addf %150, %162 : vector<22x8xf32>
    %c0_193 = arith.constant 0 : index
    %c0_194 = arith.constant 0 : index
    %c0_195 = arith.constant 0 : index
    %c7_196 = arith.constant 7 : index
    %c0_197 = arith.constant 0 : index
    %164 = vector.load %arg1[%c0_193, %c0_194, %c0_195, %c7_196, %c0_197] : memref<1x2x2x36x8xbf16, #tpu.memory_space<vmem>>, vector<1x1x1x22x8xbf16>
    %165 = vector.shape_cast %164 : vector<1x1x1x22x8xbf16> to vector<22x8xbf16>
    %c8 = arith.constant 8 : index
    %c0_198 = arith.constant 0 : index
    %c0_199 = arith.constant 0 : index
    %166 = vector.load %arg2[%c8, %c0_198, %c0_199] : memref<9x8x8xbf16, #tpu.memory_space<vmem>>, vector<1x8x8xbf16>
    %167 = vector.shape_cast %166 : vector<1x8x8xbf16> to vector<8x8xbf16>
    %cst_200 = arith.constant dense<0.000000e+00> : vector<22x8xf32>
    %168 = tpu.matmul %165, %167, %cst_200 {dimension_numbers = #tpu.dot_dimension_numbers<[1], [0], [0], [1], [0, 0, 1, 1], [], []>} : vector<22x8xbf16>, vector<8x8xbf16>, vector<22x8xf32> -> vector<22x8xf32>
    %169 = arith.addf %156, %168 : vector<22x8xf32>
    %c0_201 = arith.constant 0 : index
    %c0_202 = arith.constant 0 : index
    %c7_203 = arith.constant 7 : index
    %c0_204 = arith.constant 0 : index
    %170 = vector.load %arg11[%c0_201, %c0_202, %c7_203, %c0_204] : memref<2x2x36x8xf32, #tpu.memory_space<vmem>>, vector<1x1x22x8xf32>
    %171 = vector.shape_cast %170 : vector<1x1x22x8xf32> to vector<22x8xf32>
    %172 = arith.truncf %171 : vector<22x8xf32> to vector<22x8xbf16>
    %c8_205 = arith.constant 8 : index
    %c0_206 = arith.constant 0 : index
    %c0_207 = arith.constant 0 : index
    %173 = vector.load %arg6[%c8_205, %c0_206, %c0_207] : memref<9x8x8xbf16, #tpu.memory_space<vmem>>, vector<1x8x8xbf16>
    %174 = vector.shape_cast %173 : vector<1x8x8xbf16> to vector<8x8xbf16>
    %cst_208 = arith.constant dense<0.000000e+00> : vector<22x8xf32>
    %175 = tpu.matmul %172, %174, %cst_208 {dimension_numbers = #tpu.dot_dimension_numbers<[1], [0], [0], [1], [0, 0, 1, 1], [], []>} : vector<22x8xbf16>, vector<8x8xbf16>, vector<22x8xf32> -> vector<22x8xf32>
    %176 = arith.addf %163, %175 : vector<22x8xf32>
    %c0_209 = arith.constant 0 : index
    %c0_210 = arith.constant 0 : index
    %177 = vector.load %arg3[%c0_209, %c0_210] : memref<1x8xf32, #tpu.memory_space<vmem>>, vector<1x8xf32>
    %178 = vector.broadcast %177 : vector<1x8xf32> to vector<22x8xf32>
    %179 = arith.addf %169, %178 : vector<22x8xf32>
    %cst_211 = arith.constant 0.000000e+00 : f32
    %180 = vector.broadcast %cst_211 : f32 to vector<22x8xf32>
    %181 = arith.maximumf %179, %180 : vector<22x8xf32>
    %c0_212 = arith.constant 0 : index
    %c0_213 = arith.constant 0 : index
    %182 = vector.load %arg9[%c0_212, %c0_213] : memref<22x1xf32, #tpu.memory_space<vmem>>, vector<22x1xf32>
    %183 = vector.broadcast %182 : vector<22x1xf32> to vector<22x8xf32>
    %184 = arith.mulf %181, %183 : vector<22x8xf32>
    %c0_214 = arith.constant 0 : index
    %c0_215 = arith.constant 0 : index
    %185 = vector.load %arg7[%c0_214, %c0_215] : memref<1x8xf32, #tpu.memory_space<vmem>>, vector<1x8xf32>
    %186 = vector.broadcast %185 : vector<1x8xf32> to vector<22x8xf32>
    %187 = arith.addf %176, %186 : vector<22x8xf32>
    %cst_216 = arith.constant 0.000000e+00 : f32
    %188 = vector.broadcast %cst_216 : f32 to vector<22x8xf32>
    %189 = arith.maximumf %187, %188 : vector<22x8xf32>
    %c0_217 = arith.constant 0 : index
    %c0_218 = arith.constant 0 : index
    %190 = vector.load %arg9[%c0_217, %c0_218] : memref<22x1xf32, #tpu.memory_space<vmem>>, vector<22x1xf32>
    %191 = vector.broadcast %190 : vector<22x1xf32> to vector<22x8xf32>
    %192 = arith.mulf %189, %191 : vector<22x8xf32>
    %cst_219 = arith.constant 0.000000e+00 : bf16
    %193 = vector.broadcast %cst_219 : bf16 to vector<36x8xbf16>
    %c0_220 = arith.constant 0 : index
    %c0_221 = arith.constant 0 : index
    %c0_222 = arith.constant 0 : index
    %c0_223 = arith.constant 0 : index
    %194 = vector.load %arg10[%c0_220, %c0_221, %c0_222, %c0_223] : memref<1x2x36x8xbf16, #tpu.memory_space<vmem>>, vector<1x1x36x8xbf16>
    %195 = vector.shape_cast %194 : vector<1x1x36x8xbf16> to vector<36x8xbf16>
    %196 = vector.shape_cast %193 : vector<36x8xbf16> to vector<1x1x36x8xbf16>
    tpu.vector_store %arg10[%c0_220, %c0_221, %c0_222, %c0_223], %196 {strides = array<i32>} : memref<1x2x36x8xbf16, #tpu.memory_space<vmem>>, vector<1x1x36x8xbf16>,
    %cst_224 = arith.constant 0.000000e+00 : bf16
    %197 = vector.broadcast %cst_224 : bf16 to vector<36x8xbf16>
    %c0_225 = arith.constant 0 : index
    %c1_226 = arith.constant 1 : index
    %c0_227 = arith.constant 0 : index
    %c0_228 = arith.constant 0 : index
    %198 = vector.load %arg10[%c0_225, %c1_226, %c0_227, %c0_228] : memref<1x2x36x8xbf16, #tpu.memory_space<vmem>>, vector<1x1x36x8xbf16>
    %199 = vector.shape_cast %198 : vector<1x1x36x8xbf16> to vector<36x8xbf16>
    %200 = vector.shape_cast %197 : vector<36x8xbf16> to vector<1x1x36x8xbf16>
    tpu.vector_store %arg10[%c0_225, %c1_226, %c0_227, %c0_228], %200 {strides = array<i32>} : memref<1x2x36x8xbf16, #tpu.memory_space<vmem>>, vector<1x1x36x8xbf16>,
    %201 = arith.truncf %184 : vector<22x8xf32> to vector<22x8xbf16>
    %c0_229 = arith.constant 0 : index
    %c0_230 = arith.constant 0 : index
    %c7_231 = arith.constant 7 : index
    %c0_232 = arith.constant 0 : index
    %202 = vector.load %arg10[%c0_229, %c0_230, %c7_231, %c0_232] : memref<1x2x36x8xbf16, #tpu.memory_space<vmem>>, vector<1x1x22x8xbf16>
    %203 = vector.shape_cast %202 : vector<1x1x22x8xbf16> to vector<22x8xbf16>
    %204 = vector.shape_cast %201 : vector<22x8xbf16> to vector<1x1x22x8xbf16>
    tpu.vector_store %arg10[%c0_229, %c0_230, %c7_231, %c0_232], %204 {strides = array<i32>} : memref<1x2x36x8xbf16, #tpu.memory_space<vmem>>, vector<1x1x22x8xbf16>,
    %205 = arith.truncf %192 : vector<22x8xf32> to vector<22x8xbf16>
    %c0_233 = arith.constant 0 : index
    %c1_234 = arith.constant 1 : index
    %c7_235 = arith.constant 7 : index
    %c0_236 = arith.constant 0 : index
    %206 = vector.load %arg10[%c0_233, %c1_234, %c7_235, %c0_236] : memref<1x2x36x8xbf16, #tpu.memory_space<vmem>>, vector<1x1x22x8xbf16>
    %207 = vector.shape_cast %206 : vector<1x1x22x8xbf16> to vector<22x8xbf16>
    %208 = vector.shape_cast %205 : vector<22x8xbf16> to vector<1x1x22x8xbf16>
    tpu.vector_store %arg10[%c0_233, %c1_234, %c7_235, %c0_236], %208 {strides = array<i32>} : memref<1x2x36x8xbf16, #tpu.memory_space<vmem>>, vector<1x1x22x8xbf16>,
    return
  }
  func.func @transform_0(%arg0: i32) -> (i32, i32, i32, i32, i32) {
    %c0_i32 = arith.constant 0 : i32
    %c0_i32_0 = arith.constant 0 : i32
    %c0_i32_1 = arith.constant 0 : i32
    %c0_i32_2 = arith.constant 0 : i32
    %c0_i32_3 = arith.constant 0 : i32
    return %arg0, %c0_i32, %c0_i32_0, %c0_i32_1, %c0_i32_2 : i32, i32, i32, i32, i32
  }
  func.func @transform_1(%arg0: i32) -> (i32, i32, i32) {
    %c0_i32 = arith.constant 0 : i32
    %c0_i32_0 = arith.constant 0 : i32
    %c0_i32_1 = arith.constant 0 : i32
    %c0_i32_2 = arith.constant 0 : i32
    return %c0_i32, %c0_i32_0, %c0_i32_1 : i32, i32, i32
  }
  func.func @transform_2(%arg0: i32) -> (i32, i32) {
    %c0_i32 = arith.constant 0 : i32
    %c0_i32_0 = arith.constant 0 : i32
    %c0_i32_1 = arith.constant 0 : i32
    return %c0_i32, %c0_i32_0 : i32, i32
  }
  func.func @transform_3(%arg0: i32) -> (i32, i32) {
    %c0_i32 = arith.constant 0 : i32
    %c0_i32_0 = arith.constant 0 : i32
    %c0_i32_1 = arith.constant 0 : i32
    return %c0_i32, %c0_i32_0 : i32, i32
  }
  func.func @transform_4(%arg0: i32) -> (i32, i32) {
    %c0_i32 = arith.constant 0 : i32
    %c0_i32_0 = arith.constant 0 : i32
    %c0_i32_1 = arith.constant 0 : i32
    return %c0_i32, %c0_i32_0 : i32, i32
  }
  func.func @transform_5(%arg0: i32) -> (i32, i32, i32) {
    %c0_i32 = arith.constant 0 : i32
    %c0_i32_0 = arith.constant 0 : i32
    %c0_i32_1 = arith.constant 0 : i32
    %c0_i32_2 = arith.constant 0 : i32
    return %c0_i32, %c0_i32_0, %c0_i32_1 : i32, i32, i32
  }
  func.func @transform_6(%arg0: i32) -> (i32, i32) {
    %c0_i32 = arith.constant 0 : i32
    %c0_i32_0 = arith.constant 0 : i32
    %c0_i32_1 = arith.constant 0 : i32
    return %c0_i32, %c0_i32_0 : i32, i32
  }
  func.func @transform_7(%arg0: i32) -> (i32, i32, i32, i32) {
    %c0_i32 = arith.constant 0 : i32
    %c0_i32_0 = arith.constant 0 : i32
    %c0_i32_1 = arith.constant 0 : i32
    %c0_i32_2 = arith.constant 0 : i32
    %c0_i32_3 = arith.constant 0 : i32
    return %c0_i32, %c0_i32_0, %c0_i32_1, %c0_i32_2 : i32, i32, i32, i32
  }
  func.func @transform_8(%arg0: i32) -> (i32, i32) {
    %c0_i32 = arith.constant 0 : i32
    %c0_i32_0 = arith.constant 0 : i32
    %c0_i32_1 = arith.constant 0 : i32
    return %c0_i32, %c0_i32_0 : i32, i32
  }
  func.func @transform_9(%arg0: i32) -> (i32, i32, i32, i32) {
    %c0_i32 = arith.constant 0 : i32
    %c0_i32_0 = arith.constant 0 : i32
    %c0_i32_1 = arith.constant 0 : i32
    %c0_i32_2 = arith.constant 0 : i32
    return %arg0, %c0_i32, %c0_i32_0, %c0_i32_1 : i32, i32, i32, i32
  }
}

module attributes {stable_mosaic.version = 11 : i64} {
  func.func @_block_s1_kernel(%arg0: i32, %arg1: memref<1x36x16xbf16, #tpu.memory_space<vmem>>, %arg2: memref<8x8xbf16, #tpu.memory_space<vmem>>, %arg3: memref<1x8xf32, #tpu.memory_space<vmem>>, %arg4: memref<9x8x8xbf16, #tpu.memory_space<vmem>>, %arg5: memref<1x8xf32, #tpu.memory_space<vmem>>, %arg6: memref<36x1xf32, #tpu.memory_space<vmem>>, %arg7: memref<22x1xf32, #tpu.memory_space<vmem>>, %arg8: memref<1x2x36x8xbf16, #tpu.memory_space<vmem>>, %arg9: memref<36x8xf32, #tpu.memory_space<vmem>>) attributes {dimension_semantics = [#tpu.dimension_semantics<parallel>], iteration_bounds = array<i64: 2>, scalar_prefetch = 0 : i64, scratch_operands = 1 : i64, tpu.core_type = #tpu.core_type<tc>, window_params = [{transform_indices = @transform_0, window_bounds = array<i64: 1, 36, 16>}, {pipeline_mode = #tpu.pipeline_mode<synchronous>, transform_indices = @transform_1, window_bounds = array<i64: 8, 8>}, {pipeline_mode = #tpu.pipeline_mode<synchronous>, transform_indices = @transform_2, window_bounds = array<i64: 1, 8>}, {pipeline_mode = #tpu.pipeline_mode<synchronous>, transform_indices = @transform_3, window_bounds = array<i64: 9, 8, 8>}, {pipeline_mode = #tpu.pipeline_mode<synchronous>, transform_indices = @transform_4, window_bounds = array<i64: 1, 8>}, {pipeline_mode = #tpu.pipeline_mode<synchronous>, transform_indices = @transform_5, window_bounds = array<i64: 36, 1>}, {pipeline_mode = #tpu.pipeline_mode<synchronous>, transform_indices = @transform_6, window_bounds = array<i64: 22, 1>}, {transform_indices = @transform_7, window_bounds = array<i64: 1, 2, 36, 8>}]} {
    %c0 = arith.constant 0 : index
    %c0_0 = arith.constant 0 : index
    %c8 = arith.constant 8 : index
    %0 = vector.load %arg1[%c0, %c0_0, %c8] : memref<1x36x16xbf16, #tpu.memory_space<vmem>>, vector<1x36x8xbf16>
    %1 = vector.shape_cast %0 : vector<1x36x8xbf16> to vector<36x8xbf16>
    %c0_1 = arith.constant 0 : index
    %c0_2 = arith.constant 0 : index
    %2 = vector.load %arg2[%c0_1, %c0_2] : memref<8x8xbf16, #tpu.memory_space<vmem>>, vector<8x8xbf16>
    %cst = arith.constant dense<0.000000e+00> : vector<36x8xf32>
    %3 = tpu.matmul %1, %2, %cst {dimension_numbers = #tpu.dot_dimension_numbers<[1], [0], [0], [1], [0, 0, 1, 1], [], []>} : vector<36x8xbf16>, vector<8x8xbf16>, vector<36x8xf32> -> vector<36x8xf32>
    %c0_3 = arith.constant 0 : index
    %c0_4 = arith.constant 0 : index
    %4 = vector.load %arg3[%c0_3, %c0_4] : memref<1x8xf32, #tpu.memory_space<vmem>>, vector<1x8xf32>
    %5 = vector.broadcast %4 : vector<1x8xf32> to vector<36x8xf32>
    %6 = arith.addf %3, %5 : vector<36x8xf32>
    %cst_5 = arith.constant 0.000000e+00 : f32
    %7 = vector.broadcast %cst_5 : f32 to vector<36x8xf32>
    %8 = arith.maximumf %6, %7 : vector<36x8xf32>
    %c0_6 = arith.constant 0 : index
    %c0_7 = arith.constant 0 : index
    %9 = vector.load %arg6[%c0_6, %c0_7] : memref<36x1xf32, #tpu.memory_space<vmem>>, vector<36x1xf32>
    %10 = vector.broadcast %9 : vector<36x1xf32> to vector<36x8xf32>
    %11 = arith.mulf %8, %10 : vector<36x8xf32>
    %c0_8 = arith.constant 0 : index
    %c0_9 = arith.constant 0 : index
    %12 = vector.load %arg9[%c0_8, %c0_9] : memref<36x8xf32, #tpu.memory_space<vmem>>, vector<36x8xf32>
    tpu.vector_store %arg9[%c0_8, %c0_9], %11 {strides = array<i32>} : memref<36x8xf32, #tpu.memory_space<vmem>>, vector<36x8xf32>,
    %cst_10 = arith.constant 0.000000e+00 : f32
    %13 = vector.broadcast %cst_10 : f32 to vector<22x8xf32>
    %c0_11 = arith.constant 0 : index
    %c0_12 = arith.constant 0 : index
    %14 = vector.load %arg9[%c0_11, %c0_12] : memref<36x8xf32, #tpu.memory_space<vmem>>, vector<22x8xf32>
    %15 = arith.truncf %14 : vector<22x8xf32> to vector<22x8xbf16>
    %c0_13 = arith.constant 0 : index
    %c0_14 = arith.constant 0 : index
    %c0_15 = arith.constant 0 : index
    %16 = vector.load %arg4[%c0_13, %c0_14, %c0_15] : memref<9x8x8xbf16, #tpu.memory_space<vmem>>, vector<1x8x8xbf16>
    %17 = vector.shape_cast %16 : vector<1x8x8xbf16> to vector<8x8xbf16>
    %cst_16 = arith.constant dense<0.000000e+00> : vector<22x8xf32>
    %18 = tpu.matmul %15, %17, %cst_16 {dimension_numbers = #tpu.dot_dimension_numbers<[1], [0], [0], [1], [0, 0, 1, 1], [], []>} : vector<22x8xbf16>, vector<8x8xbf16>, vector<22x8xf32> -> vector<22x8xf32>
    %19 = arith.addf %13, %18 : vector<22x8xf32>
    %c1 = arith.constant 1 : index
    %c0_17 = arith.constant 0 : index
    %20 = vector.load %arg9[%c1, %c0_17] : memref<36x8xf32, #tpu.memory_space<vmem>>, vector<22x8xf32>
    %21 = arith.truncf %20 : vector<22x8xf32> to vector<22x8xbf16>
    %c1_18 = arith.constant 1 : index
    %c0_19 = arith.constant 0 : index
    %c0_20 = arith.constant 0 : index
    %22 = vector.load %arg4[%c1_18, %c0_19, %c0_20] : memref<9x8x8xbf16, #tpu.memory_space<vmem>>, vector<1x8x8xbf16>
    %23 = vector.shape_cast %22 : vector<1x8x8xbf16> to vector<8x8xbf16>
    %cst_21 = arith.constant dense<0.000000e+00> : vector<22x8xf32>
    %24 = tpu.matmul %21, %23, %cst_21 {dimension_numbers = #tpu.dot_dimension_numbers<[1], [0], [0], [1], [0, 0, 1, 1], [], []>} : vector<22x8xbf16>, vector<8x8xbf16>, vector<22x8xf32> -> vector<22x8xf32>
    %25 = arith.addf %19, %24 : vector<22x8xf32>
    %c2 = arith.constant 2 : index
    %c0_22 = arith.constant 0 : index
    %26 = vector.load %arg9[%c2, %c0_22] : memref<36x8xf32, #tpu.memory_space<vmem>>, vector<22x8xf32>
    %27 = arith.truncf %26 : vector<22x8xf32> to vector<22x8xbf16>
    %c2_23 = arith.constant 2 : index
    %c0_24 = arith.constant 0 : index
    %c0_25 = arith.constant 0 : index
    %28 = vector.load %arg4[%c2_23, %c0_24, %c0_25] : memref<9x8x8xbf16, #tpu.memory_space<vmem>>, vector<1x8x8xbf16>
    %29 = vector.shape_cast %28 : vector<1x8x8xbf16> to vector<8x8xbf16>
    %cst_26 = arith.constant dense<0.000000e+00> : vector<22x8xf32>
    %30 = tpu.matmul %27, %29, %cst_26 {dimension_numbers = #tpu.dot_dimension_numbers<[1], [0], [0], [1], [0, 0, 1, 1], [], []>} : vector<22x8xbf16>, vector<8x8xbf16>, vector<22x8xf32> -> vector<22x8xf32>
    %31 = arith.addf %25, %30 : vector<22x8xf32>
    %c6 = arith.constant 6 : index
    %c0_27 = arith.constant 0 : index
    %32 = vector.load %arg9[%c6, %c0_27] : memref<36x8xf32, #tpu.memory_space<vmem>>, vector<22x8xf32>
    %33 = arith.truncf %32 : vector<22x8xf32> to vector<22x8xbf16>
    %c3 = arith.constant 3 : index
    %c0_28 = arith.constant 0 : index
    %c0_29 = arith.constant 0 : index
    %34 = vector.load %arg4[%c3, %c0_28, %c0_29] : memref<9x8x8xbf16, #tpu.memory_space<vmem>>, vector<1x8x8xbf16>
    %35 = vector.shape_cast %34 : vector<1x8x8xbf16> to vector<8x8xbf16>
    %cst_30 = arith.constant dense<0.000000e+00> : vector<22x8xf32>
    %36 = tpu.matmul %33, %35, %cst_30 {dimension_numbers = #tpu.dot_dimension_numbers<[1], [0], [0], [1], [0, 0, 1, 1], [], []>} : vector<22x8xbf16>, vector<8x8xbf16>, vector<22x8xf32> -> vector<22x8xf32>
    %37 = arith.addf %31, %36 : vector<22x8xf32>
    %c7 = arith.constant 7 : index
    %c0_31 = arith.constant 0 : index
    %38 = vector.load %arg9[%c7, %c0_31] : memref<36x8xf32, #tpu.memory_space<vmem>>, vector<22x8xf32>
    %39 = arith.truncf %38 : vector<22x8xf32> to vector<22x8xbf16>
    %c4 = arith.constant 4 : index
    %c0_32 = arith.constant 0 : index
    %c0_33 = arith.constant 0 : index
    %40 = vector.load %arg4[%c4, %c0_32, %c0_33] : memref<9x8x8xbf16, #tpu.memory_space<vmem>>, vector<1x8x8xbf16>
    %41 = vector.shape_cast %40 : vector<1x8x8xbf16> to vector<8x8xbf16>
    %cst_34 = arith.constant dense<0.000000e+00> : vector<22x8xf32>
    %42 = tpu.matmul %39, %41, %cst_34 {dimension_numbers = #tpu.dot_dimension_numbers<[1], [0], [0], [1], [0, 0, 1, 1], [], []>} : vector<22x8xbf16>, vector<8x8xbf16>, vector<22x8xf32> -> vector<22x8xf32>
    %43 = arith.addf %37, %42 : vector<22x8xf32>
    %c8_35 = arith.constant 8 : index
    %c0_36 = arith.constant 0 : index
    %44 = vector.load %arg9[%c8_35, %c0_36] : memref<36x8xf32, #tpu.memory_space<vmem>>, vector<22x8xf32>
    %45 = arith.truncf %44 : vector<22x8xf32> to vector<22x8xbf16>
    %c5 = arith.constant 5 : index
    %c0_37 = arith.constant 0 : index
    %c0_38 = arith.constant 0 : index
    %46 = vector.load %arg4[%c5, %c0_37, %c0_38] : memref<9x8x8xbf16, #tpu.memory_space<vmem>>, vector<1x8x8xbf16>
    %47 = vector.shape_cast %46 : vector<1x8x8xbf16> to vector<8x8xbf16>
    %cst_39 = arith.constant dense<0.000000e+00> : vector<22x8xf32>
    %48 = tpu.matmul %45, %47, %cst_39 {dimension_numbers = #tpu.dot_dimension_numbers<[1], [0], [0], [1], [0, 0, 1, 1], [], []>} : vector<22x8xbf16>, vector<8x8xbf16>, vector<22x8xf32> -> vector<22x8xf32>
    %49 = arith.addf %43, %48 : vector<22x8xf32>
    %c12 = arith.constant 12 : index
    %c0_40 = arith.constant 0 : index
    %50 = vector.load %arg9[%c12, %c0_40] : memref<36x8xf32, #tpu.memory_space<vmem>>, vector<22x8xf32>
    %51 = arith.truncf %50 : vector<22x8xf32> to vector<22x8xbf16>
    %c6_41 = arith.constant 6 : index
    %c0_42 = arith.constant 0 : index
    %c0_43 = arith.constant 0 : index
    %52 = vector.load %arg4[%c6_41, %c0_42, %c0_43] : memref<9x8x8xbf16, #tpu.memory_space<vmem>>, vector<1x8x8xbf16>
    %53 = vector.shape_cast %52 : vector<1x8x8xbf16> to vector<8x8xbf16>
    %cst_44 = arith.constant dense<0.000000e+00> : vector<22x8xf32>
    %54 = tpu.matmul %51, %53, %cst_44 {dimension_numbers = #tpu.dot_dimension_numbers<[1], [0], [0], [1], [0, 0, 1, 1], [], []>} : vector<22x8xbf16>, vector<8x8xbf16>, vector<22x8xf32> -> vector<22x8xf32>
    %55 = arith.addf %49, %54 : vector<22x8xf32>
    %c13 = arith.constant 13 : index
    %c0_45 = arith.constant 0 : index
    %56 = vector.load %arg9[%c13, %c0_45] : memref<36x8xf32, #tpu.memory_space<vmem>>, vector<22x8xf32>
    %57 = arith.truncf %56 : vector<22x8xf32> to vector<22x8xbf16>
    %c7_46 = arith.constant 7 : index
    %c0_47 = arith.constant 0 : index
    %c0_48 = arith.constant 0 : index
    %58 = vector.load %arg4[%c7_46, %c0_47, %c0_48] : memref<9x8x8xbf16, #tpu.memory_space<vmem>>, vector<1x8x8xbf16>
    %59 = vector.shape_cast %58 : vector<1x8x8xbf16> to vector<8x8xbf16>
    %cst_49 = arith.constant dense<0.000000e+00> : vector<22x8xf32>
    %60 = tpu.matmul %57, %59, %cst_49 {dimension_numbers = #tpu.dot_dimension_numbers<[1], [0], [0], [1], [0, 0, 1, 1], [], []>} : vector<22x8xbf16>, vector<8x8xbf16>, vector<22x8xf32> -> vector<22x8xf32>
    %61 = arith.addf %55, %60 : vector<22x8xf32>
    %c14 = arith.constant 14 : index
    %c0_50 = arith.constant 0 : index
    %62 = vector.load %arg9[%c14, %c0_50] : memref<36x8xf32, #tpu.memory_space<vmem>>, vector<22x8xf32>
    %63 = arith.truncf %62 : vector<22x8xf32> to vector<22x8xbf16>
    %c8_51 = arith.constant 8 : index
    %c0_52 = arith.constant 0 : index
    %c0_53 = arith.constant 0 : index
    %64 = vector.load %arg4[%c8_51, %c0_52, %c0_53] : memref<9x8x8xbf16, #tpu.memory_space<vmem>>, vector<1x8x8xbf16>
    %65 = vector.shape_cast %64 : vector<1x8x8xbf16> to vector<8x8xbf16>
    %cst_54 = arith.constant dense<0.000000e+00> : vector<22x8xf32>
    %66 = tpu.matmul %63, %65, %cst_54 {dimension_numbers = #tpu.dot_dimension_numbers<[1], [0], [0], [1], [0, 0, 1, 1], [], []>} : vector<22x8xbf16>, vector<8x8xbf16>, vector<22x8xf32> -> vector<22x8xf32>
    %67 = arith.addf %61, %66 : vector<22x8xf32>
    %c0_55 = arith.constant 0 : index
    %c0_56 = arith.constant 0 : index
    %68 = vector.load %arg5[%c0_55, %c0_56] : memref<1x8xf32, #tpu.memory_space<vmem>>, vector<1x8xf32>
    %69 = vector.broadcast %68 : vector<1x8xf32> to vector<22x8xf32>
    %70 = arith.addf %67, %69 : vector<22x8xf32>
    %cst_57 = arith.constant 0.000000e+00 : f32
    %71 = vector.broadcast %cst_57 : f32 to vector<22x8xf32>
    %72 = arith.maximumf %70, %71 : vector<22x8xf32>
    %c0_58 = arith.constant 0 : index
    %c0_59 = arith.constant 0 : index
    %73 = vector.load %arg7[%c0_58, %c0_59] : memref<22x1xf32, #tpu.memory_space<vmem>>, vector<22x1xf32>
    %74 = vector.broadcast %73 : vector<22x1xf32> to vector<22x8xf32>
    %75 = arith.mulf %72, %74 : vector<22x8xf32>
    %c0_60 = arith.constant 0 : index
    %c0_61 = arith.constant 0 : index
    %c0_62 = arith.constant 0 : index
    %76 = vector.load %arg1[%c0_60, %c0_61, %c0_62] : memref<1x36x16xbf16, #tpu.memory_space<vmem>>, vector<1x36x8xbf16>
    %77 = vector.shape_cast %76 : vector<1x36x8xbf16> to vector<36x8xbf16>
    %c0_63 = arith.constant 0 : index
    %c0_64 = arith.constant 0 : index
    %c0_65 = arith.constant 0 : index
    %c0_66 = arith.constant 0 : index
    %78 = vector.load %arg8[%c0_63, %c0_64, %c0_65, %c0_66] : memref<1x2x36x8xbf16, #tpu.memory_space<vmem>>, vector<1x1x36x8xbf16>
    %79 = vector.shape_cast %78 : vector<1x1x36x8xbf16> to vector<36x8xbf16>
    %80 = vector.shape_cast %77 : vector<36x8xbf16> to vector<1x1x36x8xbf16>
    tpu.vector_store %arg8[%c0_63, %c0_64, %c0_65, %c0_66], %80 {strides = array<i32>} : memref<1x2x36x8xbf16, #tpu.memory_space<vmem>>, vector<1x1x36x8xbf16>,
    %cst_67 = arith.constant 0.000000e+00 : bf16
    %81 = vector.broadcast %cst_67 : bf16 to vector<36x8xbf16>
    %c0_68 = arith.constant 0 : index
    %c1_69 = arith.constant 1 : index
    %c0_70 = arith.constant 0 : index
    %c0_71 = arith.constant 0 : index
    %82 = vector.load %arg8[%c0_68, %c1_69, %c0_70, %c0_71] : memref<1x2x36x8xbf16, #tpu.memory_space<vmem>>, vector<1x1x36x8xbf16>
    %83 = vector.shape_cast %82 : vector<1x1x36x8xbf16> to vector<36x8xbf16>
    %84 = vector.shape_cast %81 : vector<36x8xbf16> to vector<1x1x36x8xbf16>
    tpu.vector_store %arg8[%c0_68, %c1_69, %c0_70, %c0_71], %84 {strides = array<i32>} : memref<1x2x36x8xbf16, #tpu.memory_space<vmem>>, vector<1x1x36x8xbf16>,
    %85 = arith.truncf %75 : vector<22x8xf32> to vector<22x8xbf16>
    %c0_72 = arith.constant 0 : index
    %c1_73 = arith.constant 1 : index
    %c7_74 = arith.constant 7 : index
    %c0_75 = arith.constant 0 : index
    %86 = vector.load %arg8[%c0_72, %c1_73, %c7_74, %c0_75] : memref<1x2x36x8xbf16, #tpu.memory_space<vmem>>, vector<1x1x22x8xbf16>
    %87 = vector.shape_cast %86 : vector<1x1x22x8xbf16> to vector<22x8xbf16>
    %88 = vector.shape_cast %85 : vector<22x8xbf16> to vector<1x1x22x8xbf16>
    tpu.vector_store %arg8[%c0_72, %c1_73, %c7_74, %c0_75], %88 {strides = array<i32>} : memref<1x2x36x8xbf16, #tpu.memory_space<vmem>>, vector<1x1x22x8xbf16>,
    return
  }
  func.func @transform_0(%arg0: i32) -> (i32, i32, i32) {
    %c0_i32 = arith.constant 0 : i32
    %c0_i32_0 = arith.constant 0 : i32
    %c0_i32_1 = arith.constant 0 : i32
    return %arg0, %c0_i32, %c0_i32_0 : i32, i32, i32
  }
  func.func @transform_1(%arg0: i32) -> (i32, i32) {
    %c0_i32 = arith.constant 0 : i32
    %c0_i32_0 = arith.constant 0 : i32
    %c0_i32_1 = arith.constant 0 : i32
    return %c0_i32, %c0_i32_0 : i32, i32
  }
  func.func @transform_2(%arg0: i32) -> (i32, i32) {
    %c0_i32 = arith.constant 0 : i32
    %c0_i32_0 = arith.constant 0 : i32
    %c0_i32_1 = arith.constant 0 : i32
    return %c0_i32, %c0_i32_0 : i32, i32
  }
  func.func @transform_3(%arg0: i32) -> (i32, i32, i32) {
    %c0_i32 = arith.constant 0 : i32
    %c0_i32_0 = arith.constant 0 : i32
    %c0_i32_1 = arith.constant 0 : i32
    %c0_i32_2 = arith.constant 0 : i32
    return %c0_i32, %c0_i32_0, %c0_i32_1 : i32, i32, i32
  }
  func.func @transform_4(%arg0: i32) -> (i32, i32) {
    %c0_i32 = arith.constant 0 : i32
    %c0_i32_0 = arith.constant 0 : i32
    %c0_i32_1 = arith.constant 0 : i32
    return %c0_i32, %c0_i32_0 : i32, i32
  }
  func.func @transform_5(%arg0: i32) -> (i32, i32) {
    %c0_i32 = arith.constant 0 : i32
    %c0_i32_0 = arith.constant 0 : i32
    %c0_i32_1 = arith.constant 0 : i32
    return %c0_i32, %c0_i32_0 : i32, i32
  }
  func.func @transform_6(%arg0: i32) -> (i32, i32) {
    %c0_i32 = arith.constant 0 : i32
    %c0_i32_0 = arith.constant 0 : i32
    %c0_i32_1 = arith.constant 0 : i32
    return %c0_i32, %c0_i32_0 : i32, i32
  }
  func.func @transform_7(%arg0: i32) -> (i32, i32, i32, i32) {
    %c0_i32 = arith.constant 0 : i32
    %c0_i32_0 = arith.constant 0 : i32
    %c0_i32_1 = arith.constant 0 : i32
    %c0_i32_2 = arith.constant 0 : i32
    return %arg0, %c0_i32, %c0_i32_0, %c0_i32_1 : i32, i32, i32, i32
  }
}

module attributes {stable_mosaic.version = 11 : i64} {
  func.func @_block_s2_kernel(%arg0: i32, %arg1: memref<1x2x2x16x16xbf16, #tpu.memory_space<vmem>>, %arg2: memref<9x16x16xbf16, #tpu.memory_space<vmem>>, %arg3: memref<1x16xf32, #tpu.memory_space<vmem>>, %arg4: memref<16x16xbf16, #tpu.memory_space<vmem>>, %arg5: memref<1x16xf32, #tpu.memory_space<vmem>>, %arg6: memref<9x16x16xbf16, #tpu.memory_space<vmem>>, %arg7: memref<1x16xf32, #tpu.memory_space<vmem>>, %arg8: memref<2x2x16x1xf32, #tpu.memory_space<vmem>>, %arg9: memref<6x1xf32, #tpu.memory_space<vmem>>, %arg10: memref<1x2x16x16xbf16, #tpu.memory_space<vmem>>, %arg11: memref<2x2x16x16xf32, #tpu.memory_space<vmem>>) attributes {dimension_semantics = [#tpu.dimension_semantics<parallel>], iteration_bounds = array<i64: 2>, scalar_prefetch = 0 : i64, scratch_operands = 1 : i64, tpu.core_type = #tpu.core_type<tc>, window_params = [{transform_indices = @transform_0, window_bounds = array<i64: 1, 2, 2, 16, 16>}, {pipeline_mode = #tpu.pipeline_mode<synchronous>, transform_indices = @transform_1, window_bounds = array<i64: 9, 16, 16>}, {pipeline_mode = #tpu.pipeline_mode<synchronous>, transform_indices = @transform_2, window_bounds = array<i64: 1, 16>}, {pipeline_mode = #tpu.pipeline_mode<synchronous>, transform_indices = @transform_3, window_bounds = array<i64: 16, 16>}, {pipeline_mode = #tpu.pipeline_mode<synchronous>, transform_indices = @transform_4, window_bounds = array<i64: 1, 16>}, {pipeline_mode = #tpu.pipeline_mode<synchronous>, transform_indices = @transform_5, window_bounds = array<i64: 9, 16, 16>}, {pipeline_mode = #tpu.pipeline_mode<synchronous>, transform_indices = @transform_6, window_bounds = array<i64: 1, 16>}, {pipeline_mode = #tpu.pipeline_mode<synchronous>, transform_indices = @transform_7, window_bounds = array<i64: 2, 2, 16, 1>}, {pipeline_mode = #tpu.pipeline_mode<synchronous>, transform_indices = @transform_8, window_bounds = array<i64: 6, 1>}, {transform_indices = @transform_9, window_bounds = array<i64: 1, 2, 16, 16>}]} {
    %c0 = arith.constant 0 : index
    %c0_0 = arith.constant 0 : index
    %0 = vector.load %arg4[%c0, %c0_0] : memref<16x16xbf16, #tpu.memory_space<vmem>>, vector<16x16xbf16>
    %c0_1 = arith.constant 0 : index
    %c0_2 = arith.constant 0 : index
    %1 = vector.load %arg5[%c0_1, %c0_2] : memref<1x16xf32, #tpu.memory_space<vmem>>, vector<1x16xf32>
    %c0_3 = arith.constant 0 : index
    %c0_4 = arith.constant 0 : index
    %c0_5 = arith.constant 0 : index
    %c0_6 = arith.constant 0 : index
    %c0_7 = arith.constant 0 : index
    %2 = vector.load %arg1[%c0_3, %c0_4, %c0_5, %c0_6, %c0_7] : memref<1x2x2x16x16xbf16, #tpu.memory_space<vmem>>, vector<1x1x1x16x16xbf16>
    %3 = vector.shape_cast %2 : vector<1x1x1x16x16xbf16> to vector<16x16xbf16>
    %cst = arith.constant dense<0.000000e+00> : vector<16x16xf32>
    %4 = tpu.matmul %3, %0, %cst {dimension_numbers = #tpu.dot_dimension_numbers<[1], [0], [0], [1], [0, 0, 1, 1], [], []>} : vector<16x16xbf16>, vector<16x16xbf16>, vector<16x16xf32> -> vector<16x16xf32>
    %5 = vector.broadcast %1 : vector<1x16xf32> to vector<16x16xf32>
    %6 = arith.addf %4, %5 : vector<16x16xf32>
    %cst_8 = arith.constant 0.000000e+00 : f32
    %7 = vector.broadcast %cst_8 : f32 to vector<16x16xf32>
    %8 = arith.maximumf %6, %7 : vector<16x16xf32>
    %c0_9 = arith.constant 0 : index
    %c0_10 = arith.constant 0 : index
    %c0_11 = arith.constant 0 : index
    %c0_12 = arith.constant 0 : index
    %9 = vector.load %arg8[%c0_9, %c0_10, %c0_11, %c0_12] : memref<2x2x16x1xf32, #tpu.memory_space<vmem>>, vector<1x1x16x1xf32>
    %10 = vector.shape_cast %9 : vector<1x1x16x1xf32> to vector<16x1xf32>
    %11 = vector.broadcast %10 : vector<16x1xf32> to vector<16x16xf32>
    %12 = arith.mulf %8, %11 : vector<16x16xf32>
    %c0_13 = arith.constant 0 : index
    %c0_14 = arith.constant 0 : index
    %c0_15 = arith.constant 0 : index
    %c0_16 = arith.constant 0 : index
    %13 = vector.load %arg11[%c0_13, %c0_14, %c0_15, %c0_16] : memref<2x2x16x16xf32, #tpu.memory_space<vmem>>, vector<1x1x16x16xf32>
    %14 = vector.shape_cast %13 : vector<1x1x16x16xf32> to vector<16x16xf32>
    %15 = vector.shape_cast %12 : vector<16x16xf32> to vector<1x1x16x16xf32>
    tpu.vector_store %arg11[%c0_13, %c0_14, %c0_15, %c0_16], %15 {strides = array<i32>} : memref<2x2x16x16xf32, #tpu.memory_space<vmem>>, vector<1x1x16x16xf32>,
    %c0_17 = arith.constant 0 : index
    %c0_18 = arith.constant 0 : index
    %c1 = arith.constant 1 : index
    %c0_19 = arith.constant 0 : index
    %c0_20 = arith.constant 0 : index
    %16 = vector.load %arg1[%c0_17, %c0_18, %c1, %c0_19, %c0_20] : memref<1x2x2x16x16xbf16, #tpu.memory_space<vmem>>, vector<1x1x1x16x16xbf16>
    %17 = vector.shape_cast %16 : vector<1x1x1x16x16xbf16> to vector<16x16xbf16>
    %cst_21 = arith.constant dense<0.000000e+00> : vector<16x16xf32>
    %18 = tpu.matmul %17, %0, %cst_21 {dimension_numbers = #tpu.dot_dimension_numbers<[1], [0], [0], [1], [0, 0, 1, 1], [], []>} : vector<16x16xbf16>, vector<16x16xbf16>, vector<16x16xf32> -> vector<16x16xf32>
    %19 = vector.broadcast %1 : vector<1x16xf32> to vector<16x16xf32>
    %20 = arith.addf %18, %19 : vector<16x16xf32>
    %cst_22 = arith.constant 0.000000e+00 : f32
    %21 = vector.broadcast %cst_22 : f32 to vector<16x16xf32>
    %22 = arith.maximumf %20, %21 : vector<16x16xf32>
    %c0_23 = arith.constant 0 : index
    %c1_24 = arith.constant 1 : index
    %c0_25 = arith.constant 0 : index
    %c0_26 = arith.constant 0 : index
    %23 = vector.load %arg8[%c0_23, %c1_24, %c0_25, %c0_26] : memref<2x2x16x1xf32, #tpu.memory_space<vmem>>, vector<1x1x16x1xf32>
    %24 = vector.shape_cast %23 : vector<1x1x16x1xf32> to vector<16x1xf32>
    %25 = vector.broadcast %24 : vector<16x1xf32> to vector<16x16xf32>
    %26 = arith.mulf %22, %25 : vector<16x16xf32>
    %c0_27 = arith.constant 0 : index
    %c1_28 = arith.constant 1 : index
    %c0_29 = arith.constant 0 : index
    %c0_30 = arith.constant 0 : index
    %27 = vector.load %arg11[%c0_27, %c1_28, %c0_29, %c0_30] : memref<2x2x16x16xf32, #tpu.memory_space<vmem>>, vector<1x1x16x16xf32>
    %28 = vector.shape_cast %27 : vector<1x1x16x16xf32> to vector<16x16xf32>
    %29 = vector.shape_cast %26 : vector<16x16xf32> to vector<1x1x16x16xf32>
    tpu.vector_store %arg11[%c0_27, %c1_28, %c0_29, %c0_30], %29 {strides = array<i32>} : memref<2x2x16x16xf32, #tpu.memory_space<vmem>>, vector<1x1x16x16xf32>,
    %c0_31 = arith.constant 0 : index
    %c1_32 = arith.constant 1 : index
    %c0_33 = arith.constant 0 : index
    %c0_34 = arith.constant 0 : index
    %c0_35 = arith.constant 0 : index
    %30 = vector.load %arg1[%c0_31, %c1_32, %c0_33, %c0_34, %c0_35] : memref<1x2x2x16x16xbf16, #tpu.memory_space<vmem>>, vector<1x1x1x16x16xbf16>
    %31 = vector.shape_cast %30 : vector<1x1x1x16x16xbf16> to vector<16x16xbf16>
    %cst_36 = arith.constant dense<0.000000e+00> : vector<16x16xf32>
    %32 = tpu.matmul %31, %0, %cst_36 {dimension_numbers = #tpu.dot_dimension_numbers<[1], [0], [0], [1], [0, 0, 1, 1], [], []>} : vector<16x16xbf16>, vector<16x16xbf16>, vector<16x16xf32> -> vector<16x16xf32>
    %33 = vector.broadcast %1 : vector<1x16xf32> to vector<16x16xf32>
    %34 = arith.addf %32, %33 : vector<16x16xf32>
    %cst_37 = arith.constant 0.000000e+00 : f32
    %35 = vector.broadcast %cst_37 : f32 to vector<16x16xf32>
    %36 = arith.maximumf %34, %35 : vector<16x16xf32>
    %c1_38 = arith.constant 1 : index
    %c0_39 = arith.constant 0 : index
    %c0_40 = arith.constant 0 : index
    %c0_41 = arith.constant 0 : index
    %37 = vector.load %arg8[%c1_38, %c0_39, %c0_40, %c0_41] : memref<2x2x16x1xf32, #tpu.memory_space<vmem>>, vector<1x1x16x1xf32>
    %38 = vector.shape_cast %37 : vector<1x1x16x1xf32> to vector<16x1xf32>
    %39 = vector.broadcast %38 : vector<16x1xf32> to vector<16x16xf32>
    %40 = arith.mulf %36, %39 : vector<16x16xf32>
    %c1_42 = arith.constant 1 : index
    %c0_43 = arith.constant 0 : index
    %c0_44 = arith.constant 0 : index
    %c0_45 = arith.constant 0 : index
    %41 = vector.load %arg11[%c1_42, %c0_43, %c0_44, %c0_45] : memref<2x2x16x16xf32, #tpu.memory_space<vmem>>, vector<1x1x16x16xf32>
    %42 = vector.shape_cast %41 : vector<1x1x16x16xf32> to vector<16x16xf32>
    %43 = vector.shape_cast %40 : vector<16x16xf32> to vector<1x1x16x16xf32>
    tpu.vector_store %arg11[%c1_42, %c0_43, %c0_44, %c0_45], %43 {strides = array<i32>} : memref<2x2x16x16xf32, #tpu.memory_space<vmem>>, vector<1x1x16x16xf32>,
    %c0_46 = arith.constant 0 : index
    %c1_47 = arith.constant 1 : index
    %c1_48 = arith.constant 1 : index
    %c0_49 = arith.constant 0 : index
    %c0_50 = arith.constant 0 : index
    %44 = vector.load %arg1[%c0_46, %c1_47, %c1_48, %c0_49, %c0_50] : memref<1x2x2x16x16xbf16, #tpu.memory_space<vmem>>, vector<1x1x1x16x16xbf16>
    %45 = vector.shape_cast %44 : vector<1x1x1x16x16xbf16> to vector<16x16xbf16>
    %cst_51 = arith.constant dense<0.000000e+00> : vector<16x16xf32>
    %46 = tpu.matmul %45, %0, %cst_51 {dimension_numbers = #tpu.dot_dimension_numbers<[1], [0], [0], [1], [0, 0, 1, 1], [], []>} : vector<16x16xbf16>, vector<16x16xbf16>, vector<16x16xf32> -> vector<16x16xf32>
    %47 = vector.broadcast %1 : vector<1x16xf32> to vector<16x16xf32>
    %48 = arith.addf %46, %47 : vector<16x16xf32>
    %cst_52 = arith.constant 0.000000e+00 : f32
    %49 = vector.broadcast %cst_52 : f32 to vector<16x16xf32>
    %50 = arith.maximumf %48, %49 : vector<16x16xf32>
    %c1_53 = arith.constant 1 : index
    %c1_54 = arith.constant 1 : index
    %c0_55 = arith.constant 0 : index
    %c0_56 = arith.constant 0 : index
    %51 = vector.load %arg8[%c1_53, %c1_54, %c0_55, %c0_56] : memref<2x2x16x1xf32, #tpu.memory_space<vmem>>, vector<1x1x16x1xf32>
    %52 = vector.shape_cast %51 : vector<1x1x16x1xf32> to vector<16x1xf32>
    %53 = vector.broadcast %52 : vector<16x1xf32> to vector<16x16xf32>
    %54 = arith.mulf %50, %53 : vector<16x16xf32>
    %c1_57 = arith.constant 1 : index
    %c1_58 = arith.constant 1 : index
    %c0_59 = arith.constant 0 : index
    %c0_60 = arith.constant 0 : index
    %55 = vector.load %arg11[%c1_57, %c1_58, %c0_59, %c0_60] : memref<2x2x16x16xf32, #tpu.memory_space<vmem>>, vector<1x1x16x16xf32>
    %56 = vector.shape_cast %55 : vector<1x1x16x16xf32> to vector<16x16xf32>
    %57 = vector.shape_cast %54 : vector<16x16xf32> to vector<1x1x16x16xf32>
    tpu.vector_store %arg11[%c1_57, %c1_58, %c0_59, %c0_60], %57 {strides = array<i32>} : memref<2x2x16x16xf32, #tpu.memory_space<vmem>>, vector<1x1x16x16xf32>,
    %cst_61 = arith.constant 0.000000e+00 : f32
    %58 = vector.broadcast %cst_61 : f32 to vector<6x16xf32>
    %cst_62 = arith.constant 0.000000e+00 : f32
    %59 = vector.broadcast %cst_62 : f32 to vector<6x16xf32>
    %c0_63 = arith.constant 0 : index
    %c0_64 = arith.constant 0 : index
    %c0_65 = arith.constant 0 : index
    %c0_66 = arith.constant 0 : index
    %c0_67 = arith.constant 0 : index
    %60 = vector.load %arg1[%c0_63, %c0_64, %c0_65, %c0_66, %c0_67] : memref<1x2x2x16x16xbf16, #tpu.memory_space<vmem>>, vector<1x1x1x6x16xbf16>
    %61 = vector.shape_cast %60 : vector<1x1x1x6x16xbf16> to vector<6x16xbf16>
    %c0_68 = arith.constant 0 : index
    %c0_69 = arith.constant 0 : index
    %c0_70 = arith.constant 0 : index
    %62 = vector.load %arg2[%c0_68, %c0_69, %c0_70] : memref<9x16x16xbf16, #tpu.memory_space<vmem>>, vector<1x16x16xbf16>
    %63 = vector.shape_cast %62 : vector<1x16x16xbf16> to vector<16x16xbf16>
    %cst_71 = arith.constant dense<0.000000e+00> : vector<6x16xf32>
    %64 = tpu.matmul %61, %63, %cst_71 {dimension_numbers = #tpu.dot_dimension_numbers<[1], [0], [0], [1], [0, 0, 1, 1], [], []>} : vector<6x16xbf16>, vector<16x16xbf16>, vector<6x16xf32> -> vector<6x16xf32>
    %65 = arith.addf %58, %64 : vector<6x16xf32>
    %c0_72 = arith.constant 0 : index
    %c0_73 = arith.constant 0 : index
    %c0_74 = arith.constant 0 : index
    %c0_75 = arith.constant 0 : index
    %66 = vector.load %arg11[%c0_72, %c0_73, %c0_74, %c0_75] : memref<2x2x16x16xf32, #tpu.memory_space<vmem>>, vector<1x1x6x16xf32>
    %67 = vector.shape_cast %66 : vector<1x1x6x16xf32> to vector<6x16xf32>
    %68 = arith.truncf %67 : vector<6x16xf32> to vector<6x16xbf16>
    %c0_76 = arith.constant 0 : index
    %c0_77 = arith.constant 0 : index
    %c0_78 = arith.constant 0 : index
    %69 = vector.load %arg6[%c0_76, %c0_77, %c0_78] : memref<9x16x16xbf16, #tpu.memory_space<vmem>>, vector<1x16x16xbf16>
    %70 = vector.shape_cast %69 : vector<1x16x16xbf16> to vector<16x16xbf16>
    %cst_79 = arith.constant dense<0.000000e+00> : vector<6x16xf32>
    %71 = tpu.matmul %68, %70, %cst_79 {dimension_numbers = #tpu.dot_dimension_numbers<[1], [0], [0], [1], [0, 0, 1, 1], [], []>} : vector<6x16xbf16>, vector<16x16xbf16>, vector<6x16xf32> -> vector<6x16xf32>
    %72 = arith.addf %59, %71 : vector<6x16xf32>
    %c0_80 = arith.constant 0 : index
    %c0_81 = arith.constant 0 : index
    %c1_82 = arith.constant 1 : index
    %c0_83 = arith.constant 0 : index
    %c0_84 = arith.constant 0 : index
    %73 = vector.load %arg1[%c0_80, %c0_81, %c1_82, %c0_83, %c0_84] : memref<1x2x2x16x16xbf16, #tpu.memory_space<vmem>>, vector<1x1x1x6x16xbf16>
    %74 = vector.shape_cast %73 : vector<1x1x1x6x16xbf16> to vector<6x16xbf16>
    %c1_85 = arith.constant 1 : index
    %c0_86 = arith.constant 0 : index
    %c0_87 = arith.constant 0 : index
    %75 = vector.load %arg2[%c1_85, %c0_86, %c0_87] : memref<9x16x16xbf16, #tpu.memory_space<vmem>>, vector<1x16x16xbf16>
    %76 = vector.shape_cast %75 : vector<1x16x16xbf16> to vector<16x16xbf16>
    %cst_88 = arith.constant dense<0.000000e+00> : vector<6x16xf32>
    %77 = tpu.matmul %74, %76, %cst_88 {dimension_numbers = #tpu.dot_dimension_numbers<[1], [0], [0], [1], [0, 0, 1, 1], [], []>} : vector<6x16xbf16>, vector<16x16xbf16>, vector<6x16xf32> -> vector<6x16xf32>
    %78 = arith.addf %65, %77 : vector<6x16xf32>
    %c0_89 = arith.constant 0 : index
    %c1_90 = arith.constant 1 : index
    %c0_91 = arith.constant 0 : index
    %c0_92 = arith.constant 0 : index
    %79 = vector.load %arg11[%c0_89, %c1_90, %c0_91, %c0_92] : memref<2x2x16x16xf32, #tpu.memory_space<vmem>>, vector<1x1x6x16xf32>
    %80 = vector.shape_cast %79 : vector<1x1x6x16xf32> to vector<6x16xf32>
    %81 = arith.truncf %80 : vector<6x16xf32> to vector<6x16xbf16>
    %c1_93 = arith.constant 1 : index
    %c0_94 = arith.constant 0 : index
    %c0_95 = arith.constant 0 : index
    %82 = vector.load %arg6[%c1_93, %c0_94, %c0_95] : memref<9x16x16xbf16, #tpu.memory_space<vmem>>, vector<1x16x16xbf16>
    %83 = vector.shape_cast %82 : vector<1x16x16xbf16> to vector<16x16xbf16>
    %cst_96 = arith.constant dense<0.000000e+00> : vector<6x16xf32>
    %84 = tpu.matmul %81, %83, %cst_96 {dimension_numbers = #tpu.dot_dimension_numbers<[1], [0], [0], [1], [0, 0, 1, 1], [], []>} : vector<6x16xbf16>, vector<16x16xbf16>, vector<6x16xf32> -> vector<6x16xf32>
    %85 = arith.addf %72, %84 : vector<6x16xf32>
    %c0_97 = arith.constant 0 : index
    %c0_98 = arith.constant 0 : index
    %c0_99 = arith.constant 0 : index
    %c1_100 = arith.constant 1 : index
    %c0_101 = arith.constant 0 : index
    %86 = vector.load %arg1[%c0_97, %c0_98, %c0_99, %c1_100, %c0_101] : memref<1x2x2x16x16xbf16, #tpu.memory_space<vmem>>, vector<1x1x1x6x16xbf16>
    %87 = vector.shape_cast %86 : vector<1x1x1x6x16xbf16> to vector<6x16xbf16>
    %c2 = arith.constant 2 : index
    %c0_102 = arith.constant 0 : index
    %c0_103 = arith.constant 0 : index
    %88 = vector.load %arg2[%c2, %c0_102, %c0_103] : memref<9x16x16xbf16, #tpu.memory_space<vmem>>, vector<1x16x16xbf16>
    %89 = vector.shape_cast %88 : vector<1x16x16xbf16> to vector<16x16xbf16>
    %cst_104 = arith.constant dense<0.000000e+00> : vector<6x16xf32>
    %90 = tpu.matmul %87, %89, %cst_104 {dimension_numbers = #tpu.dot_dimension_numbers<[1], [0], [0], [1], [0, 0, 1, 1], [], []>} : vector<6x16xbf16>, vector<16x16xbf16>, vector<6x16xf32> -> vector<6x16xf32>
    %91 = arith.addf %78, %90 : vector<6x16xf32>
    %c0_105 = arith.constant 0 : index
    %c0_106 = arith.constant 0 : index
    %c1_107 = arith.constant 1 : index
    %c0_108 = arith.constant 0 : index
    %92 = vector.load %arg11[%c0_105, %c0_106, %c1_107, %c0_108] : memref<2x2x16x16xf32, #tpu.memory_space<vmem>>, vector<1x1x6x16xf32>
    %93 = vector.shape_cast %92 : vector<1x1x6x16xf32> to vector<6x16xf32>
    %94 = arith.truncf %93 : vector<6x16xf32> to vector<6x16xbf16>
    %c2_109 = arith.constant 2 : index
    %c0_110 = arith.constant 0 : index
    %c0_111 = arith.constant 0 : index
    %95 = vector.load %arg6[%c2_109, %c0_110, %c0_111] : memref<9x16x16xbf16, #tpu.memory_space<vmem>>, vector<1x16x16xbf16>
    %96 = vector.shape_cast %95 : vector<1x16x16xbf16> to vector<16x16xbf16>
    %cst_112 = arith.constant dense<0.000000e+00> : vector<6x16xf32>
    %97 = tpu.matmul %94, %96, %cst_112 {dimension_numbers = #tpu.dot_dimension_numbers<[1], [0], [0], [1], [0, 0, 1, 1], [], []>} : vector<6x16xbf16>, vector<16x16xbf16>, vector<6x16xf32> -> vector<6x16xf32>
    %98 = arith.addf %85, %97 : vector<6x16xf32>
    %c0_113 = arith.constant 0 : index
    %c1_114 = arith.constant 1 : index
    %c0_115 = arith.constant 0 : index
    %c0_116 = arith.constant 0 : index
    %c0_117 = arith.constant 0 : index
    %99 = vector.load %arg1[%c0_113, %c1_114, %c0_115, %c0_116, %c0_117] : memref<1x2x2x16x16xbf16, #tpu.memory_space<vmem>>, vector<1x1x1x6x16xbf16>
    %100 = vector.shape_cast %99 : vector<1x1x1x6x16xbf16> to vector<6x16xbf16>
    %c3 = arith.constant 3 : index
    %c0_118 = arith.constant 0 : index
    %c0_119 = arith.constant 0 : index
    %101 = vector.load %arg2[%c3, %c0_118, %c0_119] : memref<9x16x16xbf16, #tpu.memory_space<vmem>>, vector<1x16x16xbf16>
    %102 = vector.shape_cast %101 : vector<1x16x16xbf16> to vector<16x16xbf16>
    %cst_120 = arith.constant dense<0.000000e+00> : vector<6x16xf32>
    %103 = tpu.matmul %100, %102, %cst_120 {dimension_numbers = #tpu.dot_dimension_numbers<[1], [0], [0], [1], [0, 0, 1, 1], [], []>} : vector<6x16xbf16>, vector<16x16xbf16>, vector<6x16xf32> -> vector<6x16xf32>
    %104 = arith.addf %91, %103 : vector<6x16xf32>
    %c1_121 = arith.constant 1 : index
    %c0_122 = arith.constant 0 : index
    %c0_123 = arith.constant 0 : index
    %c0_124 = arith.constant 0 : index
    %105 = vector.load %arg11[%c1_121, %c0_122, %c0_123, %c0_124] : memref<2x2x16x16xf32, #tpu.memory_space<vmem>>, vector<1x1x6x16xf32>
    %106 = vector.shape_cast %105 : vector<1x1x6x16xf32> to vector<6x16xf32>
    %107 = arith.truncf %106 : vector<6x16xf32> to vector<6x16xbf16>
    %c3_125 = arith.constant 3 : index
    %c0_126 = arith.constant 0 : index
    %c0_127 = arith.constant 0 : index
    %108 = vector.load %arg6[%c3_125, %c0_126, %c0_127] : memref<9x16x16xbf16, #tpu.memory_space<vmem>>, vector<1x16x16xbf16>
    %109 = vector.shape_cast %108 : vector<1x16x16xbf16> to vector<16x16xbf16>
    %cst_128 = arith.constant dense<0.000000e+00> : vector<6x16xf32>
    %110 = tpu.matmul %107, %109, %cst_128 {dimension_numbers = #tpu.dot_dimension_numbers<[1], [0], [0], [1], [0, 0, 1, 1], [], []>} : vector<6x16xbf16>, vector<16x16xbf16>, vector<6x16xf32> -> vector<6x16xf32>
    %111 = arith.addf %98, %110 : vector<6x16xf32>
    %c0_129 = arith.constant 0 : index
    %c1_130 = arith.constant 1 : index
    %c1_131 = arith.constant 1 : index
    %c0_132 = arith.constant 0 : index
    %c0_133 = arith.constant 0 : index
    %112 = vector.load %arg1[%c0_129, %c1_130, %c1_131, %c0_132, %c0_133] : memref<1x2x2x16x16xbf16, #tpu.memory_space<vmem>>, vector<1x1x1x6x16xbf16>
    %113 = vector.shape_cast %112 : vector<1x1x1x6x16xbf16> to vector<6x16xbf16>
    %c4 = arith.constant 4 : index
    %c0_134 = arith.constant 0 : index
    %c0_135 = arith.constant 0 : index
    %114 = vector.load %arg2[%c4, %c0_134, %c0_135] : memref<9x16x16xbf16, #tpu.memory_space<vmem>>, vector<1x16x16xbf16>
    %115 = vector.shape_cast %114 : vector<1x16x16xbf16> to vector<16x16xbf16>
    %cst_136 = arith.constant dense<0.000000e+00> : vector<6x16xf32>
    %116 = tpu.matmul %113, %115, %cst_136 {dimension_numbers = #tpu.dot_dimension_numbers<[1], [0], [0], [1], [0, 0, 1, 1], [], []>} : vector<6x16xbf16>, vector<16x16xbf16>, vector<6x16xf32> -> vector<6x16xf32>
    %117 = arith.addf %104, %116 : vector<6x16xf32>
    %c1_137 = arith.constant 1 : index
    %c1_138 = arith.constant 1 : index
    %c0_139 = arith.constant 0 : index
    %c0_140 = arith.constant 0 : index
    %118 = vector.load %arg11[%c1_137, %c1_138, %c0_139, %c0_140] : memref<2x2x16x16xf32, #tpu.memory_space<vmem>>, vector<1x1x6x16xf32>
    %119 = vector.shape_cast %118 : vector<1x1x6x16xf32> to vector<6x16xf32>
    %120 = arith.truncf %119 : vector<6x16xf32> to vector<6x16xbf16>
    %c4_141 = arith.constant 4 : index
    %c0_142 = arith.constant 0 : index
    %c0_143 = arith.constant 0 : index
    %121 = vector.load %arg6[%c4_141, %c0_142, %c0_143] : memref<9x16x16xbf16, #tpu.memory_space<vmem>>, vector<1x16x16xbf16>
    %122 = vector.shape_cast %121 : vector<1x16x16xbf16> to vector<16x16xbf16>
    %cst_144 = arith.constant dense<0.000000e+00> : vector<6x16xf32>
    %123 = tpu.matmul %120, %122, %cst_144 {dimension_numbers = #tpu.dot_dimension_numbers<[1], [0], [0], [1], [0, 0, 1, 1], [], []>} : vector<6x16xbf16>, vector<16x16xbf16>, vector<6x16xf32> -> vector<6x16xf32>
    %124 = arith.addf %111, %123 : vector<6x16xf32>
    %c0_145 = arith.constant 0 : index
    %c1_146 = arith.constant 1 : index
    %c0_147 = arith.constant 0 : index
    %c1_148 = arith.constant 1 : index
    %c0_149 = arith.constant 0 : index
    %125 = vector.load %arg1[%c0_145, %c1_146, %c0_147, %c1_148, %c0_149] : memref<1x2x2x16x16xbf16, #tpu.memory_space<vmem>>, vector<1x1x1x6x16xbf16>
    %126 = vector.shape_cast %125 : vector<1x1x1x6x16xbf16> to vector<6x16xbf16>
    %c5 = arith.constant 5 : index
    %c0_150 = arith.constant 0 : index
    %c0_151 = arith.constant 0 : index
    %127 = vector.load %arg2[%c5, %c0_150, %c0_151] : memref<9x16x16xbf16, #tpu.memory_space<vmem>>, vector<1x16x16xbf16>
    %128 = vector.shape_cast %127 : vector<1x16x16xbf16> to vector<16x16xbf16>
    %cst_152 = arith.constant dense<0.000000e+00> : vector<6x16xf32>
    %129 = tpu.matmul %126, %128, %cst_152 {dimension_numbers = #tpu.dot_dimension_numbers<[1], [0], [0], [1], [0, 0, 1, 1], [], []>} : vector<6x16xbf16>, vector<16x16xbf16>, vector<6x16xf32> -> vector<6x16xf32>
    %130 = arith.addf %117, %129 : vector<6x16xf32>
    %c1_153 = arith.constant 1 : index
    %c0_154 = arith.constant 0 : index
    %c1_155 = arith.constant 1 : index
    %c0_156 = arith.constant 0 : index
    %131 = vector.load %arg11[%c1_153, %c0_154, %c1_155, %c0_156] : memref<2x2x16x16xf32, #tpu.memory_space<vmem>>, vector<1x1x6x16xf32>
    %132 = vector.shape_cast %131 : vector<1x1x6x16xf32> to vector<6x16xf32>
    %133 = arith.truncf %132 : vector<6x16xf32> to vector<6x16xbf16>
    %c5_157 = arith.constant 5 : index
    %c0_158 = arith.constant 0 : index
    %c0_159 = arith.constant 0 : index
    %134 = vector.load %arg6[%c5_157, %c0_158, %c0_159] : memref<9x16x16xbf16, #tpu.memory_space<vmem>>, vector<1x16x16xbf16>
    %135 = vector.shape_cast %134 : vector<1x16x16xbf16> to vector<16x16xbf16>
    %cst_160 = arith.constant dense<0.000000e+00> : vector<6x16xf32>
    %136 = tpu.matmul %133, %135, %cst_160 {dimension_numbers = #tpu.dot_dimension_numbers<[1], [0], [0], [1], [0, 0, 1, 1], [], []>} : vector<6x16xbf16>, vector<16x16xbf16>, vector<6x16xf32> -> vector<6x16xf32>
    %137 = arith.addf %124, %136 : vector<6x16xf32>
    %c0_161 = arith.constant 0 : index
    %c0_162 = arith.constant 0 : index
    %c0_163 = arith.constant 0 : index
    %c4_164 = arith.constant 4 : index
    %c0_165 = arith.constant 0 : index
    %138 = vector.load %arg1[%c0_161, %c0_162, %c0_163, %c4_164, %c0_165] : memref<1x2x2x16x16xbf16, #tpu.memory_space<vmem>>, vector<1x1x1x6x16xbf16>
    %139 = vector.shape_cast %138 : vector<1x1x1x6x16xbf16> to vector<6x16xbf16>
    %c6 = arith.constant 6 : index
    %c0_166 = arith.constant 0 : index
    %c0_167 = arith.constant 0 : index
    %140 = vector.load %arg2[%c6, %c0_166, %c0_167] : memref<9x16x16xbf16, #tpu.memory_space<vmem>>, vector<1x16x16xbf16>
    %141 = vector.shape_cast %140 : vector<1x16x16xbf16> to vector<16x16xbf16>
    %cst_168 = arith.constant dense<0.000000e+00> : vector<6x16xf32>
    %142 = tpu.matmul %139, %141, %cst_168 {dimension_numbers = #tpu.dot_dimension_numbers<[1], [0], [0], [1], [0, 0, 1, 1], [], []>} : vector<6x16xbf16>, vector<16x16xbf16>, vector<6x16xf32> -> vector<6x16xf32>
    %143 = arith.addf %130, %142 : vector<6x16xf32>
    %c0_169 = arith.constant 0 : index
    %c0_170 = arith.constant 0 : index
    %c4_171 = arith.constant 4 : index
    %c0_172 = arith.constant 0 : index
    %144 = vector.load %arg11[%c0_169, %c0_170, %c4_171, %c0_172] : memref<2x2x16x16xf32, #tpu.memory_space<vmem>>, vector<1x1x6x16xf32>
    %145 = vector.shape_cast %144 : vector<1x1x6x16xf32> to vector<6x16xf32>
    %146 = arith.truncf %145 : vector<6x16xf32> to vector<6x16xbf16>
    %c6_173 = arith.constant 6 : index
    %c0_174 = arith.constant 0 : index
    %c0_175 = arith.constant 0 : index
    %147 = vector.load %arg6[%c6_173, %c0_174, %c0_175] : memref<9x16x16xbf16, #tpu.memory_space<vmem>>, vector<1x16x16xbf16>
    %148 = vector.shape_cast %147 : vector<1x16x16xbf16> to vector<16x16xbf16>
    %cst_176 = arith.constant dense<0.000000e+00> : vector<6x16xf32>
    %149 = tpu.matmul %146, %148, %cst_176 {dimension_numbers = #tpu.dot_dimension_numbers<[1], [0], [0], [1], [0, 0, 1, 1], [], []>} : vector<6x16xbf16>, vector<16x16xbf16>, vector<6x16xf32> -> vector<6x16xf32>
    %150 = arith.addf %137, %149 : vector<6x16xf32>
    %c0_177 = arith.constant 0 : index
    %c0_178 = arith.constant 0 : index
    %c1_179 = arith.constant 1 : index
    %c4_180 = arith.constant 4 : index
    %c0_181 = arith.constant 0 : index
    %151 = vector.load %arg1[%c0_177, %c0_178, %c1_179, %c4_180, %c0_181] : memref<1x2x2x16x16xbf16, #tpu.memory_space<vmem>>, vector<1x1x1x6x16xbf16>
    %152 = vector.shape_cast %151 : vector<1x1x1x6x16xbf16> to vector<6x16xbf16>
    %c7 = arith.constant 7 : index
    %c0_182 = arith.constant 0 : index
    %c0_183 = arith.constant 0 : index
    %153 = vector.load %arg2[%c7, %c0_182, %c0_183] : memref<9x16x16xbf16, #tpu.memory_space<vmem>>, vector<1x16x16xbf16>
    %154 = vector.shape_cast %153 : vector<1x16x16xbf16> to vector<16x16xbf16>
    %cst_184 = arith.constant dense<0.000000e+00> : vector<6x16xf32>
    %155 = tpu.matmul %152, %154, %cst_184 {dimension_numbers = #tpu.dot_dimension_numbers<[1], [0], [0], [1], [0, 0, 1, 1], [], []>} : vector<6x16xbf16>, vector<16x16xbf16>, vector<6x16xf32> -> vector<6x16xf32>
    %156 = arith.addf %143, %155 : vector<6x16xf32>
    %c0_185 = arith.constant 0 : index
    %c1_186 = arith.constant 1 : index
    %c4_187 = arith.constant 4 : index
    %c0_188 = arith.constant 0 : index
    %157 = vector.load %arg11[%c0_185, %c1_186, %c4_187, %c0_188] : memref<2x2x16x16xf32, #tpu.memory_space<vmem>>, vector<1x1x6x16xf32>
    %158 = vector.shape_cast %157 : vector<1x1x6x16xf32> to vector<6x16xf32>
    %159 = arith.truncf %158 : vector<6x16xf32> to vector<6x16xbf16>
    %c7_189 = arith.constant 7 : index
    %c0_190 = arith.constant 0 : index
    %c0_191 = arith.constant 0 : index
    %160 = vector.load %arg6[%c7_189, %c0_190, %c0_191] : memref<9x16x16xbf16, #tpu.memory_space<vmem>>, vector<1x16x16xbf16>
    %161 = vector.shape_cast %160 : vector<1x16x16xbf16> to vector<16x16xbf16>
    %cst_192 = arith.constant dense<0.000000e+00> : vector<6x16xf32>
    %162 = tpu.matmul %159, %161, %cst_192 {dimension_numbers = #tpu.dot_dimension_numbers<[1], [0], [0], [1], [0, 0, 1, 1], [], []>} : vector<6x16xbf16>, vector<16x16xbf16>, vector<6x16xf32> -> vector<6x16xf32>
    %163 = arith.addf %150, %162 : vector<6x16xf32>
    %c0_193 = arith.constant 0 : index
    %c0_194 = arith.constant 0 : index
    %c0_195 = arith.constant 0 : index
    %c5_196 = arith.constant 5 : index
    %c0_197 = arith.constant 0 : index
    %164 = vector.load %arg1[%c0_193, %c0_194, %c0_195, %c5_196, %c0_197] : memref<1x2x2x16x16xbf16, #tpu.memory_space<vmem>>, vector<1x1x1x6x16xbf16>
    %165 = vector.shape_cast %164 : vector<1x1x1x6x16xbf16> to vector<6x16xbf16>
    %c8 = arith.constant 8 : index
    %c0_198 = arith.constant 0 : index
    %c0_199 = arith.constant 0 : index
    %166 = vector.load %arg2[%c8, %c0_198, %c0_199] : memref<9x16x16xbf16, #tpu.memory_space<vmem>>, vector<1x16x16xbf16>
    %167 = vector.shape_cast %166 : vector<1x16x16xbf16> to vector<16x16xbf16>
    %cst_200 = arith.constant dense<0.000000e+00> : vector<6x16xf32>
    %168 = tpu.matmul %165, %167, %cst_200 {dimension_numbers = #tpu.dot_dimension_numbers<[1], [0], [0], [1], [0, 0, 1, 1], [], []>} : vector<6x16xbf16>, vector<16x16xbf16>, vector<6x16xf32> -> vector<6x16xf32>
    %169 = arith.addf %156, %168 : vector<6x16xf32>
    %c0_201 = arith.constant 0 : index
    %c0_202 = arith.constant 0 : index
    %c5_203 = arith.constant 5 : index
    %c0_204 = arith.constant 0 : index
    %170 = vector.load %arg11[%c0_201, %c0_202, %c5_203, %c0_204] : memref<2x2x16x16xf32, #tpu.memory_space<vmem>>, vector<1x1x6x16xf32>
    %171 = vector.shape_cast %170 : vector<1x1x6x16xf32> to vector<6x16xf32>
    %172 = arith.truncf %171 : vector<6x16xf32> to vector<6x16xbf16>
    %c8_205 = arith.constant 8 : index
    %c0_206 = arith.constant 0 : index
    %c0_207 = arith.constant 0 : index
    %173 = vector.load %arg6[%c8_205, %c0_206, %c0_207] : memref<9x16x16xbf16, #tpu.memory_space<vmem>>, vector<1x16x16xbf16>
    %174 = vector.shape_cast %173 : vector<1x16x16xbf16> to vector<16x16xbf16>
    %cst_208 = arith.constant dense<0.000000e+00> : vector<6x16xf32>
    %175 = tpu.matmul %172, %174, %cst_208 {dimension_numbers = #tpu.dot_dimension_numbers<[1], [0], [0], [1], [0, 0, 1, 1], [], []>} : vector<6x16xbf16>, vector<16x16xbf16>, vector<6x16xf32> -> vector<6x16xf32>
    %176 = arith.addf %163, %175 : vector<6x16xf32>
    %c0_209 = arith.constant 0 : index
    %c0_210 = arith.constant 0 : index
    %177 = vector.load %arg3[%c0_209, %c0_210] : memref<1x16xf32, #tpu.memory_space<vmem>>, vector<1x16xf32>
    %178 = vector.broadcast %177 : vector<1x16xf32> to vector<6x16xf32>
    %179 = arith.addf %169, %178 : vector<6x16xf32>
    %cst_211 = arith.constant 0.000000e+00 : f32
    %180 = vector.broadcast %cst_211 : f32 to vector<6x16xf32>
    %181 = arith.maximumf %179, %180 : vector<6x16xf32>
    %c0_212 = arith.constant 0 : index
    %c0_213 = arith.constant 0 : index
    %182 = vector.load %arg9[%c0_212, %c0_213] : memref<6x1xf32, #tpu.memory_space<vmem>>, vector<6x1xf32>
    %183 = vector.broadcast %182 : vector<6x1xf32> to vector<6x16xf32>
    %184 = arith.mulf %181, %183 : vector<6x16xf32>
    %c0_214 = arith.constant 0 : index
    %c0_215 = arith.constant 0 : index
    %185 = vector.load %arg7[%c0_214, %c0_215] : memref<1x16xf32, #tpu.memory_space<vmem>>, vector<1x16xf32>
    %186 = vector.broadcast %185 : vector<1x16xf32> to vector<6x16xf32>
    %187 = arith.addf %176, %186 : vector<6x16xf32>
    %cst_216 = arith.constant 0.000000e+00 : f32
    %188 = vector.broadcast %cst_216 : f32 to vector<6x16xf32>
    %189 = arith.maximumf %187, %188 : vector<6x16xf32>
    %c0_217 = arith.constant 0 : index
    %c0_218 = arith.constant 0 : index
    %190 = vector.load %arg9[%c0_217, %c0_218] : memref<6x1xf32, #tpu.memory_space<vmem>>, vector<6x1xf32>
    %191 = vector.broadcast %190 : vector<6x1xf32> to vector<6x16xf32>
    %192 = arith.mulf %189, %191 : vector<6x16xf32>
    %cst_219 = arith.constant 0.000000e+00 : bf16
    %193 = vector.broadcast %cst_219 : bf16 to vector<16x16xbf16>
    %c0_220 = arith.constant 0 : index
    %c0_221 = arith.constant 0 : index
    %c0_222 = arith.constant 0 : index
    %c0_223 = arith.constant 0 : index
    %194 = vector.load %arg10[%c0_220, %c0_221, %c0_222, %c0_223] : memref<1x2x16x16xbf16, #tpu.memory_space<vmem>>, vector<1x1x16x16xbf16>
    %195 = vector.shape_cast %194 : vector<1x1x16x16xbf16> to vector<16x16xbf16>
    %196 = vector.shape_cast %193 : vector<16x16xbf16> to vector<1x1x16x16xbf16>
    tpu.vector_store %arg10[%c0_220, %c0_221, %c0_222, %c0_223], %196 {strides = array<i32>} : memref<1x2x16x16xbf16, #tpu.memory_space<vmem>>, vector<1x1x16x16xbf16>,
    %cst_224 = arith.constant 0.000000e+00 : bf16
    %197 = vector.broadcast %cst_224 : bf16 to vector<16x16xbf16>
    %c0_225 = arith.constant 0 : index
    %c1_226 = arith.constant 1 : index
    %c0_227 = arith.constant 0 : index
    %c0_228 = arith.constant 0 : index
    %198 = vector.load %arg10[%c0_225, %c1_226, %c0_227, %c0_228] : memref<1x2x16x16xbf16, #tpu.memory_space<vmem>>, vector<1x1x16x16xbf16>
    %199 = vector.shape_cast %198 : vector<1x1x16x16xbf16> to vector<16x16xbf16>
    %200 = vector.shape_cast %197 : vector<16x16xbf16> to vector<1x1x16x16xbf16>
    tpu.vector_store %arg10[%c0_225, %c1_226, %c0_227, %c0_228], %200 {strides = array<i32>} : memref<1x2x16x16xbf16, #tpu.memory_space<vmem>>, vector<1x1x16x16xbf16>,
    %201 = arith.truncf %184 : vector<6x16xf32> to vector<6x16xbf16>
    %c0_229 = arith.constant 0 : index
    %c0_230 = arith.constant 0 : index
    %c5_231 = arith.constant 5 : index
    %c0_232 = arith.constant 0 : index
    %202 = vector.load %arg10[%c0_229, %c0_230, %c5_231, %c0_232] : memref<1x2x16x16xbf16, #tpu.memory_space<vmem>>, vector<1x1x6x16xbf16>
    %203 = vector.shape_cast %202 : vector<1x1x6x16xbf16> to vector<6x16xbf16>
    %204 = vector.shape_cast %201 : vector<6x16xbf16> to vector<1x1x6x16xbf16>
    tpu.vector_store %arg10[%c0_229, %c0_230, %c5_231, %c0_232], %204 {strides = array<i32>} : memref<1x2x16x16xbf16, #tpu.memory_space<vmem>>, vector<1x1x6x16xbf16>,
    %205 = arith.truncf %192 : vector<6x16xf32> to vector<6x16xbf16>
    %c0_233 = arith.constant 0 : index
    %c1_234 = arith.constant 1 : index
    %c5_235 = arith.constant 5 : index
    %c0_236 = arith.constant 0 : index
    %206 = vector.load %arg10[%c0_233, %c1_234, %c5_235, %c0_236] : memref<1x2x16x16xbf16, #tpu.memory_space<vmem>>, vector<1x1x6x16xbf16>
    %207 = vector.shape_cast %206 : vector<1x1x6x16xbf16> to vector<6x16xbf16>
    %208 = vector.shape_cast %205 : vector<6x16xbf16> to vector<1x1x6x16xbf16>
    tpu.vector_store %arg10[%c0_233, %c1_234, %c5_235, %c0_236], %208 {strides = array<i32>} : memref<1x2x16x16xbf16, #tpu.memory_space<vmem>>, vector<1x1x6x16xbf16>,
    return
  }
  func.func @transform_0(%arg0: i32) -> (i32, i32, i32, i32, i32) {
    %c0_i32 = arith.constant 0 : i32
    %c0_i32_0 = arith.constant 0 : i32
    %c0_i32_1 = arith.constant 0 : i32
    %c0_i32_2 = arith.constant 0 : i32
    %c0_i32_3 = arith.constant 0 : i32
    return %arg0, %c0_i32, %c0_i32_0, %c0_i32_1, %c0_i32_2 : i32, i32, i32, i32, i32
  }
  func.func @transform_1(%arg0: i32) -> (i32, i32, i32) {
    %c0_i32 = arith.constant 0 : i32
    %c0_i32_0 = arith.constant 0 : i32
    %c0_i32_1 = arith.constant 0 : i32
    %c0_i32_2 = arith.constant 0 : i32
    return %c0_i32, %c0_i32_0, %c0_i32_1 : i32, i32, i32
  }
  func.func @transform_2(%arg0: i32) -> (i32, i32) {
    %c0_i32 = arith.constant 0 : i32
    %c0_i32_0 = arith.constant 0 : i32
    %c0_i32_1 = arith.constant 0 : i32
    return %c0_i32, %c0_i32_0 : i32, i32
  }
  func.func @transform_3(%arg0: i32) -> (i32, i32) {
    %c0_i32 = arith.constant 0 : i32
    %c0_i32_0 = arith.constant 0 : i32
    %c0_i32_1 = arith.constant 0 : i32
    return %c0_i32, %c0_i32_0 : i32, i32
  }
  func.func @transform_4(%arg0: i32) -> (i32, i32) {
    %c0_i32 = arith.constant 0 : i32
    %c0_i32_0 = arith.constant 0 : i32
    %c0_i32_1 = arith.constant 0 : i32
    return %c0_i32, %c0_i32_0 : i32, i32
  }
  func.func @transform_5(%arg0: i32) -> (i32, i32, i32) {
    %c0_i32 = arith.constant 0 : i32
    %c0_i32_0 = arith.constant 0 : i32
    %c0_i32_1 = arith.constant 0 : i32
    %c0_i32_2 = arith.constant 0 : i32
    return %c0_i32, %c0_i32_0, %c0_i32_1 : i32, i32, i32
  }
  func.func @transform_6(%arg0: i32) -> (i32, i32) {
    %c0_i32 = arith.constant 0 : i32
    %c0_i32_0 = arith.constant 0 : i32
    %c0_i32_1 = arith.constant 0 : i32
    return %c0_i32, %c0_i32_0 : i32, i32
  }
  func.func @transform_7(%arg0: i32) -> (i32, i32, i32, i32) {
    %c0_i32 = arith.constant 0 : i32
    %c0_i32_0 = arith.constant 0 : i32
    %c0_i32_1 = arith.constant 0 : i32
    %c0_i32_2 = arith.constant 0 : i32
    %c0_i32_3 = arith.constant 0 : i32
    return %c0_i32, %c0_i32_0, %c0_i32_1, %c0_i32_2 : i32, i32, i32, i32
  }
  func.func @transform_8(%arg0: i32) -> (i32, i32) {
    %c0_i32 = arith.constant 0 : i32
    %c0_i32_0 = arith.constant 0 : i32
    %c0_i32_1 = arith.constant 0 : i32
    return %c0_i32, %c0_i32_0 : i32, i32
  }
  func.func @transform_9(%arg0: i32) -> (i32, i32, i32, i32) {
    %c0_i32 = arith.constant 0 : i32
    %c0_i32_0 = arith.constant 0 : i32
    %c0_i32_1 = arith.constant 0 : i32
    %c0_i32_2 = arith.constant 0 : i32
    return %arg0, %c0_i32, %c0_i32_0, %c0_i32_1 : i32, i32, i32, i32
  }
}

module attributes {stable_mosaic.version = 11 : i64} {
  func.func @_block_s1_kernel(%arg0: i32, %arg1: memref<1x16x32xbf16, #tpu.memory_space<vmem>>, %arg2: memref<16x16xbf16, #tpu.memory_space<vmem>>, %arg3: memref<1x16xf32, #tpu.memory_space<vmem>>, %arg4: memref<9x16x16xbf16, #tpu.memory_space<vmem>>, %arg5: memref<1x16xf32, #tpu.memory_space<vmem>>, %arg6: memref<16x1xf32, #tpu.memory_space<vmem>>, %arg7: memref<6x1xf32, #tpu.memory_space<vmem>>, %arg8: memref<1x2x16x16xbf16, #tpu.memory_space<vmem>>, %arg9: memref<16x16xf32, #tpu.memory_space<vmem>>) attributes {dimension_semantics = [#tpu.dimension_semantics<parallel>], iteration_bounds = array<i64: 2>, scalar_prefetch = 0 : i64, scratch_operands = 1 : i64, tpu.core_type = #tpu.core_type<tc>, window_params = [{transform_indices = @transform_0, window_bounds = array<i64: 1, 16, 32>}, {pipeline_mode = #tpu.pipeline_mode<synchronous>, transform_indices = @transform_1, window_bounds = array<i64: 16, 16>}, {pipeline_mode = #tpu.pipeline_mode<synchronous>, transform_indices = @transform_2, window_bounds = array<i64: 1, 16>}, {pipeline_mode = #tpu.pipeline_mode<synchronous>, transform_indices = @transform_3, window_bounds = array<i64: 9, 16, 16>}, {pipeline_mode = #tpu.pipeline_mode<synchronous>, transform_indices = @transform_4, window_bounds = array<i64: 1, 16>}, {pipeline_mode = #tpu.pipeline_mode<synchronous>, transform_indices = @transform_5, window_bounds = array<i64: 16, 1>}, {pipeline_mode = #tpu.pipeline_mode<synchronous>, transform_indices = @transform_6, window_bounds = array<i64: 6, 1>}, {transform_indices = @transform_7, window_bounds = array<i64: 1, 2, 16, 16>}]} {
    %c0 = arith.constant 0 : index
    %c0_0 = arith.constant 0 : index
    %c16 = arith.constant 16 : index
    %0 = vector.load %arg1[%c0, %c0_0, %c16] : memref<1x16x32xbf16, #tpu.memory_space<vmem>>, vector<1x16x16xbf16>
    %1 = vector.shape_cast %0 : vector<1x16x16xbf16> to vector<16x16xbf16>
    %c0_1 = arith.constant 0 : index
    %c0_2 = arith.constant 0 : index
    %2 = vector.load %arg2[%c0_1, %c0_2] : memref<16x16xbf16, #tpu.memory_space<vmem>>, vector<16x16xbf16>
    %cst = arith.constant dense<0.000000e+00> : vector<16x16xf32>
    %3 = tpu.matmul %1, %2, %cst {dimension_numbers = #tpu.dot_dimension_numbers<[1], [0], [0], [1], [0, 0, 1, 1], [], []>} : vector<16x16xbf16>, vector<16x16xbf16>, vector<16x16xf32> -> vector<16x16xf32>
    %c0_3 = arith.constant 0 : index
    %c0_4 = arith.constant 0 : index
    %4 = vector.load %arg3[%c0_3, %c0_4] : memref<1x16xf32, #tpu.memory_space<vmem>>, vector<1x16xf32>
    %5 = vector.broadcast %4 : vector<1x16xf32> to vector<16x16xf32>
    %6 = arith.addf %3, %5 : vector<16x16xf32>
    %cst_5 = arith.constant 0.000000e+00 : f32
    %7 = vector.broadcast %cst_5 : f32 to vector<16x16xf32>
    %8 = arith.maximumf %6, %7 : vector<16x16xf32>
    %c0_6 = arith.constant 0 : index
    %c0_7 = arith.constant 0 : index
    %9 = vector.load %arg6[%c0_6, %c0_7] : memref<16x1xf32, #tpu.memory_space<vmem>>, vector<16x1xf32>
    %10 = vector.broadcast %9 : vector<16x1xf32> to vector<16x16xf32>
    %11 = arith.mulf %8, %10 : vector<16x16xf32>
    %c0_8 = arith.constant 0 : index
    %c0_9 = arith.constant 0 : index
    %12 = vector.load %arg9[%c0_8, %c0_9] : memref<16x16xf32, #tpu.memory_space<vmem>>, vector<16x16xf32>
    tpu.vector_store %arg9[%c0_8, %c0_9], %11 {strides = array<i32>} : memref<16x16xf32, #tpu.memory_space<vmem>>, vector<16x16xf32>,
    %cst_10 = arith.constant 0.000000e+00 : f32
    %13 = vector.broadcast %cst_10 : f32 to vector<6x16xf32>
    %c0_11 = arith.constant 0 : index
    %c0_12 = arith.constant 0 : index
    %14 = vector.load %arg9[%c0_11, %c0_12] : memref<16x16xf32, #tpu.memory_space<vmem>>, vector<6x16xf32>
    %15 = arith.truncf %14 : vector<6x16xf32> to vector<6x16xbf16>
    %c0_13 = arith.constant 0 : index
    %c0_14 = arith.constant 0 : index
    %c0_15 = arith.constant 0 : index
    %16 = vector.load %arg4[%c0_13, %c0_14, %c0_15] : memref<9x16x16xbf16, #tpu.memory_space<vmem>>, vector<1x16x16xbf16>
    %17 = vector.shape_cast %16 : vector<1x16x16xbf16> to vector<16x16xbf16>
    %cst_16 = arith.constant dense<0.000000e+00> : vector<6x16xf32>
    %18 = tpu.matmul %15, %17, %cst_16 {dimension_numbers = #tpu.dot_dimension_numbers<[1], [0], [0], [1], [0, 0, 1, 1], [], []>} : vector<6x16xbf16>, vector<16x16xbf16>, vector<6x16xf32> -> vector<6x16xf32>
    %19 = arith.addf %13, %18 : vector<6x16xf32>
    %c1 = arith.constant 1 : index
    %c0_17 = arith.constant 0 : index
    %20 = vector.load %arg9[%c1, %c0_17] : memref<16x16xf32, #tpu.memory_space<vmem>>, vector<6x16xf32>
    %21 = arith.truncf %20 : vector<6x16xf32> to vector<6x16xbf16>
    %c1_18 = arith.constant 1 : index
    %c0_19 = arith.constant 0 : index
    %c0_20 = arith.constant 0 : index
    %22 = vector.load %arg4[%c1_18, %c0_19, %c0_20] : memref<9x16x16xbf16, #tpu.memory_space<vmem>>, vector<1x16x16xbf16>
    %23 = vector.shape_cast %22 : vector<1x16x16xbf16> to vector<16x16xbf16>
    %cst_21 = arith.constant dense<0.000000e+00> : vector<6x16xf32>
    %24 = tpu.matmul %21, %23, %cst_21 {dimension_numbers = #tpu.dot_dimension_numbers<[1], [0], [0], [1], [0, 0, 1, 1], [], []>} : vector<6x16xbf16>, vector<16x16xbf16>, vector<6x16xf32> -> vector<6x16xf32>
    %25 = arith.addf %19, %24 : vector<6x16xf32>
    %c2 = arith.constant 2 : index
    %c0_22 = arith.constant 0 : index
    %26 = vector.load %arg9[%c2, %c0_22] : memref<16x16xf32, #tpu.memory_space<vmem>>, vector<6x16xf32>
    %27 = arith.truncf %26 : vector<6x16xf32> to vector<6x16xbf16>
    %c2_23 = arith.constant 2 : index
    %c0_24 = arith.constant 0 : index
    %c0_25 = arith.constant 0 : index
    %28 = vector.load %arg4[%c2_23, %c0_24, %c0_25] : memref<9x16x16xbf16, #tpu.memory_space<vmem>>, vector<1x16x16xbf16>
    %29 = vector.shape_cast %28 : vector<1x16x16xbf16> to vector<16x16xbf16>
    %cst_26 = arith.constant dense<0.000000e+00> : vector<6x16xf32>
    %30 = tpu.matmul %27, %29, %cst_26 {dimension_numbers = #tpu.dot_dimension_numbers<[1], [0], [0], [1], [0, 0, 1, 1], [], []>} : vector<6x16xbf16>, vector<16x16xbf16>, vector<6x16xf32> -> vector<6x16xf32>
    %31 = arith.addf %25, %30 : vector<6x16xf32>
    %c4 = arith.constant 4 : index
    %c0_27 = arith.constant 0 : index
    %32 = vector.load %arg9[%c4, %c0_27] : memref<16x16xf32, #tpu.memory_space<vmem>>, vector<6x16xf32>
    %33 = arith.truncf %32 : vector<6x16xf32> to vector<6x16xbf16>
    %c3 = arith.constant 3 : index
    %c0_28 = arith.constant 0 : index
    %c0_29 = arith.constant 0 : index
    %34 = vector.load %arg4[%c3, %c0_28, %c0_29] : memref<9x16x16xbf16, #tpu.memory_space<vmem>>, vector<1x16x16xbf16>
    %35 = vector.shape_cast %34 : vector<1x16x16xbf16> to vector<16x16xbf16>
    %cst_30 = arith.constant dense<0.000000e+00> : vector<6x16xf32>
    %36 = tpu.matmul %33, %35, %cst_30 {dimension_numbers = #tpu.dot_dimension_numbers<[1], [0], [0], [1], [0, 0, 1, 1], [], []>} : vector<6x16xbf16>, vector<16x16xbf16>, vector<6x16xf32> -> vector<6x16xf32>
    %37 = arith.addf %31, %36 : vector<6x16xf32>
    %c5 = arith.constant 5 : index
    %c0_31 = arith.constant 0 : index
    %38 = vector.load %arg9[%c5, %c0_31] : memref<16x16xf32, #tpu.memory_space<vmem>>, vector<6x16xf32>
    %39 = arith.truncf %38 : vector<6x16xf32> to vector<6x16xbf16>
    %c4_32 = arith.constant 4 : index
    %c0_33 = arith.constant 0 : index
    %c0_34 = arith.constant 0 : index
    %40 = vector.load %arg4[%c4_32, %c0_33, %c0_34] : memref<9x16x16xbf16, #tpu.memory_space<vmem>>, vector<1x16x16xbf16>
    %41 = vector.shape_cast %40 : vector<1x16x16xbf16> to vector<16x16xbf16>
    %cst_35 = arith.constant dense<0.000000e+00> : vector<6x16xf32>
    %42 = tpu.matmul %39, %41, %cst_35 {dimension_numbers = #tpu.dot_dimension_numbers<[1], [0], [0], [1], [0, 0, 1, 1], [], []>} : vector<6x16xbf16>, vector<16x16xbf16>, vector<6x16xf32> -> vector<6x16xf32>
    %43 = arith.addf %37, %42 : vector<6x16xf32>
    %c6 = arith.constant 6 : index
    %c0_36 = arith.constant 0 : index
    %44 = vector.load %arg9[%c6, %c0_36] : memref<16x16xf32, #tpu.memory_space<vmem>>, vector<6x16xf32>
    %45 = arith.truncf %44 : vector<6x16xf32> to vector<6x16xbf16>
    %c5_37 = arith.constant 5 : index
    %c0_38 = arith.constant 0 : index
    %c0_39 = arith.constant 0 : index
    %46 = vector.load %arg4[%c5_37, %c0_38, %c0_39] : memref<9x16x16xbf16, #tpu.memory_space<vmem>>, vector<1x16x16xbf16>
    %47 = vector.shape_cast %46 : vector<1x16x16xbf16> to vector<16x16xbf16>
    %cst_40 = arith.constant dense<0.000000e+00> : vector<6x16xf32>
    %48 = tpu.matmul %45, %47, %cst_40 {dimension_numbers = #tpu.dot_dimension_numbers<[1], [0], [0], [1], [0, 0, 1, 1], [], []>} : vector<6x16xbf16>, vector<16x16xbf16>, vector<6x16xf32> -> vector<6x16xf32>
    %49 = arith.addf %43, %48 : vector<6x16xf32>
    %c8 = arith.constant 8 : index
    %c0_41 = arith.constant 0 : index
    %50 = vector.load %arg9[%c8, %c0_41] : memref<16x16xf32, #tpu.memory_space<vmem>>, vector<6x16xf32>
    %51 = arith.truncf %50 : vector<6x16xf32> to vector<6x16xbf16>
    %c6_42 = arith.constant 6 : index
    %c0_43 = arith.constant 0 : index
    %c0_44 = arith.constant 0 : index
    %52 = vector.load %arg4[%c6_42, %c0_43, %c0_44] : memref<9x16x16xbf16, #tpu.memory_space<vmem>>, vector<1x16x16xbf16>
    %53 = vector.shape_cast %52 : vector<1x16x16xbf16> to vector<16x16xbf16>
    %cst_45 = arith.constant dense<0.000000e+00> : vector<6x16xf32>
    %54 = tpu.matmul %51, %53, %cst_45 {dimension_numbers = #tpu.dot_dimension_numbers<[1], [0], [0], [1], [0, 0, 1, 1], [], []>} : vector<6x16xbf16>, vector<16x16xbf16>, vector<6x16xf32> -> vector<6x16xf32>
    %55 = arith.addf %49, %54 : vector<6x16xf32>
    %c9 = arith.constant 9 : index
    %c0_46 = arith.constant 0 : index
    %56 = vector.load %arg9[%c9, %c0_46] : memref<16x16xf32, #tpu.memory_space<vmem>>, vector<6x16xf32>
    %57 = arith.truncf %56 : vector<6x16xf32> to vector<6x16xbf16>
    %c7 = arith.constant 7 : index
    %c0_47 = arith.constant 0 : index
    %c0_48 = arith.constant 0 : index
    %58 = vector.load %arg4[%c7, %c0_47, %c0_48] : memref<9x16x16xbf16, #tpu.memory_space<vmem>>, vector<1x16x16xbf16>
    %59 = vector.shape_cast %58 : vector<1x16x16xbf16> to vector<16x16xbf16>
    %cst_49 = arith.constant dense<0.000000e+00> : vector<6x16xf32>
    %60 = tpu.matmul %57, %59, %cst_49 {dimension_numbers = #tpu.dot_dimension_numbers<[1], [0], [0], [1], [0, 0, 1, 1], [], []>} : vector<6x16xbf16>, vector<16x16xbf16>, vector<6x16xf32> -> vector<6x16xf32>
    %61 = arith.addf %55, %60 : vector<6x16xf32>
    %c10 = arith.constant 10 : index
    %c0_50 = arith.constant 0 : index
    %62 = vector.load %arg9[%c10, %c0_50] : memref<16x16xf32, #tpu.memory_space<vmem>>, vector<6x16xf32>
    %63 = arith.truncf %62 : vector<6x16xf32> to vector<6x16xbf16>
    %c8_51 = arith.constant 8 : index
    %c0_52 = arith.constant 0 : index
    %c0_53 = arith.constant 0 : index
    %64 = vector.load %arg4[%c8_51, %c0_52, %c0_53] : memref<9x16x16xbf16, #tpu.memory_space<vmem>>, vector<1x16x16xbf16>
    %65 = vector.shape_cast %64 : vector<1x16x16xbf16> to vector<16x16xbf16>
    %cst_54 = arith.constant dense<0.000000e+00> : vector<6x16xf32>
    %66 = tpu.matmul %63, %65, %cst_54 {dimension_numbers = #tpu.dot_dimension_numbers<[1], [0], [0], [1], [0, 0, 1, 1], [], []>} : vector<6x16xbf16>, vector<16x16xbf16>, vector<6x16xf32> -> vector<6x16xf32>
    %67 = arith.addf %61, %66 : vector<6x16xf32>
    %c0_55 = arith.constant 0 : index
    %c0_56 = arith.constant 0 : index
    %68 = vector.load %arg5[%c0_55, %c0_56] : memref<1x16xf32, #tpu.memory_space<vmem>>, vector<1x16xf32>
    %69 = vector.broadcast %68 : vector<1x16xf32> to vector<6x16xf32>
    %70 = arith.addf %67, %69 : vector<6x16xf32>
    %cst_57 = arith.constant 0.000000e+00 : f32
    %71 = vector.broadcast %cst_57 : f32 to vector<6x16xf32>
    %72 = arith.maximumf %70, %71 : vector<6x16xf32>
    %c0_58 = arith.constant 0 : index
    %c0_59 = arith.constant 0 : index
    %73 = vector.load %arg7[%c0_58, %c0_59] : memref<6x1xf32, #tpu.memory_space<vmem>>, vector<6x1xf32>
    %74 = vector.broadcast %73 : vector<6x1xf32> to vector<6x16xf32>
    %75 = arith.mulf %72, %74 : vector<6x16xf32>
    %c0_60 = arith.constant 0 : index
    %c0_61 = arith.constant 0 : index
    %c0_62 = arith.constant 0 : index
    %76 = vector.load %arg1[%c0_60, %c0_61, %c0_62] : memref<1x16x32xbf16, #tpu.memory_space<vmem>>, vector<1x16x16xbf16>
    %77 = vector.shape_cast %76 : vector<1x16x16xbf16> to vector<16x16xbf16>
    %c0_63 = arith.constant 0 : index
    %c0_64 = arith.constant 0 : index
    %c0_65 = arith.constant 0 : index
    %c0_66 = arith.constant 0 : index
    %78 = vector.load %arg8[%c0_63, %c0_64, %c0_65, %c0_66] : memref<1x2x16x16xbf16, #tpu.memory_space<vmem>>, vector<1x1x16x16xbf16>
    %79 = vector.shape_cast %78 : vector<1x1x16x16xbf16> to vector<16x16xbf16>
    %80 = vector.shape_cast %77 : vector<16x16xbf16> to vector<1x1x16x16xbf16>
    tpu.vector_store %arg8[%c0_63, %c0_64, %c0_65, %c0_66], %80 {strides = array<i32>} : memref<1x2x16x16xbf16, #tpu.memory_space<vmem>>, vector<1x1x16x16xbf16>,
    %cst_67 = arith.constant 0.000000e+00 : bf16
    %81 = vector.broadcast %cst_67 : bf16 to vector<16x16xbf16>
    %c0_68 = arith.constant 0 : index
    %c1_69 = arith.constant 1 : index
    %c0_70 = arith.constant 0 : index
    %c0_71 = arith.constant 0 : index
    %82 = vector.load %arg8[%c0_68, %c1_69, %c0_70, %c0_71] : memref<1x2x16x16xbf16, #tpu.memory_space<vmem>>, vector<1x1x16x16xbf16>
    %83 = vector.shape_cast %82 : vector<1x1x16x16xbf16> to vector<16x16xbf16>
    %84 = vector.shape_cast %81 : vector<16x16xbf16> to vector<1x1x16x16xbf16>
    tpu.vector_store %arg8[%c0_68, %c1_69, %c0_70, %c0_71], %84 {strides = array<i32>} : memref<1x2x16x16xbf16, #tpu.memory_space<vmem>>, vector<1x1x16x16xbf16>,
    %85 = arith.truncf %75 : vector<6x16xf32> to vector<6x16xbf16>
    %c0_72 = arith.constant 0 : index
    %c1_73 = arith.constant 1 : index
    %c5_74 = arith.constant 5 : index
    %c0_75 = arith.constant 0 : index
    %86 = vector.load %arg8[%c0_72, %c1_73, %c5_74, %c0_75] : memref<1x2x16x16xbf16, #tpu.memory_space<vmem>>, vector<1x1x6x16xbf16>
    %87 = vector.shape_cast %86 : vector<1x1x6x16xbf16> to vector<6x16xbf16>
    %88 = vector.shape_cast %85 : vector<6x16xbf16> to vector<1x1x6x16xbf16>
    tpu.vector_store %arg8[%c0_72, %c1_73, %c5_74, %c0_75], %88 {strides = array<i32>} : memref<1x2x16x16xbf16, #tpu.memory_space<vmem>>, vector<1x1x6x16xbf16>,
    return
  }
  func.func @transform_0(%arg0: i32) -> (i32, i32, i32) {
    %c0_i32 = arith.constant 0 : i32
    %c0_i32_0 = arith.constant 0 : i32
    %c0_i32_1 = arith.constant 0 : i32
    return %arg0, %c0_i32, %c0_i32_0 : i32, i32, i32
  }
  func.func @transform_1(%arg0: i32) -> (i32, i32) {
    %c0_i32 = arith.constant 0 : i32
    %c0_i32_0 = arith.constant 0 : i32
    %c0_i32_1 = arith.constant 0 : i32
    return %c0_i32, %c0_i32_0 : i32, i32
  }
  func.func @transform_2(%arg0: i32) -> (i32, i32) {
    %c0_i32 = arith.constant 0 : i32
    %c0_i32_0 = arith.constant 0 : i32
    %c0_i32_1 = arith.constant 0 : i32
    return %c0_i32, %c0_i32_0 : i32, i32
  }
  func.func @transform_3(%arg0: i32) -> (i32, i32, i32) {
    %c0_i32 = arith.constant 0 : i32
    %c0_i32_0 = arith.constant 0 : i32
    %c0_i32_1 = arith.constant 0 : i32
    %c0_i32_2 = arith.constant 0 : i32
    return %c0_i32, %c0_i32_0, %c0_i32_1 : i32, i32, i32
  }
  func.func @transform_4(%arg0: i32) -> (i32, i32) {
    %c0_i32 = arith.constant 0 : i32
    %c0_i32_0 = arith.constant 0 : i32
    %c0_i32_1 = arith.constant 0 : i32
    return %c0_i32, %c0_i32_0 : i32, i32
  }
  func.func @transform_5(%arg0: i32) -> (i32, i32) {
    %c0_i32 = arith.constant 0 : i32
    %c0_i32_0 = arith.constant 0 : i32
    %c0_i32_1 = arith.constant 0 : i32
    return %c0_i32, %c0_i32_0 : i32, i32
  }
  func.func @transform_6(%arg0: i32) -> (i32, i32) {
    %c0_i32 = arith.constant 0 : i32
    %c0_i32_0 = arith.constant 0 : i32
    %c0_i32_1 = arith.constant 0 : i32
    return %c0_i32, %c0_i32_0 : i32, i32
  }
  func.func @transform_7(%arg0: i32) -> (i32, i32, i32, i32) {
    %c0_i32 = arith.constant 0 : i32
    %c0_i32_0 = arith.constant 0 : i32
    %c0_i32_1 = arith.constant 0 : i32
    %c0_i32_2 = arith.constant 0 : i32
    return %arg0, %c0_i32, %c0_i32_0, %c0_i32_1 : i32, i32, i32, i32
  }
}

module attributes {stable_mosaic.version = 11 : i64} {
  func.func @_block_s2_kernel(%arg0: i32, %arg1: memref<1x2x2x9x32xbf16, #tpu.memory_space<vmem>>, %arg2: memref<9x32x32xbf16, #tpu.memory_space<vmem>>, %arg3: memref<1x32xf32, #tpu.memory_space<vmem>>, %arg4: memref<32x32xbf16, #tpu.memory_space<vmem>>, %arg5: memref<1x32xf32, #tpu.memory_space<vmem>>, %arg6: memref<9x32x32xbf16, #tpu.memory_space<vmem>>, %arg7: memref<1x32xf32, #tpu.memory_space<vmem>>, %arg8: memref<2x2x9x1xf32, #tpu.memory_space<vmem>>, %arg9: memref<1x1xf32, #tpu.memory_space<vmem>>, %arg10: memref<1x2x9x32xbf16, #tpu.memory_space<vmem>>, %arg11: memref<2x2x9x32xf32, #tpu.memory_space<vmem>>) attributes {dimension_semantics = [#tpu.dimension_semantics<parallel>], iteration_bounds = array<i64: 2>, scalar_prefetch = 0 : i64, scratch_operands = 1 : i64, tpu.core_type = #tpu.core_type<tc>, window_params = [{transform_indices = @transform_0, window_bounds = array<i64: 1, 2, 2, 9, 32>}, {pipeline_mode = #tpu.pipeline_mode<synchronous>, transform_indices = @transform_1, window_bounds = array<i64: 9, 32, 32>}, {pipeline_mode = #tpu.pipeline_mode<synchronous>, transform_indices = @transform_2, window_bounds = array<i64: 1, 32>}, {pipeline_mode = #tpu.pipeline_mode<synchronous>, transform_indices = @transform_3, window_bounds = array<i64: 32, 32>}, {pipeline_mode = #tpu.pipeline_mode<synchronous>, transform_indices = @transform_4, window_bounds = array<i64: 1, 32>}, {pipeline_mode = #tpu.pipeline_mode<synchronous>, transform_indices = @transform_5, window_bounds = array<i64: 9, 32, 32>}, {pipeline_mode = #tpu.pipeline_mode<synchronous>, transform_indices = @transform_6, window_bounds = array<i64: 1, 32>}, {pipeline_mode = #tpu.pipeline_mode<synchronous>, transform_indices = @transform_7, window_bounds = array<i64: 2, 2, 9, 1>}, {pipeline_mode = #tpu.pipeline_mode<synchronous>, transform_indices = @transform_8, window_bounds = array<i64: 1, 1>}, {transform_indices = @transform_9, window_bounds = array<i64: 1, 2, 9, 32>}]} {
    %c0 = arith.constant 0 : index
    %c0_0 = arith.constant 0 : index
    %0 = vector.load %arg4[%c0, %c0_0] : memref<32x32xbf16, #tpu.memory_space<vmem>>, vector<32x32xbf16>
    %c0_1 = arith.constant 0 : index
    %c0_2 = arith.constant 0 : index
    %1 = vector.load %arg5[%c0_1, %c0_2] : memref<1x32xf32, #tpu.memory_space<vmem>>, vector<1x32xf32>
    %c0_3 = arith.constant 0 : index
    %c0_4 = arith.constant 0 : index
    %c0_5 = arith.constant 0 : index
    %c0_6 = arith.constant 0 : index
    %c0_7 = arith.constant 0 : index
    %2 = vector.load %arg1[%c0_3, %c0_4, %c0_5, %c0_6, %c0_7] : memref<1x2x2x9x32xbf16, #tpu.memory_space<vmem>>, vector<1x1x1x9x32xbf16>
    %3 = vector.shape_cast %2 : vector<1x1x1x9x32xbf16> to vector<9x32xbf16>
    %cst = arith.constant dense<0.000000e+00> : vector<9x32xf32>
    %4 = tpu.matmul %3, %0, %cst {dimension_numbers = #tpu.dot_dimension_numbers<[1], [0], [0], [1], [0, 0, 1, 1], [], []>} : vector<9x32xbf16>, vector<32x32xbf16>, vector<9x32xf32> -> vector<9x32xf32>
    %5 = vector.broadcast %1 : vector<1x32xf32> to vector<9x32xf32>
    %6 = arith.addf %4, %5 : vector<9x32xf32>
    %cst_8 = arith.constant 0.000000e+00 : f32
    %7 = vector.broadcast %cst_8 : f32 to vector<9x32xf32>
    %8 = arith.maximumf %6, %7 : vector<9x32xf32>
    %c0_9 = arith.constant 0 : index
    %c0_10 = arith.constant 0 : index
    %c0_11 = arith.constant 0 : index
    %c0_12 = arith.constant 0 : index
    %9 = vector.load %arg8[%c0_9, %c0_10, %c0_11, %c0_12] : memref<2x2x9x1xf32, #tpu.memory_space<vmem>>, vector<1x1x9x1xf32>
    %10 = vector.shape_cast %9 : vector<1x1x9x1xf32> to vector<9x1xf32>
    %11 = vector.broadcast %10 : vector<9x1xf32> to vector<9x32xf32>
    %12 = arith.mulf %8, %11 : vector<9x32xf32>
    %c0_13 = arith.constant 0 : index
    %c0_14 = arith.constant 0 : index
    %c0_15 = arith.constant 0 : index
    %c0_16 = arith.constant 0 : index
    %13 = vector.load %arg11[%c0_13, %c0_14, %c0_15, %c0_16] : memref<2x2x9x32xf32, #tpu.memory_space<vmem>>, vector<1x1x9x32xf32>
    %14 = vector.shape_cast %13 : vector<1x1x9x32xf32> to vector<9x32xf32>
    %15 = vector.shape_cast %12 : vector<9x32xf32> to vector<1x1x9x32xf32>
    tpu.vector_store %arg11[%c0_13, %c0_14, %c0_15, %c0_16], %15 {strides = array<i32>} : memref<2x2x9x32xf32, #tpu.memory_space<vmem>>, vector<1x1x9x32xf32>,
    %c0_17 = arith.constant 0 : index
    %c0_18 = arith.constant 0 : index
    %c1 = arith.constant 1 : index
    %c0_19 = arith.constant 0 : index
    %c0_20 = arith.constant 0 : index
    %16 = vector.load %arg1[%c0_17, %c0_18, %c1, %c0_19, %c0_20] : memref<1x2x2x9x32xbf16, #tpu.memory_space<vmem>>, vector<1x1x1x9x32xbf16>
    %17 = vector.shape_cast %16 : vector<1x1x1x9x32xbf16> to vector<9x32xbf16>
    %cst_21 = arith.constant dense<0.000000e+00> : vector<9x32xf32>
    %18 = tpu.matmul %17, %0, %cst_21 {dimension_numbers = #tpu.dot_dimension_numbers<[1], [0], [0], [1], [0, 0, 1, 1], [], []>} : vector<9x32xbf16>, vector<32x32xbf16>, vector<9x32xf32> -> vector<9x32xf32>
    %19 = vector.broadcast %1 : vector<1x32xf32> to vector<9x32xf32>
    %20 = arith.addf %18, %19 : vector<9x32xf32>
    %cst_22 = arith.constant 0.000000e+00 : f32
    %21 = vector.broadcast %cst_22 : f32 to vector<9x32xf32>
    %22 = arith.maximumf %20, %21 : vector<9x32xf32>
    %c0_23 = arith.constant 0 : index
    %c1_24 = arith.constant 1 : index
    %c0_25 = arith.constant 0 : index
    %c0_26 = arith.constant 0 : index
    %23 = vector.load %arg8[%c0_23, %c1_24, %c0_25, %c0_26] : memref<2x2x9x1xf32, #tpu.memory_space<vmem>>, vector<1x1x9x1xf32>
    %24 = vector.shape_cast %23 : vector<1x1x9x1xf32> to vector<9x1xf32>
    %25 = vector.broadcast %24 : vector<9x1xf32> to vector<9x32xf32>
    %26 = arith.mulf %22, %25 : vector<9x32xf32>
    %c0_27 = arith.constant 0 : index
    %c1_28 = arith.constant 1 : index
    %c0_29 = arith.constant 0 : index
    %c0_30 = arith.constant 0 : index
    %27 = vector.load %arg11[%c0_27, %c1_28, %c0_29, %c0_30] : memref<2x2x9x32xf32, #tpu.memory_space<vmem>>, vector<1x1x9x32xf32>
    %28 = vector.shape_cast %27 : vector<1x1x9x32xf32> to vector<9x32xf32>
    %29 = vector.shape_cast %26 : vector<9x32xf32> to vector<1x1x9x32xf32>
    tpu.vector_store %arg11[%c0_27, %c1_28, %c0_29, %c0_30], %29 {strides = array<i32>} : memref<2x2x9x32xf32, #tpu.memory_space<vmem>>, vector<1x1x9x32xf32>,
    %c0_31 = arith.constant 0 : index
    %c1_32 = arith.constant 1 : index
    %c0_33 = arith.constant 0 : index
    %c0_34 = arith.constant 0 : index
    %c0_35 = arith.constant 0 : index
    %30 = vector.load %arg1[%c0_31, %c1_32, %c0_33, %c0_34, %c0_35] : memref<1x2x2x9x32xbf16, #tpu.memory_space<vmem>>, vector<1x1x1x9x32xbf16>
    %31 = vector.shape_cast %30 : vector<1x1x1x9x32xbf16> to vector<9x32xbf16>
    %cst_36 = arith.constant dense<0.000000e+00> : vector<9x32xf32>
    %32 = tpu.matmul %31, %0, %cst_36 {dimension_numbers = #tpu.dot_dimension_numbers<[1], [0], [0], [1], [0, 0, 1, 1], [], []>} : vector<9x32xbf16>, vector<32x32xbf16>, vector<9x32xf32> -> vector<9x32xf32>
    %33 = vector.broadcast %1 : vector<1x32xf32> to vector<9x32xf32>
    %34 = arith.addf %32, %33 : vector<9x32xf32>
    %cst_37 = arith.constant 0.000000e+00 : f32
    %35 = vector.broadcast %cst_37 : f32 to vector<9x32xf32>
    %36 = arith.maximumf %34, %35 : vector<9x32xf32>
    %c1_38 = arith.constant 1 : index
    %c0_39 = arith.constant 0 : index
    %c0_40 = arith.constant 0 : index
    %c0_41 = arith.constant 0 : index
    %37 = vector.load %arg8[%c1_38, %c0_39, %c0_40, %c0_41] : memref<2x2x9x1xf32, #tpu.memory_space<vmem>>, vector<1x1x9x1xf32>
    %38 = vector.shape_cast %37 : vector<1x1x9x1xf32> to vector<9x1xf32>
    %39 = vector.broadcast %38 : vector<9x1xf32> to vector<9x32xf32>
    %40 = arith.mulf %36, %39 : vector<9x32xf32>
    %c1_42 = arith.constant 1 : index
    %c0_43 = arith.constant 0 : index
    %c0_44 = arith.constant 0 : index
    %c0_45 = arith.constant 0 : index
    %41 = vector.load %arg11[%c1_42, %c0_43, %c0_44, %c0_45] : memref<2x2x9x32xf32, #tpu.memory_space<vmem>>, vector<1x1x9x32xf32>
    %42 = vector.shape_cast %41 : vector<1x1x9x32xf32> to vector<9x32xf32>
    %43 = vector.shape_cast %40 : vector<9x32xf32> to vector<1x1x9x32xf32>
    tpu.vector_store %arg11[%c1_42, %c0_43, %c0_44, %c0_45], %43 {strides = array<i32>} : memref<2x2x9x32xf32, #tpu.memory_space<vmem>>, vector<1x1x9x32xf32>,
    %c0_46 = arith.constant 0 : index
    %c1_47 = arith.constant 1 : index
    %c1_48 = arith.constant 1 : index
    %c0_49 = arith.constant 0 : index
    %c0_50 = arith.constant 0 : index
    %44 = vector.load %arg1[%c0_46, %c1_47, %c1_48, %c0_49, %c0_50] : memref<1x2x2x9x32xbf16, #tpu.memory_space<vmem>>, vector<1x1x1x9x32xbf16>
    %45 = vector.shape_cast %44 : vector<1x1x1x9x32xbf16> to vector<9x32xbf16>
    %cst_51 = arith.constant dense<0.000000e+00> : vector<9x32xf32>
    %46 = tpu.matmul %45, %0, %cst_51 {dimension_numbers = #tpu.dot_dimension_numbers<[1], [0], [0], [1], [0, 0, 1, 1], [], []>} : vector<9x32xbf16>, vector<32x32xbf16>, vector<9x32xf32> -> vector<9x32xf32>
    %47 = vector.broadcast %1 : vector<1x32xf32> to vector<9x32xf32>
    %48 = arith.addf %46, %47 : vector<9x32xf32>
    %cst_52 = arith.constant 0.000000e+00 : f32
    %49 = vector.broadcast %cst_52 : f32 to vector<9x32xf32>
    %50 = arith.maximumf %48, %49 : vector<9x32xf32>
    %c1_53 = arith.constant 1 : index
    %c1_54 = arith.constant 1 : index
    %c0_55 = arith.constant 0 : index
    %c0_56 = arith.constant 0 : index
    %51 = vector.load %arg8[%c1_53, %c1_54, %c0_55, %c0_56] : memref<2x2x9x1xf32, #tpu.memory_space<vmem>>, vector<1x1x9x1xf32>
    %52 = vector.shape_cast %51 : vector<1x1x9x1xf32> to vector<9x1xf32>
    %53 = vector.broadcast %52 : vector<9x1xf32> to vector<9x32xf32>
    %54 = arith.mulf %50, %53 : vector<9x32xf32>
    %c1_57 = arith.constant 1 : index
    %c1_58 = arith.constant 1 : index
    %c0_59 = arith.constant 0 : index
    %c0_60 = arith.constant 0 : index
    %55 = vector.load %arg11[%c1_57, %c1_58, %c0_59, %c0_60] : memref<2x2x9x32xf32, #tpu.memory_space<vmem>>, vector<1x1x9x32xf32>
    %56 = vector.shape_cast %55 : vector<1x1x9x32xf32> to vector<9x32xf32>
    %57 = vector.shape_cast %54 : vector<9x32xf32> to vector<1x1x9x32xf32>
    tpu.vector_store %arg11[%c1_57, %c1_58, %c0_59, %c0_60], %57 {strides = array<i32>} : memref<2x2x9x32xf32, #tpu.memory_space<vmem>>, vector<1x1x9x32xf32>,
    %cst_61 = arith.constant 0.000000e+00 : f32
    %58 = vector.broadcast %cst_61 : f32 to vector<1x32xf32>
    %cst_62 = arith.constant 0.000000e+00 : f32
    %59 = vector.broadcast %cst_62 : f32 to vector<1x32xf32>
    %c0_63 = arith.constant 0 : index
    %c0_64 = arith.constant 0 : index
    %c0_65 = arith.constant 0 : index
    %c0_66 = arith.constant 0 : index
    %c0_67 = arith.constant 0 : index
    %60 = vector.load %arg1[%c0_63, %c0_64, %c0_65, %c0_66, %c0_67] : memref<1x2x2x9x32xbf16, #tpu.memory_space<vmem>>, vector<1x1x1x1x32xbf16>
    %61 = vector.shape_cast %60 : vector<1x1x1x1x32xbf16> to vector<1x32xbf16>
    %c0_68 = arith.constant 0 : index
    %c0_69 = arith.constant 0 : index
    %c0_70 = arith.constant 0 : index
    %62 = vector.load %arg2[%c0_68, %c0_69, %c0_70] : memref<9x32x32xbf16, #tpu.memory_space<vmem>>, vector<1x32x32xbf16>
    %63 = vector.shape_cast %62 : vector<1x32x32xbf16> to vector<32x32xbf16>
    %cst_71 = arith.constant dense<0.000000e+00> : vector<1x32xf32>
    %64 = tpu.matmul %61, %63, %cst_71 {dimension_numbers = #tpu.dot_dimension_numbers<[1], [0], [0], [1], [0, 0, 1, 1], [], []>} : vector<1x32xbf16>, vector<32x32xbf16>, vector<1x32xf32> -> vector<1x32xf32>
    %65 = arith.addf %58, %64 : vector<1x32xf32>
    %c0_72 = arith.constant 0 : index
    %c0_73 = arith.constant 0 : index
    %c0_74 = arith.constant 0 : index
    %c0_75 = arith.constant 0 : index
    %66 = vector.load %arg11[%c0_72, %c0_73, %c0_74, %c0_75] : memref<2x2x9x32xf32, #tpu.memory_space<vmem>>, vector<1x1x1x32xf32>
    %67 = vector.shape_cast %66 : vector<1x1x1x32xf32> to vector<1x32xf32>
    %68 = arith.truncf %67 : vector<1x32xf32> to vector<1x32xbf16>
    %c0_76 = arith.constant 0 : index
    %c0_77 = arith.constant 0 : index
    %c0_78 = arith.constant 0 : index
    %69 = vector.load %arg6[%c0_76, %c0_77, %c0_78] : memref<9x32x32xbf16, #tpu.memory_space<vmem>>, vector<1x32x32xbf16>
    %70 = vector.shape_cast %69 : vector<1x32x32xbf16> to vector<32x32xbf16>
    %cst_79 = arith.constant dense<0.000000e+00> : vector<1x32xf32>
    %71 = tpu.matmul %68, %70, %cst_79 {dimension_numbers = #tpu.dot_dimension_numbers<[1], [0], [0], [1], [0, 0, 1, 1], [], []>} : vector<1x32xbf16>, vector<32x32xbf16>, vector<1x32xf32> -> vector<1x32xf32>
    %72 = arith.addf %59, %71 : vector<1x32xf32>
    %c0_80 = arith.constant 0 : index
    %c0_81 = arith.constant 0 : index
    %c1_82 = arith.constant 1 : index
    %c0_83 = arith.constant 0 : index
    %c0_84 = arith.constant 0 : index
    %73 = vector.load %arg1[%c0_80, %c0_81, %c1_82, %c0_83, %c0_84] : memref<1x2x2x9x32xbf16, #tpu.memory_space<vmem>>, vector<1x1x1x1x32xbf16>
    %74 = vector.shape_cast %73 : vector<1x1x1x1x32xbf16> to vector<1x32xbf16>
    %c1_85 = arith.constant 1 : index
    %c0_86 = arith.constant 0 : index
    %c0_87 = arith.constant 0 : index
    %75 = vector.load %arg2[%c1_85, %c0_86, %c0_87] : memref<9x32x32xbf16, #tpu.memory_space<vmem>>, vector<1x32x32xbf16>
    %76 = vector.shape_cast %75 : vector<1x32x32xbf16> to vector<32x32xbf16>
    %cst_88 = arith.constant dense<0.000000e+00> : vector<1x32xf32>
    %77 = tpu.matmul %74, %76, %cst_88 {dimension_numbers = #tpu.dot_dimension_numbers<[1], [0], [0], [1], [0, 0, 1, 1], [], []>} : vector<1x32xbf16>, vector<32x32xbf16>, vector<1x32xf32> -> vector<1x32xf32>
    %78 = arith.addf %65, %77 : vector<1x32xf32>
    %c0_89 = arith.constant 0 : index
    %c1_90 = arith.constant 1 : index
    %c0_91 = arith.constant 0 : index
    %c0_92 = arith.constant 0 : index
    %79 = vector.load %arg11[%c0_89, %c1_90, %c0_91, %c0_92] : memref<2x2x9x32xf32, #tpu.memory_space<vmem>>, vector<1x1x1x32xf32>
    %80 = vector.shape_cast %79 : vector<1x1x1x32xf32> to vector<1x32xf32>
    %81 = arith.truncf %80 : vector<1x32xf32> to vector<1x32xbf16>
    %c1_93 = arith.constant 1 : index
    %c0_94 = arith.constant 0 : index
    %c0_95 = arith.constant 0 : index
    %82 = vector.load %arg6[%c1_93, %c0_94, %c0_95] : memref<9x32x32xbf16, #tpu.memory_space<vmem>>, vector<1x32x32xbf16>
    %83 = vector.shape_cast %82 : vector<1x32x32xbf16> to vector<32x32xbf16>
    %cst_96 = arith.constant dense<0.000000e+00> : vector<1x32xf32>
    %84 = tpu.matmul %81, %83, %cst_96 {dimension_numbers = #tpu.dot_dimension_numbers<[1], [0], [0], [1], [0, 0, 1, 1], [], []>} : vector<1x32xbf16>, vector<32x32xbf16>, vector<1x32xf32> -> vector<1x32xf32>
    %85 = arith.addf %72, %84 : vector<1x32xf32>
    %c0_97 = arith.constant 0 : index
    %c0_98 = arith.constant 0 : index
    %c0_99 = arith.constant 0 : index
    %c1_100 = arith.constant 1 : index
    %c0_101 = arith.constant 0 : index
    %86 = vector.load %arg1[%c0_97, %c0_98, %c0_99, %c1_100, %c0_101] : memref<1x2x2x9x32xbf16, #tpu.memory_space<vmem>>, vector<1x1x1x1x32xbf16>
    %87 = vector.shape_cast %86 : vector<1x1x1x1x32xbf16> to vector<1x32xbf16>
    %c2 = arith.constant 2 : index
    %c0_102 = arith.constant 0 : index
    %c0_103 = arith.constant 0 : index
    %88 = vector.load %arg2[%c2, %c0_102, %c0_103] : memref<9x32x32xbf16, #tpu.memory_space<vmem>>, vector<1x32x32xbf16>
    %89 = vector.shape_cast %88 : vector<1x32x32xbf16> to vector<32x32xbf16>
    %cst_104 = arith.constant dense<0.000000e+00> : vector<1x32xf32>
    %90 = tpu.matmul %87, %89, %cst_104 {dimension_numbers = #tpu.dot_dimension_numbers<[1], [0], [0], [1], [0, 0, 1, 1], [], []>} : vector<1x32xbf16>, vector<32x32xbf16>, vector<1x32xf32> -> vector<1x32xf32>
    %91 = arith.addf %78, %90 : vector<1x32xf32>
    %c0_105 = arith.constant 0 : index
    %c0_106 = arith.constant 0 : index
    %c1_107 = arith.constant 1 : index
    %c0_108 = arith.constant 0 : index
    %92 = vector.load %arg11[%c0_105, %c0_106, %c1_107, %c0_108] : memref<2x2x9x32xf32, #tpu.memory_space<vmem>>, vector<1x1x1x32xf32>
    %93 = vector.shape_cast %92 : vector<1x1x1x32xf32> to vector<1x32xf32>
    %94 = arith.truncf %93 : vector<1x32xf32> to vector<1x32xbf16>
    %c2_109 = arith.constant 2 : index
    %c0_110 = arith.constant 0 : index
    %c0_111 = arith.constant 0 : index
    %95 = vector.load %arg6[%c2_109, %c0_110, %c0_111] : memref<9x32x32xbf16, #tpu.memory_space<vmem>>, vector<1x32x32xbf16>
    %96 = vector.shape_cast %95 : vector<1x32x32xbf16> to vector<32x32xbf16>
    %cst_112 = arith.constant dense<0.000000e+00> : vector<1x32xf32>
    %97 = tpu.matmul %94, %96, %cst_112 {dimension_numbers = #tpu.dot_dimension_numbers<[1], [0], [0], [1], [0, 0, 1, 1], [], []>} : vector<1x32xbf16>, vector<32x32xbf16>, vector<1x32xf32> -> vector<1x32xf32>
    %98 = arith.addf %85, %97 : vector<1x32xf32>
    %c0_113 = arith.constant 0 : index
    %c1_114 = arith.constant 1 : index
    %c0_115 = arith.constant 0 : index
    %c0_116 = arith.constant 0 : index
    %c0_117 = arith.constant 0 : index
    %99 = vector.load %arg1[%c0_113, %c1_114, %c0_115, %c0_116, %c0_117] : memref<1x2x2x9x32xbf16, #tpu.memory_space<vmem>>, vector<1x1x1x1x32xbf16>
    %100 = vector.shape_cast %99 : vector<1x1x1x1x32xbf16> to vector<1x32xbf16>
    %c3 = arith.constant 3 : index
    %c0_118 = arith.constant 0 : index
    %c0_119 = arith.constant 0 : index
    %101 = vector.load %arg2[%c3, %c0_118, %c0_119] : memref<9x32x32xbf16, #tpu.memory_space<vmem>>, vector<1x32x32xbf16>
    %102 = vector.shape_cast %101 : vector<1x32x32xbf16> to vector<32x32xbf16>
    %cst_120 = arith.constant dense<0.000000e+00> : vector<1x32xf32>
    %103 = tpu.matmul %100, %102, %cst_120 {dimension_numbers = #tpu.dot_dimension_numbers<[1], [0], [0], [1], [0, 0, 1, 1], [], []>} : vector<1x32xbf16>, vector<32x32xbf16>, vector<1x32xf32> -> vector<1x32xf32>
    %104 = arith.addf %91, %103 : vector<1x32xf32>
    %c1_121 = arith.constant 1 : index
    %c0_122 = arith.constant 0 : index
    %c0_123 = arith.constant 0 : index
    %c0_124 = arith.constant 0 : index
    %105 = vector.load %arg11[%c1_121, %c0_122, %c0_123, %c0_124] : memref<2x2x9x32xf32, #tpu.memory_space<vmem>>, vector<1x1x1x32xf32>
    %106 = vector.shape_cast %105 : vector<1x1x1x32xf32> to vector<1x32xf32>
    %107 = arith.truncf %106 : vector<1x32xf32> to vector<1x32xbf16>
    %c3_125 = arith.constant 3 : index
    %c0_126 = arith.constant 0 : index
    %c0_127 = arith.constant 0 : index
    %108 = vector.load %arg6[%c3_125, %c0_126, %c0_127] : memref<9x32x32xbf16, #tpu.memory_space<vmem>>, vector<1x32x32xbf16>
    %109 = vector.shape_cast %108 : vector<1x32x32xbf16> to vector<32x32xbf16>
    %cst_128 = arith.constant dense<0.000000e+00> : vector<1x32xf32>
    %110 = tpu.matmul %107, %109, %cst_128 {dimension_numbers = #tpu.dot_dimension_numbers<[1], [0], [0], [1], [0, 0, 1, 1], [], []>} : vector<1x32xbf16>, vector<32x32xbf16>, vector<1x32xf32> -> vector<1x32xf32>
    %111 = arith.addf %98, %110 : vector<1x32xf32>
    %c0_129 = arith.constant 0 : index
    %c1_130 = arith.constant 1 : index
    %c1_131 = arith.constant 1 : index
    %c0_132 = arith.constant 0 : index
    %c0_133 = arith.constant 0 : index
    %112 = vector.load %arg1[%c0_129, %c1_130, %c1_131, %c0_132, %c0_133] : memref<1x2x2x9x32xbf16, #tpu.memory_space<vmem>>, vector<1x1x1x1x32xbf16>
    %113 = vector.shape_cast %112 : vector<1x1x1x1x32xbf16> to vector<1x32xbf16>
    %c4 = arith.constant 4 : index
    %c0_134 = arith.constant 0 : index
    %c0_135 = arith.constant 0 : index
    %114 = vector.load %arg2[%c4, %c0_134, %c0_135] : memref<9x32x32xbf16, #tpu.memory_space<vmem>>, vector<1x32x32xbf16>
    %115 = vector.shape_cast %114 : vector<1x32x32xbf16> to vector<32x32xbf16>
    %cst_136 = arith.constant dense<0.000000e+00> : vector<1x32xf32>
    %116 = tpu.matmul %113, %115, %cst_136 {dimension_numbers = #tpu.dot_dimension_numbers<[1], [0], [0], [1], [0, 0, 1, 1], [], []>} : vector<1x32xbf16>, vector<32x32xbf16>, vector<1x32xf32> -> vector<1x32xf32>
    %117 = arith.addf %104, %116 : vector<1x32xf32>
    %c1_137 = arith.constant 1 : index
    %c1_138 = arith.constant 1 : index
    %c0_139 = arith.constant 0 : index
    %c0_140 = arith.constant 0 : index
    %118 = vector.load %arg11[%c1_137, %c1_138, %c0_139, %c0_140] : memref<2x2x9x32xf32, #tpu.memory_space<vmem>>, vector<1x1x1x32xf32>
    %119 = vector.shape_cast %118 : vector<1x1x1x32xf32> to vector<1x32xf32>
    %120 = arith.truncf %119 : vector<1x32xf32> to vector<1x32xbf16>
    %c4_141 = arith.constant 4 : index
    %c0_142 = arith.constant 0 : index
    %c0_143 = arith.constant 0 : index
    %121 = vector.load %arg6[%c4_141, %c0_142, %c0_143] : memref<9x32x32xbf16, #tpu.memory_space<vmem>>, vector<1x32x32xbf16>
    %122 = vector.shape_cast %121 : vector<1x32x32xbf16> to vector<32x32xbf16>
    %cst_144 = arith.constant dense<0.000000e+00> : vector<1x32xf32>
    %123 = tpu.matmul %120, %122, %cst_144 {dimension_numbers = #tpu.dot_dimension_numbers<[1], [0], [0], [1], [0, 0, 1, 1], [], []>} : vector<1x32xbf16>, vector<32x32xbf16>, vector<1x32xf32> -> vector<1x32xf32>
    %124 = arith.addf %111, %123 : vector<1x32xf32>
    %c0_145 = arith.constant 0 : index
    %c1_146 = arith.constant 1 : index
    %c0_147 = arith.constant 0 : index
    %c1_148 = arith.constant 1 : index
    %c0_149 = arith.constant 0 : index
    %125 = vector.load %arg1[%c0_145, %c1_146, %c0_147, %c1_148, %c0_149] : memref<1x2x2x9x32xbf16, #tpu.memory_space<vmem>>, vector<1x1x1x1x32xbf16>
    %126 = vector.shape_cast %125 : vector<1x1x1x1x32xbf16> to vector<1x32xbf16>
    %c5 = arith.constant 5 : index
    %c0_150 = arith.constant 0 : index
    %c0_151 = arith.constant 0 : index
    %127 = vector.load %arg2[%c5, %c0_150, %c0_151] : memref<9x32x32xbf16, #tpu.memory_space<vmem>>, vector<1x32x32xbf16>
    %128 = vector.shape_cast %127 : vector<1x32x32xbf16> to vector<32x32xbf16>
    %cst_152 = arith.constant dense<0.000000e+00> : vector<1x32xf32>
    %129 = tpu.matmul %126, %128, %cst_152 {dimension_numbers = #tpu.dot_dimension_numbers<[1], [0], [0], [1], [0, 0, 1, 1], [], []>} : vector<1x32xbf16>, vector<32x32xbf16>, vector<1x32xf32> -> vector<1x32xf32>
    %130 = arith.addf %117, %129 : vector<1x32xf32>
    %c1_153 = arith.constant 1 : index
    %c0_154 = arith.constant 0 : index
    %c1_155 = arith.constant 1 : index
    %c0_156 = arith.constant 0 : index
    %131 = vector.load %arg11[%c1_153, %c0_154, %c1_155, %c0_156] : memref<2x2x9x32xf32, #tpu.memory_space<vmem>>, vector<1x1x1x32xf32>
    %132 = vector.shape_cast %131 : vector<1x1x1x32xf32> to vector<1x32xf32>
    %133 = arith.truncf %132 : vector<1x32xf32> to vector<1x32xbf16>
    %c5_157 = arith.constant 5 : index
    %c0_158 = arith.constant 0 : index
    %c0_159 = arith.constant 0 : index
    %134 = vector.load %arg6[%c5_157, %c0_158, %c0_159] : memref<9x32x32xbf16, #tpu.memory_space<vmem>>, vector<1x32x32xbf16>
    %135 = vector.shape_cast %134 : vector<1x32x32xbf16> to vector<32x32xbf16>
    %cst_160 = arith.constant dense<0.000000e+00> : vector<1x32xf32>
    %136 = tpu.matmul %133, %135, %cst_160 {dimension_numbers = #tpu.dot_dimension_numbers<[1], [0], [0], [1], [0, 0, 1, 1], [], []>} : vector<1x32xbf16>, vector<32x32xbf16>, vector<1x32xf32> -> vector<1x32xf32>
    %137 = arith.addf %124, %136 : vector<1x32xf32>
    %c0_161 = arith.constant 0 : index
    %c0_162 = arith.constant 0 : index
    %c0_163 = arith.constant 0 : index
    %c3_164 = arith.constant 3 : index
    %c0_165 = arith.constant 0 : index
    %138 = vector.load %arg1[%c0_161, %c0_162, %c0_163, %c3_164, %c0_165] : memref<1x2x2x9x32xbf16, #tpu.memory_space<vmem>>, vector<1x1x1x1x32xbf16>
    %139 = vector.shape_cast %138 : vector<1x1x1x1x32xbf16> to vector<1x32xbf16>
    %c6 = arith.constant 6 : index
    %c0_166 = arith.constant 0 : index
    %c0_167 = arith.constant 0 : index
    %140 = vector.load %arg2[%c6, %c0_166, %c0_167] : memref<9x32x32xbf16, #tpu.memory_space<vmem>>, vector<1x32x32xbf16>
    %141 = vector.shape_cast %140 : vector<1x32x32xbf16> to vector<32x32xbf16>
    %cst_168 = arith.constant dense<0.000000e+00> : vector<1x32xf32>
    %142 = tpu.matmul %139, %141, %cst_168 {dimension_numbers = #tpu.dot_dimension_numbers<[1], [0], [0], [1], [0, 0, 1, 1], [], []>} : vector<1x32xbf16>, vector<32x32xbf16>, vector<1x32xf32> -> vector<1x32xf32>
    %143 = arith.addf %130, %142 : vector<1x32xf32>
    %c0_169 = arith.constant 0 : index
    %c0_170 = arith.constant 0 : index
    %c3_171 = arith.constant 3 : index
    %c0_172 = arith.constant 0 : index
    %144 = vector.load %arg11[%c0_169, %c0_170, %c3_171, %c0_172] : memref<2x2x9x32xf32, #tpu.memory_space<vmem>>, vector<1x1x1x32xf32>
    %145 = vector.shape_cast %144 : vector<1x1x1x32xf32> to vector<1x32xf32>
    %146 = arith.truncf %145 : vector<1x32xf32> to vector<1x32xbf16>
    %c6_173 = arith.constant 6 : index
    %c0_174 = arith.constant 0 : index
    %c0_175 = arith.constant 0 : index
    %147 = vector.load %arg6[%c6_173, %c0_174, %c0_175] : memref<9x32x32xbf16, #tpu.memory_space<vmem>>, vector<1x32x32xbf16>
    %148 = vector.shape_cast %147 : vector<1x32x32xbf16> to vector<32x32xbf16>
    %cst_176 = arith.constant dense<0.000000e+00> : vector<1x32xf32>
    %149 = tpu.matmul %146, %148, %cst_176 {dimension_numbers = #tpu.dot_dimension_numbers<[1], [0], [0], [1], [0, 0, 1, 1], [], []>} : vector<1x32xbf16>, vector<32x32xbf16>, vector<1x32xf32> -> vector<1x32xf32>
    %150 = arith.addf %137, %149 : vector<1x32xf32>
    %c0_177 = arith.constant 0 : index
    %c0_178 = arith.constant 0 : index
    %c1_179 = arith.constant 1 : index
    %c3_180 = arith.constant 3 : index
    %c0_181 = arith.constant 0 : index
    %151 = vector.load %arg1[%c0_177, %c0_178, %c1_179, %c3_180, %c0_181] : memref<1x2x2x9x32xbf16, #tpu.memory_space<vmem>>, vector<1x1x1x1x32xbf16>
    %152 = vector.shape_cast %151 : vector<1x1x1x1x32xbf16> to vector<1x32xbf16>
    %c7 = arith.constant 7 : index
    %c0_182 = arith.constant 0 : index
    %c0_183 = arith.constant 0 : index
    %153 = vector.load %arg2[%c7, %c0_182, %c0_183] : memref<9x32x32xbf16, #tpu.memory_space<vmem>>, vector<1x32x32xbf16>
    %154 = vector.shape_cast %153 : vector<1x32x32xbf16> to vector<32x32xbf16>
    %cst_184 = arith.constant dense<0.000000e+00> : vector<1x32xf32>
    %155 = tpu.matmul %152, %154, %cst_184 {dimension_numbers = #tpu.dot_dimension_numbers<[1], [0], [0], [1], [0, 0, 1, 1], [], []>} : vector<1x32xbf16>, vector<32x32xbf16>, vector<1x32xf32> -> vector<1x32xf32>
    %156 = arith.addf %143, %155 : vector<1x32xf32>
    %c0_185 = arith.constant 0 : index
    %c1_186 = arith.constant 1 : index
    %c3_187 = arith.constant 3 : index
    %c0_188 = arith.constant 0 : index
    %157 = vector.load %arg11[%c0_185, %c1_186, %c3_187, %c0_188] : memref<2x2x9x32xf32, #tpu.memory_space<vmem>>, vector<1x1x1x32xf32>
    %158 = vector.shape_cast %157 : vector<1x1x1x32xf32> to vector<1x32xf32>
    %159 = arith.truncf %158 : vector<1x32xf32> to vector<1x32xbf16>
    %c7_189 = arith.constant 7 : index
    %c0_190 = arith.constant 0 : index
    %c0_191 = arith.constant 0 : index
    %160 = vector.load %arg6[%c7_189, %c0_190, %c0_191] : memref<9x32x32xbf16, #tpu.memory_space<vmem>>, vector<1x32x32xbf16>
    %161 = vector.shape_cast %160 : vector<1x32x32xbf16> to vector<32x32xbf16>
    %cst_192 = arith.constant dense<0.000000e+00> : vector<1x32xf32>
    %162 = tpu.matmul %159, %161, %cst_192 {dimension_numbers = #tpu.dot_dimension_numbers<[1], [0], [0], [1], [0, 0, 1, 1], [], []>} : vector<1x32xbf16>, vector<32x32xbf16>, vector<1x32xf32> -> vector<1x32xf32>
    %163 = arith.addf %150, %162 : vector<1x32xf32>
    %c0_193 = arith.constant 0 : index
    %c0_194 = arith.constant 0 : index
    %c0_195 = arith.constant 0 : index
    %c4_196 = arith.constant 4 : index
    %c0_197 = arith.constant 0 : index
    %164 = vector.load %arg1[%c0_193, %c0_194, %c0_195, %c4_196, %c0_197] : memref<1x2x2x9x32xbf16, #tpu.memory_space<vmem>>, vector<1x1x1x1x32xbf16>
    %165 = vector.shape_cast %164 : vector<1x1x1x1x32xbf16> to vector<1x32xbf16>
    %c8 = arith.constant 8 : index
    %c0_198 = arith.constant 0 : index
    %c0_199 = arith.constant 0 : index
    %166 = vector.load %arg2[%c8, %c0_198, %c0_199] : memref<9x32x32xbf16, #tpu.memory_space<vmem>>, vector<1x32x32xbf16>
    %167 = vector.shape_cast %166 : vector<1x32x32xbf16> to vector<32x32xbf16>
    %cst_200 = arith.constant dense<0.000000e+00> : vector<1x32xf32>
    %168 = tpu.matmul %165, %167, %cst_200 {dimension_numbers = #tpu.dot_dimension_numbers<[1], [0], [0], [1], [0, 0, 1, 1], [], []>} : vector<1x32xbf16>, vector<32x32xbf16>, vector<1x32xf32> -> vector<1x32xf32>
    %169 = arith.addf %156, %168 : vector<1x32xf32>
    %c0_201 = arith.constant 0 : index
    %c0_202 = arith.constant 0 : index
    %c4_203 = arith.constant 4 : index
    %c0_204 = arith.constant 0 : index
    %170 = vector.load %arg11[%c0_201, %c0_202, %c4_203, %c0_204] : memref<2x2x9x32xf32, #tpu.memory_space<vmem>>, vector<1x1x1x32xf32>
    %171 = vector.shape_cast %170 : vector<1x1x1x32xf32> to vector<1x32xf32>
    %172 = arith.truncf %171 : vector<1x32xf32> to vector<1x32xbf16>
    %c8_205 = arith.constant 8 : index
    %c0_206 = arith.constant 0 : index
    %c0_207 = arith.constant 0 : index
    %173 = vector.load %arg6[%c8_205, %c0_206, %c0_207] : memref<9x32x32xbf16, #tpu.memory_space<vmem>>, vector<1x32x32xbf16>
    %174 = vector.shape_cast %173 : vector<1x32x32xbf16> to vector<32x32xbf16>
    %cst_208 = arith.constant dense<0.000000e+00> : vector<1x32xf32>
    %175 = tpu.matmul %172, %174, %cst_208 {dimension_numbers = #tpu.dot_dimension_numbers<[1], [0], [0], [1], [0, 0, 1, 1], [], []>} : vector<1x32xbf16>, vector<32x32xbf16>, vector<1x32xf32> -> vector<1x32xf32>
    %176 = arith.addf %163, %175 : vector<1x32xf32>
    %c0_209 = arith.constant 0 : index
    %c0_210 = arith.constant 0 : index
    %177 = vector.load %arg3[%c0_209, %c0_210] : memref<1x32xf32, #tpu.memory_space<vmem>>, vector<1x32xf32>
    %178 = arith.addf %169, %177 : vector<1x32xf32>
    %cst_211 = arith.constant 0.000000e+00 : f32
    %179 = vector.broadcast %cst_211 : f32 to vector<1x32xf32>
    %180 = arith.maximumf %178, %179 : vector<1x32xf32>
    %c0_212 = arith.constant 0 : index
    %c0_213 = arith.constant 0 : index
    %181 = vector.load %arg9[%c0_212, %c0_213] : memref<1x1xf32, #tpu.memory_space<vmem>>, vector<1x1xf32>
    %182 = vector.broadcast %181 : vector<1x1xf32> to vector<1x32xf32>
    %183 = arith.mulf %180, %182 : vector<1x32xf32>
    %c0_214 = arith.constant 0 : index
    %c0_215 = arith.constant 0 : index
    %184 = vector.load %arg7[%c0_214, %c0_215] : memref<1x32xf32, #tpu.memory_space<vmem>>, vector<1x32xf32>
    %185 = arith.addf %176, %184 : vector<1x32xf32>
    %cst_216 = arith.constant 0.000000e+00 : f32
    %186 = vector.broadcast %cst_216 : f32 to vector<1x32xf32>
    %187 = arith.maximumf %185, %186 : vector<1x32xf32>
    %c0_217 = arith.constant 0 : index
    %c0_218 = arith.constant 0 : index
    %188 = vector.load %arg9[%c0_217, %c0_218] : memref<1x1xf32, #tpu.memory_space<vmem>>, vector<1x1xf32>
    %189 = vector.broadcast %188 : vector<1x1xf32> to vector<1x32xf32>
    %190 = arith.mulf %187, %189 : vector<1x32xf32>
    %cst_219 = arith.constant 0.000000e+00 : bf16
    %191 = vector.broadcast %cst_219 : bf16 to vector<9x32xbf16>
    %c0_220 = arith.constant 0 : index
    %c0_221 = arith.constant 0 : index
    %c0_222 = arith.constant 0 : index
    %c0_223 = arith.constant 0 : index
    %192 = vector.load %arg10[%c0_220, %c0_221, %c0_222, %c0_223] : memref<1x2x9x32xbf16, #tpu.memory_space<vmem>>, vector<1x1x9x32xbf16>
    %193 = vector.shape_cast %192 : vector<1x1x9x32xbf16> to vector<9x32xbf16>
    %194 = vector.shape_cast %191 : vector<9x32xbf16> to vector<1x1x9x32xbf16>
    tpu.vector_store %arg10[%c0_220, %c0_221, %c0_222, %c0_223], %194 {strides = array<i32>} : memref<1x2x9x32xbf16, #tpu.memory_space<vmem>>, vector<1x1x9x32xbf16>,
    %cst_224 = arith.constant 0.000000e+00 : bf16
    %195 = vector.broadcast %cst_224 : bf16 to vector<9x32xbf16>
    %c0_225 = arith.constant 0 : index
    %c1_226 = arith.constant 1 : index
    %c0_227 = arith.constant 0 : index
    %c0_228 = arith.constant 0 : index
    %196 = vector.load %arg10[%c0_225, %c1_226, %c0_227, %c0_228] : memref<1x2x9x32xbf16, #tpu.memory_space<vmem>>, vector<1x1x9x32xbf16>
    %197 = vector.shape_cast %196 : vector<1x1x9x32xbf16> to vector<9x32xbf16>
    %198 = vector.shape_cast %195 : vector<9x32xbf16> to vector<1x1x9x32xbf16>
    tpu.vector_store %arg10[%c0_225, %c1_226, %c0_227, %c0_228], %198 {strides = array<i32>} : memref<1x2x9x32xbf16, #tpu.memory_space<vmem>>, vector<1x1x9x32xbf16>,
    %199 = arith.truncf %183 : vector<1x32xf32> to vector<1x32xbf16>
    %c0_229 = arith.constant 0 : index
    %c0_230 = arith.constant 0 : index
    %c4_231 = arith.constant 4 : index
    %c0_232 = arith.constant 0 : index
    %200 = vector.load %arg10[%c0_229, %c0_230, %c4_231, %c0_232] : memref<1x2x9x32xbf16, #tpu.memory_space<vmem>>, vector<1x1x1x32xbf16>
    %201 = vector.shape_cast %200 : vector<1x1x1x32xbf16> to vector<1x32xbf16>
    %202 = vector.shape_cast %199 : vector<1x32xbf16> to vector<1x1x1x32xbf16>
    tpu.vector_store %arg10[%c0_229, %c0_230, %c4_231, %c0_232], %202 {strides = array<i32>} : memref<1x2x9x32xbf16, #tpu.memory_space<vmem>>, vector<1x1x1x32xbf16>,
    %203 = arith.truncf %190 : vector<1x32xf32> to vector<1x32xbf16>
    %c0_233 = arith.constant 0 : index
    %c1_234 = arith.constant 1 : index
    %c4_235 = arith.constant 4 : index
    %c0_236 = arith.constant 0 : index
    %204 = vector.load %arg10[%c0_233, %c1_234, %c4_235, %c0_236] : memref<1x2x9x32xbf16, #tpu.memory_space<vmem>>, vector<1x1x1x32xbf16>
    %205 = vector.shape_cast %204 : vector<1x1x1x32xbf16> to vector<1x32xbf16>
    %206 = vector.shape_cast %203 : vector<1x32xbf16> to vector<1x1x1x32xbf16>
    tpu.vector_store %arg10[%c0_233, %c1_234, %c4_235, %c0_236], %206 {strides = array<i32>} : memref<1x2x9x32xbf16, #tpu.memory_space<vmem>>, vector<1x1x1x32xbf16>,
    return
  }
  func.func @transform_0(%arg0: i32) -> (i32, i32, i32, i32, i32) {
    %c0_i32 = arith.constant 0 : i32
    %c0_i32_0 = arith.constant 0 : i32
    %c0_i32_1 = arith.constant 0 : i32
    %c0_i32_2 = arith.constant 0 : i32
    %c0_i32_3 = arith.constant 0 : i32
    return %arg0, %c0_i32, %c0_i32_0, %c0_i32_1, %c0_i32_2 : i32, i32, i32, i32, i32
  }
  func.func @transform_1(%arg0: i32) -> (i32, i32, i32) {
    %c0_i32 = arith.constant 0 : i32
    %c0_i32_0 = arith.constant 0 : i32
    %c0_i32_1 = arith.constant 0 : i32
    %c0_i32_2 = arith.constant 0 : i32
    return %c0_i32, %c0_i32_0, %c0_i32_1 : i32, i32, i32
  }
  func.func @transform_2(%arg0: i32) -> (i32, i32) {
    %c0_i32 = arith.constant 0 : i32
    %c0_i32_0 = arith.constant 0 : i32
    %c0_i32_1 = arith.constant 0 : i32
    return %c0_i32, %c0_i32_0 : i32, i32
  }
  func.func @transform_3(%arg0: i32) -> (i32, i32) {
    %c0_i32 = arith.constant 0 : i32
    %c0_i32_0 = arith.constant 0 : i32
    %c0_i32_1 = arith.constant 0 : i32
    return %c0_i32, %c0_i32_0 : i32, i32
  }
  func.func @transform_4(%arg0: i32) -> (i32, i32) {
    %c0_i32 = arith.constant 0 : i32
    %c0_i32_0 = arith.constant 0 : i32
    %c0_i32_1 = arith.constant 0 : i32
    return %c0_i32, %c0_i32_0 : i32, i32
  }
  func.func @transform_5(%arg0: i32) -> (i32, i32, i32) {
    %c0_i32 = arith.constant 0 : i32
    %c0_i32_0 = arith.constant 0 : i32
    %c0_i32_1 = arith.constant 0 : i32
    %c0_i32_2 = arith.constant 0 : i32
    return %c0_i32, %c0_i32_0, %c0_i32_1 : i32, i32, i32
  }
  func.func @transform_6(%arg0: i32) -> (i32, i32) {
    %c0_i32 = arith.constant 0 : i32
    %c0_i32_0 = arith.constant 0 : i32
    %c0_i32_1 = arith.constant 0 : i32
    return %c0_i32, %c0_i32_0 : i32, i32
  }
  func.func @transform_7(%arg0: i32) -> (i32, i32, i32, i32) {
    %c0_i32 = arith.constant 0 : i32
    %c0_i32_0 = arith.constant 0 : i32
    %c0_i32_1 = arith.constant 0 : i32
    %c0_i32_2 = arith.constant 0 : i32
    %c0_i32_3 = arith.constant 0 : i32
    return %c0_i32, %c0_i32_0, %c0_i32_1, %c0_i32_2 : i32, i32, i32, i32
  }
  func.func @transform_8(%arg0: i32) -> (i32, i32) {
    %c0_i32 = arith.constant 0 : i32
    %c0_i32_0 = arith.constant 0 : i32
    %c0_i32_1 = arith.constant 0 : i32
    return %c0_i32, %c0_i32_0 : i32, i32
  }
  func.func @transform_9(%arg0: i32) -> (i32, i32, i32, i32) {
    %c0_i32 = arith.constant 0 : i32
    %c0_i32_0 = arith.constant 0 : i32
    %c0_i32_1 = arith.constant 0 : i32
    %c0_i32_2 = arith.constant 0 : i32
    return %arg0, %c0_i32, %c0_i32_0, %c0_i32_1 : i32, i32, i32, i32
  }
}

module attributes {stable_mosaic.version = 11 : i64} {
  func.func @_block_s1_kernel(%arg0: i32, %arg1: memref<1x9x64xbf16, #tpu.memory_space<vmem>>, %arg2: memref<32x32xbf16, #tpu.memory_space<vmem>>, %arg3: memref<1x32xf32, #tpu.memory_space<vmem>>, %arg4: memref<9x32x32xbf16, #tpu.memory_space<vmem>>, %arg5: memref<1x32xf32, #tpu.memory_space<vmem>>, %arg6: memref<9x1xf32, #tpu.memory_space<vmem>>, %arg7: memref<1x1xf32, #tpu.memory_space<vmem>>, %arg8: memref<1x2x9x32xbf16, #tpu.memory_space<vmem>>, %arg9: memref<9x32xf32, #tpu.memory_space<vmem>>) attributes {dimension_semantics = [#tpu.dimension_semantics<parallel>], iteration_bounds = array<i64: 2>, scalar_prefetch = 0 : i64, scratch_operands = 1 : i64, tpu.core_type = #tpu.core_type<tc>, window_params = [{transform_indices = @transform_0, window_bounds = array<i64: 1, 9, 64>}, {pipeline_mode = #tpu.pipeline_mode<synchronous>, transform_indices = @transform_1, window_bounds = array<i64: 32, 32>}, {pipeline_mode = #tpu.pipeline_mode<synchronous>, transform_indices = @transform_2, window_bounds = array<i64: 1, 32>}, {pipeline_mode = #tpu.pipeline_mode<synchronous>, transform_indices = @transform_3, window_bounds = array<i64: 9, 32, 32>}, {pipeline_mode = #tpu.pipeline_mode<synchronous>, transform_indices = @transform_4, window_bounds = array<i64: 1, 32>}, {pipeline_mode = #tpu.pipeline_mode<synchronous>, transform_indices = @transform_5, window_bounds = array<i64: 9, 1>}, {pipeline_mode = #tpu.pipeline_mode<synchronous>, transform_indices = @transform_6, window_bounds = array<i64: 1, 1>}, {transform_indices = @transform_7, window_bounds = array<i64: 1, 2, 9, 32>}]} {
    %c0 = arith.constant 0 : index
    %c0_0 = arith.constant 0 : index
    %c32 = arith.constant 32 : index
    %0 = vector.load %arg1[%c0, %c0_0, %c32] : memref<1x9x64xbf16, #tpu.memory_space<vmem>>, vector<1x9x32xbf16>
    %1 = vector.shape_cast %0 : vector<1x9x32xbf16> to vector<9x32xbf16>
    %c0_1 = arith.constant 0 : index
    %c0_2 = arith.constant 0 : index
    %2 = vector.load %arg2[%c0_1, %c0_2] : memref<32x32xbf16, #tpu.memory_space<vmem>>, vector<32x32xbf16>
    %cst = arith.constant dense<0.000000e+00> : vector<9x32xf32>
    %3 = tpu.matmul %1, %2, %cst {dimension_numbers = #tpu.dot_dimension_numbers<[1], [0], [0], [1], [0, 0, 1, 1], [], []>} : vector<9x32xbf16>, vector<32x32xbf16>, vector<9x32xf32> -> vector<9x32xf32>
    %c0_3 = arith.constant 0 : index
    %c0_4 = arith.constant 0 : index
    %4 = vector.load %arg3[%c0_3, %c0_4] : memref<1x32xf32, #tpu.memory_space<vmem>>, vector<1x32xf32>
    %5 = vector.broadcast %4 : vector<1x32xf32> to vector<9x32xf32>
    %6 = arith.addf %3, %5 : vector<9x32xf32>
    %cst_5 = arith.constant 0.000000e+00 : f32
    %7 = vector.broadcast %cst_5 : f32 to vector<9x32xf32>
    %8 = arith.maximumf %6, %7 : vector<9x32xf32>
    %c0_6 = arith.constant 0 : index
    %c0_7 = arith.constant 0 : index
    %9 = vector.load %arg6[%c0_6, %c0_7] : memref<9x1xf32, #tpu.memory_space<vmem>>, vector<9x1xf32>
    %10 = vector.broadcast %9 : vector<9x1xf32> to vector<9x32xf32>
    %11 = arith.mulf %8, %10 : vector<9x32xf32>
    %c0_8 = arith.constant 0 : index
    %c0_9 = arith.constant 0 : index
    %12 = vector.load %arg9[%c0_8, %c0_9] : memref<9x32xf32, #tpu.memory_space<vmem>>, vector<9x32xf32>
    tpu.vector_store %arg9[%c0_8, %c0_9], %11 {strides = array<i32>} : memref<9x32xf32, #tpu.memory_space<vmem>>, vector<9x32xf32>,
    %cst_10 = arith.constant 0.000000e+00 : f32
    %13 = vector.broadcast %cst_10 : f32 to vector<1x32xf32>
    %c0_11 = arith.constant 0 : index
    %c0_12 = arith.constant 0 : index
    %14 = vector.load %arg9[%c0_11, %c0_12] : memref<9x32xf32, #tpu.memory_space<vmem>>, vector<1x32xf32>
    %15 = arith.truncf %14 : vector<1x32xf32> to vector<1x32xbf16>
    %c0_13 = arith.constant 0 : index
    %c0_14 = arith.constant 0 : index
    %c0_15 = arith.constant 0 : index
    %16 = vector.load %arg4[%c0_13, %c0_14, %c0_15] : memref<9x32x32xbf16, #tpu.memory_space<vmem>>, vector<1x32x32xbf16>
    %17 = vector.shape_cast %16 : vector<1x32x32xbf16> to vector<32x32xbf16>
    %cst_16 = arith.constant dense<0.000000e+00> : vector<1x32xf32>
    %18 = tpu.matmul %15, %17, %cst_16 {dimension_numbers = #tpu.dot_dimension_numbers<[1], [0], [0], [1], [0, 0, 1, 1], [], []>} : vector<1x32xbf16>, vector<32x32xbf16>, vector<1x32xf32> -> vector<1x32xf32>
    %19 = arith.addf %13, %18 : vector<1x32xf32>
    %c1 = arith.constant 1 : index
    %c0_17 = arith.constant 0 : index
    %20 = vector.load %arg9[%c1, %c0_17] : memref<9x32xf32, #tpu.memory_space<vmem>>, vector<1x32xf32>
    %21 = arith.truncf %20 : vector<1x32xf32> to vector<1x32xbf16>
    %c1_18 = arith.constant 1 : index
    %c0_19 = arith.constant 0 : index
    %c0_20 = arith.constant 0 : index
    %22 = vector.load %arg4[%c1_18, %c0_19, %c0_20] : memref<9x32x32xbf16, #tpu.memory_space<vmem>>, vector<1x32x32xbf16>
    %23 = vector.shape_cast %22 : vector<1x32x32xbf16> to vector<32x32xbf16>
    %cst_21 = arith.constant dense<0.000000e+00> : vector<1x32xf32>
    %24 = tpu.matmul %21, %23, %cst_21 {dimension_numbers = #tpu.dot_dimension_numbers<[1], [0], [0], [1], [0, 0, 1, 1], [], []>} : vector<1x32xbf16>, vector<32x32xbf16>, vector<1x32xf32> -> vector<1x32xf32>
    %25 = arith.addf %19, %24 : vector<1x32xf32>
    %c2 = arith.constant 2 : index
    %c0_22 = arith.constant 0 : index
    %26 = vector.load %arg9[%c2, %c0_22] : memref<9x32xf32, #tpu.memory_space<vmem>>, vector<1x32xf32>
    %27 = arith.truncf %26 : vector<1x32xf32> to vector<1x32xbf16>
    %c2_23 = arith.constant 2 : index
    %c0_24 = arith.constant 0 : index
    %c0_25 = arith.constant 0 : index
    %28 = vector.load %arg4[%c2_23, %c0_24, %c0_25] : memref<9x32x32xbf16, #tpu.memory_space<vmem>>, vector<1x32x32xbf16>
    %29 = vector.shape_cast %28 : vector<1x32x32xbf16> to vector<32x32xbf16>
    %cst_26 = arith.constant dense<0.000000e+00> : vector<1x32xf32>
    %30 = tpu.matmul %27, %29, %cst_26 {dimension_numbers = #tpu.dot_dimension_numbers<[1], [0], [0], [1], [0, 0, 1, 1], [], []>} : vector<1x32xbf16>, vector<32x32xbf16>, vector<1x32xf32> -> vector<1x32xf32>
    %31 = arith.addf %25, %30 : vector<1x32xf32>
    %c3 = arith.constant 3 : index
    %c0_27 = arith.constant 0 : index
    %32 = vector.load %arg9[%c3, %c0_27] : memref<9x32xf32, #tpu.memory_space<vmem>>, vector<1x32xf32>
    %33 = arith.truncf %32 : vector<1x32xf32> to vector<1x32xbf16>
    %c3_28 = arith.constant 3 : index
    %c0_29 = arith.constant 0 : index
    %c0_30 = arith.constant 0 : index
    %34 = vector.load %arg4[%c3_28, %c0_29, %c0_30] : memref<9x32x32xbf16, #tpu.memory_space<vmem>>, vector<1x32x32xbf16>
    %35 = vector.shape_cast %34 : vector<1x32x32xbf16> to vector<32x32xbf16>
    %cst_31 = arith.constant dense<0.000000e+00> : vector<1x32xf32>
    %36 = tpu.matmul %33, %35, %cst_31 {dimension_numbers = #tpu.dot_dimension_numbers<[1], [0], [0], [1], [0, 0, 1, 1], [], []>} : vector<1x32xbf16>, vector<32x32xbf16>, vector<1x32xf32> -> vector<1x32xf32>
    %37 = arith.addf %31, %36 : vector<1x32xf32>
    %c4 = arith.constant 4 : index
    %c0_32 = arith.constant 0 : index
    %38 = vector.load %arg9[%c4, %c0_32] : memref<9x32xf32, #tpu.memory_space<vmem>>, vector<1x32xf32>
    %39 = arith.truncf %38 : vector<1x32xf32> to vector<1x32xbf16>
    %c4_33 = arith.constant 4 : index
    %c0_34 = arith.constant 0 : index
    %c0_35 = arith.constant 0 : index
    %40 = vector.load %arg4[%c4_33, %c0_34, %c0_35] : memref<9x32x32xbf16, #tpu.memory_space<vmem>>, vector<1x32x32xbf16>
    %41 = vector.shape_cast %40 : vector<1x32x32xbf16> to vector<32x32xbf16>
    %cst_36 = arith.constant dense<0.000000e+00> : vector<1x32xf32>
    %42 = tpu.matmul %39, %41, %cst_36 {dimension_numbers = #tpu.dot_dimension_numbers<[1], [0], [0], [1], [0, 0, 1, 1], [], []>} : vector<1x32xbf16>, vector<32x32xbf16>, vector<1x32xf32> -> vector<1x32xf32>
    %43 = arith.addf %37, %42 : vector<1x32xf32>
    %c5 = arith.constant 5 : index
    %c0_37 = arith.constant 0 : index
    %44 = vector.load %arg9[%c5, %c0_37] : memref<9x32xf32, #tpu.memory_space<vmem>>, vector<1x32xf32>
    %45 = arith.truncf %44 : vector<1x32xf32> to vector<1x32xbf16>
    %c5_38 = arith.constant 5 : index
    %c0_39 = arith.constant 0 : index
    %c0_40 = arith.constant 0 : index
    %46 = vector.load %arg4[%c5_38, %c0_39, %c0_40] : memref<9x32x32xbf16, #tpu.memory_space<vmem>>, vector<1x32x32xbf16>
    %47 = vector.shape_cast %46 : vector<1x32x32xbf16> to vector<32x32xbf16>
    %cst_41 = arith.constant dense<0.000000e+00> : vector<1x32xf32>
    %48 = tpu.matmul %45, %47, %cst_41 {dimension_numbers = #tpu.dot_dimension_numbers<[1], [0], [0], [1], [0, 0, 1, 1], [], []>} : vector<1x32xbf16>, vector<32x32xbf16>, vector<1x32xf32> -> vector<1x32xf32>
    %49 = arith.addf %43, %48 : vector<1x32xf32>
    %c6 = arith.constant 6 : index
    %c0_42 = arith.constant 0 : index
    %50 = vector.load %arg9[%c6, %c0_42] : memref<9x32xf32, #tpu.memory_space<vmem>>, vector<1x32xf32>
    %51 = arith.truncf %50 : vector<1x32xf32> to vector<1x32xbf16>
    %c6_43 = arith.constant 6 : index
    %c0_44 = arith.constant 0 : index
    %c0_45 = arith.constant 0 : index
    %52 = vector.load %arg4[%c6_43, %c0_44, %c0_45] : memref<9x32x32xbf16, #tpu.memory_space<vmem>>, vector<1x32x32xbf16>
    %53 = vector.shape_cast %52 : vector<1x32x32xbf16> to vector<32x32xbf16>
    %cst_46 = arith.constant dense<0.000000e+00> : vector<1x32xf32>
    %54 = tpu.matmul %51, %53, %cst_46 {dimension_numbers = #tpu.dot_dimension_numbers<[1], [0], [0], [1], [0, 0, 1, 1], [], []>} : vector<1x32xbf16>, vector<32x32xbf16>, vector<1x32xf32> -> vector<1x32xf32>
    %55 = arith.addf %49, %54 : vector<1x32xf32>
    %c7 = arith.constant 7 : index
    %c0_47 = arith.constant 0 : index
    %56 = vector.load %arg9[%c7, %c0_47] : memref<9x32xf32, #tpu.memory_space<vmem>>, vector<1x32xf32>
    %57 = arith.truncf %56 : vector<1x32xf32> to vector<1x32xbf16>
    %c7_48 = arith.constant 7 : index
    %c0_49 = arith.constant 0 : index
    %c0_50 = arith.constant 0 : index
    %58 = vector.load %arg4[%c7_48, %c0_49, %c0_50] : memref<9x32x32xbf16, #tpu.memory_space<vmem>>, vector<1x32x32xbf16>
    %59 = vector.shape_cast %58 : vector<1x32x32xbf16> to vector<32x32xbf16>
    %cst_51 = arith.constant dense<0.000000e+00> : vector<1x32xf32>
    %60 = tpu.matmul %57, %59, %cst_51 {dimension_numbers = #tpu.dot_dimension_numbers<[1], [0], [0], [1], [0, 0, 1, 1], [], []>} : vector<1x32xbf16>, vector<32x32xbf16>, vector<1x32xf32> -> vector<1x32xf32>
    %61 = arith.addf %55, %60 : vector<1x32xf32>
    %c8 = arith.constant 8 : index
    %c0_52 = arith.constant 0 : index
    %62 = vector.load %arg9[%c8, %c0_52] : memref<9x32xf32, #tpu.memory_space<vmem>>, vector<1x32xf32>
    %63 = arith.truncf %62 : vector<1x32xf32> to vector<1x32xbf16>
    %c8_53 = arith.constant 8 : index
    %c0_54 = arith.constant 0 : index
    %c0_55 = arith.constant 0 : index
    %64 = vector.load %arg4[%c8_53, %c0_54, %c0_55] : memref<9x32x32xbf16, #tpu.memory_space<vmem>>, vector<1x32x32xbf16>
    %65 = vector.shape_cast %64 : vector<1x32x32xbf16> to vector<32x32xbf16>
    %cst_56 = arith.constant dense<0.000000e+00> : vector<1x32xf32>
    %66 = tpu.matmul %63, %65, %cst_56 {dimension_numbers = #tpu.dot_dimension_numbers<[1], [0], [0], [1], [0, 0, 1, 1], [], []>} : vector<1x32xbf16>, vector<32x32xbf16>, vector<1x32xf32> -> vector<1x32xf32>
    %67 = arith.addf %61, %66 : vector<1x32xf32>
    %c0_57 = arith.constant 0 : index
    %c0_58 = arith.constant 0 : index
    %68 = vector.load %arg5[%c0_57, %c0_58] : memref<1x32xf32, #tpu.memory_space<vmem>>, vector<1x32xf32>
    %69 = arith.addf %67, %68 : vector<1x32xf32>
    %cst_59 = arith.constant 0.000000e+00 : f32
    %70 = vector.broadcast %cst_59 : f32 to vector<1x32xf32>
    %71 = arith.maximumf %69, %70 : vector<1x32xf32>
    %c0_60 = arith.constant 0 : index
    %c0_61 = arith.constant 0 : index
    %72 = vector.load %arg7[%c0_60, %c0_61] : memref<1x1xf32, #tpu.memory_space<vmem>>, vector<1x1xf32>
    %73 = vector.broadcast %72 : vector<1x1xf32> to vector<1x32xf32>
    %74 = arith.mulf %71, %73 : vector<1x32xf32>
    %c0_62 = arith.constant 0 : index
    %c0_63 = arith.constant 0 : index
    %c0_64 = arith.constant 0 : index
    %75 = vector.load %arg1[%c0_62, %c0_63, %c0_64] : memref<1x9x64xbf16, #tpu.memory_space<vmem>>, vector<1x9x32xbf16>
    %76 = vector.shape_cast %75 : vector<1x9x32xbf16> to vector<9x32xbf16>
    %c0_65 = arith.constant 0 : index
    %c0_66 = arith.constant 0 : index
    %c0_67 = arith.constant 0 : index
    %c0_68 = arith.constant 0 : index
    %77 = vector.load %arg8[%c0_65, %c0_66, %c0_67, %c0_68] : memref<1x2x9x32xbf16, #tpu.memory_space<vmem>>, vector<1x1x9x32xbf16>
    %78 = vector.shape_cast %77 : vector<1x1x9x32xbf16> to vector<9x32xbf16>
    %79 = vector.shape_cast %76 : vector<9x32xbf16> to vector<1x1x9x32xbf16>
    tpu.vector_store %arg8[%c0_65, %c0_66, %c0_67, %c0_68], %79 {strides = array<i32>} : memref<1x2x9x32xbf16, #tpu.memory_space<vmem>>, vector<1x1x9x32xbf16>,
    %cst_69 = arith.constant 0.000000e+00 : bf16
    %80 = vector.broadcast %cst_69 : bf16 to vector<9x32xbf16>
    %c0_70 = arith.constant 0 : index
    %c1_71 = arith.constant 1 : index
    %c0_72 = arith.constant 0 : index
    %c0_73 = arith.constant 0 : index
    %81 = vector.load %arg8[%c0_70, %c1_71, %c0_72, %c0_73] : memref<1x2x9x32xbf16, #tpu.memory_space<vmem>>, vector<1x1x9x32xbf16>
    %82 = vector.shape_cast %81 : vector<1x1x9x32xbf16> to vector<9x32xbf16>
    %83 = vector.shape_cast %80 : vector<9x32xbf16> to vector<1x1x9x32xbf16>
    tpu.vector_store %arg8[%c0_70, %c1_71, %c0_72, %c0_73], %83 {strides = array<i32>} : memref<1x2x9x32xbf16, #tpu.memory_space<vmem>>, vector<1x1x9x32xbf16>,
    %84 = arith.truncf %74 : vector<1x32xf32> to vector<1x32xbf16>
    %c0_74 = arith.constant 0 : index
    %c1_75 = arith.constant 1 : index
    %c4_76 = arith.constant 4 : index
    %c0_77 = arith.constant 0 : index
    %85 = vector.load %arg8[%c0_74, %c1_75, %c4_76, %c0_77] : memref<1x2x9x32xbf16, #tpu.memory_space<vmem>>, vector<1x1x1x32xbf16>
    %86 = vector.shape_cast %85 : vector<1x1x1x32xbf16> to vector<1x32xbf16>
    %87 = vector.shape_cast %84 : vector<1x32xbf16> to vector<1x1x1x32xbf16>
    tpu.vector_store %arg8[%c0_74, %c1_75, %c4_76, %c0_77], %87 {strides = array<i32>} : memref<1x2x9x32xbf16, #tpu.memory_space<vmem>>, vector<1x1x1x32xbf16>,
    return
  }
  func.func @transform_0(%arg0: i32) -> (i32, i32, i32) {
    %c0_i32 = arith.constant 0 : i32
    %c0_i32_0 = arith.constant 0 : i32
    %c0_i32_1 = arith.constant 0 : i32
    return %arg0, %c0_i32, %c0_i32_0 : i32, i32, i32
  }
  func.func @transform_1(%arg0: i32) -> (i32, i32) {
    %c0_i32 = arith.constant 0 : i32
    %c0_i32_0 = arith.constant 0 : i32
    %c0_i32_1 = arith.constant 0 : i32
    return %c0_i32, %c0_i32_0 : i32, i32
  }
  func.func @transform_2(%arg0: i32) -> (i32, i32) {
    %c0_i32 = arith.constant 0 : i32
    %c0_i32_0 = arith.constant 0 : i32
    %c0_i32_1 = arith.constant 0 : i32
    return %c0_i32, %c0_i32_0 : i32, i32
  }
  func.func @transform_3(%arg0: i32) -> (i32, i32, i32) {
    %c0_i32 = arith.constant 0 : i32
    %c0_i32_0 = arith.constant 0 : i32
    %c0_i32_1 = arith.constant 0 : i32
    %c0_i32_2 = arith.constant 0 : i32
    return %c0_i32, %c0_i32_0, %c0_i32_1 : i32, i32, i32
  }
  func.func @transform_4(%arg0: i32) -> (i32, i32) {
    %c0_i32 = arith.constant 0 : i32
    %c0_i32_0 = arith.constant 0 : i32
    %c0_i32_1 = arith.constant 0 : i32
    return %c0_i32, %c0_i32_0 : i32, i32
  }
  func.func @transform_5(%arg0: i32) -> (i32, i32) {
    %c0_i32 = arith.constant 0 : i32
    %c0_i32_0 = arith.constant 0 : i32
    %c0_i32_1 = arith.constant 0 : i32
    return %c0_i32, %c0_i32_0 : i32, i32
  }
  func.func @transform_6(%arg0: i32) -> (i32, i32) {
    %c0_i32 = arith.constant 0 : i32
    %c0_i32_0 = arith.constant 0 : i32
    %c0_i32_1 = arith.constant 0 : i32
    return %c0_i32, %c0_i32_0 : i32, i32
  }
  func.func @transform_7(%arg0: i32) -> (i32, i32, i32, i32) {
    %c0_i32 = arith.constant 0 : i32
    %c0_i32_0 = arith.constant 0 : i32
    %c0_i32_1 = arith.constant 0 : i32
    %c0_i32_2 = arith.constant 0 : i32
    return %arg0, %c0_i32, %c0_i32_0, %c0_i32_1 : i32, i32, i32, i32
  }
}

module attributes {stable_mosaic.version = 11 : i64} {
  func.func @_head_kernel(%arg0: i32, %arg1: memref<1x1x64xbf16, #tpu.memory_space<vmem>>, %arg2: memref<64x128xbf16, #tpu.memory_space<vmem>>, %arg3: memref<1x128xf32, #tpu.memory_space<vmem>>, %arg4: memref<128x128xbf16, #tpu.memory_space<vmem>>, %arg5: memref<1x128xf32, #tpu.memory_space<vmem>>, %arg6: memref<1x1x128xf32, #tpu.memory_space<vmem>>) attributes {dimension_semantics = [#tpu.dimension_semantics<parallel>], iteration_bounds = array<i64: 2>, scalar_prefetch = 0 : i64, scratch_operands = 0 : i64, tpu.core_type = #tpu.core_type<tc>, window_params = [{transform_indices = @transform_0, window_bounds = array<i64: 1, 1, 64>}, {pipeline_mode = #tpu.pipeline_mode<synchronous>, transform_indices = @transform_1, window_bounds = array<i64: 64, 128>}, {pipeline_mode = #tpu.pipeline_mode<synchronous>, transform_indices = @transform_2, window_bounds = array<i64: 1, 128>}, {pipeline_mode = #tpu.pipeline_mode<synchronous>, transform_indices = @transform_3, window_bounds = array<i64: 128, 128>}, {pipeline_mode = #tpu.pipeline_mode<synchronous>, transform_indices = @transform_4, window_bounds = array<i64: 1, 128>}, {transform_indices = @transform_5, window_bounds = array<i64: 1, 1, 128>}]} {
    %c0 = arith.constant 0 : index
    %c0_0 = arith.constant 0 : index
    %c0_1 = arith.constant 0 : index
    %0 = vector.load %arg1[%c0, %c0_0, %c0_1] : memref<1x1x64xbf16, #tpu.memory_space<vmem>>, vector<1x1x64xbf16>
    %1 = vector.shape_cast %0 : vector<1x1x64xbf16> to vector<1x64xbf16>
    %c0_2 = arith.constant 0 : index
    %c0_3 = arith.constant 0 : index
    %2 = vector.load %arg2[%c0_2, %c0_3] : memref<64x128xbf16, #tpu.memory_space<vmem>>, vector<64x128xbf16>
    %cst = arith.constant dense<0.000000e+00> : vector<1x128xf32>
    %3 = tpu.matmul %1, %2, %cst {dimension_numbers = #tpu.dot_dimension_numbers<[1], [0], [0], [1], [0, 0, 1, 1], [], []>} : vector<1x64xbf16>, vector<64x128xbf16>, vector<1x128xf32> -> vector<1x128xf32>
    %c0_4 = arith.constant 0 : index
    %c0_5 = arith.constant 0 : index
    %4 = vector.load %arg3[%c0_4, %c0_5] : memref<1x128xf32, #tpu.memory_space<vmem>>, vector<1x128xf32>
    %5 = arith.addf %3, %4 : vector<1x128xf32>
    %cst_6 = arith.constant 0.000000e+00 : f32
    %6 = vector.broadcast %cst_6 : f32 to vector<1x128xf32>
    %7 = arith.maximumf %5, %6 : vector<1x128xf32>
    %cst_7 = arith.constant dense<0.000000e+00> : vector<128xf32>
    %8 = vector.multi_reduction <add>, %7, %cst_7 [0] : vector<1x128xf32> to vector<128xf32>
    %9 = vector.shape_cast %8 : vector<128xf32> to vector<1x128xf32>
    %cst_8 = arith.constant 1.000000e+00 : f32
    %10 = vector.broadcast %cst_8 : f32 to vector<1x128xf32>
    %11 = arith.divf %9, %10 : vector<1x128xf32>
    %12 = arith.truncf %11 : vector<1x128xf32> to vector<1x128xbf16>
    %c0_9 = arith.constant 0 : index
    %c0_10 = arith.constant 0 : index
    %13 = vector.load %arg4[%c0_9, %c0_10] : memref<128x128xbf16, #tpu.memory_space<vmem>>, vector<128x128xbf16>
    %cst_11 = arith.constant dense<0.000000e+00> : vector<1x128xf32>
    %14 = tpu.matmul %12, %13, %cst_11 {dimension_numbers = #tpu.dot_dimension_numbers<[1], [0], [0], [1], [0, 0, 1, 1], [], []>} : vector<1x128xbf16>, vector<128x128xbf16>, vector<1x128xf32> -> vector<1x128xf32>
    %c0_12 = arith.constant 0 : index
    %c0_13 = arith.constant 0 : index
    %15 = vector.load %arg5[%c0_12, %c0_13] : memref<1x128xf32, #tpu.memory_space<vmem>>, vector<1x128xf32>
    %16 = arith.addf %14, %15 : vector<1x128xf32>
    %c0_14 = arith.constant 0 : index
    %c0_15 = arith.constant 0 : index
    %c0_16 = arith.constant 0 : index
    %17 = vector.load %arg6[%c0_14, %c0_15, %c0_16] : memref<1x1x128xf32, #tpu.memory_space<vmem>>, vector<1x1x128xf32>
    %18 = vector.shape_cast %17 : vector<1x1x128xf32> to vector<1x128xf32>
    %19 = vector.shape_cast %16 : vector<1x128xf32> to vector<1x1x128xf32>
    tpu.vector_store %arg6[%c0_14, %c0_15, %c0_16], %19 {strides = array<i32>} : memref<1x1x128xf32, #tpu.memory_space<vmem>>, vector<1x1x128xf32>,
    return
  }
  func.func @transform_0(%arg0: i32) -> (i32, i32, i32) {
    %c0_i32 = arith.constant 0 : i32
    %c0_i32_0 = arith.constant 0 : i32
    %c0_i32_1 = arith.constant 0 : i32
    return %arg0, %c0_i32, %c0_i32_0 : i32, i32, i32
  }
  func.func @transform_1(%arg0: i32) -> (i32, i32) {
    %c0_i32 = arith.constant 0 : i32
    %c0_i32_0 = arith.constant 0 : i32
    %c0_i32_1 = arith.constant 0 : i32
    return %c0_i32, %c0_i32_0 : i32, i32
  }
  func.func @transform_2(%arg0: i32) -> (i32, i32) {
    %c0_i32 = arith.constant 0 : i32
    %c0_i32_0 = arith.constant 0 : i32
    %c0_i32_1 = arith.constant 0 : i32
    return %c0_i32, %c0_i32_0 : i32, i32
  }
  func.func @transform_3(%arg0: i32) -> (i32, i32) {
    %c0_i32 = arith.constant 0 : i32
    %c0_i32_0 = arith.constant 0 : i32
    %c0_i32_1 = arith.constant 0 : i32
    return %c0_i32, %c0_i32_0 : i32, i32
  }
  func.func @transform_4(%arg0: i32) -> (i32, i32) {
    %c0_i32 = arith.constant 0 : i32
    %c0_i32_0 = arith.constant 0 : i32
    %c0_i32_1 = arith.constant 0 : i32
    return %c0_i32, %c0_i32_0 : i32, i32
  }
  func.func @transform_5(%arg0: i32) -> (i32, i32, i32) {
    %c0_i32 = arith.constant 0 : i32
    %c0_i32_0 = arith.constant 0 : i32
    %c0_i32_1 = arith.constant 0 : i32
    return %arg0, %c0_i32, %c0_i32_0 : i32, i32, i32
  }
}

</mosaic_0001>

<bundles_post_ra>
// kernel: shufflenet_v2_forward.8
= control target key start
LH: loop header
LB: loop body
LE: loop exit
PB: predicated region body
PF: predicated region fallthrough
CT: control target
= control target key end

     0   :  { %s2247_s18 = smov 0   ;;  %s2932_s0 = inlined_call_operand.vmem [shape: bf16[2,2,2,100,27], index: 0, kind: input, shape index: {}]   ;;  %s2933_s1 = inlined_call_operand.vmem [shape: bf16[27,8], index: 1, kind: input, shape index: {}]   ;;  %s2934_s2 = inlined_call_operand.vmem [shape: f32[1,8], index: 2, kind: input, shape index: {}]   ;;  %s2935_s3 = inlined_call_operand.vmem [shape: f32[2,2,100,1], index: 3, kind: input, shape index: {}]   ;;  %s2936_s4 = inlined_call_operand.vmem [shape: f32[78,1], index: 4, kind: input, shape index: {}]   ;;  %s2937_s5 = inlined_call_operand.vmem [shape: bf16[2,100,8], index: 5, kind: output, shape index: {}]  }
   0x1 LB: > { %s1828_s19 = sadd.s32 4294967295, %s2211_s18   ;;  %p1832_p0 = scmp.ge.s32.totalorder %s2211_s18, 1  ;;  %s2211_s18 = sphi %s2247_s18, %s15_s18  }
   0x2   : > { %p187_p1 = scmp.lt.s32.totalorder %s2211_s18, 3 }
   0x4   : > { %p188_p2 = pnand %p1832_p0, %p187_p1 }
   0x5   : > { %p215_p3 = scmp.lt.s32.totalorder (!%p188_p2), %s1828_s19, 1  ;;  %v426_v0 = vld [vmem:[%s2935_s3 + $0x10] sm:$0xff] (!%p188_p2)  ;;  %v424_v1 = vld [vmem:[%s2935_s3] sm:$0xff] (!%p188_p2)  ;;  %v2213_v2 = vmov (!%p188_p2), 0   ;;  %v427_v4 = vld [vmem:[%s2935_s3 + $0x18] sm:$0xff] (!%p188_p2)  ;;  %vm316_vm0 = vcmask (!%p188_p2), 1044480  }
   0x6   : > { %191 = sbr.rel (%p188_p2) target bundleno = 368 (0x170), region = 40  ;;  %2173 = vset.pattern.permute.xlu1 (!%p188_p2), %v2213_v2  ;;  %2172 = vset.pattern.permute.xlu0 (!%p188_p2), %v2213_v2  ;;  %v2174_v3 = vld [vmem:[%s2933_s1] sm:$0xff] (!%p188_p2)   ;;  %v425_v5 = vld [vmem:[%s2935_s3 + $0x8] sm:$0xff] (!%p188_p2)  ;;  %v2214_v6 = vmov (!%p188_p2), 0.0   ;;  %vm317_vm1 = vcmask (!%p188_p2), 1045504   ;;  %v2215_v8 = vmov (!%p188_p2), 65535  }
   0x7   : > { %449 = vperm.xlu1 (!%p188_p2), %2173, %v426_v0   ;;  %439 = vperm.xlu0 (!%p188_p2), %2172, %v424_v1   ;;  %v2175_v7 = vld [vmem:[%s2933_s1 + $0x8] sm:$0x3f] (!%p188_p2)   ;;  %v318_v9 = vsel (!%p188_p2), %vm316_vm0, 4294967295, %v2215_v8  ;;  %vm1607_vm2 = vcmask (!%p188_p2), 58368   ;;  %v428_v13 = vld [vmem:[%s2935_s3 + $0x20] sm:$0xff] (!%p188_p2)  ;;  %vm528_vm3 = vcmask (!%p188_p2), 60416  }
   0x8   : > { %2030 = vmatprep.subr.bf16.mxu0 (!%p188_p2), %v2214_v6  ;;  %2062 = vmatprep.subr.bf16.mxu1 (!%p188_p2), %v2214_v6  ;;  %v319_v10 = vsel (!%p188_p2), %vm317_vm1, %v318_v9, 0  ;;  %v429_v12 = vld [vmem:[%s2935_s3 + $0x28] sm:$0xff] (!%p188_p2)  ;;  %vm2216_vm4 = vmmov (!%p188_p2), 0   ;;  %vm294_vm5 = vcmask (!%p188_p2), 220160   ;;  %v431_v16 = vld [vmem:[%s2935_s3 + $0x38] sm:$0xff] (!%p188_p2)  ;;  %v430_v17 = vld [vmem:[%s2935_s3 + $0x30] sm:$0xff] (!%p188_p2) }
   0x9   : > { %2031 = vmatpush3.bf16.msra.mxu0 (!%p188_p2), %v2174_v3  ;;  %2063 = vmatpush3.bf16.msra.mxu1 (!%p188_p2), %v2174_v3  ;;  %v321_v11 = vand.u32 (!%p188_p2), %v2175_v7, %v319_v10  ;;  %v433_v18 = vld [vmem:[%s2935_s3 + $0x48] sm:$0xff] (!%p188_p2)  ;;  %v432_v19 = vld [vmem:[%s2935_s3 + $0x40] sm:$0xff] (!%p188_p2)  ;;  %v435_v22 = vld [vmem:[%s2935_s3 + $0x58] sm:$0xff] (!%p188_p2)  ;;  %vm515_vm6 = vcmask (!%p188_p2), 64512   ;;  %vm1752_vm7 = vcmask (!%p188_p2), 60417   ;;  %vm1767_vm13 = vcmask (!%p188_p2), 57344  }
   0xa   : > { %2032 = vmatprep.subr.bf16.mxu0 (!%p188_p2), %v2214_v6  ;;  %2064 = vmatprep.subr.bf16.mxu1 (!%p188_p2), %v2214_v6  ;;  %v434_v23 = vld [vmem:[%s2935_s3 + $0x50] sm:$0xff] (!%p188_p2)  ;;  %v1879_v24 = vld [vmem:[%s2935_s3 + $0x68] sm:$0xff] (!%p188_p2)  ;;  %v436_v25 = vld [vmem:[%s2935_s3 + $0x60] sm:$0xf] (!%p188_p2)  ;;  %vm1753_vm8 = vsmask.f32 (!%p188_p2), 7942 }
   0xb   : > { %454 = vperm.xlu1 (!%p188_p2), %2173, %v427_v4   ;;  %444 = vperm.xlu0 (!%p188_p2), %2172, %v425_v5   ;;  %v1881_v28 = vld [vmem:[%s2935_s3 + $0x78] sm:$0xff] (!%p188_p2)  ;;  %v1880_v29 = vld [vmem:[%s2935_s3 + $0x70] sm:$0xff] (!%p188_p2)  ;;  %v1883_v30 = vld [vmem:[%s2935_s3 + $0x88] sm:$0xff] (!%p188_p2)  ;;  %vm1639_vm9 = vsmask.f32 (!%p188_p2), 1280 }
   0xc   : > { %2034 = vmatprep.mubr.msk.bf16.mxu0 (!%p188_p2), %vm2216_vm4, %v2214_v6  ;;  %2066 = vmatprep.mubr.msk.bf16.mxu1 (!%p188_p2), %vm2216_vm4, %v2214_v6  ;;  %v1882_v31 = vld [vmem:[%s2935_s3 + $0x80] sm:$0xff] (!%p188_p2)  ;;  %v1885_v34 = vld [vmem:[%s2935_s3 + $0x98] sm:$0xff] (!%p188_p2)  ;;  %v1884_v35 = vld [vmem:[%s2935_s3 + $0x90] sm:$0xff] (!%p188_p2)  ;;  %vm1640_vm10 = vsmask.f32 (!%p188_p2), 5392 }
   0xd   : > { %s2943_s19 = smov (!%p215_p3, %s1828_s19), 1  ;;  %2033 = vmatpush3.bf16.msra.mxu0 %v321_v11  ;;  %2065 = vmatpush3.bf16.msra.mxu1 %v321_v11  ;;  %v1887_v36 = vld [vmem:[%s2935_s3 + $0xa8] sm:$0xff]  ;;  %v1886_v37 = vld [vmem:[%s2935_s3 + $0xa0] sm:$0xff]  ;;  %v1889_v40 = vld [vmem:[%s2935_s3 + $0xb8] sm:$0xff]  ;;  %vm1768_vm14 = vsmask.f32 256 }
   0xe   : > { %s2158_s7 = smul.u32 208, %s2943_s19  ;;  %2094 = vmatprep.subr.bf16.mxu0 %v2214_v6  ;;  %2126 = vmatprep.subr.bf16.mxu1 %v2214_v6  ;;  %v1888_v41 = vld [vmem:[%s2935_s3 + $0xb0] sm:$0xff]  ;;  %v1891_v42 = vld [vmem:[%s2935_s3 + $0xc8] sm:$0xf]  ;;  %v1890_v43 = vld [vmem:[%s2935_s3 + $0xc0] sm:$0xff] }
   0xf   : > { %s2159_s8 = smul.u32 52, %s2943_s19  ;;  %464 = vperm.xlu1 %2173, %v429_v12   ;;  %459 = vperm.xlu0 %2172, %v428_v13   ;;  %v1920_v46 = vld [vmem:[%s2935_s3 + $0xd8] sm:$0xff]  ;;  %v1919_v47 = vld [vmem:[%s2935_s3 + $0xd0] sm:$0xff]  ;;  %v1922_v48 = vld [vmem:[%s2935_s3 + $0xe8] sm:$0xff] }
  0x10   : > { %s2284_s11 = scalar_lea.vmem %s2932_s0, %s2158_s7  ;;  %v1921_v49 = vld [vmem:[%s2935_s3 + $0xe0] sm:$0xff]  ;;  %v1924_v52 = vld [vmem:[%s2935_s3 + $0xf8] sm:$0xff]  ;;  %v1923_v53 = vld [vmem:[%s2935_s3 + $0xf0] sm:$0xff] }
  0x11   : > { %s2295_s19 = scalar_lea.vmem %s2937_s5, %s2159_s8  ;;  %v2176_v14 = vld [vmem:[%s2284_s11] sm:$0xff]   ;;  %v2177_v15 = vld [vmem:[%s2284_s11 + $0x34] sm:$0xff]   ;;  %v2178_v20 = vld [vmem:[%s2284_s11 + $0x8] sm:$0xff]  }
  0x12   : > { %1595 = vst.msk [vmem:[%s2295_s19] sm:$0xf] %vm528_vm3, %v2213_v2  ;;  %1596 = vst.msk [vmem:[%s2295_s19 + $0x4] sm:$0xf] %vm528_vm3, %v2213_v2  ;;  %2035 = vmatmul.mubr.msk.bf16.vlgmr.msra.gmra.mrb[0].mxu0 %vm294_vm5, %v2176_v14  ;;  %2067 = vmatmul.mubr.msk.bf16.vlgmr.msra.gmra.mrb[0].mxu1 %vm294_vm5, %v2177_v15  ;;  %v2179_v21 = vld [vmem:[%s2284_s11 + $0x3c] sm:$0xff]   ;;  %v2180_v26 = vld [vmem:[%s2284_s11 + $0x10] sm:$0xff]  }
  0x13   : > { %1608 = vst.msk [vmem:[%s2295_s19 + $0x30] sm:$0x3] %vm1607_vm2, %v2213_v2  ;;  %2095 = vmatpush3.bf16.msra.mxu0 %v2174_v3  ;;  %2127 = vmatpush3.bf16.msra.mxu1 %v2174_v3  ;;  %v2181_v27 = vld [vmem:[%s2284_s11 + $0x44] sm:$0xff]   ;;  %v2182_v32 = vld [vmem:[%s2284_s11 + $0x18] sm:$0xff]   ;;  %v2183_v33 = vld [vmem:[%s2284_s11 + $0x4c] sm:$0xff]  }
  0x14   : > { %1597 = vst.msk [vmem:[%s2295_s19 + $0x8] sm:$0xf] %vm528_vm3, %v2213_v2  ;;  %1598 = vst.msk [vmem:[%s2295_s19 + $0xc] sm:$0xf] %vm528_vm3, %v2213_v2  ;;  %2038 = vmatprep.mubr.msk.bf16.mxu0 %vm2216_vm4, %v2214_v6  ;;  %2070 = vmatprep.mubr.msk.bf16.mxu1 %vm2216_vm4, %v2214_v6  ;;  %v2184_v38 = vld [vmem:[%s2284_s11 + $0x20] sm:$0xff]   ;;  %v2185_v39 = vld [vmem:[%s2284_s11 + $0x54] sm:$0xff]  }
  0x15   : > { %1599 = vst.msk [vmem:[%s2295_s19 + $0x10] sm:$0xf] %vm528_vm3, %v2213_v2  ;;  %1600 = vst.msk [vmem:[%s2295_s19 + $0x14] sm:$0xf] %vm528_vm3, %v2213_v2  ;;  %474 = vperm.xlu1 %2173, %v431_v16   ;;  %469 = vperm.xlu0 %2172, %v430_v17   ;;  %v2186_v44 = vld [vmem:[%s2284_s11 + $0x28] sm:$0xff]   ;;  %v2187_v45 = vld [vmem:[%s2284_s11 + $0x5c] sm:$0xff]  }
  0x16   : > { %1601 = vst.msk [vmem:[%s2295_s19 + $0x18] sm:$0xf] %vm528_vm3, %v2213_v2  ;;  %1602 = vst.msk [vmem:[%s2295_s19 + $0x1c] sm:$0xf] %vm528_vm3, %v2213_v2  ;;  %2096 = vmatprep.subr.bf16.mxu0 %v2214_v6  ;;  %2128 = vmatprep.subr.bf16.mxu1 %v2214_v6  ;;  %v1926_v54 = vld [vmem:[%s2935_s3 + $0x108] sm:$0xff]  ;;  %v1925_v55 = vld [vmem:[%s2935_s3 + $0x100] sm:$0xff] }
  0x17   : > { %1603 = vst.msk [vmem:[%s2295_s19 + $0x20] sm:$0xf] %vm528_vm3, %v2213_v2  ;;  %1604 = vst.msk [vmem:[%s2295_s19 + $0x24] sm:$0xf] %vm528_vm3, %v2213_v2  ;;  %2097 = vmatpush3.bf16.msra.mxu0 %v321_v11  ;;  %2129 = vmatpush3.bf16.msra.mxu1 %v321_v11  ;;  %v2190_v56 = vld [vmem:[%s2284_s11 + $0x68] sm:$0xff]   ;;  %v2191_v57 = vld [vmem:[%s2284_s11 + $0x9c] sm:$0xff]  }
  0x18   : > { %1605 = vst.msk [vmem:[%s2295_s19 + $0x28] sm:$0xf] %vm528_vm3, %v2213_v2  ;;  %1606 = vst.msk [vmem:[%s2295_s19 + $0x2c] sm:$0xf] %vm528_vm3, %v2213_v2  ;;  %v1928_v58 = vld [vmem:[%s2935_s3 + $0x118] sm:$0xff]  ;;  %v1927_v59 = vld [vmem:[%s2935_s3 + $0x110] sm:$0xff] }
  0x19   : > { %484 = vperm.xlu1 %2173, %v433_v18   ;;  %479 = vperm.xlu0 %2172, %v432_v19   ;;  %v2188_v50 = vld [vmem:[%s2284_s11 + $0x30] ss:$0 sps:$4 sm:$0x33]   ;;  %v2189_v51 = vld [vmem:[%s2284_s11 + $0x64] ss:$0 sps:$4 sm:$0x33]   ;;  %vm2836_vm11 = vmand %vm1752_vm7, %vm1753_vm8 }
  0x1a   : > { %2039 = vmatmul.mubr.msk.bf16.gmra.mrb[4].mxu0 %vm294_vm5, %v2178_v20  ;;  %2071 = vmatmul.mubr.msk.bf16.gmra.mrb[4].mxu1 %vm294_vm5, %v2179_v21  ;;  %v1930_v60 = vld [vmem:[%s2935_s3 + $0x128] sm:$0xff]  ;;  %v1929_v61 = vld [vmem:[%s2935_s3 + $0x120] sm:$0xff]  ;;  %v2192_v62 = vld [vmem:[%s2284_s11 + $0x70] sm:$0xff]  }
  0x1b   : > { %2042 = vmatprep.mubr.msk.bf16.mxu0 %vm2216_vm4, %v2214_v6  ;;  %2074 = vmatprep.mubr.msk.bf16.mxu1 %vm2216_vm4, %v2214_v6  ;;  %v2193_v63 = vld [vmem:[%s2284_s11 + $0xa4] sm:$0xff]   ;;  %v1959_v1 = vld [vmem:[%s2935_s3 + $0x138] sm:$0xff]  ;;  %v1962_v2 = vld [vmem:[%s2935_s3 + $0x150] sm:$0xff] }
  0x1c   : > { %v1960_v0 = vld [vmem:[%s2935_s3 + $0x140] sm:$0xff]  ;;  %v1961_v3 = vld [vmem:[%s2935_s3 + $0x148] sm:$0xff]  ;;  %v2194_v4 = vld [vmem:[%s2284_s11 + $0x78] sm:$0xff]  }
  0x1d   : > { %494 = vperm.xlu1 %2173, %v435_v22   ;;  %489 = vperm.xlu0 %2172, %v434_v23   ;;  %v2195_v5 = vld [vmem:[%s2284_s11 + $0xac] sm:$0xff]   ;;  %v1964_v7 = vld [vmem:[%s2935_s3 + $0x160] sm:$0xff]  ;;  %v1963_v8 = vld [vmem:[%s2935_s3 + $0x158] sm:$0xff] }
  0x1e   : > { %v1966_v9 = vld [vmem:[%s2935_s3 + $0x170] sm:$0xff]  ;;  %v1965_v10 = vld [vmem:[%s2935_s3 + $0x168] sm:$0xff]  ;;  %v2196_v11 = vld [vmem:[%s2284_s11 + $0x80] sm:$0xff]  }
  0x1f   : > { %v2197_v12 = vld [vmem:[%s2284_s11 + $0xb4] sm:$0xff]   ;;  %v1968_v13 = vld [vmem:[%s2935_s3 + $0x180] sm:$0xff]  ;;  %v1526_v15 = vld [vmem:[%s2936_s4 + $0x8] sm:$0xff] }
  0x20   : > { %v1967_v14 = vld [vmem:[%s2935_s3 + $0x178] sm:$0xff]  ;;  %v1525_v16 = vld [vmem:[%s2936_s4] sm:$0xff]  ;;  %v2198_v17 = vld [vmem:[%s2284_s11 + $0x88] sm:$0xff]  }
  0x21   : > { %715 = vperm.xlu1 %2173, %v1879_v24   ;;  %499 = vperm.xlu0 %2172, %v436_v25   ;;  %v2199_v18 = vld [vmem:[%s2284_s11 + $0xbc] sm:$0xff]   ;;  %v1527_v20 = vld [vmem:[%s2936_s4 + $0x10] sm:$0xff]  ;;  %v1530_v21 = vld [vmem:[%s2936_s4 + $0x28] sm:$0xff] }
  0x22   : > { %2043 = vmatmul.mubr.msk.bf16.gmra.mrb[8].mxu0 %vm294_vm5, %v2180_v26  ;;  %2075 = vmatmul.mubr.msk.bf16.gmra.mrb[8].mxu1 %vm294_vm5, %v2181_v27  ;;  %v1528_v19 = vld [vmem:[%s2936_s4 + $0x18] sm:$0xff]  ;;  %v1529_v22 = vld [vmem:[%s2936_s4 + $0x20] sm:$0xff]  ;;  %v2200_v23 = vld [vmem:[%s2284_s11 + $0x90] sm:$0xff]  }
  0x23   : > { %2046 = vmatprep.mubr.msk.bf16.mxu0 %vm2216_vm4, %v2214_v6  ;;  %2078 = vmatprep.mubr.msk.bf16.mxu1 %vm2216_vm4, %v2214_v6  ;;  %v2201_v24 = vld [vmem:[%s2284_s11 + $0xc4] sm:$0xff]   ;;  %v1532_v25 = vld [vmem:[%s2936_s4 + $0x38] sm:$0xff]  ;;  %v1531_v26 = vld [vmem:[%s2936_s4 + $0x30] sm:$0xff] }
  0x24   : > { %v1534_v27 = vld [vmem:[%s2936_s4 + $0x48] sm:$0x3f]  ;;  %vm2851_vm12 = vmor %vm1639_vm9, %vm1640_vm10 }
  0x25   : > { %725 = vperm.xlu1 %2173, %v1881_v28   ;;  %720 = vperm.xlu0 %2172, %v1880_v29   ;;  %v1533_v28 = vld [vmem:[%s2936_s4 + $0x40] sm:$0xff]  ;;  %v2202_v29 = vld [vmem:[%s2284_s11 + $0x98] ss:$0 sps:$4 sm:$0x33]   ;;  %vm1769_vm15 = vmand %vm1767_vm13, %vm1768_vm14 }
  0x29   : > { %735 = vperm.xlu1 %2173, %v1883_v30   ;;  %730 = vperm.xlu0 %2172, %v1882_v31   ;;  %v2203_v30 = vld [vmem:[%s2284_s11 + $0xcc] ss:$0 sps:$4 sm:$0x33]   ;;  %v1931_v31 = vld [vmem:[%s2935_s3 + $0x130] sm:$0xf] }
  0x2a   : > { %2047 = vmatmul.mubr.msk.bf16.gmra.mrb[12].mxu0 %vm294_vm5, %v2182_v32  ;;  %2079 = vmatmul.mubr.msk.bf16.gmra.mrb[12].mxu1 %vm294_vm5, %v2183_v33  ;;  %v1971_v32 = vld [vmem:[%s2935_s3 + $0x198] sm:$0xf]  ;;  %v1970_v33 = vld [vmem:[%s2935_s3 + $0x190] sm:$0xff] }
  0x2b   : > { %2050 = vmatprep.mubr.msk.bf16.mxu0 %vm2216_vm4, %v2214_v6  ;;  %2082 = vmatprep.mubr.msk.bf16.mxu1 %vm2216_vm4, %v2214_v6 }
  0x2d   : > { %745 = vperm.xlu1 %2173, %v1885_v34   ;;  %740 = vperm.xlu0 %2172, %v1884_v35  }
  0x31   : > { %755 = vperm.xlu1 %2173, %v1887_v36   ;;  %750 = vperm.xlu0 %2172, %v1886_v37  }
  0x32   : > { %2051 = vmatmul.mubr.msk.bf16.gmra.mrb[16].mxu0 %vm294_vm5, %v2184_v38  ;;  %2083 = vmatmul.mubr.msk.bf16.gmra.mrb[16].mxu1 %vm294_vm5, %v2185_v39 }
  0x33   : > { %2054 = vmatprep.mubr.msk.bf16.mxu0 %vm2216_vm4, %v2214_v6  ;;  %2086 = vmatprep.mubr.msk.bf16.mxu1 %vm2216_vm4, %v2214_v6 }
  0x35   : > { %765 = vperm.xlu1 %2173, %v1889_v40   ;;  %760 = vperm.xlu0 %2172, %v1888_v41  }
  0x39   : > { %775 = vperm.xlu1 %2173, %v1891_v42   ;;  %770 = vperm.xlu0 %2172, %v1890_v43  }
  0x3a   : > { %2055 = vmatmul.mubr.msk.bf16.gmra.mrb[20].mxu0 %vm294_vm5, %v2186_v44  ;;  %2087 = vmatmul.mubr.msk.bf16.gmra.mrb[20].mxu1 %vm294_vm5, %v2187_v45 }
  0x3b   : > { %2058 = vmatprep.mubr.msk.bf16.mxu0 %vm2216_vm4, %v2214_v6  ;;  %2090 = vmatprep.mubr.msk.bf16.mxu1 %vm2216_vm4, %v2214_v6 }
  0x3d   : > { %995 = vperm.xlu1 %2173, %v1920_v46   ;;  %990 = vperm.xlu0 %2172, %v1919_v47  }
  0x41   : > { %1005 = vperm.xlu1 %2173, %v1922_v48   ;;  %1000 = vperm.xlu0 %2172, %v1921_v49  }
  0x42   : > { %2059 = vmatmul.mubr.msk.bf16.gmra.mrb[24].mxu0 %vm294_vm5, %v2188_v50  ;;  %2091 = vmatmul.mubr.msk.bf16.gmra.mrb[24].mxu1 %vm294_vm5, %v2189_v51 }
  0x43   : > { %2098 = vmatprep.mubr.msk.bf16.mxu0 %vm2216_vm4, %v2214_v6  ;;  %2130 = vmatprep.mubr.msk.bf16.mxu1 %vm2216_vm4, %v2214_v6 }
  0x45   : > { %1015 = vperm.xlu1 %2173, %v1924_v52   ;;  %1010 = vperm.xlu0 %2172, %v1923_v53  }
  0x49   : > { %1025 = vperm.xlu1 %2173, %v1926_v54   ;;  %1020 = vperm.xlu0 %2172, %v1925_v55  }
  0x4a   : > { %2099 = vmatmul.mubr.msk.bf16.vlgmr.msra.gmra.mrb[28].mxu0 %vm294_vm5, %v2190_v56  ;;  %2131 = vmatmul.mubr.msk.bf16.vlgmr.msra.gmra.mrb[28].mxu1 %vm294_vm5, %v2191_v57 }
  0x4b   : > { %2102 = vmatprep.mubr.msk.bf16.mxu0 %vm2216_vm4, %v2214_v6  ;;  %2134 = vmatprep.mubr.msk.bf16.mxu1 %vm2216_vm4, %v2214_v6 }
  0x4d   : > { %1035 = vperm.xlu1 %2173, %v1928_v58   ;;  %1030 = vperm.xlu0 %2172, %v1927_v59  }
  0x51   : > { %1045 = vperm.xlu1 %2173, %v1930_v60   ;;  %1040 = vperm.xlu0 %2172, %v1929_v61  }
  0x52   : > { %2103 = vmatmul.mubr.msk.bf16.gmra.mrb[32].mxu0 %vm294_vm5, %v2192_v62  ;;  %2135 = vmatmul.mubr.msk.bf16.gmra.mrb[32].mxu1 %vm294_vm5, %v2193_v63 }
  0x53   : > { %2106 = vmatprep.mubr.msk.bf16.mxu0 %vm2216_vm4, %v2214_v6  ;;  %2138 = vmatprep.mubr.msk.bf16.mxu1 %vm2216_vm4, %v2214_v6 }
  0x55   : > { %1270 = vperm.xlu1 %2173, %v1960_v0   ;;  %1265 = vperm.xlu0 %2172, %v1959_v1   ;;  %v2654_v0 = vld [vmem:[%s2934_s2] ss:$0 sm:$0xff] }
  0x59   : > { %1280 = vperm.xlu1 %2173, %v1962_v2   ;;  %1275 = vperm.xlu0 %2172, %v1961_v3  }
  0x5a   : > { %2107 = vmatmul.mubr.msk.bf16.gmra.mrb[36].mxu0 %vm294_vm5, %v2194_v4  ;;  %2139 = vmatmul.mubr.msk.bf16.gmra.mrb[36].mxu1 %vm294_vm5, %v2195_v5 }
  0x5b   : > { %2110 = vmatprep.mubr.msk.bf16.mxu0 %vm2216_vm4, %v2214_v6  ;;  %2142 = vmatprep.mubr.msk.bf16.mxu1 %vm2216_vm4, %v2214_v6 }
  0x5d   : > { %1290 = vperm.xlu1 %2173, %v1964_v7   ;;  %1285 = vperm.xlu0 %2172, %v1963_v8  }
  0x61   : > { %1300 = vperm.xlu1 %2173, %v1966_v9   ;;  %1295 = vperm.xlu0 %2172, %v1965_v10  }
  0x62   : > { %2111 = vmatmul.mubr.msk.bf16.gmra.mrb[40].mxu0 %vm294_vm5, %v2196_v11  ;;  %2143 = vmatmul.mubr.msk.bf16.gmra.mrb[40].mxu1 %vm294_vm5, %v2197_v12 }
  0x63   : > { %2114 = vmatprep.mubr.msk.bf16.mxu0 %vm2216_vm4, %v2214_v6  ;;  %2146 = vmatprep.mubr.msk.bf16.mxu1 %vm2216_vm4, %v2214_v6 }
  0x65   : > { %1310 = vperm.xlu1 %2173, %v1968_v13   ;;  %1305 = vperm.xlu0 %2172, %v1967_v14  }
  0x69   : > { %1542 = vperm.xlu1 %2173, %v1526_v15   ;;  %1537 = vperm.xlu0 %2172, %v1525_v16  }
  0x6a   : > { %2115 = vmatmul.mubr.msk.bf16.gmra.mrb[44].mxu0 %vm294_vm5, %v2198_v17  ;;  %2147 = vmatmul.mubr.msk.bf16.gmra.mrb[44].mxu1 %vm294_vm5, %v2199_v18 }
  0x6b   : > { %2118 = vmatprep.mubr.msk.bf16.mxu0 %vm2216_vm4, %v2214_v6  ;;  %2150 = vmatprep.mubr.msk.bf16.mxu1 %vm2216_vm4, %v2214_v6 }
  0x6d   : > { %1552 = vperm.xlu1 %2173, %v1528_v19   ;;  %1547 = vperm.xlu0 %2172, %v1527_v20  }
  0x71   : > { %1562 = vperm.xlu1 %2173, %v1530_v21   ;;  %1557 = vperm.xlu0 %2172, %v1529_v22  }
  0x72   : > { %2119 = vmatmul.mubr.msk.bf16.gmra.mrb[48].mxu0 %vm294_vm5, %v2200_v23  ;;  %2151 = vmatmul.mubr.msk.bf16.gmra.mrb[48].mxu1 %vm294_vm5, %v2201_v24 }
  0x73   : > { %2122 = vmatprep.mubr.msk.bf16.mxu0 %vm2216_vm4, %v2214_v6  ;;  %2154 = vmatprep.mubr.msk.bf16.mxu1 %vm2216_vm4, %v2214_v6  ;;  %v1969_v6 = vld [vmem:[%s2935_s3 + $0x188] sm:$0xff] }
  0x75   : > { %1572 = vperm.xlu1 %2173, %v1532_v25   ;;  %1567 = vperm.xlu0 %2172, %v1531_v26  }
  0x79   : > { %1582 = vperm.xlu1 %2173, %v1534_v27   ;;  %1577 = vperm.xlu0 %2172, %v1533_v28  }
  0x7a   : > { %2123 = vmatmul.mubr.msk.bf16.gmra.mrb[52].mxu0 %vm294_vm5, %v2202_v29  ;;  %2155 = vmatmul.mubr.msk.bf16.gmra.mrb[52].mxu1 %vm294_vm5, %v2203_v30 }
  0x7d   : > { %1315 = vperm.xlu1 %2173, %v1969_v6   ;;  %1050 = vperm.xlu0 %2172, %v1931_v31  }
  0x81   : > { %1325 = vperm.xlu1 %2173, %v1971_v32   ;;  %1320 = vperm.xlu0 %2172, %v1970_v33  }
  0x86   : > { %v2607_v34 = vpop.permute.xlu1 %449  ;;  %v440_v35 = vpop.permute.xlu0 %439 }
  0x8a   : > { %v2609_v36 = vpop.permute.xlu1 %454  ;;  %v445_v37 = vpop.permute.xlu0 %444 }
  0x8e   : > { %v2611_v38 = vpop.permute.xlu1 %464  ;;  %v2613_v39 = vpop.permute.xlu0 %459 }
  0x94   : > { %v2615_v40 = vpop.permute.xlu1 %474  ;;  %v2617_v41 = vpop.permute.xlu0 %469 }
  0x98   : > { %v2619_v42 = vpop.permute.xlu1 %484  ;;  %v2621_v43 = vpop.permute.xlu0 %479 }
  0x9c   : > { %v2623_v44 = vpop.permute.xlu1 %494  ;;  %v2625_v45 = vpop.permute.xlu0 %489 }
  0xa0   : > { %v716_v46 = vpop.permute.xlu1 %715  ;;  %v500_v47 = vpop.permute.xlu0 %499 }
  0xa4   : > { %v726_v48 = vpop.permute.xlu1 %725  ;;  %v721_v49 = vpop.permute.xlu0 %720 }
  0xa8   : > { %v2627_v50 = vpop.permute.xlu1 %735  ;;  %v2629_v51 = vpop.permute.xlu0 %730 }
  0xac   : > { %v2631_v52 = vpop.permute.xlu1 %745  ;;  %v2633_v53 = vpop.permute.xlu0 %740 }
  0xb0   : > { %v2635_v54 = vpop.permute.xlu1 %755  ;;  %v2637_v55 = vpop.permute.xlu0 %750 }
  0xb4   : > { %v2639_v56 = vpop.permute.xlu1 %765  ;;  %v2641_v57 = vpop.permute.xlu0 %760 }
  0xb8   : > { %v776_v58 = vpop.permute.xlu1 %775  ;;  %v771_v59 = vpop.permute.xlu0 %770 }
  0xbc   : > { %v2643_v60 = vpop.permute.xlu1 %995  ;;  %v2645_v61 = vpop.permute.xlu0 %990 }
  0xc0   : > { %v2647_v62 = vpop.permute.xlu1 %1005  ;;  %v2649_v63 = vpop.permute.xlu0 %1000 }
  0xc4   : > { %v2656_v1 = vpop.permute.xlu1 %1015  ;;  %v2658_v2 = vpop.permute.xlu0 %1010 }
  0xc8   : > { %v2666_v24 = vpop.permute.xlu1 %1025  ;;  %v2668_v25 = vpop.permute.xlu0 %1020 }
  0xe5   : > { %v357_v3 = vpop.f32.mrb[0].mxu0  ;;  %v632_v4 = vpop.f32.mrb[0].mxu1 }
  0xe6   : > { %v358_v5 = vadd.f32 %v2654_v0, %v357_v3  ;;  %v633_v7 = vadd.f32 %v2654_v0, %v632_v4  ;;  %v2036_v8 = vpop.f32.mrb[1].mxu0  ;;  %v2068_v9 = vpop.f32.mrb[1].mxu1 }
  0xe7   : > { %v360_v10 = vpop.f32.mrb[2].mxu0  ;;  %v635_v11 = vpop.f32.mrb[2].mxu1 }
  0xe8   : > { %v411_v12 = vmax.f32 %v358_v5, 0.0  ;;  %v686_v13 = vmax.f32 %v633_v7, 0.0  ;;  %v361_v14 = vadd.f32 %v2654_v0, %v360_v10  ;;  %v636_v15 = vadd.f32 %v2654_v0, %v635_v11  ;;  %v2037_v16 = vpop.f32.mrb[3].mxu0  ;;  %v2069_v17 = vpop.f32.mrb[3].mxu1 }
  0xe9   : > { %v2681_v10 = vpop.permute.xlu1 %1035  ;;  %v2683_v11 = vpop.permute.xlu0 %1030 }
  0xea   : > { %v502_v18 = vmul.f32 %v440_v35, %v411_v12  ;;  %v778_v19 = vmul.f32 %v716_v46, %v686_v13  ;;  %v412_v20 = vmax.f32 %v361_v14, 0.0  ;;  %v687_v21 = vmax.f32 %v636_v15, 0.0 }
  0xec   : > { %516 = vst.msk [vmem:[#allocation2] sm:$0xff] %vm515_vm6, %v502_v18  ;;  %792 = vst.msk [vmem:[#allocation2 + $0x68] sm:$0xff] %vm515_vm6, %v778_v19  ;;  %v503_v22 = vmul.f32 %v445_v37, %v412_v20  ;;  %v779_v23 = vmul.f32 %v721_v49, %v687_v21 }
  0xed   : > { %v365_v26 = vpop.f32.mrb[4].mxu0  ;;  %v640_v27 = vpop.f32.mrb[4].mxu1 }
  0xee   : > { %517 = vst.msk [vmem:[#allocation2 + $0x8] sm:$0xff] %vm515_vm6, %v503_v22  ;;  %793 = vst.msk [vmem:[#allocation2 + $0x70] sm:$0xff] %vm515_vm6, %v779_v23  ;;  %v366_v28 = vadd.f32 %v2654_v0, %v365_v26  ;;  %v641_v29 = vadd.f32 %v2654_v0, %v640_v27  ;;  %v2040_v30 = vpop.f32.mrb[5].mxu0  ;;  %v2072_v6 = vpop.f32.mrb[5].mxu1 }
  0xef   : > { %v368_v31 = vpop.f32.mrb[6].mxu0  ;;  %v643_v32 = vpop.f32.mrb[6].mxu1 }
  0xf0   : > { %v413_v33 = vmax.f32 %v366_v28, 0.0  ;;  %v688_v35 = vmax.f32 %v641_v29, 0.0  ;;  %v369_v37 = vadd.f32 %v2654_v0, %v368_v31  ;;  %v644_v46 = vadd.f32 %v2654_v0, %v643_v32  ;;  %v2041_v47 = vpop.f32.mrb[7].mxu0  ;;  %v2073_v49 = vpop.f32.mrb[7].mxu1 }
  0xf1   : > { %v1046_v30 = vpop.permute.xlu1 %1045  ;;  %v1041_v6 = vpop.permute.xlu0 %1040 }
  0xf2   : > { %v504_v58 = vmul.f32 %v2607_v34, %v413_v33  ;;  %v780_v59 = vmul.f32 %v726_v48, %v688_v35  ;;  %v414_v3 = vmax.f32 %v369_v37, 0.0  ;;  %v689_v4 = vmax.f32 %v644_v46, 0.0 }
  0xf4   : > { %518 = vst.msk [vmem:[#allocation2 + $0x10] sm:$0xff] %vm515_vm6, %v504_v58  ;;  %794 = vst.msk [vmem:[#allocation2 + $0x78] sm:$0xff] %vm515_vm6, %v780_v59  ;;  %v505_v5 = vmul.f32 %v2609_v36, %v414_v3  ;;  %v781_v7 = vmul.f32 %v2629_v51, %v689_v4 }
  0xf5   : > { %v373_v8 = vpop.f32.mrb[8].mxu0  ;;  %v648_v9 = vpop.f32.mrb[8].mxu1 }
  0xf6   : > { %v374_v12 = vadd.f32 %v2654_v0, %v373_v8  ;;  %v649_v34 = vadd.f32 %v2654_v0, %v648_v9  ;;  %519 = vst.msk [vmem:[#allocation2 + $0x18] sm:$0xff] %vm515_vm6, %v505_v5  ;;  %795 = vst.msk [vmem:[#allocation2 + $0x80] sm:$0xff] %vm515_vm6, %v781_v7  ;;  %v2044_v48 = vpop.f32.mrb[9].mxu0  ;;  %v2076_v13 = vpop.f32.mrb[9].mxu1 }
  0xf7   : > { %v376_v15 = vpop.f32.mrb[10].mxu0  ;;  %v651_v51 = vpop.f32.mrb[10].mxu1 }
  0xf8   : > { %v415_v14 = vmax.f32 %v374_v12, 0.0  ;;  %v690_v36 = vmax.f32 %v649_v34, 0.0  ;;  %v377_v16 = vadd.f32 %v2654_v0, %v376_v15  ;;  %v652_v17 = vadd.f32 %v2654_v0, %v651_v51  ;;  %v2045_v18 = vpop.f32.mrb[11].mxu0  ;;  %v2077_v19 = vpop.f32.mrb[11].mxu1 }
  0xf9   : > { %v2705_v5 = vpop.permute.xlu1 %1270  ;;  %v2707_v7 = vpop.permute.xlu0 %1265 }
  0xfa   : > { %v506_v20 = vmul.f32 %v2613_v39, %v415_v14  ;;  %v782_v21 = vmul.f32 %v2627_v50, %v690_v36  ;;  %v416_v22 = vmax.f32 %v377_v16, 0.0  ;;  %v691_v23 = vmax.f32 %v652_v17, 0.0 }
  0xfc   : > { %520 = vst.msk [vmem:[#allocation2 + $0x20] sm:$0xff] %vm515_vm6, %v506_v20  ;;  %796 = vst.msk [vmem:[#allocation2 + $0x88] sm:$0xff] %vm515_vm6, %v782_v21  ;;  %v507_v26 = vmul.f32 %v2611_v38, %v416_v22  ;;  %v783_v27 = vmul.f32 %v2633_v53, %v691_v23 }
  0xfd   : > { %v381_v28 = vpop.f32.mrb[12].mxu0  ;;  %v656_v29 = vpop.f32.mrb[12].mxu1 }
  0xfe   : > { %v382_v31 = vadd.f32 %v2654_v0, %v381_v28  ;;  %v657_v39 = vadd.f32 %v2654_v0, %v656_v29  ;;  %521 = vst.msk [vmem:[#allocation2 + $0x28] sm:$0xff] %vm515_vm6, %v507_v26  ;;  %797 = vst.msk [vmem:[#allocation2 + $0x90] sm:$0xff] %vm515_vm6, %v783_v27  ;;  %v2048_v50 = vpop.f32.mrb[13].mxu0  ;;  %v2080_v32 = vpop.f32.mrb[13].mxu1 }
  0xff   : > { %v384_v37 = vpop.f32.mrb[14].mxu0  ;;  %v659_v38 = vpop.f32.mrb[14].mxu1 }
 0x100   : > { %v417_v33 = vmax.f32 %v382_v31, 0.0  ;;  %v692_v35 = vmax.f32 %v657_v39, 0.0  ;;  %v385_v53 = vadd.f32 %v2654_v0, %v384_v37  ;;  %v660_v46 = vadd.f32 %v2654_v0, %v659_v38  ;;  %v2049_v47 = vpop.f32.mrb[15].mxu0  ;;  %v2081_v49 = vpop.f32.mrb[15].mxu1 }
 0x101   : > { %v2721_v22 = vpop.permute.xlu1 %1280  ;;  %v2723_v23 = vpop.permute.xlu0 %1275 }
 0x102   : > { %v508_v58 = vmul.f32 %v2617_v41, %v417_v33  ;;  %v784_v59 = vmul.f32 %v2631_v52, %v692_v35  ;;  %v418_v3 = vmax.f32 %v385_v53, 0.0  ;;  %v693_v4 = vmax.f32 %v660_v46, 0.0 }
 0x104   : > { %522 = vst.msk [vmem:[#allocation2 + $0x30] sm:$0xff] %vm515_vm6, %v508_v58  ;;  %798 = vst.msk [vmem:[#allocation2 + $0x98] sm:$0xff] %vm515_vm6, %v784_v59  ;;  %v509_v8 = vmul.f32 %v2615_v40, %v418_v3  ;;  %v785_v9 = vmul.f32 %v2637_v55, %v693_v4 }
 0x105   : > { %v389_v12 = vpop.f32.mrb[16].mxu0  ;;  %v664_v34 = vpop.f32.mrb[16].mxu1 }
 0x106   : > { %v390_v41 = vadd.f32 %v2654_v0, %v389_v12  ;;  %v665_v52 = vadd.f32 %v2654_v0, %v664_v34  ;;  %v2052_v48 = vpop.f32.mrb[17].mxu0  ;;  %v2084_v13 = vpop.f32.mrb[17].mxu1  ;;  %523 = vst.msk [vmem:[#allocation2 + $0x38] sm:$0xff] %vm515_vm6, %v509_v8  ;;  %799 = vst.msk [vmem:[#allocation2 + $0xa0] sm:$0xff] %vm515_vm6, %v785_v9 }
 0x107   : > { %v392_v14 = vpop.f32.mrb[18].mxu0  ;;  %v667_v36 = vpop.f32.mrb[18].mxu1 }
 0x108   : > { %v419_v15 = vmax.f32 %v390_v41, 0.0  ;;  %v694_v51 = vmax.f32 %v665_v52, 0.0  ;;  %v393_v40 = vadd.f32 %v2654_v0, %v392_v14  ;;  %v2053_v16 = vpop.f32.mrb[19].mxu0  ;;  %v2085_v55 = vpop.f32.mrb[19].mxu1  ;;  %v668_v17 = vadd.f32 %v2654_v0, %v667_v36 }
 0x109   : > { %v2736_v53 = vpop.permute.xlu1 %1290  ;;  %v2741_v47 = vpop.permute.xlu0 %1285 }
 0x10a   : > { %v510_v18 = vmul.f32 %v2621_v43, %v419_v15  ;;  %v786_v19 = vmul.f32 %v2635_v54, %v694_v51  ;;  %v420_v20 = vmax.f32 %v393_v40, 0.0  ;;  %v695_v21 = vmax.f32 %v668_v17, 0.0 }
 0x10c   : > { %524 = vst.msk [vmem:[#allocation2 + $0x40] sm:$0xff] %vm515_vm6, %v510_v18  ;;  %800 = vst.msk [vmem:[#allocation2 + $0xa8] sm:$0xff] %vm515_vm6, %v786_v19  ;;  %v511_v26 = vmul.f32 %v2619_v42, %v420_v20  ;;  %v787_v27 = vmul.f32 %v2641_v57, %v695_v21  ;;  %v1355_v18 = vld [vmem:[#allocation2] sm:$0xff]  ;;  %v1365_v19 = vld [vmem:[#allocation2 + $0x68] sm:$0xff] }
 0x10d   : > { %v397_v28 = vpop.f32.mrb[20].mxu0  ;;  %v672_v29 = vpop.f32.mrb[20].mxu1 }
 0x10e   : > { %525 = vst.msk [vmem:[#allocation2 + $0x48] sm:$0xff] %vm515_vm6, %v511_v26  ;;  %v398_v43 = vadd.f32 %v2654_v0, %v397_v28  ;;  %v673_v54 = vadd.f32 %v2654_v0, %v672_v29  ;;  %v2056_v30 = vpop.f32.mrb[21].mxu0  ;;  %v2088_v6 = vpop.f32.mrb[21].mxu1  ;;  %801 = vst.msk [vmem:[#allocation2 + $0xb0] sm:$0xff] %vm515_vm6, %v787_v27 }
 0x10f   : > { %v400_v31 = vpop.f32.mrb[22].mxu0  ;;  %v675_v39 = vpop.f32.mrb[22].mxu1  ;;  %v1375_v30 = vmax.f32 %v1355_v18, %v1365_v19  ;;  %v1360_v18 = vld [vmem:[#allocation2 + $0x28] sm:$0xff] }
 0x110   : > { %v421_v50 = vmax.f32 %v398_v43, 0.0  ;;  %v696_v32 = vmax.f32 %v673_v54, 0.0  ;;  %v401_v42 = vadd.f32 %v2654_v0, %v400_v31  ;;  %v2057_v33 = vpop.f32.mrb[23].mxu0  ;;  %v2089_v57 = vpop.f32.mrb[23].mxu1  ;;  %v1385_v39 = vld [vmem:[#allocation2 + $0x1] sm:$0xff] }
 0x111   : > { %v2744_v9 = vpop.permute.xlu1 %1300  ;;  %v2746_v12 = vpop.permute.xlu0 %1295  ;;  %v1357_v57 = vld [vmem:[#allocation2 + $0x10] sm:$0xff] }
 0x112   : > { %v512_v35 = vmul.f32 %v2625_v45, %v421_v50  ;;  %v788_v37 = vmul.f32 %v2639_v56, %v696_v32  ;;  %v422_v38 = vmax.f32 %v401_v42, 0.0 }
 0x114   : > { %526 = vst.msk [vmem:[#allocation2 + $0x50] sm:$0xff] %vm515_vm6, %v512_v35  ;;  %802 = vst.msk [vmem:[#allocation2 + $0xb8] sm:$0xff] %vm515_vm6, %v788_v37  ;;  %v513_v46 = vmul.f32 %v2623_v44, %v422_v38  ;;  %v1367_v37 = vld [vmem:[#allocation2 + $0x78] sm:$0xff] }
 0x115   : > { %v405_v49 = vpop.f32.mrb[24].mxu0  ;;  %v680_v58 = vpop.f32.mrb[24].mxu1 }
 0x116   : > { %527 = vst.msk [vmem:[#allocation2 + $0x58] sm:$0xff] %vm515_vm6, %v513_v46  ;;  %v2060_v59 = vpop.f32.mrb[25].mxu0  ;;  %v2092_v3 = vpop.f32.mrb[25].mxu1 }
 0x117   : > { %v408_v45 = vpop.f32.mrb[26].mxu0  ;;  %v683_v4 = vpop.f32.mrb[26].mxu1 }
 0x118   : > { %v2061_v56 = vpop.f32.mrb[27].mxu0  ;;  %v2093_v8 = vpop.f32.mrb[27].mxu1  ;;  %v1395_v45 = vmax.f32 %v1375_v30, %v1385_v39  ;;  %v1370_v30 = vld [vmem:[#allocation2 + $0x90] sm:$0xff] }
 0x119   : > { %v2754_v28 = vpop.permute.xlu1 %1310  ;;  %v2756_v29 = vpop.permute.xlu0 %1305  ;;  %v1359_v56 = vld [vmem:[#allocation2 + $0x20] sm:$0xff]  ;;  %v1369_v8 = vld [vmem:[#allocation2 + $0x88] sm:$0xff] }
 0x11d   : > { %v907_v34 = vpop.f32.mrb[28].mxu0  ;;  %v1182_v41 = vpop.f32.mrb[28].mxu1 }
 0x11e   : > { %v908_v44 = vadd.f32 %v2654_v0, %v907_v34  ;;  %v1183_v52 = vadd.f32 %v2654_v0, %v1182_v41  ;;  %v2100_v48 = vpop.f32.mrb[29].mxu0  ;;  %v2132_v13 = vpop.f32.mrb[29].mxu1  ;;  %v1358_v34 = vld [vmem:[#allocation2 + $0x18] sm:$0xff]  ;;  %v1368_v41 = vld [vmem:[#allocation2 + $0x80] sm:$0xff] }
 0x11f   : > { %v910_v14 = vpop.f32.mrb[30].mxu0  ;;  %v1185_v36 = vpop.f32.mrb[30].mxu1 }
 0x120   : > { %v961_v15 = vmax.f32 %v908_v44, 0.0  ;;  %v1236_v51 = vmax.f32 %v1183_v52, 0.0  ;;  %v911_v40 = vadd.f32 %v2654_v0, %v910_v14  ;;  %v1186_v16 = vadd.f32 %v2654_v0, %v1185_v36  ;;  %v2101_v55 = vpop.f32.mrb[31].mxu0  ;;  %v2133_v17 = vpop.f32.mrb[31].mxu1 }
 0x121   : > { %v1377_v36 = vmax.f32 %v1357_v57, %v1367_v37  ;;  %v1388_v55 = vld [vmem:[#allocation2 + $0x19] sm:$0xff]  ;;  %v1379_v17 = vmax.f32 %v1359_v56, %v1369_v8  ;;  %v1390_v57 = vld [vmem:[#allocation2 + $0x29] sm:$0xff] }
 0x122   : > { %v1053_v20 = vmul.f32 %v2645_v61, %v961_v15  ;;  %v1328_v21 = vmul.f32 %v2707_v7, %v1236_v51  ;;  %v962_v26 = vmax.f32 %v911_v40, 0.0  ;;  %v1237_v27 = vmax.f32 %v1186_v16, 0.0  ;;  %v1356_v61 = vld [vmem:[#allocation2 + $0x8] sm:$0xff]  ;;  %v1366_v7 = vld [vmem:[#allocation2 + $0x70] sm:$0xff]  ;;  %v2770_v51 = vpop.permute.xlu1 %1542  ;;  %v2772_v40 = vpop.permute.xlu0 %1537 }
 0x123   : > { %v1376_v4 = vmax.f32 %v1356_v61, %v1366_v7  ;;  %v1387_v16 = vld [vmem:[#allocation2 + $0x11] sm:$0xff]  ;;  %v2786_v8 = vld [vmem:[#allocation2 + $0x48] sm:$0x3f] }
 0x124   : > { %1067 = vst.msk [vmem:[#allocation2 + $0xd0] sm:$0xff] %vm515_vm6, %v1053_v20  ;;  %1342 = vst.msk [vmem:[#allocation2 + $0x138] sm:$0xff] %vm515_vm6, %v1328_v21  ;;  %v1054_v43 = vmul.f32 %v2643_v60, %v962_v26  ;;  %v1329_v54 = vmul.f32 %v2705_v5, %v1237_v27  ;;  %v1386_v5 = vld [vmem:[#allocation2 + $0x9] sm:$0xff]  ;;  %v1378_v20 = vmax.f32 %v1358_v34, %v1368_v41  ;;  %v1389_v21 = vld [vmem:[#allocation2 + $0x21] sm:$0xff] }
 0x125   : > { %v915_v6 = vpop.f32.mrb[32].mxu0  ;;  %v1190_v31 = vpop.f32.mrb[32].mxu1  ;;  %v1396_v14 = vmax.f32 %v1376_v4, %v1386_v5  ;;  %v2784_v37 = vmax.f32 %v1379_v17, %v1389_v21  ;;  %v1380_v4 = vmax.f32 %v1360_v18, %v1370_v30  ;;  %v2788_v34 = vld [vmem:[#allocation2 + $0xb0] sm:$0x3f]  ;;  %v1393_v30 = vld [vmem:[#allocation2 + $0x41] sm:$0xff] }
 0x126   : > { %1068 = vst.msk [vmem:[#allocation2 + $0xd8] sm:$0xff] %vm515_vm6, %v1054_v43  ;;  %1343 = vst.msk [vmem:[#allocation2 + $0x140] sm:$0xff] %vm515_vm6, %v1329_v54  ;;  %v916_v50 = vadd.f32 %v2654_v0, %v915_v6  ;;  %v1191_v32 = vadd.f32 %v2654_v0, %v1190_v31  ;;  %v2104_v42 = vpop.f32.mrb[33].mxu0  ;;  %v2136_v33 = vpop.f32.mrb[33].mxu1  ;;  %v1361_v6 = vld [vmem:[#allocation2 + $0x30] sm:$0xff]  ;;  %v1371_v31 = vld [vmem:[#allocation2 + $0x98] sm:$0xff] }
 0x127   : > { %v918_v60 = vpop.f32.mrb[34].mxu0  ;;  %v1193_v35 = vpop.f32.mrb[34].mxu1  ;;  %v1397_v42 = vmax.f32 %v1377_v36, %v1387_v16  ;;  %v2782_v33 = vmax.f32 %v1378_v20, %v1388_v55  ;;  %v1381_v56 = vmax.f32 %v1361_v6, %v1371_v31  ;;  %v1485_v17 = vld [vmem:[#allocation2 + $0x72] sm:$0xff]  ;;  %v2794_v18 = vmax.f32 %v1380_v4, %v1390_v57 }
 0x128   : > { %v963_v38 = vmax.f32 %v916_v50, 0.0  ;;  %v1238_v46 = vmax.f32 %v1191_v32, 0.0  ;;  %v919_v49 = vadd.f32 %v2654_v0, %v918_v60  ;;  %v1194_v58 = vadd.f32 %v2654_v0, %v1193_v35  ;;  %v2105_v59 = vpop.f32.mrb[35].mxu0  ;;  %v2137_v3 = vpop.f32.mrb[35].mxu1  ;;  %v1465_v32 = vld [vmem:[#allocation2 + $0xa] sm:$0xff] }
 0x12a   : > { %v1055_v44 = vmul.f32 %v2649_v63, %v963_v38  ;;  %v1330_v52 = vmul.f32 %v2723_v23, %v1238_v46  ;;  %v964_v48 = vmax.f32 %v919_v49, 0.0  ;;  %v1239_v13 = vmax.f32 %v1194_v58, 0.0  ;;  %v1363_v38 = vld [vmem:[#allocation2 + $0x40] sm:$0xff]  ;;  %v1373_v46 = vld [vmem:[#allocation2 + $0xa8] sm:$0xff] }
 0x12b   : > { %v1405_v15 = vld [vmem:[#allocation2 + $0xd0] sm:$0xff]  ;;  %v1425_v26 = vld [vmem:[#allocation2 + $0x138] sm:$0xff] }
 0x12c   : > { %v1415_v19 = vmax.f32 %v1395_v45, %v1405_v15  ;;  %1069 = vst.msk [vmem:[#allocation2 + $0xe0] sm:$0xff] %vm515_vm6, %v1055_v44  ;;  %1344 = vst.msk [vmem:[#allocation2 + $0x148] sm:$0xff] %vm515_vm6, %v1330_v52  ;;  %v1056_v63 = vmul.f32 %v2647_v62, %v964_v48  ;;  %v1331_v23 = vmul.f32 %v2721_v22, %v1239_v13  ;;  %v1362_v48 = vld [vmem:[#allocation2 + $0x38] sm:$0xff] }
 0x12d   : > { %v1406_v27 = vld [vmem:[#allocation2 + $0xd8] sm:$0xff]  ;;  %v923_v43 = vpop.f32.mrb[36].mxu0  ;;  %v1198_v54 = vpop.f32.mrb[36].mxu1  ;;  %v1426_v41 = vld [vmem:[#allocation2 + $0x140] sm:$0xff] }
 0x12e   : > { %v1435_v61 = vmax.f32 %v1415_v19, %v1425_v26  ;;  %v1416_v39 = vmax.f32 %v1396_v14, %v1406_v27  ;;  %1070 = vst.msk [vmem:[#allocation2 + $0xe8] sm:$0xff] %vm515_vm6, %v1056_v63  ;;  %1345 = vst.msk [vmem:[#allocation2 + $0x150] sm:$0xff] %vm515_vm6, %v1331_v23  ;;  %v924_v7 = vadd.f32 %v2654_v0, %v923_v43  ;;  %v2108_v22 = vpop.f32.mrb[37].mxu0  ;;  %v2140_v50 = vpop.f32.mrb[37].mxu1  ;;  %v1445_v60 = vld [vmem:[#allocation2 + $0xd1] sm:$0xff]  ;;  %v1372_v14 = vld [vmem:[#allocation2 + $0xa0] sm:$0xff] }
 0x12f   : > { %v1199_v62 = vadd.f32 %v2654_v0, %v1198_v54  ;;  %v926_v35 = vpop.f32.mrb[38].mxu0  ;;  %v1201_v5 = vpop.f32.mrb[38].mxu1  ;;  %v1391_v13 = vld [vmem:[#allocation2 + $0x31] sm:$0xff]  ;;  %v1383_v19 = vmax.f32 %v1363_v38, %v1373_v46  ;;  %v1392_v54 = vld [vmem:[#allocation2 + $0x39] sm:$0xff] }
 0x130   : > { %v1455_v49 = vmax.f32 %v1435_v61, %v1445_v60  ;;  %v965_v58 = vmax.f32 %v924_v7, 0.0  ;;  %v2109_v3 = vpop.f32.mrb[39].mxu0  ;;  %v2141_v45 = vpop.f32.mrb[39].mxu1  ;;  %v927_v44 = vadd.f32 %v2654_v0, %v926_v35  ;;  %v1202_v52 = vadd.f32 %v2654_v0, %v1201_v5  ;;  %v1505_v43 = vld [vmem:[#allocation2 + $0xb] sm:$0xff] }
 0x131   : > { %v1240_v59 = vmax.f32 %v1199_v62, 0.0  ;;  %v1436_v15 = vmax.f32 %v1416_v39, %v1426_v41  ;;  %v2796_v26 = vpop.permute.xlu1 %1552  ;;  %v2798_v27 = vpop.permute.xlu0 %1547  ;;  %v1466_v61 = vld [vmem:[#allocation2 + $0x12] sm:$0xff]  ;;  %v2804_v39 = vmax.f32 %v1381_v56, %v1391_v13  ;;  %v1382_v7 = vmax.f32 %v1362_v48, %v1372_v14  ;;  %v1394_v3 = vld [vmem:[#allocation2 + $0x49] sm:$0x3f]  ;;  %v1467_v14 = vld [vmem:[#allocation2 + $0x1a] sm:$0xff] }
 0x132   : > { %v1475_v36 = vmax.f32 %v1455_v49, %v1465_v32  ;;  %v1057_v16 = vmul.f32 %v2658_v2, %v965_v58  ;;  %v966_v20 = vmax.f32 %v927_v44, 0.0  ;;  %v1241_v21 = vmax.f32 %v1202_v52, 0.0  ;;  %v1486_v58 = vld [vmem:[#allocation2 + $0x7a] sm:$0xff] }
 0x133   : > { %v1332_v55 = vmul.f32 %v2741_v47, %v1240_v59  ;;  %v1407_v63 = vld [vmem:[#allocation2 + $0xe0] sm:$0xff]  ;;  %v1384_v2 = vmax.f32 %v2786_v8, %v2788_v34  ;;  %v1427_v62 = vld [vmem:[#allocation2 + $0x148] sm:$0xff]  ;;  %v2809_v59 = vmax.f32 %v1382_v7, %v1392_v54  ;;  %v2811_v45 = vmax.f32 %v1383_v19, %v1393_v30  ;;  %v1506_v13 = vld [vmem:[#allocation2 + $0x13] sm:$0xff] }
 0x134   : > { %v1446_v23 = vld [vmem:[#allocation2 + $0xd9] sm:$0xff]  ;;  %v1495_v6 = vmax.f32 %v1475_v36, %v1485_v17  ;;  %v1417_v47 = vmax.f32 %v1397_v42, %v1407_v63  ;;  %1071 = vst.msk [vmem:[#allocation2 + $0xf0] sm:$0xff] %vm515_vm6, %v1057_v16  ;;  %v1058_v50 = vmul.f32 %v2656_v1, %v966_v20  ;;  %v1333_v32 = vmul.f32 %v2736_v53, %v1241_v21  ;;  %v1487_v20 = vld [vmem:[#allocation2 + $0x82] sm:$0xff] }
 0x135   : > { %v1456_v31 = vmax.f32 %v1436_v15, %v1446_v23  ;;  %1346 = vst.msk [vmem:[#allocation2 + $0x158] sm:$0xff] %vm515_vm6, %v1332_v55  ;;  %v1408_v22 = vld [vmem:[#allocation2 + $0xe8] sm:$0xff]  ;;  %v931_v57 = vpop.f32.mrb[40].mxu0  ;;  %v1206_v60 = vpop.f32.mrb[40].mxu1  ;;  %v2818_v48 = vmax.f32 %v1384_v2, %v1394_v3  ;;  %v1428_v36 = vld [vmem:[#allocation2 + $0x150] sm:$0xff] }
 0x136   : > { %v1515_v35 = vmax.f32 %v1495_v6, %v1505_v43  ;;  %v1437_v42 = vmax.f32 %v1417_v47, %v1427_v62  ;;  %v1418_v38 = vmax.f32 %v2782_v33, %v1408_v22  ;;  %v2112_v46 = vpop.f32.mrb[41].mxu0  ;;  %v2144_v49 = vpop.f32.mrb[41].mxu1  ;;  %v1447_v4 = vld [vmem:[#allocation2 + $0xe1] sm:$0xff]  ;;  %1072 = vst.msk [vmem:[#allocation2 + $0xf8] sm:$0xff] %vm515_vm6, %v1058_v50  ;;  %1347 = vst.msk [vmem:[#allocation2 + $0x160] sm:$0xff] %vm515_vm6, %v1333_v32  ;;  %v1488_v3 = vld [vmem:[#allocation2 + $0x8a] sm:$0xff] }
 0x137   : > { %v1476_v5 = vmax.f32 %v1456_v31, %v1466_v61  ;;  %v932_v1 = vadd.f32 %v2654_v0, %v931_v57  ;;  %v1207_v53 = vadd.f32 %v2654_v0, %v1206_v60  ;;  %v934_v56 = vpop.f32.mrb[42].mxu0  ;;  %v1209_v8 = vpop.f32.mrb[42].mxu1  ;;  %v1507_v22 = vld [vmem:[#allocation2 + $0x1b] sm:$0xff] }
 0x138   : > { %v1585_v33 = vmul.f32 %v2772_v40, %v1515_v35  ;;  %v1457_v41 = vmax.f32 %v1437_v42, %v1447_v4  ;;  %v2113_v44 = vpop.f32.mrb[43].mxu0  ;;  %v2145_v52 = vpop.f32.mrb[43].mxu1  ;;  %v935_v55 = vadd.f32 %v2654_v0, %v934_v56  ;;  %v1210_v17 = vadd.f32 %v2654_v0, %v1209_v8 }
 0x139   : > { %v1496_v34 = vmax.f32 %v1476_v5, %v1486_v58  ;;  %v967_v15 = vmax.f32 %v932_v1, 0.0  ;;  %v1242_v16 = vmax.f32 %v1207_v53, 0.0  ;;  %v1438_v23 = vmax.f32 %v1418_v38, %v1428_v36  ;;  %v2824_v47 = vpop.permute.xlu1 %1562  ;;  %v2832_v35 = vpop.permute.xlu0 %1557  ;;  %v1468_v5 = vld [vmem:[#allocation2 + $0x22] sm:$0xff] }
 0x13a   : > { %v1984_v19 = vpack.c.bf16 %v1585_v33, %v1585_v33  ;;  %v1477_v40 = vmax.f32 %v1457_v41, %v1467_v14  ;;  %v968_v2 = vmax.f32 %v935_v55, 0.0  ;;  %v1243_v6 = vmax.f32 %v1210_v17, 0.0 }
 0x13b   : > { %v1516_v63 = vmax.f32 %v1496_v34, %v1506_v13  ;;  %v1409_v21 = vld [vmem:[#allocation2 + $0xf0] sm:$0xff]  ;;  %v1059_v54 = vmul.f32 %v2668_v25, %v967_v15  ;;  %v1334_v30 = vmul.f32 %v2746_v12, %v1242_v16 }
 0x13c   : > { %v1448_v43 = vld [vmem:[#allocation2 + $0xe9] sm:$0xff]  ;;  %v1643_v31 = vshrl.u32 %v1984_v19, 16  ;;  %v1646_v61 = vshll.u32 %v1984_v19, 16  ;;  %v1497_v62 = vmax.f32 %v1477_v40, %v1487_v20  ;;  %v1419_v50 = vmax.f32 %v2784_v37, %v1409_v21  ;;  %v1429_v37 = vld [vmem:[#allocation2 + $0x158] sm:$0xff] }
 0x13d   : > { %v1586_v7 = vmul.f32 %v2770_v51, %v1516_v63  ;;  %v1458_v32 = vmax.f32 %v1438_v23, %v1448_v43  ;;  %1073 = vst.msk [vmem:[#allocation2 + $0x100] sm:$0xff] %vm515_vm6, %v1059_v54  ;;  %1348 = vst.msk [vmem:[#allocation2 + $0x168] sm:$0xff] %vm515_vm6, %v1334_v30  ;;  %v1060_v25 = vmul.f32 %v2666_v24, %v968_v2  ;;  %v939_v57 = vpop.f32.mrb[44].mxu0  ;;  %v1214_v60 = vpop.f32.mrb[44].mxu1  ;;  %v1410_v49 = vld [vmem:[#allocation2 + $0xf8] sm:$0xff]  ;;  %v1430_v14 = vld [vmem:[#allocation2 + $0x160] sm:$0xff] }
 0x13e   : > { %v1335_v12 = vmul.f32 %v2744_v9, %v1243_v6  ;;  %v1645_v51 = vrot.slane %v1643_v31, 6  ;;  %v1648_v42 = vrot.slane %v1646_v61, 7  ;;  %v1517_v46 = vmax.f32 %v1497_v62, %v1507_v22  ;;  %v2116_v58 = vpop.f32.mrb[45].mxu0  ;;  %v1755_v24 = vld [vmem:[%s2295_s19 + $0x4] sm:$0xe]  ;;  %v2148_v8 = vpop.f32.mrb[45].mxu1 }
 0x13f   : > { %v1985_v38 = vpack.c.bf16 %v1586_v7, %v1586_v7  ;;  %v1478_v9 = vmax.f32 %v1458_v32, %v1468_v5  ;;  %v1439_v1 = vmax.f32 %v1419_v50, %v1429_v37  ;;  %v1420_v53 = vmax.f32 %v2794_v18, %v1410_v49  ;;  %1074 = vst.msk [vmem:[#allocation2 + $0x108] sm:$0xff] %vm515_vm6, %v1060_v25  ;;  %v942_v33 = vpop.f32.mrb[46].mxu0  ;;  %v1449_v13 = vld [vmem:[#allocation2 + $0xf1] sm:$0xff]  ;;  %v1217_v36 = vpop.f32.mrb[46].mxu1  ;;  %v1508_v63 = vld [vmem:[#allocation2 + $0x23] sm:$0xff] }
 0x140   : > { %1349 = vst.msk [vmem:[#allocation2 + $0x170] sm:$0xff] %vm515_vm6, %v1335_v12  ;;  %v940_v56 = vadd.f32 %v2654_v0, %v939_v57  ;;  %v1649_v34 = vor.u32 %v1648_v42, %v1645_v51  ;;  %v1587_v52 = vmul.f32 %v2798_v27, %v1517_v46  ;;  %v2117_v15 = vpop.f32.mrb[47].mxu0  ;;  %v2149_v19 = vpop.f32.mrb[47].mxu1  ;;  %v1469_v40 = vld [vmem:[#allocation2 + $0x2a] sm:$0xff]  ;;  %v1489_v7 = vld [vmem:[#allocation2 + $0x92] sm:$0xff]  ;;  %v1215_v32 = vadd.f32 %v2654_v0, %v1214_v60 }
 0x141   : > { %v1652_v41 = vshrl.u32 %v1985_v38, 16  ;;  %v1655_v44 = vshll.u32 %v1985_v38, 16  ;;  %v1498_v16 = vmax.f32 %v1478_v9, %v1488_v3  ;;  %v1459_v18 = vmax.f32 %v1439_v1, %v1449_v13  ;;  %v2856_v31 = vpop.permute.xlu1 %1572  ;;  %v2858_v61 = vpop.permute.xlu0 %1567  ;;  %v1509_v46 = vld [vmem:[#allocation2 + $0x2b] sm:$0xff] }
 0x142   : > { %v1440_v55 = vmax.f32 %v1420_v53, %v1430_v14  ;;  %v969_v17 = vmax.f32 %v940_v56, 0.0  ;;  %v1650_v23 = vrot.slane %v1649_v34, 4  ;;  %v1756_v20 = vsel %vm2836_vm11, %v1649_v34, %v1755_v24  ;;  %v1470_v24 = vld [vmem:[#allocation2 + $0x32] sm:$0xff]  ;;  %v1490_v14 = vld [vmem:[#allocation2 + $0x9a] sm:$0xff] }
 0x143   : > { %v1654_v21 = vrot.slane %v1652_v41, 6  ;;  %v1657_v43 = vrot.slane %v1655_v44, 7  ;;  %1757 = vst [vmem:[%s2295_s19 + $0x4] sm:$0xe] %v1756_v20  ;;  %v1986_v54 = vpack.c.bf16 %v1587_v52, %v1587_v52  ;;  %v1518_v30 = vmax.f32 %v1498_v16, %v1508_v63  ;;  %v1510_v20 = vld [vmem:[#allocation2 + $0x33] sm:$0xff] }
 0x144   : > { %v1479_v2 = vmax.f32 %v1459_v18, %v1469_v40  ;;  %v1061_v6 = vmul.f32 %v2683_v11, %v969_v17  ;;  %v1411_v22 = vld [vmem:[#allocation2 + $0x100] sm:$0xff]  ;;  %v2862_v25 = vadd.f32 %v2654_v0, %v942_v33  ;;  %v2865_v12 = vadd.f32 %v2654_v0, %v1217_v36  ;;  %v1431_v56 = vld [vmem:[#allocation2 + $0x168] sm:$0xff] }
 0x145   : > { %v1658_v62 = vor.u32 %v1657_v43, %v1654_v21  ;;  %v1450_v50 = vld [vmem:[#allocation2 + $0xf9] sm:$0xff]  ;;  %v1662_v57 = vshrl.u32 %v1986_v54, 16  ;;  %v1665_v5 = vshll.u32 %v1986_v54, 16  ;;  %v1588_v11 = vmul.f32 %v2796_v26, %v1518_v30  ;;  %v947_v42 = vpop.f32.mrb[48].mxu0  ;;  %v1222_v38 = vpop.f32.mrb[48].mxu1 }
 0x146   : > { %v1499_v51 = vmax.f32 %v1479_v2, %v1489_v7  ;;  %1075 = vst.msk [vmem:[#allocation2 + $0x110] sm:$0xff] %vm515_vm6, %v1061_v6  ;;  %v1421_v49 = vmax.f32 %v2804_v39, %v1411_v22  ;;  %v1460_v58 = vmax.f32 %v1440_v55, %v1450_v50  ;;  %v1412_v0 = vld [vmem:[#allocation2 + $0x108] sm:$0xff]  ;;  %v2120_v3 = vpop.f32.mrb[49].mxu0  ;;  %v2152_v4 = vpop.f32.mrb[49].mxu1  ;;  %v1244_v52 = vmax.f32 %v1215_v32, 0.0  ;;  %v1471_v21 = vld [vmem:[#allocation2 + $0x3a] sm:$0xff] }
 0x147   : > { %v1659_v60 = vsel %vm2851_vm12, %v1650_v23, %v1658_v62  ;;  %v1660_v37 = vrot.slane %v1658_v62, 4  ;;  %v1664_v26 = vrot.slane %v1662_v57, 6  ;;  %v1667_v9 = vrot.slane %v1665_v5, 7  ;;  %v950_v8 = vpop.f32.mrb[50].mxu0  ;;  %v1225_v33 = vpop.f32.mrb[50].mxu1  ;;  %v1451_v55 = vld [vmem:[#allocation2 + $0x101] sm:$0xff] }
 0x148   : > { %1758 = vst.msk [vmem:[%s2295_s19 + $0x8] sm:$0xf] %vm528_vm3, %v1659_v60  ;;  %v1987_v1 = vpack.c.bf16 %v1588_v11, %v1588_v11  ;;  %v1519_v53 = vmax.f32 %v1499_v51, %v1509_v46  ;;  %v1480_v34 = vmax.f32 %v1460_v58, %v1470_v24  ;;  %v1441_v41 = vmax.f32 %v1421_v49, %v1431_v56  ;;  %v2121_v39 = vpop.f32.mrb[51].mxu0  ;;  %v2153_v13 = vpop.f32.mrb[51].mxu1  ;;  %v1432_v17 = vld [vmem:[#allocation2 + $0x170] sm:$0xff]  ;;  %v1491_v32 = vld [vmem:[#allocation2 + $0xa2] sm:$0xff] }
 0x149   : > { %v1422_v44 = vmax.f32 %v2809_v59, %v1412_v0  ;;  %v1668_v36 = vor.u32 %v1667_v9, %v1664_v26  ;;  %v1336_v23 = vmul.f32 %v2756_v29, %v1244_v52  ;;  %v2879_v2 = vpop.permute.xlu1 %1582  ;;  %v2881_v6 = vpop.permute.xlu0 %1577  ;;  %v970_v29 = vmax.f32 %v2862_v25, 0.0  ;;  %v1472_v46 = vld [vmem:[#allocation2 + $0x42] sm:$0xff] }
 0x14a   : > { %v1672_v15 = vshrl.u32 %v1987_v1, 16  ;;  %v1675_v16 = vshll.u32 %v1987_v1, 16  ;;  %v1589_v18 = vmul.f32 %v2832_v35, %v1519_v53  ;;  %v1500_v19 = vmax.f32 %v1480_v34, %v1490_v14  ;;  %v1511_v4 = vld [vmem:[#allocation2 + $0x3b] sm:$0xff]  ;;  %v1492_v1 = vld [vmem:[#allocation2 + $0xaa] sm:$0xff] }
 0x14b   : > { %v1461_v63 = vmax.f32 %v1441_v41, %v1451_v55  ;;  %v1442_v40 = vmax.f32 %v1422_v44, %v1432_v17  ;;  %v1669_v59 = vsel %vm2851_vm12, %v1660_v37, %v1668_v36  ;;  %v1670_v43 = vrot.slane %v1668_v36, 4  ;;  %1350 = vst.msk [vmem:[#allocation2 + $0x178] sm:$0xff] %vm515_vm6, %v1336_v23  ;;  %v1512_v52 = vld [vmem:[#allocation2 + $0x43] sm:$0xff] }
 0x14c   : > { %v1674_v54 = vrot.slane %v1672_v15, 6  ;;  %v1677_v30 = vrot.slane %v1675_v16, 7  ;;  %1759 = vst.msk [vmem:[%s2295_s19 + $0xc] sm:$0xf] %vm528_vm3, %v1669_v59  ;;  %v1988_v35 = vpack.c.bf16 %v1589_v18, %v1589_v18  ;;  %v1520_v7 = vmax.f32 %v1500_v19, %v1510_v20 }
 0x14d   : > { %v1481_v62 = vmax.f32 %v1461_v63, %v1471_v21  ;;  %v1413_v22 = vld [vmem:[#allocation2 + $0x110] sm:$0xff]  ;;  %v1245_v51 = vmax.f32 %v2865_v12, 0.0  ;;  %v955_v42 = vpop.f32.mrb[52].mxu0  ;;  %v1230_v38 = vpop.f32.mrb[52].mxu1  ;;  %v1062_v26 = vmul.f32 %v2681_v10, %v970_v29 }
 0x14e   : > { %v1452_v50 = vld [vmem:[#allocation2 + $0x109] sm:$0xff]  ;;  %v1678_v57 = vor.u32 %v1677_v30, %v1674_v54  ;;  %v1423_v5 = vmax.f32 %v2811_v45, %v1413_v22  ;;  %v1682_v60 = vshrl.u32 %v1988_v35, 16  ;;  %v1685_v37 = vshll.u32 %v1988_v35, 16  ;;  %v2124_v0 = vpop.f32.mrb[53].mxu0  ;;  %v2156_v3 = vpop.f32.mrb[53].mxu1 }
 0x14f   : > { %v1462_v11 = vmax.f32 %v1442_v40, %v1452_v50  ;;  %v1590_v49 = vmul.f32 %v2824_v47, %v1520_v7  ;;  %v1501_v58 = vmax.f32 %v1481_v62, %v1491_v32  ;;  %v958_v12 = vpop.f32.mrb[54].mxu0  ;;  %v1233_v9 = vpop.f32.mrb[54].mxu1  ;;  %1076 = vst.msk [vmem:[#allocation2 + $0x118] sm:$0xff] %vm515_vm6, %v1062_v26  ;;  %v1337_v44 = vmul.f32 %v2754_v28, %v1245_v51 }
 0x150   : > { %v1679_v25 = vsel %vm2851_vm12, %v1670_v43, %v1678_v57  ;;  %v1680_v24 = vrot.slane %v1678_v57, 4  ;;  %v1684_v53 = vrot.slane %v1682_v60, 6  ;;  %v1687_v56 = vrot.slane %v1685_v37, 7  ;;  %v2125_v33 = vpop.f32.mrb[55].mxu0  ;;  %v2157_v34 = vpop.f32.mrb[55].mxu1  ;;  %v1473_v57 = vld [vmem:[#allocation2 + $0x4a] sm:$0xff] }
 0x151   : > { %v1482_v45 = vmax.f32 %v1462_v11, %v1472_v46  ;;  %1760 = vst.msk [vmem:[%s2295_s19 + $0x10] sm:$0xf] %vm528_vm3, %v1679_v25  ;;  %v1989_v8 = vpack.c.bf16 %v1590_v49, %v1590_v49  ;;  %v1521_v47 = vmax.f32 %v1501_v58, %v1511_v4  ;;  %v1316_v19 = vpop.permute.xlu1 %1315  ;;  %v1051_v63 = vpop.permute.xlu0 %1050  ;;  %v1493_v37 = vld [vmem:[#allocation2 + $0xb2] sm:$0xff]  ;;  %v1494_v9 = vld [vmem:[#allocation2 + $0xba] sm:$0x3f] }
 0x152   : > { %v1688_v39 = vor.u32 %v1687_v56, %v1684_v53  ;;  %1351 = vst.msk [vmem:[#allocation2 + $0x180] sm:$0xff] %vm515_vm6, %v1337_v44  ;;  %v1433_v17 = vld [vmem:[#allocation2 + $0x178] sm:$0xff]  ;;  %v1474_v25 = vld [vmem:[#allocation2 + $0x52] sm:$0x3f] }
 0x153   : > { %v1502_v41 = vmax.f32 %v1482_v45, %v1492_v1  ;;  %v1692_v10 = vshrl.u32 %v1989_v8, 16  ;;  %v1695_v13 = vshll.u32 %v1989_v8, 16  ;;  %v1591_v14 = vmul.f32 %v2858_v61, %v1521_v47  ;;  %v1514_v56 = vld [vmem:[#allocation2 + $0x53] sm:$0x3f] }
 0x154   : > { %v1689_v15 = vsel %vm2851_vm12, %v1680_v24, %v1688_v39  ;;  %v1690_v16 = vrot.slane %v1688_v39, 4  ;;  %v1443_v23 = vmax.f32 %v1423_v5, %v1433_v17  ;;  %v1513_v24 = vld [vmem:[#allocation2 + $0x4b] sm:$0xff] }
 0x155   : > { %v1522_v36 = vmax.f32 %v1502_v41, %v1512_v52  ;;  %v1694_v18 = vrot.slane %v1692_v10, 6  ;;  %v1697_v55 = vrot.slane %v1695_v13, 7  ;;  %1761 = vst.msk [vmem:[%s2295_s19 + $0x14] sm:$0xf] %vm528_vm3, %v1689_v15  ;;  %v1990_v28 = vpack.c.bf16 %v1591_v14, %v1591_v14  ;;  %v1321_v32 = vpop.permute.xlu0 %1320  ;;  %v1326_v38 = vpop.permute.xlu1 %1325 }
 0x156   : > { %v1414_v30 = vld [vmem:[#allocation2 + $0x118] sm:$0x3f] }
 0x157   : > { %v1592_v40 = vmul.f32 %v2856_v31, %v1522_v36  ;;  %v1698_v61 = vor.u32 %v1697_v55, %v1694_v18  ;;  %v1702_v20 = vshrl.u32 %v1990_v28, 16  ;;  %v1705_v21 = vshll.u32 %v1990_v28, 16  ;;  %v1453_v50 = vld [vmem:[#allocation2 + $0x111] sm:$0xff]  ;;  %v1454_v3 = vld [vmem:[#allocation2 + $0x119] sm:$0x3f] }
 0x158   : > { %v1424_v29 = vmax.f32 %v2818_v48, %v1414_v30  ;;  %v1463_v31 = vmax.f32 %v1443_v23, %v1453_v50 }
 0x159   : > { %v1991_v59 = vpack.c.bf16 %v1592_v40, %v1592_v40  ;;  %v1699_v43 = vsel %vm2851_vm12, %v1690_v16, %v1698_v61  ;;  %v1700_v54 = vrot.slane %v1698_v61, 4  ;;  %v1704_v35 = vrot.slane %v1702_v20, 6  ;;  %v1434_v42 = vld [vmem:[#allocation2 + $0x180] sm:$0x3f] }
 0x15a   : > { %1762 = vst.msk [vmem:[%s2295_s19 + $0x18] sm:$0xf] %vm528_vm3, %v1699_v43  ;;  %v1707_v7 = vrot.slane %v1705_v21, 7  ;;  %v1483_v46 = vmax.f32 %v1463_v31, %v1473_v57  ;;  %v1444_v60 = vmax.f32 %v1424_v29, %v1434_v42 }
 0x15b   : > { %v1712_v62 = vshrl.u32 %v1991_v59, 16  ;;  %v1715_v22 = vshll.u32 %v1991_v59, 16 }
 0x15c   : > { %v1708_v5 = vor.u32 %v1707_v7, %v1704_v35  ;;  %v1503_v48 = vmax.f32 %v1483_v46, %v1493_v37  ;;  %v1464_v4 = vmax.f32 %v1444_v60, %v1454_v3 }
 0x15d   : > { %v1714_v11 = vrot.slane %v1712_v62, 6  ;;  %v1717_v51 = vrot.slane %v1715_v22, 7 }
 0x15e   : > { %v1709_v49 = vsel %vm2851_vm12, %v1700_v54, %v1708_v5  ;;  %v1710_v58 = vrot.slane %v1708_v5, 4  ;;  %v1523_v26 = vmax.f32 %v1503_v48, %v1513_v24  ;;  %v1484_v12 = vmax.f32 %v1464_v4, %v1474_v25 }
 0x15f   : > { %v1718_v0 = vor.u32 %v1717_v51, %v1714_v11  ;;  %1763 = vst.msk [vmem:[%s2295_s19 + $0x1c] sm:$0xf] %vm528_vm3, %v1709_v49 }
 0x160   : > { %v1593_v1 = vmul.f32 %v2881_v6, %v1523_v26  ;;  %v1504_v53 = vmax.f32 %v1484_v12, %v1494_v9 }
 0x161   : > { %v1719_v45 = vsel %vm2851_vm12, %v1710_v58, %v1718_v0  ;;  %v1720_v10 = vrot.slane %v1718_v0, 4 }
 0x162   : > { %1764 = vst.msk [vmem:[%s2295_s19 + $0x20] sm:$0xf] %vm528_vm3, %v1719_v45  ;;  %v1992_v8 = vpack.c.bf16 %v1593_v1, %v1593_v1  ;;  %v1524_v47 = vmax.f32 %v1504_v53, %v1514_v56 }
 0x164   : > { %v1722_v33 = vshrl.u32 %v1992_v8, 16  ;;  %v1725_v34 = vshll.u32 %v1992_v8, 16  ;;  %v1594_v41 = vmul.f32 %v2879_v2, %v1524_v47  ;;  %v1770_v2 = vld [vmem:[%s2295_s19 + $0x2c] sm:$0x1] }
 0x166   : > { %v1724_v44 = vrot.slane %v1722_v33, 6  ;;  %v1727_v52 = vrot.slane %v1725_v34, 7  ;;  %v1993_v39 = vpack.c.bf16 %v1594_v41, %v1594_v41 }
 0x168   : > { %v1728_v13 = vor.u32 %v1727_v52, %v1724_v44  ;;  %v1732_v6 = vshrl.u32 %v1993_v39, 16  ;;  %v1735_v14 = vshll.u32 %v1993_v39, 16 }
 0x16a   : > { %v1729_v36 = vsel %vm2851_vm12, %v1720_v10, %v1728_v13  ;;  %v1730_v15 = vrot.slane %v1728_v13, 4  ;;  %v1734_v16 = vrot.slane %v1732_v6, 6  ;;  %v1737_v18 = vrot.slane %v1735_v14, 7 }
 0x16b   : > { %1765 = vst.msk [vmem:[%s2295_s19 + $0x24] sm:$0xf] %vm528_vm3, %v1729_v36 }
 0x16c   : > { %v1738_v55 = vor.u32 %v1737_v18, %v1734_v16  ;;  %v1740_v17 = vrot.slane %v1734_v16, 4 }
 0x16e   : > { %v1739_v19 = vsel %vm2851_vm12, %v1730_v15, %v1738_v55  ;;  %v1771_v63 = vsel %vm1769_vm15, %v1740_v17, %v1770_v2 }
 0x16f   : > { %1766 = vst.msk [vmem:[%s2295_s19 + $0x28] sm:$0xf] %vm528_vm3, %v1739_v19  ;;  %1772 = vst [vmem:[%s2295_s19 + $0x2c] sm:$0x1] %v1771_v63 }
 0x170 PF: > { %s15_s18 = sadd.s32 1, %s2211_s18  }
 0x171   : > { %p12_p4 = scmp.ge.s32.totalorder %s15_s18, 4  }
 0x173   :  { %14 = sbr.rel (!%p12_p4) target bundleno = 1 (0x1), region = 79 }

// kernel: shufflenet_v2_forward.10
= control target key start
LH: loop header
LB: loop body
LE: loop exit
PB: predicated region body
PF: predicated region fallthrough
CT: control target
= control target key end

     0   :  { %s1429_s24 = smov 0   ;;  %s1599_s0 = inlined_call_operand.vmem [shape: bf16[2,36,16], index: 0, kind: input, shape index: {}]   ;;  %s1600_s1 = inlined_call_operand.vmem [shape: bf16[8,8], index: 1, kind: input, shape index: {}]   ;;  %s1601_s2 = inlined_call_operand.vmem [shape: f32[1,8], index: 2, kind: input, shape index: {}]   ;;  %s1602_s3 = inlined_call_operand.vmem [shape: bf16[9,8,8], index: 3, kind: input, shape index: {}]   ;;  %s1603_s4 = inlined_call_operand.vmem [shape: f32[1,8], index: 4, kind: input, shape index: {}]   ;;  %s1604_s5 = inlined_call_operand.vmem [shape: f32[36,1], index: 5, kind: input, shape index: {}]   ;;  %s1605_s6 = inlined_call_operand.vmem [shape: f32[22,1], index: 6, kind: input, shape index: {}]   ;;  %s1606_s7 = inlined_call_operand.vmem [shape: bf16[2,2,36,8], index: 7, kind: output, shape index: {}]  }
   0x1 LB: > { %s1190_s25 = sadd.s32 4294967295, %s1383_s24   ;;  %p1194_p0 = scmp.ge.s32.totalorder %s1383_s24, 1  ;;  %s1383_s24 = sphi %s1429_s24, %s17_s24  }
   0x2   : > { %p237_p1 = scmp.lt.s32.totalorder %s1383_s24, 3 }
   0x4   : > { %p238_p2 = pnand %p1194_p0, %p237_p1 }
   0x5   : > { %p269_p3 = scmp.lt.s32.totalorder (!%p238_p2), %s1190_s25, 1  ;;  %v285_v0 = vld [vmem:[%s1600_s1] sm:$0xf] (!%p238_p2)  ;;  %vm322_vm0 = vcmask (!%p238_p2), 1043456   ;;  %v1385_v1 = vmov (!%p238_p2), 0.0   ;;  %vm1386_vm1 = vmmov (!%p238_p2), 0  }
   0x6   : > { %241 = sbr.rel (%p238_p2) target bundleno = 645 (0x285), region = 48  ;;  %1281 = vmatprep.subr.bf16.mxu0 (!%p238_p2), %v1385_v1  ;;  %v324_v2 = vsel (!%p238_p2), %vm322_vm0, %v285_v0, 0  ;;  %1283 = vmatprep.mubr.msk.bf16.mxu0 (!%p238_p2), %vm1386_vm1, %v1385_v1  ;;  %s1387_s10 = smov (!%p238_p2), 120   ;;  %vm1067_vm2 = vcmask (!%p238_p2), 58368   ;;  %v1388_v7 = vmov (!%p238_p2), 0   ;;  %v387_v8 = vld [vmem:[%s1604_s5] sm:$0xff] (!%p238_p2) }
   0x7   : > { %1282 = vmatpush3.bf16.msra.mxu0 (!%p238_p2), %v324_v2  ;;  %1372 = vset.pattern.permute.xlu1 (!%p238_p2), %v1388_v7  ;;  %v388_v9 = vld [vmem:[%s1604_s5 + $0x8] sm:$0xff] (!%p238_p2)  ;;  %v389_v10 = vld [vmem:[%s1604_s5 + $0x10] sm:$0xff] (!%p238_p2)  ;;  %v391_v11 = vld [vmem:[%s1604_s5 + $0x20] sm:$0xf] (!%p238_p2)  ;;  %vm312_vm3 = vcmask (!%p238_p2), 64512   ;;  %vm426_vm4 = vcmask (!%p238_p2), 60416  }
   0x8   : > { %1373 = vset.pattern.permute.xlu0 (!%p238_p2), %v1388_v7  ;;  %v390_v12 = vld [vmem:[%s1604_s5 + $0x18] sm:$0xff] (!%p238_p2)  ;;  %v1038_v13 = vld [vmem:[%s1605_s6 + $0x8] sm:$0xff] (!%p238_p2)  ;;  %v1037_v14 = vld [vmem:[%s1605_s6] sm:$0xff] (!%p238_p2)  ;;  %vm1121_vm5 = vcmask (!%p238_p2), 60419   ;;  %vm1122_vm6 = vsmask.f32 (!%p238_p2), 7950 }
   0x9   : > { %v1039_v15 = vld [vmem:[%s1605_s6 + $0x10] sm:$0x3f] (!%p238_p2)  ;;  %v1204_v23 = vld [vmem:[%s1602_s3 + $0x4] sm:$0xf] (!%p238_p2)  ;;  %v1212_v25 = vld [vmem:[%s1602_s3 + $0xc] sm:$0xf] (!%p238_p2) }
   0xa   : > { %1349 = vmatprep.subr.msk.bf16.mxu1 (!%p238_p2), %vm322_vm0, %v1204_v23  ;;  %v448_v24 = vsel (!%p238_p2), %vm322_vm0, %v1204_v23, 0  ;;  %1352 = vmatprep.subr.msk.bf16.mxu0 (!%p238_p2), %vm322_vm0, %v1212_v25  ;;  %v636_v26 = vsel (!%p238_p2), %vm322_vm0, %v1212_v25, 0  ;;  %v433_v27 = vld [vmem:[%s1602_s3] sm:$0xf] (!%p238_p2)  ;;  %v1218_v28 = vld [vmem:[%s1602_s3 + $0x14] sm:$0xf] (!%p238_p2)  ;;  %vm1123_vm9 = vmand (!%p238_p2), %vm1121_vm5, %vm1122_vm6 }
   0xb   : > { %1296 = vmatpush3.bf16.msra.mxu1 (!%p238_p2), %v448_v24  ;;  %v1197_v29 = vld [vmem:[%s1601_s2] ss:$0 sm:$0xff] (!%p238_p2)  ;;  %v1215_v25 = vld [vmem:[%s1602_s3 + $0x10] sm:$0xf] (!%p238_p2)  ;;  %vm1129_vm7 = vcmask (!%p238_p2), 59392  }
   0xc   : > { %1350 = vmatprep.subr.msk.bf16.mxu1 (!%p238_p2), %vm322_vm0, %v433_v27  ;;  %vm1130_vm8 = vsmask.f32 (!%p238_p2), 2304  ;;  %vm1085_vm10 = vsmask.f32 (!%p238_p2), 3328  ;;  %vm1086_vm11 = vsmask.f32 (!%p238_p2), 7440 }
   0xd   : > { %s1608_s25 = smov (!%p269_p3, %s1190_s25), 1  ;;  %vm1131_vm12 = vmand %vm1129_vm7, %vm1130_vm8 }
   0xe   : > { %s1358_s28 = smul.u32 20, %s1608_s25  ;;  %vm1087_vm13 = vmor %vm1085_vm10, %vm1086_vm11 }
   0xf   : > { %s1359_s9 = smul.u32 40, %s1608_s25 }
  0x10   : > { %s1445_s8 = scalar_lea.vmem %s1599_s0, %s1358_s28 }
  0x11   : > { %v1374_v3 = vld [vmem:[%s1445_s8] sm:$0xff]   ;;  %v1375_v4 = vld [vmem:[%s1445_s8 + $0x8] sm:$0xff]   ;;  %v1376_v5 = vld [vmem:[%s1445_s8 + $0x10] ss:$0 sps:$4 sm:$0x33]   ;;  %s1453_s13 = scalar_lea.vmem %s1606_s7, %s1359_s9 }
  0x12   : > { %306 = vrot.lane.b32.xlu0 %v1374_v3, %s1387_s10  ;;  %310 = vrot.lane.b32.xlu1 %v1376_v5, %s1387_s10  ;;  %v1062_v6 = vld [vmem:[%s1445_s8 + $0x10] sm:$0x3]  ;;  %1235 = vst.msk [vmem:[%s1453_s13 + $0x24] sm:$0x3] %vm1067_vm2, %v1388_v7 }
  0x13   : > { %1068 = vst.msk [vmem:[%s1453_s13 + $0x10] sm:$0x3] %vm1067_vm2, %v1062_v6  ;;  %v1058_v19 = vld [vmem:[%s1445_s8] sm:$0xf]  ;;  %v1059_v20 = vld [vmem:[%s1445_s8 + $0x4] sm:$0xf] }
  0x14   : > { %v1060_v21 = vld [vmem:[%s1445_s8 + $0x8] sm:$0xf]  ;;  %v1061_v22 = vld [vmem:[%s1445_s8 + $0xc] sm:$0xf]  ;;  %1063 = vst.msk [vmem:[%s1453_s13] sm:$0xf] %vm426_vm4, %v1058_v19 }
  0x15   : > { %1064 = vst.msk [vmem:[%s1453_s13 + $0x4] sm:$0xf] %vm426_vm4, %v1059_v20  ;;  %1065 = vst.msk [vmem:[%s1453_s13 + $0x8] sm:$0xf] %vm426_vm4, %v1060_v21 }
  0x16   : > { %308 = vrot.lane.b32.xlu0 %v1375_v4, %s1387_s10  ;;  %394 = vperm.xlu1 %1372, %v387_v8   ;;  %1066 = vst.msk [vmem:[%s1453_s13 + $0xc] sm:$0xf] %vm426_vm4, %v1061_v22  ;;  %1231 = vst.msk [vmem:[%s1453_s13 + $0x14] sm:$0xf] %vm426_vm4, %v1388_v7 }
  0x17   : > { %1232 = vst.msk [vmem:[%s1453_s13 + $0x18] sm:$0xf] %vm426_vm4, %v1388_v7  ;;  %1233 = vst.msk [vmem:[%s1453_s13 + $0x1c] sm:$0xf] %vm426_vm4, %v1388_v7 }
  0x18   : > { %1234 = vst.msk [vmem:[%s1453_s13 + $0x20] sm:$0xf] %vm426_vm4, %v1388_v7  ;;  %v505_v7 = vsel %vm322_vm0, %v433_v27, 0 }
  0x1a   : > { %399 = vperm.xlu0 %1373, %v388_v9   ;;  %404 = vperm.xlu1 %1372, %v389_v10  }
  0x1e   : > { %414 = vperm.xlu0 %1373, %v391_v11   ;;  %409 = vperm.xlu1 %1372, %v390_v12  }
  0x22   : > { %1047 = vperm.xlu0 %1373, %v1038_v13   ;;  %1042 = vperm.xlu1 %1372, %v1037_v14   ;;  %v1209_v13 = vld [vmem:[%s1602_s3 + $0x8] sm:$0xf]  ;;  %v770_v14 = vsel %vm322_vm0, %v1218_v28, 0 }
  0x23   : > { %v569_v21 = vsel %vm322_vm0, %v1209_v13, 0 }
  0x26   : > { %1052 = vperm.xlu1 %1372, %v1039_v15  }
  0x84   : > { %v307_v16 = vpop.permute.xlu0 %306  ;;  %v311_v18 = vpop.permute.xlu1 %310 }
  0x85   : > { %1284 = vmatmul.mubr.msk.bf16.vlgmr.msra.gmra.mrb[0].mxu0 %vm312_vm3, %v307_v16  ;;  %v1224_v16 = vld [vmem:[%s1602_s3 + $0x1c] sm:$0xf] }
  0x86   : > { %1287 = vmatprep.mubr.msk.bf16.mxu0 %vm1386_vm1, %v1385_v1  ;;  %1314 = vmatpush3.bf16.msra.mxu0 %v636_v26 }
  0x87   : > { %1354 = vmatprep.subr.msk.bf16.mxu0 %vm322_vm0, %v1218_v28  ;;  %v904_v28 = vsel %vm322_vm0, %v1224_v16, 0 }
  0x88   : > { %v309_v17 = vpop.permute.xlu0 %308 }
  0x8d   : > { %1288 = vmatmul.mubr.msk.bf16.gmra.mrb[4].mxu0 %vm312_vm3, %v309_v17 }
  0x8e   : > { %1291 = vmatprep.mubr.msk.bf16.mxu0 %vm1386_vm1, %v1385_v1 }
  0x95   : > { %1292 = vmatmul.mubr.msk.bf16.gmra.mrb[8].mxu0 %vm312_vm3, %v311_v18  ;;  %v395_v33 = vpop.permute.xlu1 %394 }
  0x99   : > { %v400_v40 = vpop.permute.xlu0 %399  ;;  %v405_v42 = vpop.permute.xlu1 %404 }
  0x9d   : > { %v410_v52 = vpop.permute.xlu1 %409  ;;  %v415_v60 = vpop.permute.xlu0 %414 }
 0x158   : > { %v360_v30 = vpop.f32.mrb[0].mxu0 }
 0x159   : > { %v361_v31 = vadd.f32 %v1197_v29, %v360_v30  ;;  %v1285_v32 = vpop.f32.mrb[1].mxu0 }
 0x15a   : > { %v363_v34 = vpop.f32.mrb[2].mxu0 }
 0x15b   : > { %v382_v35 = vmax.f32 %v361_v31, 0.0  ;;  %v364_v36 = vadd.f32 %v1197_v29, %v363_v34  ;;  %v1286_v37 = vpop.f32.mrb[3].mxu0  ;;  %v703_v34 = vsel %vm322_vm0, %v1215_v25, 0 }
 0x15c   : > { %v1221_v37 = vld [vmem:[%s1602_s3 + $0x18] sm:$0xf] }
 0x15d   : > { %v417_v38 = vmul.f32 %v395_v33, %v382_v35  ;;  %v383_v39 = vmax.f32 %v364_v36, 0.0 }
 0x15f   : > { %422 = vst.msk [vmem:[#allocation2] sm:$0xff] %vm312_vm3, %v417_v38  ;;  %v418_v41 = vmul.f32 %v400_v40, %v383_v39 }
 0x160   : > { %v368_v43 = vpop.f32.mrb[4].mxu0 }
 0x161   : > { %423 = vst.msk [vmem:[#allocation2 + $0x8] sm:$0xff] %vm312_vm3, %v418_v41  ;;  %v369_v44 = vadd.f32 %v1197_v29, %v368_v43  ;;  %v1289_v45 = vpop.f32.mrb[5].mxu0 }
 0x162   : > { %v371_v46 = vpop.f32.mrb[6].mxu0  ;;  %v1227_v45 = vld [vmem:[%s1602_s3 + $0x20] sm:$0xf] }
 0x163   : > { %v384_v47 = vmax.f32 %v369_v44, 0.0  ;;  %v372_v48 = vadd.f32 %v1197_v29, %v371_v46  ;;  %v1290_v49 = vpop.f32.mrb[7].mxu0 }
 0x164   : > { %v971_v49 = vsel %vm322_vm0, %v1227_v45, 0 }
 0x165   : > { %v419_v50 = vmul.f32 %v405_v42, %v384_v47  ;;  %v385_v51 = vmax.f32 %v372_v48, 0.0  ;;  %v837_v42 = vsel %vm322_vm0, %v1221_v37, 0 }
 0x166   : > { %v428_v8 = vld [vmem:[#allocation2] sm:$0xff] }
 0x167   : > { %424 = vst.msk [vmem:[#allocation2 + $0x10] sm:$0xff] %vm312_vm3, %v419_v50  ;;  %v420_v53 = vmul.f32 %v410_v52, %v385_v51 }
 0x168   : > { %v376_v54 = vpop.f32.mrb[8].mxu0  ;;  %v434_v62 = vld [vmem:[#allocation2 + $0x1] sm:$0xff] }
 0x169   : > { %425 = vst.msk [vmem:[#allocation2 + $0x18] sm:$0xff] %vm312_vm3, %v420_v53  ;;  %v377_v55 = vadd.f32 %v1197_v29, %v376_v54  ;;  %v1293_v56 = vpop.f32.mrb[9].mxu0  ;;  %v622_v63 = vld [vmem:[#allocation2 + $0x6] sm:$0xff] }
 0x16a   : > { %v379_v57 = vpop.f32.mrb[10].mxu0  ;;  %v429_v0 = vld [vmem:[#allocation2 + $0x8] sm:$0xff] }
 0x16b   : > { %v386_v58 = vmax.f32 %v377_v55, 0.0  ;;  %v1294_v59 = vpop.f32.mrb[11].mxu0  ;;  %v431_v11 = vpack.c.bf16 %v429_v0, %v428_v8  ;;  %v555_v22 = vld [vmem:[#allocation2 + $0x2] sm:$0xff] }
 0x16c   : > { %v689_v35 = vld [vmem:[#allocation2 + $0x7] sm:$0xff] }
 0x16d   : > { %v421_v61 = vmul.f32 %v415_v60, %v386_v58 }
 0x16e   : > { %v435_v1 = vld [vmem:[#allocation2 + $0x9] sm:$0xff]  ;;  %v436_v3 = vld [vmem:[#allocation2 + $0x11] sm:$0x3f] }
 0x16f   : > { %v1532_v2 = vld [vmem:[#allocation2 + $0xe] sm:$0xff]  ;;  %427 = vst.msk [vmem:[#allocation2 + $0x20] sm:$0xf] %vm426_vm4, %v421_v61  ;;  %v437_v4 = vpack.c.bf16 %v435_v1, %v434_v62  ;;  %v438_v6 = vpack.c.bf16 %v436_v3, %v436_v3 }
 0x170   : > { %v625_v5 = vpack.c.bf16 %v1532_v2, %v622_v63  ;;  %v624_v9 = vld [vmem:[#allocation2 + $0x16] sm:$0x3f]  ;;  %v430_v17 = vld [vmem:[#allocation2 + $0x10] sm:$0x3f] }
 0x171   : > { %v757_v10 = vld [vmem:[#allocation2 + $0x10] sm:$0xff]  ;;  %1297 = vmatprep.mubr.msk.bf16.mxu1 %vm312_vm3, %v437_v4  ;;  %v626_v12 = vpack.c.bf16 %v624_v9, %v624_v9  ;;  %v758_v19 = vld [vmem:[#allocation2 + $0x18] sm:$0x3f]  ;;  %v432_v20 = vpack.c.bf16 %v430_v17, %v430_v17 }
 0x172   : > { %1315 = vmatprep.mubr.msk.bf16.mxu0 %vm312_vm3, %v625_v5  ;;  %1298 = vmatmul.mubr.msk.bf16.vlgmr.msra.gmra.mrb[0].mxu1 %vm312_vm3, %v438_v6  ;;  %v759_v15 = vpack.c.bf16 %v757_v10, %v429_v0  ;;  %v556_v18 = vld [vmem:[#allocation2 + $0xa] sm:$0xff]  ;;  %v891_v23 = vld [vmem:[#allocation2 + $0x15] sm:$0xff]  ;;  %v760_v26 = vpack.c.bf16 %v758_v19, %v758_v19 }
 0x173   : > { %1302 = vmatpush3.bf16.msra.mxu1 %v505_v7  ;;  %1303 = vmatprep.mubr.msk.bf16.mxu1 %vm312_vm3, %v431_v11  ;;  %v558_v24 = vpack.c.bf16 %v556_v18, %v555_v22  ;;  %v890_v27 = vld [vmem:[#allocation2 + $0xd] sm:$0xff]  ;;  %v691_v39 = vld [vmem:[#allocation2 + $0x17] sm:$0x3f] }
 0x174   : > { %1316 = vmatmul.mubr.msk.bf16.vlgmr.msra.gmra.mrb[12].mxu0 %vm312_vm3, %v626_v12  ;;  %1351 = vmatprep.subr.msk.bf16.mxu1 %vm322_vm0, %v1209_v13  ;;  %v893_v29 = vpack.c.bf16 %v891_v23, %v890_v27  ;;  %v557_v30 = vld [vmem:[#allocation2 + $0x12] sm:$0x3f]  ;;  %v693_v41 = vpack.c.bf16 %v691_v39, %v691_v39 }
 0x175   : > { %1327 = vmatprep.mubr.msk.bf16.mxu0 %vm312_vm3, %v759_v15  ;;  %1326 = vmatpush3.bf16.msra.mxu0 %v770_v14  ;;  %v690_v31 = vld [vmem:[#allocation2 + $0xf] sm:$0xff]  ;;  %v559_v33 = vpack.c.bf16 %v557_v30, %v557_v30 }
 0x176   : > { %1356 = vmatprep.subr.msk.bf16.mxu0 %vm322_vm0, %v1224_v16  ;;  %v892_v32 = vld [vmem:[#allocation2 + $0x1d] sm:$0x3f]  ;;  %v692_v36 = vpack.c.bf16 %v690_v31, %v689_v35  ;;  %v824_v40 = vld [vmem:[#allocation2 + $0x14] sm:$0xff]  ;;  %v823_v43 = vld [vmem:[#allocation2 + $0xc] sm:$0xff] }
 0x177   : > { %v894_v38 = vpack.c.bf16 %v892_v32, %v892_v32  ;;  %v826_v44 = vpack.c.bf16 %v824_v40, %v823_v43  ;;  %v825_v46 = vld [vmem:[#allocation2 + $0x1c] sm:$0x3f] }
 0x178   : > { %v958_v47 = vld [vmem:[#allocation2 + $0x16] sm:$0xff]  ;;  %v827_v48 = vpack.c.bf16 %v825_v46, %v825_v46  ;;  %v959_v51 = vld [vmem:[#allocation2 + $0x1e] sm:$0x3f] }
 0x179   : > { %v960_v50 = vpack.c.bf16 %v958_v47, %v1532_v2  ;;  %v961_v52 = vpack.c.bf16 %v959_v51, %v959_v51 }
 0x17a   : > { %1304 = vmatmul.mubr.msk.bf16.vlgmr.msra.gmra.mrb[4].mxu1 %vm312_vm3, %v432_v20 }
 0x17b   : > { %1308 = vmatpush3.bf16.msra.mxu1 %v569_v21  ;;  %1309 = vmatprep.mubr.msk.bf16.mxu1 %vm312_vm3, %v558_v24 }
 0x17c   : > { %1328 = vmatmul.mubr.msk.bf16.vlgmr.msra.gmra.mrb[16].mxu0 %vm312_vm3, %v760_v26  ;;  %1353 = vmatprep.subr.msk.bf16.mxu1 %vm322_vm0, %v1215_v25 }
 0x17d   : > { %1339 = vmatprep.mubr.msk.bf16.mxu0 %vm312_vm3, %v893_v29  ;;  %1338 = vmatpush3.bf16.msra.mxu0 %v904_v28 }
 0x182   : > { %1310 = vmatmul.mubr.msk.bf16.vlgmr.msra.gmra.mrb[8].mxu1 %vm312_vm3, %v559_v33 }
 0x183   : > { %1320 = vmatpush3.bf16.msra.mxu1 %v703_v34  ;;  %1321 = vmatprep.mubr.msk.bf16.mxu1 %vm312_vm3, %v692_v36 }
 0x184   : > { %1340 = vmatmul.mubr.msk.bf16.vlgmr.msra.gmra.mrb[20].mxu0 %vm312_vm3, %v894_v38  ;;  %1355 = vmatprep.subr.msk.bf16.mxu1 %vm322_vm0, %v1221_v37 }
 0x18a   : > { %1322 = vmatmul.mubr.msk.bf16.vlgmr.msra.gmra.mrb[12].mxu1 %vm312_vm3, %v693_v41 }
 0x18b   : > { %1332 = vmatpush3.bf16.msra.mxu1 %v837_v42  ;;  %1333 = vmatprep.mubr.msk.bf16.mxu1 %vm312_vm3, %v826_v44  ;;  %v1043_v42 = vpop.permute.xlu1 %1042  ;;  %v1230_v44 = vld [vmem:[%s1603_s4] ss:$0 sm:$0xff] }
 0x18c   : > { %1357 = vmatprep.subr.msk.bf16.mxu1 %vm322_vm0, %v1227_v45 }
 0x192   : > { %1334 = vmatmul.mubr.msk.bf16.vlgmr.msra.gmra.mrb[16].mxu1 %vm312_vm3, %v827_v48 }
 0x193   : > { %1344 = vmatpush3.bf16.msra.mxu1 %v971_v49  ;;  %1345 = vmatprep.mubr.msk.bf16.mxu1 %vm312_vm3, %v960_v50 }
 0x19a   : > { %1346 = vmatmul.mubr.msk.bf16.vlgmr.msra.gmra.mrb[20].mxu1 %vm312_vm3, %v961_v52 }
 0x245   : > { %v1299_v53 = vpop.f32.mrb[0].mxu1 }
 0x246   : > { %v484_v54 = vpop.f32.mrb[1].mxu1 }
 0x247   : > { %v1317_v55 = vpop.f32.mrb[12].mxu0  ;;  %v1300_v56 = vpop.f32.mrb[2].mxu1 }
 0x248   : > { %v672_v57 = vpop.f32.mrb[13].mxu0  ;;  %v487_v58 = vpop.f32.mrb[3].mxu1 }
 0x249   : > { %v1318_v59 = vpop.f32.mrb[14].mxu0 }
 0x24a   : > { %v675_v60 = vpop.f32.mrb[15].mxu0 }
 0x24d   : > { %v1305_v61 = vpop.f32.mrb[4].mxu1 }
 0x24e   : > { %v550_v62 = vadd.f32 %v1305_v61, %v1299_v53  ;;  %v541_v63 = vpop.f32.mrb[5].mxu1 }
 0x24f   : > { %v542_v0 = vadd.f32 %v541_v63, %v484_v54  ;;  %v1329_v1 = vpop.f32.mrb[16].mxu0  ;;  %v1306_v2 = vpop.f32.mrb[6].mxu1 }
 0x250   : > { %v806_v3 = vpop.f32.mrb[17].mxu0  ;;  %v544_v4 = vpop.f32.mrb[7].mxu1 }
 0x251   : > { %v545_v5 = vadd.f32 %v544_v4, %v487_v58  ;;  %v1330_v6 = vpop.f32.mrb[18].mxu0  ;;  %v1053_v54 = vpop.permute.xlu1 %1052  ;;  %v1239_v4 = vld [vmem:[%s1453_s13 + $0x14] sm:$0x8] }
 0x252   : > { %v809_v7 = vpop.f32.mrb[19].mxu0 }
 0x255   : > { %v1311_v8 = vpop.f32.mrb[8].mxu1 }
 0x256   : > { %v621_v9 = vadd.f32 %v1311_v8, %v550_v62  ;;  %v605_v10 = vpop.f32.mrb[9].mxu1 }
 0x257   : > { %v619_v11 = vadd.f32 %v605_v10, %v542_v0  ;;  %v1341_v12 = vpop.f32.mrb[20].mxu0  ;;  %v1312_v13 = vpop.f32.mrb[10].mxu1 }
 0x258   : > { %v940_v14 = vpop.f32.mrb[21].mxu0  ;;  %v608_v15 = vpop.f32.mrb[11].mxu1  ;;  %v688_v16 = vadd.f32 %v1317_v55, %v621_v9  ;;  %v1243_v13 = vld [vmem:[%s1453_s13 + $0x20] sm:$0x7] }
 0x259   : > { %v620_v17 = vadd.f32 %v608_v15, %v545_v5  ;;  %v1342_v18 = vpop.f32.mrb[22].mxu0  ;;  %v686_v19 = vadd.f32 %v672_v57, %v619_v11 }
 0x25a   : > { %v943_v20 = vpop.f32.mrb[23].mxu0 }
 0x25b   : > { %v687_v21 = vadd.f32 %v675_v60, %v620_v17  ;;  %v1048_v60 = vpop.permute.xlu0 %1047 }
 0x25d   : > { %v1323_v22 = vpop.f32.mrb[12].mxu1 }
 0x25e   : > { %v755_v23 = vadd.f32 %v1323_v22, %v688_v16  ;;  %v739_v24 = vpop.f32.mrb[13].mxu1 }
 0x25f   : > { %v753_v25 = vadd.f32 %v739_v24, %v686_v19  ;;  %v1324_v26 = vpop.f32.mrb[14].mxu1 }
 0x260   : > { %v742_v27 = vpop.f32.mrb[15].mxu1  ;;  %v822_v28 = vadd.f32 %v1329_v1, %v755_v23 }
 0x261   : > { %v754_v29 = vadd.f32 %v742_v27, %v687_v21  ;;  %v820_v30 = vadd.f32 %v806_v3, %v753_v25 }
 0x263   : > { %v821_v31 = vadd.f32 %v809_v7, %v754_v29 }
 0x265   : > { %v1335_v32 = vpop.f32.mrb[16].mxu1 }
 0x266   : > { %v889_v33 = vadd.f32 %v1335_v32, %v822_v28  ;;  %v873_v34 = vpop.f32.mrb[17].mxu1 }
 0x267   : > { %v887_v35 = vadd.f32 %v873_v34, %v820_v30  ;;  %v1336_v36 = vpop.f32.mrb[18].mxu1 }
 0x268   : > { %v876_v37 = vpop.f32.mrb[19].mxu1  ;;  %v956_v38 = vadd.f32 %v1341_v12, %v889_v33 }
 0x269   : > { %v888_v39 = vadd.f32 %v876_v37, %v821_v31  ;;  %v954_v40 = vadd.f32 %v940_v14, %v887_v35 }
 0x26b   : > { %v955_v41 = vadd.f32 %v943_v20, %v888_v39 }
 0x26d   : > { %v1347_v43 = vpop.f32.mrb[20].mxu1 }
 0x26e   : > { %v1023_v45 = vadd.f32 %v1347_v43, %v956_v38  ;;  %v1007_v46 = vpop.f32.mrb[21].mxu1 }
 0x26f   : > { %v1021_v47 = vadd.f32 %v1007_v46, %v954_v40  ;;  %v1348_v48 = vpop.f32.mrb[22].mxu1 }
 0x270   : > { %v1033_v49 = vadd.f32 %v1230_v44, %v1023_v45  ;;  %v1010_v50 = vpop.f32.mrb[23].mxu1 }
 0x271   : > { %v1031_v51 = vadd.f32 %v1230_v44, %v1021_v47  ;;  %v1022_v52 = vadd.f32 %v1010_v50, %v955_v41 }
 0x272   : > { %v1036_v53 = vmax.f32 %v1033_v49, 0.0 }
 0x273   : > { %v1034_v55 = vmax.f32 %v1031_v51, 0.0  ;;  %v1032_v56 = vadd.f32 %v1230_v44, %v1022_v52 }
 0x274   : > { %v1057_v57 = vmul.f32 %v1053_v54, %v1036_v53 }
 0x275   : > { %v1055_v58 = vmul.f32 %v1043_v42, %v1034_v55  ;;  %v1035_v59 = vmax.f32 %v1032_v56, 0.0 }
 0x276   : > { %v1249_v61 = vpack.c.bf16 %v1057_v57, %v1057_v57 }
 0x277   : > { %v1247_v62 = vpack.c.bf16 %v1055_v58, %v1055_v58  ;;  %v1056_v63 = vmul.f32 %v1048_v60, %v1035_v59 }
 0x278   : > { %v1108_v0 = vshll.u32 %v1249_v61, 16  ;;  %v1112_v1 = vshrl.u32 %v1249_v61, 16 }
 0x279   : > { %v1089_v2 = vshll.u32 %v1247_v62, 16  ;;  %v1092_v3 = vshrl.u32 %v1247_v62, 16  ;;  %v1248_v5 = vpack.c.bf16 %v1056_v63, %v1056_v63 }
 0x27a   : > { %v1110_v6 = vrot.slane %v1108_v0, 5  ;;  %v1114_v7 = vrot.slane %v1112_v1, 4 }
 0x27b   : > { %v1091_v8 = vrot.slane %v1089_v2, 5  ;;  %v1094_v9 = vrot.slane %v1092_v3, 4  ;;  %v1098_v10 = vshll.u32 %v1248_v5, 16  ;;  %v1102_v11 = vshrl.u32 %v1248_v5, 16 }
 0x27c   : > { %v1115_v12 = vor.u32 %v1114_v7, %v1110_v6 }
 0x27d   : > { %v1095_v14 = vor.u32 %v1094_v9, %v1091_v8  ;;  %v1125_v15 = vsel %vm1123_vm9, %v1091_v8, %v1239_v4  ;;  %v1100_v16 = vrot.slane %v1098_v10, 5  ;;  %v1104_v17 = vrot.slane %v1102_v11, 4 }
 0x27e   : > { %v1116_v18 = vrot.slane %v1115_v12, 4  ;;  %1240 = vst [vmem:[%s1453_s13 + $0x14] sm:$0x8] %v1125_v15 }
 0x27f   : > { %v1096_v19 = vrot.slane %v1095_v14, 4  ;;  %v1105_v20 = vor.u32 %v1104_v17, %v1100_v16 }
 0x280   : > { %v1133_v21 = vsel %vm1131_vm12, %v1116_v18, %v1243_v13 }
 0x281   : > { %1244 = vst [vmem:[%s1453_s13 + $0x20] sm:$0x7] %v1133_v21  ;;  %v1101_v22 = vsel %vm1087_vm13, %v1096_v19, %v1100_v16  ;;  %v1106_v23 = vrot.slane %v1105_v20, 4 }
 0x282   : > { %1241 = vst.msk [vmem:[%s1453_s13 + $0x18] sm:$0xf] %vm426_vm4, %v1101_v22 }
 0x283   : > { %v1111_v24 = vsel %vm1087_vm13, %v1106_v23, %v1110_v6 }
 0x284   : > { %1242 = vst.msk [vmem:[%s1453_s13 + $0x1c] sm:$0xf] %vm426_vm4, %v1111_v24 }
 0x285 PF: > { %s17_s24 = sadd.s32 1, %s1383_s24  }
 0x286   : > { %p14_p4 = scmp.ge.s32.totalorder %s17_s24, 4  }
 0x288   :  { %16 = sbr.rel (!%p14_p4) target bundleno = 1 (0x1), region = 87 }

// kernel: shufflenet_v2_forward.9
= control target key start
LH: loop header
LB: loop body
LE: loop exit
PB: predicated region body
PF: predicated region fallthrough
CT: control target
= control target key end

     0   :  { %s2907_s30 = smov 0   ;;  %s3370_s0 = inlined_call_operand.vmem [shape: bf16[2,2,2,36,8], index: 0, kind: input, shape index: {}]   ;;  %s3371_s1 = inlined_call_operand.vmem [shape: bf16[9,8,8], index: 1, kind: input, shape index: {}]   ;;  %s3372_s2 = inlined_call_operand.vmem [shape: f32[1,8], index: 2, kind: input, shape index: {}]   ;;  %s3373_s3 = inlined_call_operand.vmem [shape: bf16[8,8], index: 3, kind: input, shape index: {}]   ;;  %s3374_s4 = inlined_call_operand.vmem [shape: f32[1,8], index: 4, kind: input, shape index: {}]   ;;  %s3375_s5 = inlined_call_operand.vmem [shape: bf16[9,8,8], index: 5, kind: input, shape index: {}]   ;;  %s3376_s6 = inlined_call_operand.vmem [shape: f32[1,8], index: 6, kind: input, shape index: {}]   ;;  %s3377_s7 = inlined_call_operand.vmem [shape: f32[2,2,36,1], index: 7, kind: input, shape index: {}]   ;;  %s3378_s8 = inlined_call_operand.vmem [shape: f32[22,1], index: 8, kind: input, shape index: {}]   ;;  %s3379_s9 = inlined_call_operand.vmem [shape: bf16[2,2,36,8], index: 9, kind: output, shape index: {}]  }
   0x1 LB: > { %s2382_s10 = sadd.s32 4294967295, %s2852_s30   ;;  %p2386_p0 = scmp.ge.s32.totalorder %s2852_s30, 1  ;;  %s2852_s30 = sphi %s2907_s30, %s19_s30  }
   0x2   : > { %p287_p1 = scmp.lt.s32.totalorder %s2852_s30, 3 }
   0x4   : > { %p288_p2 = pnand %p2386_p0, %p287_p1 }
   0x5   : > { %v334_v0 = vld [vmem:[%s3373_s3] sm:$0xf] (!%p288_p2)  ;;  %vm370_vm0 = vcmask (!%p288_p2), 1043456   ;;  %p323_p3 = scmp.lt.s32.totalorder (!%p288_p2), %s2382_s10, 1  ;;  %v2854_v1 = vmov (!%p288_p2), 0.0   ;;  %vm2855_vm1 = vmmov (!%p288_p2), 0  }
   0x6   : > { %291 = sbr.rel (%p288_p2) target bundleno = 553 (0x229), region = 56  ;;  %2622 = vmatprep.subr.bf16.mxu0 (!%p288_p2), %v2854_v1  ;;  %v372_v2 = vsel (!%p288_p2), %vm370_vm0, %v334_v0, 0  ;;  %2636 = vmatprep.subr.bf16.mxu1 (!%p288_p2), %v2854_v1  ;;  %v435_v3 = vld [vmem:[%s3377_s7] sm:$0xff] (!%p288_p2)  ;;  %v2407_v4 = vld [vmem:[%s3377_s7 + $0x28] sm:$0xff] (!%p288_p2)  ;;  %vm2208_vm2 = vcmask (!%p288_p2), 58368   ;;  %v2856_v5 = vmov (!%p288_p2), 0  }
   0x7   : > { %2623 = vmatpush3.bf16.msra.mxu0 (!%p288_p2), %v372_v2  ;;  %2637 = vmatpush3.bf16.msra.mxu1 (!%p288_p2), %v372_v2  ;;  %vm360_vm3 = vcmask (!%p288_p2), 64512   ;;  %v436_v8 = vld [vmem:[%s3377_s7 + $0x8] sm:$0xff] (!%p288_p2)  ;;  %v2408_v9 = vld [vmem:[%s3377_s7 + $0x30] sm:$0xff] (!%p288_p2)  ;;  %v2409_v13 = vld [vmem:[%s3377_s7 + $0x38] sm:$0xff] (!%p288_p2)  ;;  %vm474_vm4 = vcmask (!%p288_p2), 60416   ;;  %vm1726_vm6 = vcmask (!%p288_p2), 1044480  }
   0x8   : > { %2624 = vmatprep.mubr.msk.bf16.mxu0 (!%p288_p2), %vm2855_vm1, %v2854_v1  ;;  %2638 = vmatprep.mubr.msk.bf16.mxu1 (!%p288_p2), %vm2855_vm1, %v2854_v1  ;;  %v437_v10 = vld [vmem:[%s3377_s7 + $0x10] sm:$0xff] (!%p288_p2)  ;;  %v2424_v15 = vld [vmem:[%s3377_s7 + $0x58] sm:$0xff] (!%p288_p2)  ;;  %v2425_v17 = vld [vmem:[%s3377_s7 + $0x60] sm:$0xff] (!%p288_p2)  ;;  %vm1141_vm5 = vsmask.f32 (!%p288_p2), 7424  ;;  %vm2262_vm8 = vcmask (!%p288_p2), 60419  }
   0x9   : > { %2650 = vmatprep.subr.bf16.mxu0 (!%p288_p2), %v2854_v1  ;;  %2664 = vmatprep.subr.bf16.mxu1 (!%p288_p2), %v2854_v1  ;;  %v2423_v14 = vld [vmem:[%s3377_s7 + $0x50] sm:$0xff] (!%p288_p2)  ;;  %v2439_v19 = vld [vmem:[%s3377_s7 + $0x78] sm:$0xff] (!%p288_p2)  ;;  %v2440_v20 = vld [vmem:[%s3377_s7 + $0x80] sm:$0xff] (!%p288_p2)  ;;  %vm2009_vm7 = vsmask.f32 (!%p288_p2), 4352  ;;  %vm2270_vm10 = vcmask (!%p288_p2), 59392  }
   0xa   : > { %2817 = vset.pattern.permute.xlu0 (!%p288_p2), %v2856_v5  ;;  %2818 = vset.pattern.permute.xlu1 (!%p288_p2), %v2856_v5  ;;  %v2441_v21 = vld [vmem:[%s3377_s7 + $0x88] sm:$0xff] (!%p288_p2)  ;;  %v438_v23 = vld [vmem:[%s3377_s7 + $0x18] sm:$0xff] (!%p288_p2)  ;;  %v2410_v25 = vld [vmem:[%s3377_s7 + $0x40] sm:$0xff] (!%p288_p2)  ;;  %vm2263_vm9 = vsmask.f32 (!%p288_p2), 7950 }
   0xb   : > { %442 = vperm.xlu0 (!%p288_p2), %2817, %v435_v3   ;;  %573 = vperm.xlu1 (!%p288_p2), %2818, %v2407_v4   ;;  %v2167_v26 = vld [vmem:[%s3378_s8] sm:$0xff] (!%p288_p2)  ;;  %v2168_v27 = vld [vmem:[%s3378_s8 + $0x8] sm:$0xff] (!%p288_p2)  ;;  %v2169_v29 = vld [vmem:[%s3378_s8 + $0x10] sm:$0x3f] (!%p288_p2)  ;;  %vm2271_vm11 = vsmask.f32 (!%p288_p2), 2304 }
   0xc   : > { %v439_v31 = vld [vmem:[%s3377_s7 + $0x20] sm:$0xf] (!%p288_p2)  ;;  %v2411_v32 = vld [vmem:[%s3377_s7 + $0x48] sm:$0xf] (!%p288_p2)  ;;  %v2427_v35 = vld [vmem:[%s3377_s7 + $0x70] sm:$0xf] (!%p288_p2) }
   0xd   : > { %s3387_s10 = smov (!%p323_p3, %s2382_s10), 1  ;;  %v2426_v33 = vld [vmem:[%s3377_s7 + $0x68] sm:$0xff]  ;;  %v2442_v37 = vld [vmem:[%s3377_s7 + $0x90] sm:$0xff]  ;;  %v2443_v38 = vld [vmem:[%s3377_s7 + $0x98] sm:$0xf] }
   0xe   : > { %s2804_s17 = smul.u32 80, %s3387_s10  ;;  %v2447_v39 = vld [vmem:[%s3371_s1 + $0x4] sm:$0xf]  ;;  %v872_v40 = vld [vmem:[%s3371_s1] sm:$0xf]  ;;  %vm3316_vm14 = vmand %vm2262_vm8, %vm2263_vm9 }
   0xf   : > { %s2805_s18 = smul.u32 40, %s3387_s10  ;;  %447 = vperm.xlu0 %2817, %v436_v8   ;;  %578 = vperm.xlu1 %2818, %v2408_v9   ;;  %v899_v41 = vsel %vm370_vm0, %v2447_v39, 0  ;;  %v964_v42 = vsel %vm370_vm0, %v872_v40, 0  ;;  %v2456_v47 = vld [vmem:[%s3375_s5 + $0x4] sm:$0xf]  ;;  %vm3325_vm15 = vmand %vm2270_vm10, %vm2271_vm11 }
  0x10   : > { %s2938_s21 = scalar_lea.vmem %s3370_s0, %s2804_s17  ;;  %v878_v48 = vld [vmem:[%s3375_s5] sm:$0xf]  ;;  %v1028_v49 = vsel %vm370_vm0, %v2456_v47, 0  ;;  %v3114_v51 = vld [vmem:[%s3371_s1 + $0x8] sm:$0xf] }
  0x11   : > { %v2819_v6 = vld [vmem:[%s2938_s21] sm:$0xff]   ;;  %s2944_s24 = scalar_lea.vmem %s3379_s9, %s2805_s18  ;;  %v2820_v7 = vld [vmem:[%s2938_s21 + $0x14] sm:$0xff]   ;;  %v2821_v11 = vld [vmem:[%s2938_s21 + $0x8] sm:$0xff]   ;;  %v1085_v50 = vsel %vm370_vm0, %v878_v48, 0  ;;  %vm2226_vm12 = vsmask.f32 3328 }
  0x12   : > { %2209 = vst.msk [vmem:[%s2944_s24 + $0x10] sm:$0x3] %vm2208_vm2, %v2856_v5  ;;  %2531 = vst.msk [vmem:[%s2944_s24 + $0x24] sm:$0x3] %vm2208_vm2, %v2856_v5  ;;  %2625 = vmatmul.mubr.msk.bf16.vlgmr.msra.gmra.mrb[0].mxu0 %vm360_vm3, %v2819_v6  ;;  %2639 = vmatmul.mubr.msk.bf16.vlgmr.msra.gmra.mrb[0].mxu1 %vm360_vm3, %v2820_v7  ;;  %v2822_v12 = vld [vmem:[%s2938_s21 + $0x1c] sm:$0xff]   ;;  %v2825_v22 = vld [vmem:[%s2938_s21 + $0x28] sm:$0xff]  }
  0x13   : > { %2651 = vmatpush3.bf16.msra.mxu0 %v372_v2  ;;  %2628 = vmatprep.mubr.msk.bf16.mxu0 %vm2855_vm1, %v2854_v1  ;;  %v2823_v16 = vld [vmem:[%s2938_s21 + $0x10] ss:$0 sps:$4 sm:$0x33]   ;;  %v2824_v18 = vld [vmem:[%s2938_s21 + $0x24] ss:$0 sps:$4 sm:$0x33]  }
  0x14   : > { %2642 = vmatprep.mubr.msk.bf16.mxu1 %vm2855_vm1, %v2854_v1  ;;  %2665 = vmatpush3.bf16.msra.mxu1 %v372_v2  ;;  %v2826_v24 = vld [vmem:[%s2938_s21 + $0x3c] sm:$0xff]   ;;  %v2827_v28 = vld [vmem:[%s2938_s21 + $0x30] sm:$0xff]   ;;  %v2828_v30 = vld [vmem:[%s2938_s21 + $0x44] sm:$0xff]   ;;  %2204 = vst.msk [vmem:[%s2944_s24] sm:$0xf] %vm474_vm4, %v2856_v5 }
  0x15   : > { %452 = vperm.xlu0 %2817, %v437_v10   ;;  %583 = vperm.xlu1 %2818, %v2409_v13   ;;  %v2829_v34 = vld [vmem:[%s2938_s21 + $0x38] ss:$0 sps:$4 sm:$0x33]   ;;  %v2830_v36 = vld [vmem:[%s2938_s21 + $0x4c] ss:$0 sps:$4 sm:$0x33]  }
  0x16   : > { %2786 = vmatprep.subr.msk.bf16.mxu0 %vm370_vm0, %v2447_v39  ;;  %2787 = vmatprep.subr.msk.bf16.mxu1 %vm370_vm0, %v872_v40  ;;  %v2831_v43 = vld [vmem:[%s2938_s21 + $0x14] sm:$0xff]   ;;  %v3068_v44 = vld [vmem:[%s2938_s21] sm:$0xff]   ;;  %v2833_v45 = vld [vmem:[%s2938_s21 + $0x1c] ss:$0 sps:$4 sm:$0x77]  }
  0x17   : > { %v2834_v46 = vld [vmem:[%s2938_s21 + $0x8] ss:$0 sps:$4 sm:$0x77]   ;;  %2205 = vst.msk [vmem:[%s2944_s24 + $0x4] sm:$0xf] %vm474_vm4, %v2856_v5 }
  0x18   : > { %2206 = vst.msk [vmem:[%s2944_s24 + $0x8] sm:$0xf] %vm474_vm4, %v2856_v5  ;;  %2207 = vst.msk [vmem:[%s2944_s24 + $0xc] sm:$0xf] %vm474_vm4, %v2856_v5  ;;  %v3119_v52 = vld [vmem:[%s3375_s5 + $0x8] sm:$0xf] }
  0x19   : > { %704 = vperm.xlu0 %2817, %v2423_v14   ;;  %709 = vperm.xlu1 %2818, %v2424_v15   ;;  %2527 = vst.msk [vmem:[%s2944_s24 + $0x14] sm:$0xf] %vm474_vm4, %v2856_v5  ;;  %2528 = vst.msk [vmem:[%s2944_s24 + $0x18] sm:$0xf] %vm474_vm4, %v2856_v5  ;;  %v3138_v0 = vld [vmem:[%s3374_s4] ss:$0 sm:$0xff] }
  0x1a   : > { %2629 = vmatmul.mubr.msk.bf16.gmra.mrb[4].mxu0 %vm360_vm3, %v2821_v11  ;;  %2643 = vmatmul.mubr.msk.bf16.gmra.mrb[4].mxu1 %vm360_vm3, %v2822_v12  ;;  %2529 = vst.msk [vmem:[%s2944_s24 + $0x1c] sm:$0xf] %vm474_vm4, %v2856_v5  ;;  %2530 = vst.msk [vmem:[%s2944_s24 + $0x20] sm:$0xf] %vm474_vm4, %v2856_v5  ;;  %vm2227_vm13 = vsmask.f32 7440 }
  0x1b   : > { %2632 = vmatprep.mubr.msk.bf16.mxu0 %vm2855_vm1, %v2854_v1  ;;  %2646 = vmatprep.mubr.msk.bf16.mxu1 %vm2855_vm1, %v2854_v1 }
  0x1d   : > { %714 = vperm.xlu0 %2817, %v2425_v17   ;;  %835 = vperm.xlu1 %2818, %v2439_v19  }
  0x21   : > { %840 = vperm.xlu0 %2817, %v2440_v20   ;;  %845 = vperm.xlu1 %2818, %v2441_v21  }
  0x22   : > { %2633 = vmatmul.mubr.msk.bf16.gmra.mrb[8].mxu0 %vm360_vm3, %v2823_v16  ;;  %2647 = vmatmul.mubr.msk.bf16.gmra.mrb[8].mxu1 %vm360_vm3, %v2824_v18 }
  0x23   : > { %2652 = vmatprep.mubr.msk.bf16.mxu0 %vm2855_vm1, %v2854_v1  ;;  %2666 = vmatprep.mubr.msk.bf16.mxu1 %vm2855_vm1, %v2854_v1 }
  0x25   : > { %457 = vperm.xlu0 %2817, %v438_v23   ;;  %588 = vperm.xlu1 %2818, %v2410_v25  }
  0x29   : > { %2172 = vperm.xlu0 %2817, %v2167_v26   ;;  %2177 = vperm.xlu1 %2818, %v2168_v27  }
  0x2a   : > { %2653 = vmatmul.mubr.msk.bf16.vlgmr.msra.gmra.mrb[12].mxu0 %vm360_vm3, %v2825_v22  ;;  %2667 = vmatmul.mubr.msk.bf16.vlgmr.msra.gmra.mrb[12].mxu1 %vm360_vm3, %v2826_v24 }
  0x2b   : > { %2656 = vmatprep.mubr.msk.bf16.mxu0 %vm2855_vm1, %v2854_v1  ;;  %2670 = vmatprep.mubr.msk.bf16.mxu1 %vm2855_vm1, %v2854_v1 }
  0x2c   : > { %2679 = vmatpush3.bf16.msra.mxu0 %v899_v41  ;;  %2685 = vmatpush3.bf16.msra.mxu1 %v964_v42  ;;  %v3157_v41 = vld [vmem:[%s2938_s21 + $0x8] ss:$0 sps:$4 sm:$0xff]   ;;  %v1144_v42 = vshll.u32 %v3068_v44, 16 }
  0x2d   : > { %2182 = vperm.xlu0 %2817, %v2169_v29   ;;  %462 = vperm.xlu1 %2818, %v439_v31  }
  0x2e   : > { %2788 = vmatprep.subr.msk.bf16.mxu0 %vm370_vm0, %v2456_v47  ;;  %2789 = vmatprep.subr.msk.bf16.mxu1 %vm370_vm0, %v878_v48 }
  0x31   : > { %593 = vperm.xlu0 %2817, %v2411_v32   ;;  %719 = vperm.xlu1 %2818, %v2426_v33  }
  0x32   : > { %2657 = vmatmul.mubr.msk.bf16.gmra.mrb[16].mxu0 %vm360_vm3, %v2827_v28  ;;  %2671 = vmatmul.mubr.msk.bf16.gmra.mrb[16].mxu1 %vm360_vm3, %v2828_v30 }
  0x33   : > { %2660 = vmatprep.mubr.msk.bf16.mxu0 %vm2855_vm1, %v2854_v1  ;;  %2674 = vmatprep.mubr.msk.bf16.mxu1 %vm2855_vm1, %v2854_v1 }
  0x35   : > { %724 = vperm.xlu0 %2817, %v2427_v35   ;;  %850 = vperm.xlu1 %2818, %v2442_v37  }
  0x39   : > { %855 = vperm.xlu0 %2817, %v2443_v38  }
  0x3a   : > { %2661 = vmatmul.mubr.msk.bf16.gmra.mrb[20].mxu0 %vm360_vm3, %v2829_v34  ;;  %2675 = vmatmul.mubr.msk.bf16.gmra.mrb[20].mxu1 %vm360_vm3, %v2830_v36 }
  0x3b   : > { %2680 = vmatprep.mubr.msk.bf16.mxu0 %vm360_vm3, %v2831_v43  ;;  %2686 = vmatprep.mubr.msk.bf16.mxu1 %vm360_vm3, %v3068_v44 }
  0x42   : > { %2681 = vmatmul.mubr.msk.bf16.vlgmr.msra.gmra.mrb[24].mxu0 %vm360_vm3, %v2833_v45  ;;  %2687 = vmatmul.mubr.msk.bf16.vlgmr.msra.gmra.mrb[24].mxu1 %vm360_vm3, %v2834_v46 }
  0x43   : > { %2691 = vmatpush3.bf16.msra.mxu0 %v1028_v49  ;;  %2697 = vmatpush3.bf16.msra.mxu1 %v1085_v50 }
  0x44   : > { %2790 = vmatprep.subr.msk.bf16.mxu0 %vm370_vm0, %v3114_v51  ;;  %2791 = vmatprep.subr.msk.bf16.mxu1 %vm370_vm0, %v3119_v52 }
  0x8a   : > { %v443_v53 = vpop.permute.xlu0 %442  ;;  %v574_v54 = vpop.permute.xlu1 %573 }
  0x8e   : > { %v448_v55 = vpop.permute.xlu0 %447  ;;  %v579_v56 = vpop.permute.xlu1 %578 }
  0x94   : > { %v453_v57 = vpop.permute.xlu0 %452  ;;  %v584_v58 = vpop.permute.xlu1 %583 }
  0x98   : > { %v3125_v59 = vpop.permute.xlu0 %704  ;;  %v3127_v60 = vpop.permute.xlu1 %709 }
  0x9c   : > { %v3129_v61 = vpop.permute.xlu0 %714  ;;  %v3131_v62 = vpop.permute.xlu1 %835 }
  0xa0   : > { %v3133_v63 = vpop.permute.xlu0 %840  ;;  %v3140_v1 = vpop.permute.xlu1 %845 }
  0xa4   : > { %v458_v2 = vpop.permute.xlu0 %457  ;;  %v589_v21 = vpop.permute.xlu1 %588 }
  0xa8   : > { %v3147_v23 = vpop.permute.xlu0 %2172  ;;  %v3160_v43 = vpop.permute.xlu1 %2177 }
  0xac   : > { %v3162_v47 = vpop.permute.xlu0 %2182 }
  0xe5   : > { %v408_v3 = vpop.f32.mrb[0].mxu0  ;;  %v538_v6 = vpop.f32.mrb[0].mxu1 }
  0xe6   : > { %v409_v4 = vadd.f32 %v3138_v0, %v408_v3  ;;  %v2626_v5 = vpop.f32.mrb[1].mxu0  ;;  %v539_v8 = vadd.f32 %v3138_v0, %v538_v6  ;;  %v2640_v9 = vpop.f32.mrb[1].mxu1  ;;  %v1149_v6 = vshll.u32 %v3157_v41, 16 }
  0xe7   : > { %v411_v7 = vpop.f32.mrb[2].mxu0  ;;  %v541_v13 = vpop.f32.mrb[2].mxu1  ;;  %v1146_v5 = vrot.slane %v1144_v42, 1 }
  0xe8   : > { %v430_v10 = vmax.f32 %v409_v4, 0.0  ;;  %v412_v11 = vadd.f32 %v3138_v0, %v411_v7  ;;  %v2627_v12 = vpop.f32.mrb[3].mxu0  ;;  %v560_v14 = vmax.f32 %v539_v8, 0.0  ;;  %v542_v15 = vadd.f32 %v3138_v0, %v541_v13  ;;  %v2641_v16 = vpop.f32.mrb[3].mxu1 }
  0xe9   : > { %v594_v12 = vpop.permute.xlu0 %593 }
  0xea   : > { %v465_v17 = vmul.f32 %v443_v53, %v430_v10  ;;  %v431_v18 = vmax.f32 %v412_v11, 0.0  ;;  %v596_v19 = vmul.f32 %v574_v54, %v560_v14  ;;  %v561_v20 = vmax.f32 %v542_v15, 0.0  ;;  %v463_v11 = vpop.permute.xlu1 %462 }
  0xeb   : > { %v1151_v14 = vrot.slane %v1149_v6, 1 }
  0xec   : > { %470 = vst.msk [vmem:[#allocation2] sm:$0xff] %vm360_vm3, %v465_v17  ;;  %v466_v22 = vmul.f32 %v448_v55, %v431_v18  ;;  %602 = vst.msk [vmem:[#allocation2 + $0x28] sm:$0xff] %vm360_vm3, %v596_v19  ;;  %v597_v24 = vmul.f32 %v579_v56, %v561_v20  ;;  %v1142_v56 = vshrl.u32 %v3068_v44, 16 }
  0xed   : > { %v416_v25 = vpop.f32.mrb[4].mxu0  ;;  %v546_v27 = vpop.f32.mrb[4].mxu1 }
  0xee   : > { %471 = vst.msk [vmem:[#allocation2 + $0x8] sm:$0xff] %vm360_vm3, %v466_v22  ;;  %v417_v26 = vadd.f32 %v3138_v0, %v416_v25  ;;  %v2630_v28 = vpop.f32.mrb[5].mxu0  ;;  %603 = vst.msk [vmem:[#allocation2 + $0x30] sm:$0xff] %vm360_vm3, %v597_v24  ;;  %v547_v29 = vadd.f32 %v3138_v0, %v546_v27  ;;  %v2644_v30 = vpop.f32.mrb[5].mxu1  ;;  %v1147_v13 = vor.u32 %v1146_v5, %v1142_v56  ;;  %v1163_v24 = vsel %vm370_vm0, %v3114_v51, 0 }
  0xef   : > { %v419_v31 = vpop.f32.mrb[6].mxu0  ;;  %v549_v34 = vpop.f32.mrb[6].mxu1  ;;  %v1230_v25 = vsel %vm370_vm0, %v3119_v52, 0  ;;  %v2471_v30 = vld [vmem:[%s3371_s1 + $0xc] sm:$0xf]  ;;  %v1153_v52 = vshrl.u32 %v3157_v41, 16 }
  0xf0   : > { %v432_v32 = vmax.f32 %v417_v26, 0.0  ;;  %v420_v33 = vadd.f32 %v3138_v0, %v419_v31  ;;  %v2631_v35 = vpop.f32.mrb[7].mxu0  ;;  %v562_v36 = vmax.f32 %v547_v29, 0.0  ;;  %v550_v37 = vadd.f32 %v3138_v0, %v549_v34  ;;  %v2645_v38 = vpop.f32.mrb[7].mxu1  ;;  %v2487_v5 = vld [vmem:[%s3375_s5 + $0x10] sm:$0xf] }
  0xf1   : > { %v1152_v29 = vsel %vm1141_vm5, %v1147_v13, %v1151_v14  ;;  %v720_v56 = vpop.permute.xlu1 %719 }
  0xf2   : > { %v467_v39 = vmul.f32 %v453_v57, %v432_v32  ;;  %v433_v40 = vmax.f32 %v420_v33, 0.0  ;;  %v598_v45 = vmul.f32 %v584_v58, %v562_v36  ;;  %v563_v46 = vmax.f32 %v550_v37, 0.0  ;;  %v2476_v33 = vld [vmem:[%s3375_s5 + $0xc] sm:$0xf] }
  0xf3   : > { %v1014_v49 = vld [vmem:[#allocation2 + $0x28] sm:$0xff]  ;;  %v873_v54 = vld [vmem:[#allocation2] sm:$0xff] }
  0xf4   : > { %472 = vst.msk [vmem:[#allocation2 + $0x10] sm:$0xff] %vm360_vm3, %v467_v39  ;;  %v468_v48 = vmul.f32 %v458_v2, %v433_v40  ;;  %604 = vst.msk [vmem:[#allocation2 + $0x38] sm:$0xff] %vm360_vm3, %v598_v45  ;;  %v599_v50 = vmul.f32 %v589_v21, %v563_v46 }
  0xf5   : > { %v424_v53 = vpop.f32.mrb[8].mxu0  ;;  %v874_v55 = vld [vmem:[#allocation2 + $0x8] sm:$0xff]  ;;  %v554_v57 = vpop.f32.mrb[8].mxu1  ;;  %v1015_v4 = vld [vmem:[#allocation2 + $0x30] sm:$0xff] }
  0xf6   : > { %473 = vst.msk [vmem:[#allocation2 + $0x18] sm:$0xff] %vm360_vm3, %v468_v48  ;;  %v2634_v3 = vpop.f32.mrb[9].mxu0  ;;  %v876_v58 = vpack.c.bf16 %v874_v55, %v873_v54  ;;  %605 = vst.msk [vmem:[#allocation2 + $0x40] sm:$0xff] %vm360_vm3, %v599_v50  ;;  %v2648_v7 = vpop.f32.mrb[9].mxu1  ;;  %v1017_v8 = vpack.c.bf16 %v1015_v4, %v1014_v49  ;;  %v1216_v16 = vld [vmem:[#allocation2 + $0x1] sm:$0xff]  ;;  %v1155_v49 = vor.u32 %v1153_v52, %v1151_v14  ;;  %v1370_v55 = vsel %vm370_vm0, %v2476_v33, 0 }
  0xf7   : > { %v427_v2 = vpop.f32.mrb[10].mxu0  ;;  %v557_v10 = vpop.f32.mrb[10].mxu1  ;;  %v3199_v54 = vld [vmem:[%s2938_s21 + $0x28] sm:$0xff]   ;;  %v1303_v3 = vsel %vm370_vm0, %v2471_v30, 0 }
  0xf8   : > { %v2635_v9 = vpop.f32.mrb[11].mxu0  ;;  %2698 = vmatprep.mubr.msk.bf16.mxu1 %vm360_vm3, %v876_v58  ;;  %v2649_v44 = vpop.f32.mrb[11].mxu1  ;;  %2692 = vmatprep.mubr.msk.bf16.mxu0 %vm360_vm3, %v1017_v8  ;;  %v1571_v12 = vshll.u32 %v3199_v54, 16  ;;  %v2837_v14 = vld [vmem:[%s2938_s21 + $0x30] ss:$0 sps:$4 sm:$0x77]  }
  0xf9   : > { %v2840_v44 = vld [vmem:[%s2938_s21 + $0x30] ss:$0 sps:$4 sm:$0xff]   ;;  %v2839_v52 = vld [vmem:[%s2938_s21 + $0x44] ss:$0 sps:$4 sm:$0x77]  }
  0xfb   : > { %v875_v15 = vld [vmem:[#allocation2 + $0x10] sm:$0x3f]  ;;  %v1016_v18 = vld [vmem:[#allocation2 + $0x38] sm:$0x3f] }
  0xfc   : > { %v1217_v17 = vld [vmem:[#allocation2 + $0x9] sm:$0xff]  ;;  %v877_v19 = vpack.c.bf16 %v875_v15, %v875_v15  ;;  %v1018_v22 = vpack.c.bf16 %v1016_v18, %v1016_v18  ;;  %v1218_v42 = vld [vmem:[#allocation2 + $0x11] sm:$0x3f]  ;;  %v725_v15 = vpop.permute.xlu0 %724 }
  0xfd   : > { %v1219_v20 = vpack.c.bf16 %v1217_v17, %v1216_v16  ;;  %v669_v21 = vpop.f32.mrb[12].mxu0  ;;  %v800_v27 = vpop.f32.mrb[12].mxu1  ;;  %v1220_v53 = vpack.c.bf16 %v1218_v42, %v1218_v42 }
  0xfe   : > { %v670_v26 = vadd.f32 %v3138_v0, %v669_v21  ;;  %v2654_v28 = vpop.f32.mrb[13].mxu0  ;;  %2699 = vmatmul.mubr.msk.bf16.vlgmr.msra.gmra.mrb[28].mxu1 %vm360_vm3, %v877_v19  ;;  %v801_v31 = vadd.f32 %v3138_v0, %v800_v27  ;;  %v2668_v32 = vpop.f32.mrb[13].mxu1  ;;  %2693 = vmatmul.mubr.msk.bf16.vlgmr.msra.gmra.mrb[28].mxu0 %vm360_vm3, %v1018_v22  ;;  %v2838_v21 = vld [vmem:[%s2938_s21 + $0x3c] sm:$0xff]  }
  0xff   : > { %v672_v51 = vpop.f32.mrb[14].mxu0  ;;  %2710 = vmatprep.mubr.msk.bf16.mxu1 %vm360_vm3, %v1219_v20  ;;  %v803_v36 = vpop.f32.mrb[14].mxu1  ;;  %2703 = vmatpush3.bf16.msra.mxu0 %v1163_v24 }
 0x100   : > { %v691_v34 = vmax.f32 %v670_v26, 0.0  ;;  %v673_v35 = vadd.f32 %v3138_v0, %v672_v51  ;;  %v2655_v37 = vpop.f32.mrb[15].mxu0  ;;  %2709 = vmatpush3.bf16.msra.mxu1 %v1230_v25  ;;  %v822_v38 = vmax.f32 %v801_v31, 0.0  ;;  %v804_v39 = vadd.f32 %v3138_v0, %v803_v36  ;;  %v2669_v40 = vpop.f32.mrb[15].mxu1  ;;  %2704 = vmatprep.mubr.msk.bf16.mxu0 %vm360_vm3, %v1152_v29 }
 0x101   : > { %2792 = vmatprep.subr.msk.bf16.mxu0 %vm370_vm0, %v2471_v30  ;;  %2793 = vmatprep.subr.msk.bf16.mxu1 %vm370_vm0, %v2476_v33  ;;  %v851_v16 = vpop.permute.xlu1 %850  ;;  %v1573_v25 = vrot.slane %v1571_v12, 1  ;;  %v1576_v26 = vshll.u32 %v2840_v44, 16  ;;  %v856_v51 = vpop.permute.xlu0 %855  ;;  %v1510_v40 = vsel %vm370_vm0, %v2487_v5, 0 }
 0x102   : > { %v727_v41 = vmul.f32 %v3125_v59, %v691_v34  ;;  %v692_v45 = vmax.f32 %v673_v35, 0.0  ;;  %v858_v46 = vmul.f32 %v3131_v62, %v822_v38  ;;  %v823_v48 = vmax.f32 %v804_v39, 0.0  ;;  %v1712_v35 = vld [vmem:[%s2938_s21 + $0x8] sm:$0xf]  ;;  %v1713_v38 = vld [vmem:[%s2938_s21 + $0xc] sm:$0x3] }
 0x103   : > { %v1578_v34 = vrot.slane %v1576_v26, 1  ;;  %v1791_v16 = vld [vmem:[#allocation2 + $0xe] sm:$0xff] }
 0x104   : > { %733 = vst.msk [vmem:[#allocation2 + $0x50] sm:$0xff] %vm360_vm3, %v727_v41  ;;  %v728_v50 = vmul.f32 %v3127_v60, %v692_v45  ;;  %864 = vst.msk [vmem:[#allocation2 + $0x78] sm:$0xff] %vm360_vm3, %v858_v46  ;;  %v859_v59 = vmul.f32 %v3133_v63, %v823_v48  ;;  %v2482_v60 = vld [vmem:[%s3371_s1 + $0x10] sm:$0xf]  ;;  %v2495_v48 = vld [vmem:[%s3375_s5 + $0x14] sm:$0xf] }
 0x105   : > { %v677_v57 = vpop.f32.mrb[16].mxu0  ;;  %v808_v58 = vpop.f32.mrb[16].mxu1  ;;  %v1443_v20 = vsel %vm370_vm0, %v2482_v60, 0 }
 0x106   : > { %734 = vst.msk [vmem:[#allocation2 + $0x58] sm:$0xff] %vm360_vm3, %v728_v50  ;;  %v678_v62 = vadd.f32 %v3138_v0, %v677_v57  ;;  %v2658_v4 = vpop.f32.mrb[17].mxu0  ;;  %2711 = vmatmul.mubr.msk.bf16.vlgmr.msra.gmra.mrb[32].mxu1 %vm360_vm3, %v1220_v53  ;;  %865 = vst.msk [vmem:[#allocation2 + $0x80] sm:$0xff] %vm360_vm3, %v859_v59  ;;  %v809_v63 = vadd.f32 %v3138_v0, %v808_v58  ;;  %v2672_v6 = vpop.f32.mrb[17].mxu1  ;;  %2705 = vmatmul.mubr.msk.bf16.vlgmr.msra.gmra.mrb[32].mxu0 %vm360_vm3, %v1155_v49  ;;  %v2841_v49 = vld [vmem:[%s2938_s21] sm:$0xf8]  }
 0x107   : > { %v680_v2 = vpop.f32.mrb[18].mxu0  ;;  %2721 = vmatpush3.bf16.msra.mxu1 %v1370_v55  ;;  %v811_v8 = vpop.f32.mrb[18].mxu1  ;;  %2715 = vmatpush3.bf16.msra.mxu0 %v1303_v3  ;;  %v2500_v50 = vcombine.low %v1712_v35, %v1713_v38  ;;  %v1580_v53 = vshrl.u32 %v2840_v44, 16  ;;  %v1727_v56 = vrot.slane %v2841_v49, 3  ;;  %v1657_v4 = vsel %vm370_vm0, %v2495_v48, 0  ;;  %v2088_v38 = vld [vmem:[#allocation2 + $0xf] sm:$0xff] }
 0x108   : > { %v693_v7 = vmax.f32 %v678_v62, 0.0  ;;  %v2659_v9 = vpop.f32.mrb[19].mxu0  ;;  %2716 = vmatprep.mubr.msk.bf16.mxu0 %vm360_vm3, %v3199_v54  ;;  %v824_v10 = vmax.f32 %v809_v63, 0.0  ;;  %v2673_v11 = vpop.f32.mrb[19].mxu1  ;;  %2794 = vmatprep.subr.msk.bf16.mxu0 %vm370_vm0, %v2482_v60  ;;  %v2003_v62 = vld [vmem:[%s2938_s21 + $0xc] sm:$0x7] }
 0x109   : > { %2795 = vmatprep.subr.msk.bf16.mxu1 %vm370_vm0, %v2487_v5  ;;  %v1728_v59 = vrot.slane %v2500_v50, 3  ;;  %v1582_v57 = vor.u32 %v1580_v53, %v1578_v34  ;;  %v2844_v63 = vld [vmem:[%s2938_s21 + $0x14] sm:$0xf8]   ;;  %v2845_v6 = vld [vmem:[%s2938_s21 + $0x1c] sm:$0x3f]   ;;  %v2519_v8 = vcombine.low %v1712_v35, %v2003_v62  ;;  %v2011_v12 = vshrl.u32 %v2841_v49, 16 }
 0x10a   : > { %v729_v0 = vmul.f32 %v3129_v61, %v693_v7  ;;  %v860_v13 = vmul.f32 %v3140_v1, %v824_v10  ;;  %v1569_v61 = vshrl.u32 %v3199_v54, 16  ;;  %v2491_v1 = vld [vmem:[%s3371_s1 + $0x14] sm:$0xf]  ;;  %v2498_v54 = vld [vmem:[%s3371_s1 + $0x18] sm:$0xf]  ;;  %v1874_v44 = vrot.slane %v2845_v6, 3 }
 0x10b   : > { %v1356_v18 = vld [vmem:[#allocation2 + $0x50] sm:$0xff]  ;;  %v1496_v42 = vld [vmem:[#allocation2 + $0x78] sm:$0xff]  ;;  %v1590_v41 = vsel %vm370_vm0, %v2491_v1, 0  ;;  %v1737_v5 = vsel %vm370_vm0, %v2498_v54, 0  ;;  %v1729_v7 = vsel %vm1726_vm6, %v1727_v56, %v1728_v59  ;;  %v2022_v15 = vshll.u32 %v2519_v8, 16 }
 0x10c   : > { %735 = vst.msk [vmem:[#allocation2 + $0x60] sm:$0xff] %vm360_vm3, %v729_v0  ;;  %866 = vst.msk [vmem:[#allocation2 + $0x88] sm:$0xff] %vm360_vm3, %v860_v13  ;;  %v1574_v33 = vor.u32 %v1573_v25, %v1569_v61  ;;  %v2503_v9 = vld [vmem:[%s3375_s5 + $0x18] sm:$0xf]  ;;  %v2510_v10 = vld [vmem:[%s3371_s1 + $0x1c] sm:$0xf] }
 0x10d   : > { %v685_v17 = vpop.f32.mrb[20].mxu0  ;;  %v1357_v19 = vld [vmem:[#allocation2 + $0x58] sm:$0xff]  ;;  %v816_v22 = vpop.f32.mrb[20].mxu1  ;;  %v1497_v37 = vld [vmem:[#allocation2 + $0x80] sm:$0xff]  ;;  %v1873_v0 = vrot.slane %v2844_v63, 3  ;;  %v2014_v13 = vshll.u32 %v2841_v49, 16 }
 0x10e   : > { %v1359_v24 = vpack.c.bf16 %v1357_v19, %v1356_v18  ;;  %v2662_v27 = vpop.f32.mrb[21].mxu0  ;;  %2717 = vmatmul.mubr.msk.bf16.vlgmr.msra.gmra.mrb[36].mxu0 %vm360_vm3, %v2837_v14  ;;  %v2676_v28 = vpop.f32.mrb[21].mxu1  ;;  %v1499_v45 = vpack.c.bf16 %v1497_v37, %v1496_v42  ;;  %v1579_v46 = vsel %vm1141_vm5, %v1574_v33, %v1578_v34  ;;  %v1643_v60 = vld [vmem:[#allocation2 + $0x51] sm:$0xff]  ;;  %v2019_v14 = vshrl.u32 %v2519_v8, 16  ;;  %v1790_v19 = vld [vmem:[#allocation2 + $0x6] sm:$0xff] }
 0x10f   : > { %v688_v29 = vpop.f32.mrb[22].mxu0  ;;  %2727 = vmatpush3.bf16.msra.mxu0 %v1443_v20  ;;  %v819_v30 = vpop.f32.mrb[22].mxu1  ;;  %2728 = vmatprep.mubr.msk.bf16.mxu0 %vm360_vm3, %v2838_v21  ;;  %v1804_v18 = vsel %vm370_vm0, %v2503_v9, 0  ;;  %v1883_v20 = vsel %vm370_vm0, %v2510_v10, 0  ;;  %v1875_v21 = vsel %vm1726_vm6, %v1873_v0, %v1874_v44  ;;  %v2013_v61 = vrot.slane %v2011_v12, 3  ;;  %v2087_v42 = vld [vmem:[#allocation2 + $0x7] sm:$0xff] }
 0x110   : > { %2722 = vmatprep.mubr.msk.bf16.mxu1 %vm360_vm3, %v1359_v24  ;;  %v2663_v31 = vpop.f32.mrb[23].mxu0  ;;  %2796 = vmatprep.subr.msk.bf16.mxu0 %vm370_vm0, %v2491_v1  ;;  %v2677_v32 = vpop.f32.mrb[23].mxu1  ;;  %v1793_v22 = vpack.c.bf16 %v1791_v16, %v1790_v19  ;;  %v2515_v24 = vld [vmem:[%s3375_s5 + $0x1c] sm:$0xf]  ;;  %v2016_v1 = vrot.slane %v2014_v13, 4  ;;  %v2021_v25 = vrot.slane %v2019_v14, 3 }
 0x111   : > { %v2024_v26 = vrot.slane %v2022_v15, 4  ;;  %v2518_v27 = vld [vmem:[%s3371_s1 + $0x20] sm:$0xf]  ;;  %v1792_v28 = vld [vmem:[#allocation2 + $0x16] sm:$0x3f]  ;;  %v1936_v31 = vld [vmem:[#allocation2 + $0x2e] sm:$0xff] }
 0x112   : > { %v2017_v29 = vor.u32 %v2016_v1, %v2013_v61  ;;  %v1937_v32 = vld [vmem:[#allocation2 + $0x36] sm:$0xff]  ;;  %v1794_v51 = vpack.c.bf16 %v1792_v28, %v1792_v28  ;;  %v2034_v33 = vsel %vm370_vm0, %v2518_v27, 0  ;;  %v1938_v37 = vld [vmem:[#allocation2 + $0x3e] sm:$0x3f] }
 0x113   : > { %v1358_v36 = vld [vmem:[#allocation2 + $0x60] sm:$0x3f]  ;;  %v1498_v55 = vld [vmem:[#allocation2 + $0x88] sm:$0x3f]  ;;  %v2025_v30 = vor.u32 %v2024_v26, %v2021_v25  ;;  %v1939_v34 = vpack.c.bf16 %v1937_v32, %v1936_v31 }
 0x114   : > { %v1360_v39 = vpack.c.bf16 %v1358_v36, %v1358_v36  ;;  %v1644_v3 = vld [vmem:[#allocation2 + $0x59] sm:$0xff]  ;;  %v1500_v58 = vpack.c.bf16 %v1498_v55, %v1498_v55  ;;  %v1645_v11 = vld [vmem:[#allocation2 + $0x61] sm:$0x3f] }
 0x115   : > { %v1646_v2 = vpack.c.bf16 %v1644_v3, %v1643_v60  ;;  %v1647_v17 = vpack.c.bf16 %v1645_v11, %v1645_v11  ;;  %v2026_v35 = vsel %vm2009_vm7, %v2017_v29, %v2025_v30  ;;  %v2522_v36 = vld [vmem:[%s3375_s5 + $0x20] sm:$0xf]  ;;  %v2688_v49 = vpop.f32.mrb[24].mxu1 }
 0x116   : > { %2723 = vmatmul.mubr.msk.bf16.vlgmr.msra.gmra.mrb[36].mxu1 %vm360_vm3, %v1360_v39  ;;  %2729 = vmatmul.mubr.msk.bf16.vlgmr.msra.gmra.mrb[40].mxu0 %vm360_vm3, %v2839_v52  ;;  %v1950_v52 = vsel %vm370_vm0, %v2515_v24, 0  ;;  %v1940_v39 = vpack.c.bf16 %v1938_v37, %v1938_v37 }
 0x117   : > { %2733 = vmatpush3.bf16.msra.mxu1 %v1510_v40  ;;  %2734 = vmatprep.mubr.msk.bf16.mxu1 %vm360_vm3, %v1499_v45  ;;  %v2101_v40 = vsel %vm370_vm0, %v2522_v36, 0  ;;  %v2089_v45 = vld [vmem:[#allocation2 + $0x17] sm:$0x3f] }
 0x118   : > { %2739 = vmatpush3.bf16.msra.mxu0 %v1590_v41  ;;  %2740 = vmatprep.mubr.msk.bf16.mxu0 %vm360_vm3, %v1579_v46  ;;  %v2090_v41 = vpack.c.bf16 %v2088_v38, %v2087_v42  ;;  %v2091_v46 = vpack.c.bf16 %v2089_v45, %v2089_v45 }
 0x119   : > { %2797 = vmatprep.subr.msk.bf16.mxu1 %vm370_vm0, %v2495_v48  ;;  %2798 = vmatprep.subr.msk.bf16.mxu0 %vm370_vm0, %v2498_v54  ;;  %v2682_v48 = vpop.f32.mrb[24].mxu0  ;;  %v1000_v54 = vpop.f32.mrb[25].mxu1 }
 0x11a   : > { %v1009_v50 = vadd.f32 %v2688_v49, %v2682_v48  ;;  %v935_v53 = vpop.f32.mrb[25].mxu0 }
 0x11b   : > { %v1001_v55 = vadd.f32 %v1000_v54, %v935_v53  ;;  %v2683_v56 = vpop.f32.mrb[26].mxu0 }
 0x11e   : > { %2735 = vmatmul.mubr.msk.bf16.vlgmr.msra.gmra.mrb[40].mxu1 %vm360_vm3, %v1500_v58  ;;  %2741 = vmatmul.mubr.msk.bf16.vlgmr.msra.gmra.mrb[44].mxu0 %vm360_vm3, %v1582_v57  ;;  %v938_v57 = vpop.f32.mrb[27].mxu0 }
 0x11f   : > { %2745 = vmatpush3.bf16.msra.mxu1 %v1657_v4  ;;  %2746 = vmatprep.mubr.msk.bf16.mxu1 %vm360_vm3, %v1646_v2 }
 0x120   : > { %2751 = vmatpush3.bf16.msra.mxu0 %v1737_v5  ;;  %2752 = vmatprep.mubr.msk.bf16.mxu0 %vm360_vm3, %v1729_v7 }
 0x121   : > { %2799 = vmatprep.subr.msk.bf16.mxu1 %vm370_vm0, %v2503_v9  ;;  %2800 = vmatprep.subr.msk.bf16.mxu0 %vm370_vm0, %v2510_v10 }
 0x126   : > { %2747 = vmatmul.mubr.msk.bf16.vlgmr.msra.gmra.mrb[44].mxu1 %vm360_vm3, %v1647_v17  ;;  %2753 = vmatmul.mubr.msk.bf16.vlgmr.msra.gmra.mrb[48].mxu0 %vm360_vm3, %v1728_v59  ;;  %v2689_v59 = vpop.f32.mrb[26].mxu1 }
 0x127   : > { %2757 = vmatpush3.bf16.msra.mxu1 %v1804_v18  ;;  %2758 = vmatprep.mubr.msk.bf16.mxu1 %vm360_vm3, %v1793_v22  ;;  %v1003_v3 = vpop.f32.mrb[27].mxu1 }
 0x128   : > { %2763 = vmatpush3.bf16.msra.mxu0 %v1883_v20  ;;  %2764 = vmatprep.mubr.msk.bf16.mxu0 %vm360_vm3, %v1875_v21  ;;  %v1004_v62 = vadd.f32 %v1003_v3, %v938_v57 }
 0x129   : > { %2801 = vmatprep.subr.msk.bf16.mxu1 %vm370_vm0, %v2515_v24  ;;  %2802 = vmatprep.subr.msk.bf16.mxu0 %vm370_vm0, %v2518_v27 }
 0x12e   : > { %2759 = vmatmul.mubr.msk.bf16.vlgmr.msra.gmra.mrb[48].mxu1 %vm360_vm3, %v1794_v51  ;;  %2765 = vmatmul.mubr.msk.bf16.vlgmr.msra.gmra.mrb[52].mxu0 %vm360_vm3, %v1874_v44 }
 0x12f   : > { %2769 = vmatpush3.bf16.msra.mxu1 %v1950_v52  ;;  %2770 = vmatprep.mubr.msk.bf16.mxu1 %vm360_vm3, %v1939_v34 }
 0x130   : > { %2775 = vmatpush3.bf16.msra.mxu0 %v2034_v33  ;;  %2776 = vmatprep.mubr.msk.bf16.mxu0 %vm360_vm3, %v2026_v35 }
 0x131   : > { %2803 = vmatprep.subr.msk.bf16.mxu1 %vm370_vm0, %v2522_v36  ;;  %vm3335_vm0 = vmor %vm2226_vm12, %vm2227_vm13 }
 0x136   : > { %2771 = vmatmul.mubr.msk.bf16.vlgmr.msra.gmra.mrb[52].mxu1 %vm360_vm3, %v1940_v39  ;;  %2777 = vmatmul.mubr.msk.bf16.vlgmr.msra.gmra.mrb[56].mxu0 %vm360_vm3, %v2025_v30 }
 0x137   : > { %2781 = vmatpush3.bf16.msra.mxu1 %v2101_v40  ;;  %2782 = vmatprep.mubr.msk.bf16.mxu1 %vm360_vm3, %v2090_v41 }
 0x13e   : > { %2783 = vmatmul.mubr.msk.bf16.vlgmr.msra.gmra.mrb[56].mxu1 %vm360_vm3, %v2091_v46 }
 0x1d1   : > { %v2700_v58 = vpop.f32.mrb[28].mxu1  ;;  %v2694_v4 = vpop.f32.mrb[28].mxu0 }
 0x1d2   : > { %v1121_v60 = vpop.f32.mrb[29].mxu1  ;;  %v1130_v5 = vadd.f32 %v2700_v58, %v2694_v4  ;;  %v1064_v63 = vpop.f32.mrb[29].mxu0 }
 0x1d3   : > { %v2701_v6 = vpop.f32.mrb[30].mxu1  ;;  %v1122_v2 = vadd.f32 %v1121_v60, %v1064_v63  ;;  %v2695_v7 = vpop.f32.mrb[30].mxu0 }
 0x1d4   : > { %v1124_v8 = vpop.f32.mrb[31].mxu1  ;;  %v1067_v9 = vpop.f32.mrb[31].mxu0 }
 0x1d5   : > { %v1125_v10 = vadd.f32 %v1124_v8, %v1067_v9 }
 0x1d9   : > { %v2712_v11 = vpop.f32.mrb[32].mxu1  ;;  %v2706_v0 = vpop.f32.mrb[32].mxu0 }
 0x1da   : > { %v1282_v44 = vadd.f32 %v2712_v11, %v1130_v5  ;;  %v1266_v12 = vpop.f32.mrb[33].mxu1  ;;  %v1215_v13 = vadd.f32 %v2706_v0, %v1009_v50  ;;  %v1199_v14 = vpop.f32.mrb[33].mxu0 }
 0x1db   : > { %v1280_v15 = vadd.f32 %v1266_v12, %v1122_v2  ;;  %v2713_v16 = vpop.f32.mrb[34].mxu1  ;;  %v1213_v17 = vadd.f32 %v1199_v14, %v1001_v55  ;;  %v2707_v18 = vpop.f32.mrb[34].mxu0 }
 0x1dc   : > { %v1269_v19 = vpop.f32.mrb[35].mxu1  ;;  %v1202_v20 = vpop.f32.mrb[35].mxu0 }
 0x1dd   : > { %v1281_v21 = vadd.f32 %v1269_v19, %v1125_v10  ;;  %v1214_v61 = vadd.f32 %v1202_v20, %v1004_v62 }
 0x1e1   : > { %v2718_v22 = vpop.f32.mrb[36].mxu0 }
 0x1e2   : > { %v1355_v24 = vadd.f32 %v2718_v22, %v1215_v13  ;;  %v1339_v1 = vpop.f32.mrb[37].mxu0 }
 0x1e3   : > { %v1353_v25 = vadd.f32 %v1339_v1, %v1213_v17  ;;  %v2719_v26 = vpop.f32.mrb[38].mxu0 }
 0x1e4   : > { %v1342_v27 = vpop.f32.mrb[39].mxu0 }
 0x1e5   : > { %v1354_v28 = vadd.f32 %v1342_v27, %v1214_v61  ;;  %v2525_v27 = vld [vmem:[%s3372_s2] ss:$0 sm:$0xff] }
 0x1e9   : > { %v2724_v29 = vpop.f32.mrb[36].mxu1  ;;  %v2730_v31 = vpop.f32.mrb[40].mxu0 }
 0x1ea   : > { %v1422_v30 = vadd.f32 %v2724_v29, %v1282_v44  ;;  %v1406_v32 = vpop.f32.mrb[37].mxu1  ;;  %v1495_v51 = vadd.f32 %v2730_v31, %v1355_v24  ;;  %v1479_v33 = vpop.f32.mrb[41].mxu0 }
 0x1eb   : > { %v1420_v52 = vadd.f32 %v1406_v32, %v1280_v15  ;;  %v2725_v34 = vpop.f32.mrb[38].mxu1  ;;  %v1493_v35 = vadd.f32 %v1479_v33, %v1353_v25  ;;  %v2731_v36 = vpop.f32.mrb[42].mxu0 }
 0x1ec   : > { %v1409_v37 = vpop.f32.mrb[39].mxu1  ;;  %v1482_v39 = vpop.f32.mrb[43].mxu0 }
 0x1ed   : > { %v1421_v38 = vadd.f32 %v1409_v37, %v1281_v21  ;;  %v1494_v40 = vadd.f32 %v1482_v39, %v1354_v28 }
 0x1f1   : > { %v2736_v42 = vpop.f32.mrb[40].mxu1  ;;  %v2742_v45 = vpop.f32.mrb[44].mxu0 }
 0x1f2   : > { %v1562_v41 = vadd.f32 %v2736_v42, %v1422_v30  ;;  %v1546_v46 = vpop.f32.mrb[41].mxu1  ;;  %v1642_v48 = vadd.f32 %v2742_v45, %v1495_v51  ;;  %v1626_v50 = vpop.f32.mrb[45].mxu0 }
 0x1f3   : > { %v1560_v49 = vadd.f32 %v1546_v46, %v1420_v52  ;;  %v2737_v53 = vpop.f32.mrb[42].mxu1  ;;  %v1640_v54 = vadd.f32 %v1626_v50, %v1493_v35  ;;  %v2743_v55 = vpop.f32.mrb[46].mxu0  ;;  %v2526_v46 = vld [vmem:[%s3376_s6] ss:$0 sm:$0xff] }
 0x1f4   : > { %v1549_v56 = vpop.f32.mrb[43].mxu1  ;;  %v1629_v57 = vpop.f32.mrb[47].mxu0 }
 0x1f5   : > { %v1561_v59 = vadd.f32 %v1549_v56, %v1421_v38  ;;  %v1641_v3 = vadd.f32 %v1629_v57, %v1494_v40 }
 0x1f9   : > { %v2748_v62 = vpop.f32.mrb[44].mxu1  ;;  %v2754_v4 = vpop.f32.mrb[48].mxu0 }
 0x1fa   : > { %v1709_v58 = vadd.f32 %v2748_v62, %v1562_v41  ;;  %v1693_v60 = vpop.f32.mrb[45].mxu1  ;;  %v1789_v5 = vadd.f32 %v2754_v4, %v1642_v48  ;;  %v1773_v6 = vpop.f32.mrb[49].mxu0 }
 0x1fb   : > { %v1707_v63 = vadd.f32 %v1693_v60, %v1560_v49  ;;  %v2749_v2 = vpop.f32.mrb[46].mxu1  ;;  %v1787_v7 = vadd.f32 %v1773_v6, %v1640_v54  ;;  %v2755_v8 = vpop.f32.mrb[50].mxu0 }
 0x1fc   : > { %v1696_v9 = vpop.f32.mrb[47].mxu1  ;;  %v1776_v11 = vpop.f32.mrb[51].mxu0 }
 0x1fd   : > { %v1708_v10 = vadd.f32 %v1696_v9, %v1561_v59  ;;  %v1788_v0 = vadd.f32 %v1776_v11, %v1641_v3  ;;  %v2265_v11 = vld [vmem:[%s2944_s24] sm:$0x8] }
 0x201   : > { %v2760_v44 = vpop.f32.mrb[48].mxu1  ;;  %v2766_v13 = vpop.f32.mrb[52].mxu0 }
 0x202   : > { %v1856_v12 = vadd.f32 %v2760_v44, %v1709_v58  ;;  %v1840_v14 = vpop.f32.mrb[49].mxu1  ;;  %v1935_v15 = vadd.f32 %v2766_v13, %v1789_v5  ;;  %v1919_v17 = vpop.f32.mrb[53].mxu0 }
 0x203   : > { %v1854_v16 = vadd.f32 %v1840_v14, %v1707_v63  ;;  %v2761_v18 = vpop.f32.mrb[50].mxu1  ;;  %v1933_v19 = vadd.f32 %v1919_v17, %v1787_v7  ;;  %v2767_v20 = vpop.f32.mrb[54].mxu0 }
 0x204   : > { %v1843_v21 = vpop.f32.mrb[51].mxu1  ;;  %v1922_v22 = vpop.f32.mrb[55].mxu0 }
 0x205   : > { %v1855_v61 = vadd.f32 %v1843_v21, %v1708_v10  ;;  %v1934_v24 = vadd.f32 %v1922_v22, %v1788_v0  ;;  %v2273_v21 = vld [vmem:[%s2944_s24 + $0xc] sm:$0x7] }
 0x209   : > { %v2772_v1 = vpop.f32.mrb[52].mxu1  ;;  %v2778_v26 = vpop.f32.mrb[56].mxu0 }
 0x20a   : > { %v2002_v25 = vadd.f32 %v2772_v1, %v1856_v12  ;;  %v1986_v28 = vpop.f32.mrb[53].mxu1  ;;  %v2086_v29 = vadd.f32 %v2778_v26, %v1935_v15  ;;  %v2070_v31 = vpop.f32.mrb[57].mxu0 }
 0x20b   : > { %v2000_v30 = vadd.f32 %v1986_v28, %v1854_v16  ;;  %v2773_v32 = vpop.f32.mrb[54].mxu1  ;;  %v2084_v51 = vadd.f32 %v2070_v31, %v1933_v19  ;;  %v2779_v52 = vpop.f32.mrb[58].mxu0 }
 0x20c   : > { %v1989_v33 = vpop.f32.mrb[55].mxu1  ;;  %v2163_v34 = vadd.f32 %v2525_v27, %v2086_v29  ;;  %v2073_v36 = vpop.f32.mrb[59].mxu0 }
 0x20d   : > { %v2001_v35 = vadd.f32 %v1989_v33, %v1855_v61  ;;  %v2161_v37 = vadd.f32 %v2525_v27, %v2084_v51  ;;  %v2085_v38 = vadd.f32 %v2073_v36, %v1934_v24 }
 0x20e   : > { %v2166_v39 = vmax.f32 %v2163_v34, 0.0 }
 0x20f   : > { %v2164_v40 = vmax.f32 %v2161_v37, 0.0  ;;  %v2162_v42 = vadd.f32 %v2525_v27, %v2085_v38 }
 0x210   : > { %v2187_v41 = vmul.f32 %v3162_v47, %v2166_v39 }
 0x211   : > { %v2784_v45 = vpop.f32.mrb[56].mxu1  ;;  %v2185_v48 = vmul.f32 %v3147_v23, %v2164_v40  ;;  %v2165_v49 = vmax.f32 %v2162_v42, 0.0 }
 0x212   : > { %v2153_v50 = vadd.f32 %v2784_v45, %v2002_v25  ;;  %v2137_v53 = vpop.f32.mrb[57].mxu1  ;;  %v2548_v54 = vpack.c.bf16 %v2187_v41, %v2187_v41 }
 0x213   : > { %v2151_v55 = vadd.f32 %v2137_v53, %v2000_v30  ;;  %v2785_v56 = vpop.f32.mrb[58].mxu1  ;;  %v2546_v59 = vpack.c.bf16 %v2185_v48, %v2185_v48  ;;  %v2186_v57 = vmul.f32 %v3160_v43, %v2165_v49  ;;  %v2542_v48 = vld [vmem:[%s2944_s24 + $0x20] sm:$0x7] }
 0x214   : > { %v2197_v3 = vadd.f32 %v2526_v46, %v2153_v50  ;;  %v2140_v62 = vpop.f32.mrb[59].mxu1  ;;  %v2249_v58 = vshll.u32 %v2548_v54, 16  ;;  %v2253_v4 = vshrl.u32 %v2548_v54, 16 }
 0x215   : > { %v2195_v60 = vadd.f32 %v2526_v46, %v2151_v55  ;;  %v2152_v5 = vadd.f32 %v2140_v62, %v2001_v35  ;;  %v2230_v63 = vshll.u32 %v2546_v59, 16  ;;  %v2233_v6 = vshrl.u32 %v2546_v59, 16  ;;  %v2538_v35 = vld [vmem:[%s2944_s24 + $0x14] sm:$0x8] }
 0x216   : > { %v2547_v2 = vpack.c.bf16 %v2186_v57, %v2186_v57  ;;  %v2200_v7 = vmax.f32 %v2197_v3, 0.0  ;;  %v2251_v8 = vrot.slane %v2249_v58, 5  ;;  %v2255_v9 = vrot.slane %v2253_v4, 4 }
 0x217   : > { %v2198_v0 = vmax.f32 %v2195_v60, 0.0  ;;  %v2196_v44 = vadd.f32 %v2526_v46, %v2152_v5  ;;  %v2232_v12 = vrot.slane %v2230_v63, 5  ;;  %v2235_v13 = vrot.slane %v2233_v6, 4 }
 0x218   : > { %v2239_v14 = vshll.u32 %v2547_v2, 16  ;;  %v2243_v15 = vshrl.u32 %v2547_v2, 16  ;;  %v2256_v16 = vor.u32 %v2255_v9, %v2251_v8  ;;  %v2203_v17 = vmul.f32 %v2200_v7, %v3162_v47 }
 0x219   : > { %v2201_v18 = vmul.f32 %v2198_v0, %v3147_v23  ;;  %v2199_v19 = vmax.f32 %v2196_v44, 0.0  ;;  %v2236_v61 = vor.u32 %v2235_v13, %v2232_v12  ;;  %v2266_v22 = vsel %vm3316_vm14, %v2232_v12, %v2265_v11 }
 0x21a   : > { %v2241_v24 = vrot.slane %v2239_v14, 5  ;;  %v2245_v1 = vrot.slane %v2243_v15, 4  ;;  %v2257_v25 = vrot.slane %v2256_v16, 4  ;;  %2267 = vst [vmem:[%s2944_s24] sm:$0x8] %v2266_v22  ;;  %v2551_v47 = vpack.c.bf16 %v2203_v17, %v2203_v17 }
 0x21b   : > { %v2549_v26 = vpack.c.bf16 %v2201_v18, %v2201_v18  ;;  %v2202_v27 = vmul.f32 %v2199_v19, %v3160_v43  ;;  %v2237_v28 = vrot.slane %v2236_v61, 4 }
 0x21c   : > { %v2246_v29 = vor.u32 %v2245_v1, %v2241_v24  ;;  %v2274_v30 = vsel %vm3325_vm15, %v2257_v25, %v2273_v21  ;;  %v2306_v31 = vshll.u32 %v2551_v47, 16  ;;  %v2310_v32 = vshrl.u32 %v2551_v47, 16 }
 0x21d   : > { %v2287_v51 = vshll.u32 %v2549_v26, 16  ;;  %2275 = vst [vmem:[%s2944_s24 + $0xc] sm:$0x7] %v2274_v30  ;;  %v2242_v52 = vsel %vm3335_vm0, %v2237_v28, %v2241_v24  ;;  %v2290_v34 = vshrl.u32 %v2549_v26, 16  ;;  %v2550_v36 = vpack.c.bf16 %v2202_v27, %v2202_v27 }
 0x21e   : > { %v2247_v33 = vrot.slane %v2246_v29, 4  ;;  %2268 = vst.msk [vmem:[%s2944_s24 + $0x4] sm:$0xf] %vm474_vm4, %v2242_v52  ;;  %v2308_v43 = vrot.slane %v2306_v31, 5  ;;  %v2312_v37 = vrot.slane %v2310_v32, 4 }
 0x21f   : > { %v2289_v38 = vrot.slane %v2287_v51, 5  ;;  %v2292_v40 = vrot.slane %v2290_v34, 4  ;;  %v2296_v42 = vshll.u32 %v2550_v36, 16  ;;  %v2300_v41 = vshrl.u32 %v2550_v36, 16 }
 0x220   : > { %v2252_v39 = vsel %vm3335_vm0, %v2247_v33, %v2251_v8  ;;  %v2313_v45 = vor.u32 %v2312_v37, %v2308_v43 }
 0x221   : > { %2269 = vst.msk [vmem:[%s2944_s24 + $0x8] sm:$0xf] %vm474_vm4, %v2252_v39  ;;  %v2320_v46 = vsel %vm3316_vm14, %v2289_v38, %v2538_v35  ;;  %v2293_v49 = vor.u32 %v2292_v40, %v2289_v38  ;;  %v2298_v50 = vrot.slane %v2296_v42, 5  ;;  %v2302_v53 = vrot.slane %v2300_v41, 4 }
 0x222   : > { %2539 = vst [vmem:[%s2944_s24 + $0x14] sm:$0x8] %v2320_v46  ;;  %v2314_v54 = vrot.slane %v2313_v45, 4 }
 0x223   : > { %v2294_v55 = vrot.slane %v2293_v49, 4  ;;  %v2303_v56 = vor.u32 %v2302_v53, %v2298_v50 }
 0x224   : > { %v2325_v59 = vsel %vm3325_vm15, %v2314_v54, %v2542_v48 }
 0x225   : > { %2543 = vst [vmem:[%s2944_s24 + $0x20] sm:$0x7] %v2325_v59  ;;  %v2299_v57 = vsel %vm3335_vm0, %v2294_v55, %v2298_v50  ;;  %v2304_v3 = vrot.slane %v2303_v56, 4 }
 0x226   : > { %2540 = vst.msk [vmem:[%s2944_s24 + $0x18] sm:$0xf] %vm474_vm4, %v2299_v57 }
 0x227   : > { %v2309_v62 = vsel %vm3335_vm0, %v2304_v3, %v2308_v43 }
 0x228   : > { %2541 = vst.msk [vmem:[%s2944_s24 + $0x1c] sm:$0xf] %vm474_vm4, %v2309_v62 }
 0x229 PF: > { %s19_s30 = sadd.s32 1, %s2852_s30  }
 0x22a   : > { %p16_p4 = scmp.ge.s32.totalorder %s19_s30, 4  }
 0x22c   :  { %18 = sbr.rel (!%p16_p4) target bundleno = 1 (0x1), region = 112 }

// kernel: shufflenet_v2_forward.12
= control target key start
LH: loop header
LB: loop body
LE: loop exit
PB: predicated region body
PF: predicated region fallthrough
CT: control target
= control target key end

     0   :  { %s1182_s24 = smov 0   ;;  %s1300_s0 = inlined_call_operand.vmem [shape: bf16[2,16,32], index: 0, kind: input, shape index: {}]   ;;  %s1301_s1 = inlined_call_operand.vmem [shape: bf16[16,16], index: 1, kind: input, shape index: {}]   ;;  %s1302_s2 = inlined_call_operand.vmem [shape: f32[1,16], index: 2, kind: input, shape index: {}]   ;;  %s1303_s3 = inlined_call_operand.vmem [shape: bf16[9,16,16], index: 3, kind: input, shape index: {}]   ;;  %s1304_s4 = inlined_call_operand.vmem [shape: f32[1,16], index: 4, kind: input, shape index: {}]   ;;  %s1305_s5 = inlined_call_operand.vmem [shape: f32[16,1], index: 5, kind: input, shape index: {}]   ;;  %s1306_s6 = inlined_call_operand.vmem [shape: f32[6,1], index: 6, kind: input, shape index: {}]   ;;  %s1307_s7 = inlined_call_operand.vmem [shape: bf16[2,2,16,16], index: 7, kind: output, shape index: {}]  }
   0x1 LB: > { %s965_s25 = sadd.s32 4294967295, %s1136_s24   ;;  %p969_p0 = scmp.ge.s32.totalorder %s1136_s24, 1  ;;  %s1136_s24 = sphi %s1182_s24, %s17_s24  }
   0x2   : > { %p237_p1 = scmp.lt.s32.totalorder %s1136_s24, 3 }
   0x4   : > { %p238_p2 = pnand %p969_p0, %p237_p1 }
   0x5   : > { %p269_p3 = scmp.lt.s32.totalorder (!%p238_p2), %s965_s25, 1  ;;  %v1120_v0 = vld [vmem:[%s1301_s1] sm:$0xff] (!%p238_p2)   ;;  %v1138_v1 = vmov (!%p238_p2), 0.0   ;;  %vm1139_vm0 = vmmov (!%p238_p2), 0   ;;  %vm877_vm1 = vcmask (!%p238_p2), 125952   ;;  %v352_v2 = vld [vmem:[%s1305_s5 + $0x8] sm:$0xff] (!%p238_p2) }
   0x6   : > { %241 = sbr.rel (%p238_p2) target bundleno = 624 (0x270), region = 48  ;;  %1045 = vmatprep.subr.bf16.mxu0 (!%p238_p2), %v1138_v1  ;;  %1051 = vmatprep.subr.bf16.mxu1 (!%p238_p2), %v1138_v1  ;;  %v1140_v3 = vmov (!%p238_p2), 0   ;;  %v868_v4 = vld [vmem:[%s1306_s6] sm:$0x3f] (!%p238_p2)  ;;  %s1141_s19 = smov (!%p238_p2), 112   ;;  %vm304_vm2 = vcmask (!%p238_p2), 130048  }
   0x7   : > { %1046 = vmatpush3.bf16.msra.mxu0 (!%p238_p2), %v1120_v0  ;;  %1047 = vmatprep.mubr.msk.bf16.mxu0 (!%p238_p2), %vm1139_vm0, %v1138_v1  ;;  %v351_v8 = vld [vmem:[%s1305_s5] sm:$0xff] (!%p238_p2)  ;;  %v1121_v10 = vld [vmem:[%s1303_s3 + $0x8] sm:$0xff] (!%p238_p2)   ;;  %v1123_v25 = vld [vmem:[%s1303_s3 + $0x10] sm:$0xff] (!%p238_p2)   ;;  %vm898_vm3 = vcmask (!%p238_p2), 125954   ;;  %vm899_vm4 = vsmask.f32 (!%p238_p2), 7946 }
   0x8   : > { %1117 = vset.pattern.permute.xlu0 (!%p238_p2), %v1140_v3  ;;  %1118 = vset.pattern.permute.xlu1 (!%p238_p2), %v1140_v3  ;;  %v1122_v11 = vld [vmem:[%s1303_s3] sm:$0xff] (!%p238_p2)   ;;  %v1124_v28 = vld [vmem:[%s1303_s3 + $0x18] sm:$0xff] (!%p238_p2)   ;;  %v1126_v34 = vld [vmem:[%s1303_s3 + $0x28] sm:$0xff] (!%p238_p2)   ;;  %vm904_vm5 = vcmask (!%p238_p2), 123904   ;;  %vm905_vm6 = vsmask.f32 (!%p238_p2), 1280 }
   0x9   : > { %360 = vperm.xlu1 (!%p238_p2), %1118, %v352_v2   ;;  %1057 = vmatprep.subr.bf16.mxu0 (!%p238_p2), %v1138_v1  ;;  %v974_v12 = vld [vmem:[%s1302_s2] ss:$0 sm:$0xff] (!%p238_p2)  ;;  %v1127_v39 = vld [vmem:[%s1303_s3 + $0x30] sm:$0xff] (!%p238_p2)   ;;  %v1128_v40 = vld [vmem:[%s1303_s3 + $0x38] sm:$0xff] (!%p238_p2)  }
   0xa   : > { %1053 = vmatprep.mubr.msk.bf16.mxu1 (!%p238_p2), %vm1139_vm0, %v1138_v1  ;;  %1052 = vmatpush3.bf16.msra.mxu1 (!%p238_p2), %v1121_v10  ;;  %v1125_v33 = vld [vmem:[%s1303_s3 + $0x20] sm:$0xff] (!%p238_p2)   ;;  %vm900_vm7 = vmand (!%p238_p2), %vm898_vm3, %vm899_vm4 }
   0xb   : > { %1063 = vmatprep.subr.bf16.mxu1 (!%p238_p2), %v1138_v1  ;;  %v1129_v45 = vld [vmem:[%s1303_s3 + $0x40] sm:$0xff] (!%p238_p2)   ;;  %vm906_vm8 = vmand (!%p238_p2), %vm904_vm5, %vm905_vm6 }
   0xd   : > { %s1309_s25 = smov (!%p269_p3, %s965_s25), 1  ;;  %871 = vperm.xlu1 %1118, %v868_v4  }
   0xe   : > { %s1022_s9 = sshll.u32 %s1309_s25, 3  ;;  %s1023_s10 = sshll.u32 %s1309_s25, 4 }
   0xf   : > { %s273_s13 = scalar_lea.vmem %s1300_s0, %s1022_s9  ;;  %s1210_s16 = scalar_lea.vmem %s1307_s7, %s1023_s10 }
  0x10   : > { %v1119_v5 = vld [vmem:[%s273_s13] sm:$0xff]   ;;  %1013 = vst.msk [vmem:[%s1210_s16 + $0x8] sm:$0xf] %vm877_vm1, %v1140_v3  ;;  %1014 = vst.msk [vmem:[%s1210_s16 + $0xc] sm:$0xf] %vm877_vm1, %v1140_v3 }
  0x11   : > { %v875_v6 = vld [vmem:[%s273_s13] sm:$0xf]  ;;  %v876_v7 = vld [vmem:[%s273_s13 + $0x4] sm:$0xf]  ;;  %296 = vrot.lane.b32.xlu0 %v1119_v5, %s1141_s19 }
  0x12   : > { %878 = vst.msk [vmem:[%s1210_s16] sm:$0xf] %vm877_vm1, %v875_v6  ;;  %879 = vst.msk [vmem:[%s1210_s16 + $0x4] sm:$0xf] %vm877_vm1, %v876_v7 }
  0x15   : > { %355 = vperm.xlu0 %1117, %v351_v8  }
  0x83   : > { %v297_v9 = vpop.permute.xlu0 %296 }
  0x84   : > { %1048 = vmatmul.mubr.msk.bf16.vlgmr.msra.gmra.mrb[0].mxu0 %vm304_vm2, %v297_v9 }
  0x85   : > { %1059 = vmatprep.mubr.msk.bf16.mxu0 %vm1139_vm0, %v1138_v1  ;;  %1058 = vmatpush3.bf16.msra.mxu0 %v1122_v11 }
  0x86   : > { %1069 = vmatprep.subr.bf16.mxu0 %v1138_v1 }
  0x88   : > { %v361_v21 = vpop.permute.xlu1 %360 }
  0x94   : > { %v356_v17 = vpop.permute.xlu0 %355 }
 0x157   : > { %v342_v13 = vpop.f32.mrb[0].mxu0 }
 0x158   : > { %v343_v14 = vadd.f32 %v974_v12, %v342_v13  ;;  %v1049_v15 = vpop.f32.mrb[1].mxu0 }
 0x159   : > { %v345_v16 = vpop.f32.mrb[2].mxu0 }
 0x15a   : > { %v349_v18 = vmax.f32 %v343_v14, 0.0  ;;  %v346_v19 = vadd.f32 %v974_v12, %v345_v16  ;;  %v1050_v20 = vpop.f32.mrb[3].mxu0 }
 0x15c   : > { %v350_v22 = vmax.f32 %v346_v19, 0.0  ;;  %v363_v23 = vmul.f32 %v356_v17, %v349_v18 }
 0x15e   : > { %365 = vst.msk [vmem:[#allocation2] sm:$0xff] %vm304_vm2, %v363_v23  ;;  %v364_v24 = vmul.f32 %v361_v21, %v350_v22 }
 0x160   : > { %366 = vst.msk [vmem:[#allocation2 + $0x8] sm:$0xff] %vm304_vm2, %v364_v24 }
 0x165   : > { %v371_v26 = vld [vmem:[#allocation2 + $0x1] sm:$0x3f] }
 0x166   : > { %v367_v27 = vld [vmem:[#allocation2] sm:$0x3f]  ;;  %v372_v29 = vpack.c.bf16 %v371_v26, %v371_v26 }
 0x167   : > { %v368_v30 = vpack.c.bf16 %v367_v27, %v367_v27  ;;  %v474_v31 = vld [vmem:[#allocation2 + $0x2] sm:$0x3f]  ;;  %v694_v43 = vld [vmem:[#allocation2 + $0x8] sm:$0x3f]  ;;  %v1012_v26 = vld [vmem:[%s1304_s4] ss:$0 sm:$0xff] }
 0x168   : > { %1054 = vmatmul.mubr.msk.bf16.vlgmr.msra.gmra.mrb[0].mxu1 %vm304_vm2, %v372_v29  ;;  %v529_v32 = vld [vmem:[#allocation2 + $0x4] sm:$0x3f]  ;;  %v475_v35 = vpack.c.bf16 %v474_v31, %v474_v31  ;;  %v695_v46 = vpack.c.bf16 %v694_v43, %v694_v43  ;;  %v804_v48 = vld [vmem:[#allocation2 + $0xa] sm:$0x3f] }
 0x169   : > { %1060 = vmatmul.mubr.msk.bf16.vlgmr.msra.gmra.mrb[4].mxu0 %vm304_vm2, %v368_v30  ;;  %1064 = vmatpush3.bf16.msra.mxu1 %v1123_v25  ;;  %v530_v36 = vpack.c.bf16 %v529_v32, %v529_v32  ;;  %v584_v37 = vld [vmem:[#allocation2 + $0x5] sm:$0x3f]  ;;  %v805_v49 = vpack.c.bf16 %v804_v48, %v804_v48 }
 0x16a   : > { %1070 = vmatpush3.bf16.msra.mxu0 %v1124_v28  ;;  %1065 = vmatprep.mubr.msk.bf16.mxu1 %vm1139_vm0, %v1138_v1  ;;  %v639_v38 = vld [vmem:[#allocation2 + $0x6] sm:$0x3f]  ;;  %v585_v41 = vpack.c.bf16 %v584_v37, %v584_v37 }
 0x16b   : > { %1071 = vmatprep.mubr.msk.bf16.mxu0 %vm1139_vm0, %v1138_v1  ;;  %1075 = vmatprep.subr.bf16.mxu1 %v1138_v1  ;;  %v640_v42 = vpack.c.bf16 %v639_v38, %v639_v38  ;;  %v749_v44 = vld [vmem:[#allocation2 + $0x9] sm:$0x3f] }
 0x16c   : > { %1081 = vmatprep.subr.bf16.mxu0 %v1138_v1  ;;  %v750_v47 = vpack.c.bf16 %v749_v44, %v749_v44 }
 0x170   : > { %1066 = vmatmul.mubr.msk.bf16.vlgmr.msra.gmra.mrb[4].mxu1 %vm304_vm2, %v475_v35 }
 0x171   : > { %1072 = vmatmul.mubr.msk.bf16.vlgmr.msra.gmra.mrb[8].mxu0 %vm304_vm2, %v530_v36  ;;  %1076 = vmatpush3.bf16.msra.mxu1 %v1125_v33  ;;  %v872_v33 = vpop.permute.xlu1 %871 }
 0x172   : > { %1082 = vmatpush3.bf16.msra.mxu0 %v1126_v34  ;;  %1077 = vmatprep.mubr.msk.bf16.mxu1 %vm1139_vm0, %v1138_v1 }
 0x173   : > { %1083 = vmatprep.mubr.msk.bf16.mxu0 %vm1139_vm0, %v1138_v1  ;;  %1087 = vmatprep.subr.bf16.mxu1 %v1138_v1 }
 0x174   : > { %1093 = vmatprep.subr.bf16.mxu0 %v1138_v1 }
 0x178   : > { %1078 = vmatmul.mubr.msk.bf16.vlgmr.msra.gmra.mrb[8].mxu1 %vm304_vm2, %v585_v41 }
 0x179   : > { %1084 = vmatmul.mubr.msk.bf16.vlgmr.msra.gmra.mrb[12].mxu0 %vm304_vm2, %v640_v42  ;;  %1088 = vmatpush3.bf16.msra.mxu1 %v1127_v39  ;;  %v1018_v42 = vld [vmem:[%s1210_s16 + $0xc] sm:$0x3] }
 0x17a   : > { %1094 = vmatpush3.bf16.msra.mxu0 %v1128_v40  ;;  %1089 = vmatprep.mubr.msk.bf16.mxu1 %vm1139_vm0, %v1138_v1  ;;  %v1016_v40 = vld [vmem:[%s1210_s16 + $0x8] sm:$0xc] }
 0x17b   : > { %1095 = vmatprep.mubr.msk.bf16.mxu0 %vm1139_vm0, %v1138_v1  ;;  %1099 = vmatprep.subr.bf16.mxu1 %v1138_v1 }
 0x180   : > { %1090 = vmatmul.mubr.msk.bf16.vlgmr.msra.gmra.mrb[12].mxu1 %vm304_vm2, %v695_v46 }
 0x181   : > { %1096 = vmatmul.mubr.msk.bf16.vlgmr.msra.gmra.mrb[16].mxu0 %vm304_vm2, %v750_v47  ;;  %1100 = vmatpush3.bf16.msra.mxu1 %v1129_v45 }
 0x182   : > { %1101 = vmatprep.mubr.msk.bf16.mxu1 %vm1139_vm0, %v1138_v1 }
 0x188   : > { %1102 = vmatmul.mubr.msk.bf16.vlgmr.msra.gmra.mrb[16].mxu1 %vm304_vm2, %v805_v49 }
 0x23b   : > { %v419_v50 = vpop.f32.mrb[0].mxu1 }
 0x23c   : > { %v468_v51 = vpop.f32.mrb[4].mxu0  ;;  %v1055_v53 = vpop.f32.mrb[1].mxu1 }
 0x23d   : > { %v469_v52 = vadd.f32 %v468_v51, %v419_v50  ;;  %v1061_v54 = vpop.f32.mrb[5].mxu0  ;;  %v422_v55 = vpop.f32.mrb[2].mxu1 }
 0x23e   : > { %v471_v56 = vpop.f32.mrb[6].mxu0  ;;  %v1056_v57 = vpop.f32.mrb[3].mxu1 }
 0x23f   : > { %v1062_v58 = vpop.f32.mrb[7].mxu0 }
 0x243   : > { %v522_v59 = vpop.f32.mrb[4].mxu1 }
 0x244   : > { %v577_v60 = vpop.f32.mrb[8].mxu0  ;;  %v528_v61 = vadd.f32 %v522_v59, %v469_v52  ;;  %v1067_v62 = vpop.f32.mrb[5].mxu1 }
 0x245   : > { %v1073_v63 = vpop.f32.mrb[9].mxu0  ;;  %v525_v0 = vpop.f32.mrb[6].mxu1 }
 0x246   : > { %v580_v1 = vpop.f32.mrb[10].mxu0  ;;  %v583_v2 = vadd.f32 %v577_v60, %v528_v61  ;;  %v1068_v3 = vpop.f32.mrb[7].mxu1 }
 0x247   : > { %v1074_v4 = vpop.f32.mrb[11].mxu0 }
 0x24b   : > { %v632_v5 = vpop.f32.mrb[8].mxu1 }
 0x24c   : > { %v687_v6 = vpop.f32.mrb[12].mxu0  ;;  %v638_v7 = vadd.f32 %v632_v5, %v583_v2  ;;  %v1079_v8 = vpop.f32.mrb[9].mxu1 }
 0x24d   : > { %v1085_v9 = vpop.f32.mrb[13].mxu0  ;;  %v635_v10 = vpop.f32.mrb[10].mxu1 }
 0x24e   : > { %v690_v11 = vpop.f32.mrb[14].mxu0  ;;  %v693_v12 = vadd.f32 %v687_v6, %v638_v7  ;;  %v1080_v13 = vpop.f32.mrb[11].mxu1 }
 0x24f   : > { %v1086_v14 = vpop.f32.mrb[15].mxu0 }
 0x253   : > { %v742_v15 = vpop.f32.mrb[12].mxu1 }
 0x254   : > { %v797_v16 = vpop.f32.mrb[16].mxu0  ;;  %v748_v17 = vadd.f32 %v742_v15, %v693_v12  ;;  %v1091_v18 = vpop.f32.mrb[13].mxu1 }
 0x255   : > { %v1097_v19 = vpop.f32.mrb[17].mxu0  ;;  %v745_v20 = vpop.f32.mrb[14].mxu1 }
 0x256   : > { %v800_v21 = vpop.f32.mrb[18].mxu0  ;;  %v803_v22 = vadd.f32 %v797_v16, %v748_v17  ;;  %v1092_v23 = vpop.f32.mrb[15].mxu1 }
 0x257   : > { %v1098_v24 = vpop.f32.mrb[19].mxu0 }
 0x25b   : > { %v852_v25 = vpop.f32.mrb[16].mxu1 }
 0x25c   : > { %v858_v27 = vadd.f32 %v852_v25, %v803_v22  ;;  %v1103_v28 = vpop.f32.mrb[17].mxu1 }
 0x25d   : > { %v855_v29 = vpop.f32.mrb[18].mxu1 }
 0x25e   : > { %v866_v30 = vadd.f32 %v1012_v26, %v858_v27  ;;  %v1104_v31 = vpop.f32.mrb[19].mxu1 }
 0x260   : > { %v867_v32 = vmax.f32 %v866_v30, 0.0 }
 0x262   : > { %v874_v34 = vmul.f32 %v872_v33, %v867_v32 }
 0x264   : > { %v1024_v35 = vpack.c.bf16 %v874_v34, %v874_v34 }
 0x266   : > { %v888_v36 = vshrl.u32 %v1024_v35, 16  ;;  %v891_v37 = vshll.u32 %v1024_v35, 16 }
 0x268   : > { %v890_v38 = vrot.slane %v888_v36, 5  ;;  %v893_v39 = vrot.slane %v891_v37, 6 }
 0x26a   : > { %v894_v41 = vor.u32 %v893_v39, %v890_v38 }
 0x26c   : > { %v895_v43 = vrot.slane %v894_v41, 4  ;;  %v902_v44 = vsel %vm900_vm7, %v894_v41, %v1016_v40 }
 0x26d   : > { %1017 = vst [vmem:[%s1210_s16 + $0x8] sm:$0xc] %v902_v44 }
 0x26e   : > { %v908_v45 = vsel %vm906_vm8, %v895_v43, %v1018_v42 }
 0x26f   : > { %1019 = vst [vmem:[%s1210_s16 + $0xc] sm:$0x3] %v908_v45 }
 0x270 PF: > { %s17_s24 = sadd.s32 1, %s1136_s24  }
 0x271   : > { %p14_p4 = scmp.ge.s32.totalorder %s17_s24, 4  }
 0x273   :  { %16 = sbr.rel (!%p14_p4) target bundleno = 1 (0x1), region = 87 }

// kernel: shufflenet_v2_forward.11
= control target key start
LH: loop header
LB: loop body
LE: loop exit
PB: predicated region body
PF: predicated region fallthrough
CT: control target
= control target key end

     0   :  { %s2194_s30 = smov 0   ;;  %s2432_s0 = inlined_call_operand.vmem [shape: bf16[2,2,2,16,16], index: 0, kind: input, shape index: {}]   ;;  %s2433_s1 = inlined_call_operand.vmem [shape: bf16[9,16,16], index: 1, kind: input, shape index: {}]   ;;  %s2434_s2 = inlined_call_operand.vmem [shape: f32[1,16], index: 2, kind: input, shape index: {}]   ;;  %s2435_s3 = inlined_call_operand.vmem [shape: bf16[16,16], index: 3, kind: input, shape index: {}]   ;;  %s2436_s4 = inlined_call_operand.vmem [shape: f32[1,16], index: 4, kind: input, shape index: {}]   ;;  %s2437_s5 = inlined_call_operand.vmem [shape: bf16[9,16,16], index: 5, kind: input, shape index: {}]   ;;  %s2438_s6 = inlined_call_operand.vmem [shape: f32[1,16], index: 6, kind: input, shape index: {}]   ;;  %s2439_s7 = inlined_call_operand.vmem [shape: f32[2,2,16,1], index: 7, kind: input, shape index: {}]   ;;  %s2440_s8 = inlined_call_operand.vmem [shape: f32[6,1], index: 8, kind: input, shape index: {}]   ;;  %s2441_s9 = inlined_call_operand.vmem [shape: bf16[2,2,16,16], index: 9, kind: output, shape index: {}]  }
   0x1 LB: > { %s1790_s10 = sadd.s32 4294967295, %s2139_s30   ;;  %p1794_p0 = scmp.ge.s32.totalorder %s2139_s30, 1  ;;  %s2139_s30 = sphi %s2194_s30, %s19_s30  }
   0x2   : > { %p287_p1 = scmp.lt.s32.totalorder %s2139_s30, 3 }
   0x4   : > { %p288_p2 = pnand %p1794_p0, %p287_p1 }
   0x5   : > { %v2105_v0 = vld [vmem:[%s2435_s3] sm:$0xff] (!%p288_p2)   ;;  %v2141_v1 = vmov (!%p288_p2), 0.0   ;;  %p323_p3 = scmp.lt.s32.totalorder (!%p288_p2), %s1790_s10, 1  ;;  %vm2142_vm0 = vmmov (!%p288_p2), 0   ;;  %vm356_vm1 = vcmask (!%p288_p2), 130048   ;;  %vm1681_vm2 = vcmask (!%p288_p2), 125952  }
   0x6   : > { %291 = sbr.rel (%p288_p2) target bundleno = 533 (0x215), region = 56  ;;  %1960 = vmatprep.subr.bf16.mxu0 (!%p288_p2), %v2141_v1  ;;  %1966 = vmatprep.subr.bf16.mxu1 (!%p288_p2), %v2141_v1  ;;  %v403_v2 = vld [vmem:[%s2439_s7] sm:$0xff] (!%p288_p2)  ;;  %v2143_v4 = vmov (!%p288_p2), 0   ;;  %v1807_v7 = vld [vmem:[%s2439_s7 + $0x10] sm:$0xff] (!%p288_p2)  ;;  %v404_v10 = vld [vmem:[%s2439_s7 + $0x8] sm:$0xff] (!%p288_p2)  ;;  %vm1702_vm3 = vcmask (!%p288_p2), 125954  }
   0x7   : > { %1961 = vmatpush3.bf16.msra.mxu0 (!%p288_p2), %v2105_v0  ;;  %1967 = vmatpush3.bf16.msra.mxu1 (!%p288_p2), %v2105_v0  ;;  %v1813_v3 = vld [vmem:[%s2439_s7 + $0x20] sm:$0xff] (!%p288_p2)  ;;  %v1819_v8 = vld [vmem:[%s2439_s7 + $0x30] sm:$0xff] (!%p288_p2)  ;;  %v1808_v12 = vld [vmem:[%s2439_s7 + $0x18] sm:$0xff] (!%p288_p2)  ;;  %vm1703_vm4 = vsmask.f32 (!%p288_p2), 7946  ;;  %vm1708_vm5 = vcmask (!%p288_p2), 123904  }
   0x8   : > { %1962 = vmatprep.mubr.msk.bf16.mxu0 (!%p288_p2), %vm2142_vm0, %v2141_v1  ;;  %1968 = vmatprep.mubr.msk.bf16.mxu1 (!%p288_p2), %vm2142_vm0, %v2141_v1  ;;  %v1664_v13 = vld [vmem:[%s2440_s8] sm:$0x3f] (!%p288_p2)  ;;  %v1814_v14 = vld [vmem:[%s2439_s7 + $0x28] sm:$0xff] (!%p288_p2)  ;;  %v1820_v15 = vld [vmem:[%s2439_s7 + $0x38] sm:$0xff] (!%p288_p2)  ;;  %vm1709_vm6 = vsmask.f32 (!%p288_p2), 1280 }
   0x9   : > { %1978 = vmatprep.subr.bf16.mxu1 (!%p288_p2), %v2141_v1  ;;  %1972 = vmatprep.subr.bf16.mxu0 (!%p288_p2), %v2141_v1  ;;  %v2110_v16 = vld [vmem:[%s2433_s1 + $0x8] sm:$0xff] (!%p288_p2)   ;;  %v2111_v17 = vld [vmem:[%s2433_s1] sm:$0xff] (!%p288_p2)   ;;  %vm1704_vm7 = vmand (!%p288_p2), %vm1702_vm3, %vm1703_vm4 }
   0xa   : > { %2103 = vset.pattern.permute.xlu0 (!%p288_p2), %v2143_v4  ;;  %2104 = vset.pattern.permute.xlu1 (!%p288_p2), %v2143_v4  ;;  %v2112_v20 = vld [vmem:[%s2437_s5 + $0x8] sm:$0xff] (!%p288_p2)   ;;  %v2113_v21 = vld [vmem:[%s2437_s5] sm:$0xff] (!%p288_p2)   ;;  %vm1710_vm8 = vmand (!%p288_p2), %vm1708_vm5, %vm1709_vm6 }
   0xb   : > { %407 = vperm.xlu0 (!%p288_p2), %2103, %v403_v2   ;;  %550 = vperm.xlu1 (!%p288_p2), %2104, %v1813_v3   ;;  %v1799_v25 = vld [vmem:[%s2436_s4] ss:$0 sm:$0xff] (!%p288_p2) }
   0xd   : > { %s2443_s10 = smov (!%p323_p3, %s1790_s10), 1 }
   0xe   : > { %s1912_s17 = sshll.u32 %s2443_s10, 5  ;;  %s1913_s18 = sshll.u32 %s2443_s10, 4 }
   0xf   : > { %s2222_s21 = scalar_lea.vmem %s2432_s0, %s1912_s17  ;;  %s2227_s24 = scalar_lea.vmem %s2441_s9, %s1913_s18  ;;  %478 = vperm.xlu0 %2103, %v1807_v7   ;;  %622 = vperm.xlu1 %2104, %v1819_v8  }
  0x10   : > { %v2106_v5 = vld [vmem:[%s2222_s21] sm:$0xff]   ;;  %1682 = vst.msk [vmem:[%s2227_s24] sm:$0xf] %vm1681_vm2, %v2143_v4  ;;  %1683 = vst.msk [vmem:[%s2227_s24 + $0x4] sm:$0xf] %vm1681_vm2, %v2143_v4  ;;  %v2107_v6 = vld [vmem:[%s2222_s21 + $0x8] sm:$0xff]  }
  0x11   : > { %1902 = vst.msk [vmem:[%s2227_s24 + $0x8] sm:$0xf] %vm1681_vm2, %v2143_v4  ;;  %1903 = vst.msk [vmem:[%s2227_s24 + $0xc] sm:$0xf] %vm1681_vm2, %v2143_v4  ;;  %1963 = vmatmul.mubr.msk.bf16.vlgmr.msra.gmra.mrb[0].mxu0 %vm356_vm1, %v2106_v5  ;;  %1969 = vmatmul.mubr.msk.bf16.vlgmr.msra.gmra.mrb[0].mxu1 %vm356_vm1, %v2107_v6  ;;  %v2109_v9 = vld [vmem:[%s2222_s21 + $0x10] sm:$0xff]   ;;  %v2108_v11 = vld [vmem:[%s2222_s21 + $0x18] sm:$0xff]  }
  0x12   : > { %1973 = vmatpush3.bf16.msra.mxu0 %v2105_v0  ;;  %1979 = vmatpush3.bf16.msra.mxu1 %v2105_v0  ;;  %v1821_v18 = vld [vmem:[%s2222_s21 + $0x8] sm:$0x7]  ;;  %v635_v19 = vld [vmem:[%s2222_s21] sm:$0x7]  ;;  %v2115_v4 = vld [vmem:[%s2437_s5 + $0x10] sm:$0xff]  }
  0x13   : > { %1980 = vmatprep.mubr.msk.bf16.mxu1 %vm2142_vm0, %v2141_v1  ;;  %1974 = vmatprep.mubr.msk.bf16.mxu0 %vm2142_vm0, %v2141_v1  ;;  %v2116_v57 = vld [vmem:[%s2222_s21] ss:$0 sps:$4 sm:$0xff]  }
  0x14   : > { %1984 = vmatprep.subr.bf16.mxu0 %v2141_v1  ;;  %1990 = vmatprep.subr.bf16.mxu1 %v2141_v1  ;;  %v857_v5 = vshll.u32 %v2116_v57, 16 }
  0x15   : > { %412 = vperm.xlu0 %2103, %v404_v10   ;;  %483 = vperm.xlu1 %2104, %v1808_v12  }
  0x16   : > { %v859_v12 = vrot.slane %v857_v5, 1 }
  0x19   : > { %1975 = vmatmul.mubr.msk.bf16.vlgmr.msra.gmra.mrb[4].mxu0 %vm356_vm1, %v2109_v9  ;;  %1981 = vmatmul.mubr.msk.bf16.vlgmr.msra.gmra.mrb[4].mxu1 %vm356_vm1, %v2108_v11  ;;  %v2114_v9 = vld [vmem:[%s2433_s1 + $0x10] sm:$0xff]   ;;  %v855_v11 = vshrl.u32 %v2116_v57, 16 }
  0x1a   : > { %1986 = vmatprep.mubr.msk.bf16.mxu0 %vm2142_vm0, %v2141_v1  ;;  %1992 = vmatprep.mubr.msk.bf16.mxu1 %vm2142_vm0, %v2141_v1 }
  0x1b   : > { %1667 = vperm.xlu0 %2103, %v1664_v13   ;;  %555 = vperm.xlu1 %2104, %v1814_v14   ;;  %v860_v14 = vor.u32 %v859_v12, %v855_v11 }
  0x1c   : > { %1985 = vmatpush3.bf16.msra.mxu0 %v2110_v16  ;;  %1991 = vmatpush3.bf16.msra.mxu1 %v2111_v17  ;;  %v2117_v17 = vld [vmem:[%s2433_s1 + $0x18] sm:$0xff]  }
  0x1d   : > { %1996 = vmatprep.subr.bf16.mxu0 %v2141_v1  ;;  %2002 = vmatprep.subr.bf16.mxu1 %v2141_v1 }
  0x1f   : > { %627 = vperm.xlu0 %2103, %v1820_v15   ;;  %v2118_v15 = vld [vmem:[%s2437_s5 + $0x18] sm:$0xff]  }
  0x21   : > { %1987 = vmatmul.mubr.msk.bf16.vlgmr.msra.gmra.mrb[8].mxu0 %vm356_vm1, %v1821_v18  ;;  %1993 = vmatmul.mubr.msk.bf16.vlgmr.msra.gmra.mrb[8].mxu1 %vm356_vm1, %v635_v19 }
  0x22   : > { %1998 = vmatprep.mubr.msk.bf16.mxu0 %vm2142_vm0, %v2141_v1  ;;  %2004 = vmatprep.mubr.msk.bf16.mxu1 %vm2142_vm0, %v2141_v1 }
  0x23   : > { %1997 = vmatpush3.bf16.msra.mxu0 %v2112_v20  ;;  %2003 = vmatpush3.bf16.msra.mxu1 %v2113_v21  ;;  %v2120_v20 = vld [vmem:[%s2437_s5 + $0x20] sm:$0xff]   ;;  %v1843_v21 = vld [vmem:[%s2222_s21 + $0x10] sm:$0x7] }
  0x24   : > { %2008 = vmatprep.subr.bf16.mxu0 %v2141_v1  ;;  %2014 = vmatprep.subr.bf16.mxu1 %v2141_v1 }
  0x8a   : > { %v408_v22 = vpop.permute.xlu0 %407  ;;  %v551_v23 = vpop.permute.xlu1 %550 }
  0x8e   : > { %v479_v24 = vpop.permute.xlu0 %478  ;;  %v623_v26 = vpop.permute.xlu1 %622 }
  0x94   : > { %v413_v27 = vpop.permute.xlu0 %412  ;;  %v484_v44 = vpop.permute.xlu1 %483 }
  0x9a   : > { %v2300_v48 = vpop.permute.xlu0 %1667  ;;  %v556_v62 = vpop.permute.xlu1 %555 }
  0x9e   : > { %v628_v6 = vpop.permute.xlu0 %627 }
  0xe4   : > { %v394_v28 = vpop.f32.mrb[0].mxu0  ;;  %v464_v30 = vpop.f32.mrb[0].mxu1 }
  0xe5   : > { %v395_v29 = vadd.f32 %v1799_v25, %v394_v28  ;;  %v1964_v31 = vpop.f32.mrb[1].mxu0  ;;  %v465_v32 = vadd.f32 %v1799_v25, %v464_v30  ;;  %v1970_v33 = vpop.f32.mrb[1].mxu1 }
  0xe6   : > { %v397_v34 = vpop.f32.mrb[2].mxu0  ;;  %v467_v37 = vpop.f32.mrb[2].mxu1 }
  0xe7   : > { %v401_v35 = vmax.f32 %v395_v29, 0.0  ;;  %v398_v36 = vadd.f32 %v1799_v25, %v397_v34  ;;  %v1965_v38 = vpop.f32.mrb[3].mxu0  ;;  %v471_v39 = vmax.f32 %v465_v32, 0.0  ;;  %v468_v40 = vadd.f32 %v1799_v25, %v467_v37  ;;  %v1971_v41 = vpop.f32.mrb[3].mxu1  ;;  %v2121_v29 = vld [vmem:[%s2433_s1 + $0x28] sm:$0xff]   ;;  %v2125_v34 = vld [vmem:[%s2437_s5 + $0x30] sm:$0xff]  }
  0xe8   : > { %v1303_v37 = vld [vmem:[%s2222_s21] sm:$0xc]  ;;  %v1304_v38 = vld [vmem:[%s2222_s21 + $0x4] sm:$0x1] }
  0xe9   : > { %v415_v42 = vmul.f32 %v408_v22, %v401_v35  ;;  %v402_v43 = vmax.f32 %v398_v36, 0.0  ;;  %v486_v45 = vmul.f32 %v479_v24, %v471_v39  ;;  %v472_v46 = vmax.f32 %v468_v40, 0.0  ;;  %v2119_v22 = vld [vmem:[%s2433_s1 + $0x20] sm:$0xff]   ;;  %v2124_v36 = vld [vmem:[%s2433_s1 + $0x30] sm:$0xff]  }
  0xea   : > { %v1873_v39 = vcombine.low %v1303_v37, %v1304_v38 }
  0xeb   : > { %417 = vst.msk [vmem:[#allocation2] sm:$0xff] %vm356_vm1, %v415_v42  ;;  %v416_v47 = vmul.f32 %v413_v27, %v402_v43  ;;  %489 = vst.msk [vmem:[#allocation2 + $0x10] sm:$0xff] %vm356_vm1, %v486_v45  ;;  %v487_v49 = vmul.f32 %v484_v44, %v472_v46  ;;  %v1852_v27 = vld [vmem:[%s2222_s21 + $0x18] sm:$0x7]  ;;  %v1535_v43 = vld [vmem:[%s2222_s21 + $0x4] sm:$0x3] }
  0xec   : > { %v536_v50 = vpop.f32.mrb[4].mxu0  ;;  %v608_v51 = vpop.f32.mrb[4].mxu1  ;;  %v1313_v41 = vrot.slane %v1873_v39, 2  ;;  %v2129_v42 = vld [vmem:[%s2437_s5 + $0x38] sm:$0xff]   ;;  %v1893_v46 = vcombine.low %v1303_v37, %v1535_v43 }
  0xed   : > { %418 = vst.msk [vmem:[#allocation2 + $0x8] sm:$0xff] %vm356_vm1, %v416_v47  ;;  %v537_v52 = vadd.f32 %v1799_v25, %v536_v50  ;;  %v1976_v53 = vpop.f32.mrb[5].mxu0  ;;  %490 = vst.msk [vmem:[#allocation2 + $0x18] sm:$0xff] %vm356_vm1, %v487_v49  ;;  %v609_v54 = vadd.f32 %v1799_v25, %v608_v51  ;;  %v1982_v55 = vpop.f32.mrb[5].mxu1  ;;  %v2122_v25 = vld [vmem:[%s2437_s5 + $0x28] sm:$0xff]   ;;  %v2128_v45 = vld [vmem:[%s2433_s1 + $0x38] sm:$0xff]  }
  0xee   : > { %v539_v56 = vpop.f32.mrb[6].mxu0  ;;  %v611_v58 = vpop.f32.mrb[6].mxu1  ;;  %v2130_v47 = vld [vmem:[%s2222_s21 + $0x8] sm:$0x1c]   ;;  %v2132_v51 = vld [vmem:[%s2437_s5 + $0x40] sm:$0xff]   ;;  %v1546_v53 = vshll.u32 %v1893_v46, 16 }
  0xef   : > { %v543_v59 = vmax.f32 %v537_v52, 0.0  ;;  %v1977_v60 = vpop.f32.mrb[7].mxu0  ;;  %v615_v61 = vmax.f32 %v609_v54, 0.0  ;;  %v1983_v63 = vpop.f32.mrb[7].mxu1  ;;  %v1429_v50 = vrot.slane %v2130_v47, 2  ;;  %v1543_v52 = vshrl.u32 %v1893_v46, 16 }
  0xf0   : > { %v2131_v55 = vld [vmem:[%s2433_s1 + $0x40] sm:$0xff]   ;;  %v1548_v57 = vrot.slane %v1546_v53, 3 }
  0xf1   : > { %v558_v0 = vmul.f32 %v551_v23, %v543_v59  ;;  %v630_v2 = vmul.f32 %v623_v26, %v615_v61  ;;  %v2123_v23 = vld [vmem:[%s2222_s21 + $0x10] ss:$0 sps:$4 sm:$0xff]   ;;  %v1545_v56 = vrot.slane %v1543_v52, 2 }
  0xf2   : > { %v638_v3 = vld [vmem:[#allocation2] sm:$0x3f]  ;;  %v744_v7 = vld [vmem:[#allocation2 + $0x10] sm:$0x3f]  ;;  %v1194_v26 = vshll.u32 %v2123_v23, 16  ;;  %v1192_v30 = vshrl.u32 %v2123_v23, 16 }
  0xf3   : > { %561 = vst.msk [vmem:[#allocation2 + $0x20] sm:$0xff] %vm356_vm1, %v558_v0  ;;  %v639_v8 = vpack.c.bf16 %v638_v3, %v638_v3  ;;  %633 = vst.msk [vmem:[#allocation2 + $0x30] sm:$0xff] %vm356_vm1, %v630_v2  ;;  %v745_v10 = vpack.c.bf16 %v744_v7, %v744_v7  ;;  %v911_v13 = vld [vmem:[#allocation2 + $0x1] sm:$0x3f]  ;;  %v1549_v59 = vor.u32 %v1548_v57, %v1545_v56 }
  0xf4   : > { %v912_v16 = vpack.c.bf16 %v911_v13, %v911_v13  ;;  %v1196_v31 = vrot.slane %v1194_v26, 1  ;;  %v1364_v40 = vld [vmem:[#allocation2 + $0x4] sm:$0x3f]  ;;  %v1480_v49 = vld [vmem:[#allocation2 + $0x14] sm:$0x3f]  ;;  %v689_v61 = vpop.f32.mrb[8].mxu0 }
  0xf5   : > { %2005 = vmatmul.mubr.msk.bf16.vlgmr.msra.gmra.mrb[12].mxu1 %vm356_vm1, %v639_v8  ;;  %1999 = vmatmul.mubr.msk.bf16.vlgmr.msra.gmra.mrb[12].mxu0 %vm356_vm1, %v745_v10  ;;  %v1365_v44 = vpack.c.bf16 %v1364_v40, %v1364_v40  ;;  %v1481_v54 = vpack.c.bf16 %v1480_v49, %v1480_v49  ;;  %v1600_v58 = vld [vmem:[#allocation2 + $0x5] sm:$0x3f]  ;;  %v738_v62 = vpop.f32.mrb[8].mxu1  ;;  %v1988_v0 = vpop.f32.mrb[9].mxu0 }
  0xf6   : > { %2015 = vmatpush3.bf16.msra.mxu1 %v2115_v4  ;;  %2009 = vmatpush3.bf16.msra.mxu0 %v2114_v9  ;;  %v1197_v33 = vor.u32 %v1196_v31, %v1192_v30  ;;  %v1601_v60 = vpack.c.bf16 %v1600_v58, %v1600_v58  ;;  %v739_v63 = vadd.f32 %v738_v62, %v689_v61  ;;  %v1994_v2 = vpop.f32.mrb[9].mxu1  ;;  %v692_v3 = vpop.f32.mrb[10].mxu0 }
  0xf7   : > { %2010 = vmatprep.mubr.msk.bf16.mxu0 %vm2142_vm0, %v2141_v1  ;;  %2016 = vmatprep.mubr.msk.bf16.mxu1 %vm2142_vm0, %v2141_v1  ;;  %v741_v4 = vpop.f32.mrb[10].mxu1  ;;  %v1989_v5 = vpop.f32.mrb[11].mxu0 }
  0xf8   : > { %2020 = vmatprep.subr.bf16.mxu0 %v2141_v1  ;;  %2026 = vmatprep.subr.bf16.mxu1 %v2141_v1  ;;  %v1995_v6 = vpop.f32.mrb[11].mxu1 }
  0xfa   : > { %v1020_v18 = vld [vmem:[#allocation2 + $0x20] sm:$0x3f]  ;;  %v1129_v24 = vld [vmem:[#allocation2 + $0x30] sm:$0x3f] }
  0xfb   : > { %v1021_v19 = vpack.c.bf16 %v1020_v18, %v1020_v18  ;;  %v1130_v28 = vpack.c.bf16 %v1129_v24, %v1129_v24  ;;  %v1248_v32 = vld [vmem:[#allocation2 + $0x21] sm:$0x3f] }
  0xfc   : > { %v1249_v35 = vpack.c.bf16 %v1248_v32, %v1248_v32 }
  0xfd   : > { %2017 = vmatmul.mubr.msk.bf16.vlgmr.msra.gmra.mrb[16].mxu1 %vm356_vm1, %v912_v16  ;;  %2011 = vmatmul.mubr.msk.bf16.vlgmr.msra.gmra.mrb[16].mxu0 %vm356_vm1, %v860_v14 }
  0xfe   : > { %2027 = vmatpush3.bf16.msra.mxu1 %v2118_v15  ;;  %2021 = vmatpush3.bf16.msra.mxu0 %v2117_v17 }
  0xff   : > { %2022 = vmatprep.mubr.msk.bf16.mxu0 %vm2142_vm0, %v2141_v1  ;;  %2028 = vmatprep.mubr.msk.bf16.mxu1 %vm2142_vm0, %v2141_v1 }
 0x100   : > { %2032 = vmatprep.subr.bf16.mxu0 %v2141_v1  ;;  %2038 = vmatprep.subr.bf16.mxu1 %v2141_v1 }
 0x105   : > { %2029 = vmatmul.mubr.msk.bf16.vlgmr.msra.gmra.mrb[20].mxu1 %vm356_vm1, %v1021_v19  ;;  %2023 = vmatmul.mubr.msk.bf16.vlgmr.msra.gmra.mrb[20].mxu0 %vm356_vm1, %v1843_v21 }
 0x106   : > { %2039 = vmatpush3.bf16.msra.mxu1 %v2120_v20  ;;  %2033 = vmatpush3.bf16.msra.mxu0 %v2119_v22 }
 0x107   : > { %2034 = vmatprep.mubr.msk.bf16.mxu0 %vm2142_vm0, %v2141_v1  ;;  %2040 = vmatprep.mubr.msk.bf16.mxu1 %vm2142_vm0, %v2141_v1 }
 0x108   : > { %2044 = vmatprep.subr.bf16.mxu0 %v2141_v1  ;;  %2050 = vmatprep.subr.bf16.mxu1 %v2141_v1 }
 0x10d   : > { %2041 = vmatmul.mubr.msk.bf16.vlgmr.msra.gmra.mrb[24].mxu1 %vm356_vm1, %v1130_v28  ;;  %2035 = vmatmul.mubr.msk.bf16.vlgmr.msra.gmra.mrb[24].mxu0 %vm356_vm1, %v1852_v27 }
 0x10e   : > { %2051 = vmatpush3.bf16.msra.mxu1 %v2122_v25  ;;  %2045 = vmatpush3.bf16.msra.mxu0 %v2121_v29 }
 0x10f   : > { %2046 = vmatprep.mubr.msk.bf16.mxu0 %vm2142_vm0, %v2141_v1  ;;  %2052 = vmatprep.mubr.msk.bf16.mxu1 %vm2142_vm0, %v2141_v1 }
 0x110   : > { %2056 = vmatprep.subr.bf16.mxu0 %v2141_v1  ;;  %2062 = vmatprep.subr.bf16.mxu1 %v2141_v1 }
 0x115   : > { %2053 = vmatmul.mubr.msk.bf16.vlgmr.msra.gmra.mrb[28].mxu1 %vm356_vm1, %v1249_v35  ;;  %2047 = vmatmul.mubr.msk.bf16.vlgmr.msra.gmra.mrb[28].mxu0 %vm356_vm1, %v1197_v33 }
 0x116   : > { %2063 = vmatpush3.bf16.msra.mxu1 %v2125_v34  ;;  %2057 = vmatpush3.bf16.msra.mxu0 %v2124_v36 }
 0x117   : > { %2058 = vmatprep.mubr.msk.bf16.mxu0 %vm2142_vm0, %v2141_v1  ;;  %2064 = vmatprep.mubr.msk.bf16.mxu1 %vm2142_vm0, %v2141_v1 }
 0x118   : > { %2068 = vmatprep.subr.bf16.mxu0 %v2141_v1  ;;  %2074 = vmatprep.subr.bf16.mxu1 %v2141_v1 }
 0x11d   : > { %2065 = vmatmul.mubr.msk.bf16.vlgmr.msra.gmra.mrb[32].mxu1 %vm356_vm1, %v1365_v44  ;;  %2059 = vmatmul.mubr.msk.bf16.vlgmr.msra.gmra.mrb[32].mxu0 %vm356_vm1, %v1313_v41 }
 0x11e   : > { %2075 = vmatpush3.bf16.msra.mxu1 %v2129_v42  ;;  %2069 = vmatpush3.bf16.msra.mxu0 %v2128_v45 }
 0x11f   : > { %2070 = vmatprep.mubr.msk.bf16.mxu0 %vm2142_vm0, %v2141_v1  ;;  %2076 = vmatprep.mubr.msk.bf16.mxu1 %vm2142_vm0, %v2141_v1 }
 0x120   : > { %2080 = vmatprep.subr.bf16.mxu0 %v2141_v1  ;;  %2086 = vmatprep.subr.bf16.mxu1 %v2141_v1 }
 0x125   : > { %2077 = vmatmul.mubr.msk.bf16.vlgmr.msra.gmra.mrb[36].mxu1 %vm356_vm1, %v1481_v54  ;;  %2071 = vmatmul.mubr.msk.bf16.vlgmr.msra.gmra.mrb[36].mxu0 %vm356_vm1, %v1429_v50 }
 0x126   : > { %2087 = vmatpush3.bf16.msra.mxu1 %v2132_v51  ;;  %2081 = vmatpush3.bf16.msra.mxu0 %v2131_v55 }
 0x127   : > { %2082 = vmatprep.mubr.msk.bf16.mxu0 %vm2142_vm0, %v2141_v1  ;;  %2088 = vmatprep.mubr.msk.bf16.mxu1 %vm2142_vm0, %v2141_v1 }
 0x12d   : > { %2089 = vmatmul.mubr.msk.bf16.vlgmr.msra.gmra.mrb[40].mxu1 %vm356_vm1, %v1601_v60  ;;  %2083 = vmatmul.mubr.msk.bf16.vlgmr.msra.gmra.mrb[40].mxu0 %vm356_vm1, %v1549_v59 }
 0x1c8   : > { %v841_v7 = vpop.f32.mrb[12].mxu1  ;;  %v792_v8 = vpop.f32.mrb[12].mxu0 }
 0x1c9   : > { %v2006_v9 = vpop.f32.mrb[13].mxu1  ;;  %v842_v1 = vadd.f32 %v841_v7, %v792_v8  ;;  %v2000_v10 = vpop.f32.mrb[13].mxu0 }
 0x1ca   : > { %v844_v11 = vpop.f32.mrb[14].mxu1  ;;  %v795_v12 = vpop.f32.mrb[14].mxu0 }
 0x1cb   : > { %v2007_v13 = vpop.f32.mrb[15].mxu1  ;;  %v2001_v14 = vpop.f32.mrb[15].mxu0 }
 0x1cc   : > { %v1901_v13 = vld [vmem:[%s2438_s6] ss:$0 sm:$0xff] }
 0x1d0   : > { %v959_v15 = vpop.f32.mrb[16].mxu1  ;;  %v904_v16 = vpop.f32.mrb[16].mxu0 }
 0x1d1   : > { %v965_v17 = vadd.f32 %v959_v15, %v842_v1  ;;  %v2018_v18 = vpop.f32.mrb[17].mxu1  ;;  %v910_v19 = vadd.f32 %v904_v16, %v739_v63  ;;  %v2012_v20 = vpop.f32.mrb[17].mxu0  ;;  %v1900_v15 = vld [vmem:[%s2434_s2] ss:$0 sm:$0xff] }
 0x1d2   : > { %v962_v21 = vpop.f32.mrb[18].mxu1  ;;  %v907_v22 = vpop.f32.mrb[18].mxu0 }
 0x1d3   : > { %v2019_v23 = vpop.f32.mrb[19].mxu1  ;;  %v2013_v24 = vpop.f32.mrb[19].mxu0 }
 0x1d8   : > { %v1068_v25 = vpop.f32.mrb[20].mxu1  ;;  %v1013_v26 = vpop.f32.mrb[20].mxu0 }
 0x1d9   : > { %v1074_v27 = vadd.f32 %v1068_v25, %v965_v17  ;;  %v2030_v28 = vpop.f32.mrb[21].mxu1  ;;  %v1019_v29 = vadd.f32 %v1013_v26, %v910_v19  ;;  %v2024_v30 = vpop.f32.mrb[21].mxu0 }
 0x1da   : > { %v1071_v31 = vpop.f32.mrb[22].mxu1  ;;  %v1016_v32 = vpop.f32.mrb[22].mxu0 }
 0x1db   : > { %v2031_v33 = vpop.f32.mrb[23].mxu1  ;;  %v2025_v34 = vpop.f32.mrb[23].mxu0 }
 0x1e0   : > { %v1177_v35 = vpop.f32.mrb[24].mxu1  ;;  %v1122_v36 = vpop.f32.mrb[24].mxu0 }
 0x1e1   : > { %v1183_v37 = vadd.f32 %v1177_v35, %v1074_v27  ;;  %v2042_v38 = vpop.f32.mrb[25].mxu1  ;;  %v1128_v39 = vadd.f32 %v1122_v36, %v1019_v29  ;;  %v2036_v40 = vpop.f32.mrb[25].mxu0 }
 0x1e2   : > { %v1180_v41 = vpop.f32.mrb[26].mxu1  ;;  %v1125_v42 = vpop.f32.mrb[26].mxu0  ;;  %v1705_v40 = vld [vmem:[%s2227_s24] sm:$0xc] }
 0x1e3   : > { %v2043_v43 = vpop.f32.mrb[27].mxu1  ;;  %v2037_v44 = vpop.f32.mrb[27].mxu0 }
 0x1e4   : > { %v1908_v43 = vld [vmem:[%s2227_s24 + $0xc] sm:$0x3]  ;;  %v1711_v44 = vld [vmem:[%s2227_s24 + $0x4] sm:$0x3] }
 0x1e8   : > { %v1296_v45 = vpop.f32.mrb[28].mxu1  ;;  %v1241_v46 = vpop.f32.mrb[28].mxu0 }
 0x1e9   : > { %v1302_v47 = vadd.f32 %v1296_v45, %v1183_v37  ;;  %v2054_v49 = vpop.f32.mrb[29].mxu1  ;;  %v1247_v50 = vadd.f32 %v1241_v46, %v1128_v39  ;;  %v2048_v51 = vpop.f32.mrb[29].mxu0  ;;  %v1906_v39 = vld [vmem:[%s2227_s24 + $0x8] sm:$0xc] }
 0x1ea   : > { %v1299_v52 = vpop.f32.mrb[30].mxu1  ;;  %v1244_v53 = vpop.f32.mrb[30].mxu0 }
 0x1eb   : > { %v2055_v54 = vpop.f32.mrb[31].mxu1  ;;  %v2049_v55 = vpop.f32.mrb[31].mxu0 }
 0x1f0   : > { %v1412_v56 = vpop.f32.mrb[32].mxu1  ;;  %v1357_v57 = vpop.f32.mrb[32].mxu0 }
 0x1f1   : > { %v1418_v58 = vadd.f32 %v1412_v56, %v1302_v47  ;;  %v2066_v59 = vpop.f32.mrb[33].mxu1  ;;  %v1363_v60 = vadd.f32 %v1357_v57, %v1247_v50  ;;  %v2060_v61 = vpop.f32.mrb[33].mxu0 }
 0x1f2   : > { %v1415_v62 = vpop.f32.mrb[34].mxu1  ;;  %v1360_v63 = vpop.f32.mrb[34].mxu0 }
 0x1f3   : > { %v2067_v0 = vpop.f32.mrb[35].mxu1  ;;  %v2061_v2 = vpop.f32.mrb[35].mxu0 }
 0x1f8   : > { %v1528_v3 = vpop.f32.mrb[36].mxu1  ;;  %v1473_v4 = vpop.f32.mrb[36].mxu0 }
 0x1f9   : > { %v1534_v5 = vadd.f32 %v1528_v3, %v1418_v58  ;;  %v2078_v6 = vpop.f32.mrb[37].mxu1  ;;  %v1479_v7 = vadd.f32 %v1473_v4, %v1363_v60  ;;  %v2072_v8 = vpop.f32.mrb[37].mxu0 }
 0x1fa   : > { %v1531_v9 = vpop.f32.mrb[38].mxu1  ;;  %v1476_v1 = vpop.f32.mrb[38].mxu0 }
 0x1fb   : > { %v2079_v10 = vpop.f32.mrb[39].mxu1  ;;  %v2073_v11 = vpop.f32.mrb[39].mxu0 }
 0x200   : > { %v1648_v12 = vpop.f32.mrb[40].mxu1  ;;  %v1593_v14 = vpop.f32.mrb[40].mxu0 }
 0x201   : > { %v1654_v16 = vadd.f32 %v1648_v12, %v1534_v5  ;;  %v2090_v17 = vpop.f32.mrb[41].mxu1  ;;  %v1599_v18 = vadd.f32 %v1593_v14, %v1479_v7  ;;  %v2084_v19 = vpop.f32.mrb[41].mxu0 }
 0x202   : > { %v1651_v20 = vpop.f32.mrb[42].mxu1  ;;  %v1596_v22 = vpop.f32.mrb[42].mxu0 }
 0x203   : > { %v1678_v21 = vadd.f32 %v1901_v13, %v1654_v16  ;;  %v2091_v23 = vpop.f32.mrb[43].mxu1  ;;  %v1662_v24 = vadd.f32 %v1900_v15, %v1599_v18  ;;  %v2085_v25 = vpop.f32.mrb[43].mxu0 }
 0x205   : > { %v1679_v26 = vmax.f32 %v1678_v21, 0.0  ;;  %v1663_v27 = vmax.f32 %v1662_v24, 0.0 }
 0x207   : > { %v1680_v28 = vmul.f32 %v1679_v26, %v2300_v48  ;;  %v1670_v29 = vmul.f32 %v2300_v48, %v1663_v27 }
 0x209   : > { %v1915_v30 = vpack.c.bf16 %v1680_v28, %v1680_v28  ;;  %v1914_v31 = vpack.c.bf16 %v1670_v29, %v1670_v29 }
 0x20b   : > { %v1719_v32 = vshrl.u32 %v1915_v30, 16  ;;  %v1722_v33 = vshll.u32 %v1915_v30, 16  ;;  %v1692_v34 = vshrl.u32 %v1914_v31, 16  ;;  %v1695_v35 = vshll.u32 %v1914_v31, 16 }
 0x20d   : > { %v1721_v36 = vrot.slane %v1719_v32, 5  ;;  %v1724_v37 = vrot.slane %v1722_v33, 6  ;;  %v1694_v38 = vrot.slane %v1692_v34, 5  ;;  %v1697_v48 = vrot.slane %v1695_v35, 6 }
 0x20f   : > { %v1725_v41 = vor.u32 %v1724_v37, %v1721_v36  ;;  %v1698_v42 = vor.u32 %v1697_v48, %v1694_v38 }
 0x211   : > { %v1726_v45 = vrot.slane %v1725_v41, 4  ;;  %v1730_v46 = vsel %vm1704_vm7, %v1725_v41, %v1906_v39  ;;  %v1699_v47 = vrot.slane %v1698_v42, 4  ;;  %v1706_v49 = vsel %vm1704_vm7, %v1698_v42, %v1705_v40 }
 0x212   : > { %1907 = vst [vmem:[%s2227_s24 + $0x8] sm:$0xc] %v1730_v46  ;;  %1707 = vst [vmem:[%s2227_s24] sm:$0xc] %v1706_v49 }
 0x213   : > { %v1733_v50 = vsel %vm1710_vm8, %v1726_v45, %v1908_v43  ;;  %v1712_v51 = vsel %vm1710_vm8, %v1699_v47, %v1711_v44 }
 0x214   : > { %1909 = vst [vmem:[%s2227_s24 + $0xc] sm:$0x3] %v1733_v50  ;;  %1713 = vst [vmem:[%s2227_s24 + $0x4] sm:$0x3] %v1712_v51 }
 0x215 PF: > { %s19_s30 = sadd.s32 1, %s2139_s30  }
 0x216   : > { %p16_p4 = scmp.ge.s32.totalorder %s19_s30, 4  }
 0x218   :  { %18 = sbr.rel (!%p16_p4) target bundleno = 1 (0x1), region = 112 }

// kernel: shufflenet_v2_forward.13
= control target key start
LH: loop header
LB: loop body
LE: loop exit
PB: predicated region body
PF: predicated region fallthrough
CT: control target
= control target key end

     0   :  { %s2438_s11 = smov 0   ;;  %s2749_s0 = inlined_call_operand.vmem [shape: bf16[2,2,2,9,32], index: 0, kind: input, shape index: {}]   ;;  %s2750_s1 = inlined_call_operand.vmem [shape: bf16[9,32,32], index: 1, kind: input, shape index: {}]   ;;  %s2751_s2 = inlined_call_operand.vmem [shape: f32[1,32], index: 2, kind: input, shape index: {}]   ;;  %s2752_s3 = inlined_call_operand.vmem [shape: bf16[32,32], index: 3, kind: input, shape index: {}]   ;;  %s2753_s4 = inlined_call_operand.vmem [shape: f32[1,32], index: 4, kind: input, shape index: {}]   ;;  %s2754_s5 = inlined_call_operand.vmem [shape: bf16[9,32,32], index: 5, kind: input, shape index: {}]   ;;  %s2755_s6 = inlined_call_operand.vmem [shape: f32[1,32], index: 6, kind: input, shape index: {}]   ;;  %s2756_s7 = inlined_call_operand.vmem [shape: f32[2,2,9,1], index: 7, kind: input, shape index: {}]   ;;  %s2757_s8 = inlined_call_operand.<no memory space> [shape: f32[1,1], index: 8, kind: input, shape index: {}]   ;;  %s2758_s9 = inlined_call_operand.vmem [shape: bf16[2,2,9,32], index: 9, kind: output, shape index: {}]  }
   0x1   :  { %v14_v0 = vstv %s2757_s8 }
   0x2   :  { %15 = vst [vmem:[#allocation3] sm:$0x1] %v14_v0 }
   0x3 LB: > { %s1900_s12 = sadd.s32 4294967295, %s2380_s11   ;;  %p1904_p0 = scmp.ge.s32.totalorder %s2380_s11, 1  ;;  %s2380_s11 = sphi %s2438_s11, %s21_s11  }
   0x4   : > { %p289_p1 = scmp.lt.s32.totalorder %s2380_s11, 3 }
   0x6   : > { %p290_p2 = pnand %p1904_p0, %p289_p1 }
   0x7   : > { %v2327_v1 = vld [vmem:[%s2752_s3] sm:$0xff] (!%p290_p2)   ;;  %v2382_v2 = vmov (!%p290_p2), 0.0   ;;  %v2328_v3 = vld [vmem:[%s2752_s3 + $0x8] sm:$0xff] (!%p290_p2)   ;;  %p325_p3 = scmp.lt.s32.totalorder (!%p290_p2), %s1900_s12, 1  ;;  %vm2383_vm0 = vmmov (!%p290_p2), 0   ;;  %vm366_vm1 = vcmask (!%p290_p2), 261120  }
   0x8   : > { %293 = sbr.rel (%p290_p2) target bundleno = 530 (0x212), region = 56  ;;  %2138 = vmatprep.subr.bf16.mxu0 (!%p290_p2), %v2382_v2  ;;  %2146 = vmatprep.subr.bf16.mxu1 (!%p290_p2), %v2382_v2  ;;  %v413_v4 = vld [vmem:[%s2756_s7] sm:$0xff] (!%p290_p2)  ;;  %vm1811_vm2 = vcmask (!%p290_p2), 257024   ;;  %v2384_v5 = vmov (!%p290_p2), 0   ;;  %v1918_v9 = vld [vmem:[%s2756_s7 + $0x10] sm:$0xff] (!%p290_p2)  ;;  %v2335_v20 = vld [vmem:[%s2750_s1 + $0x18] sm:$0xff] (!%p290_p2)  }
   0x9   : > { %2139 = vmatpush3.bf16.msra.mxu0 (!%p290_p2), %v2327_v1  ;;  %2147 = vmatpush3.bf16.msra.mxu1 (!%p290_p2), %v2327_v1  ;;  %v1924_v6 = vld [vmem:[%s2756_s7 + $0x20] sm:$0xff] (!%p290_p2)  ;;  %v1930_v10 = vld [vmem:[%s2756_s7 + $0x30] sm:$0xff] (!%p290_p2)  ;;  %v414_v13 = vld [vmem:[%s2756_s7 + $0x8] sm:$0x1] (!%p290_p2)  ;;  %vm428_vm3 = vcmask (!%p290_p2), 253952   ;;  %vm1830_vm6 = vcmask (!%p290_p2), 256002  }
   0xa   : > { %2140 = vmatprep.subr.bf16.mxu0 (!%p290_p2), %v2382_v2  ;;  %2148 = vmatprep.subr.bf16.mxu1 (!%p290_p2), %v2382_v2  ;;  %v1796_v12 = vld [vmem:[#allocation3] sm:$0x1] (!%p290_p2)  ;;  %v1919_v15 = vld [vmem:[%s2756_s7 + $0x18] sm:$0x1] (!%p290_p2)  ;;  %v1925_v16 = vld [vmem:[%s2756_s7 + $0x28] sm:$0x1] (!%p290_p2) }
   0xb   : > { %2142 = vmatprep.mubr.msk.bf16.mxu0 (!%p290_p2), %vm2383_vm0, %v2382_v2  ;;  %2150 = vmatprep.mubr.msk.bf16.mxu1 (!%p290_p2), %vm2383_vm0, %v2382_v2  ;;  %v1931_v17 = vld [vmem:[%s2756_s7 + $0x38] sm:$0x1] (!%p290_p2)  ;;  %v2333_v18 = vld [vmem:[%s2750_s1 + $0x10] sm:$0xff] (!%p290_p2)   ;;  %v2334_v19 = vld [vmem:[%s2750_s1] sm:$0xff] (!%p290_p2)   ;;  %vm1814_vm4 = vsmask.f32 (!%p290_p2), 256 }
   0xc   : > { %2325 = vset.pattern.permute.xlu0 (!%p290_p2), %v2384_v5  ;;  %2326 = vset.pattern.permute.xlu1 (!%p290_p2), %v2384_v5  ;;  %v2336_v21 = vld [vmem:[%s2750_s1 + $0x8] sm:$0xff] (!%p290_p2)   ;;  %v2338_v24 = vld [vmem:[%s2754_s5 + $0x10] sm:$0xff] (!%p290_p2)   ;;  %v2339_v25 = vld [vmem:[%s2754_s5] sm:$0xff] (!%p290_p2)   ;;  %vm1831_vm7 = vsmask.f32 (!%p290_p2), 2304 }
   0xd   : > { %2141 = vmatpush3.bf16.msra.mxu0 (!%p290_p2), %v2328_v3  ;;  %2149 = vmatpush3.bf16.msra.mxu1 (!%p290_p2), %v2328_v3  ;;  %vm1815_vm5 = vmand (!%p290_p2), %vm428_vm3, %vm1814_vm4  ;;  %v2340_v30 = vld [vmem:[%s2754_s5 + $0x18] sm:$0xff] (!%p290_p2)   ;;  %v2341_v31 = vld [vmem:[%s2754_s5 + $0x8] sm:$0xff] (!%p290_p2)  }
   0xe   : > { %2162 = vmatprep.subr.bf16.mxu1 (!%p290_p2), %v2382_v2  ;;  %2154 = vmatprep.subr.bf16.mxu0 (!%p290_p2), %v2382_v2  ;;  %v1909_v35 = vld [vmem:[%s2753_s4] ss:$0 sm:$0xff] (!%p290_p2)  ;;  %vm1832_vm8 = vmand (!%p290_p2), %vm1830_vm6, %vm1831_vm7 }
   0xf   : > { %s2760_s12 = smov (!%p325_p3, %s1900_s12), 1  ;;  %417 = vperm.xlu0 %2325, %v413_v4   ;;  %561 = vperm.xlu1 %2326, %v1924_v6  }
  0x10   : > { %s2068_s20 = sshll.u32 %s2760_s12, 5  ;;  %s2069_s21 = sshll.u32 %s2760_s12, 4 }
  0x11   : > { %s2469_s24 = scalar_lea.vmem %s2749_s0, %s2068_s20  ;;  %s2476_s27 = scalar_lea.vmem %s2758_s9, %s2069_s21 }
  0x12   : > { %v2329_v7 = vld [vmem:[%s2469_s24] sm:$0x1f]   ;;  %1812 = vst.msk [vmem:[%s2476_s27] sm:$0xf] %vm1811_vm2, %v2384_v5  ;;  %2059 = vst.msk [vmem:[%s2476_s27 + $0x8] sm:$0xf] %vm1811_vm2, %v2384_v5 }
  0x13   : > { %v2330_v8 = vld [vmem:[%s2469_s24 + $0x8] sm:$0x1f]   ;;  %2143 = vmatmul.mubr.msk.bf16.vlgmr.msra.gmra.mrb[0].mxu0 %vm366_vm1, %v2329_v7  ;;  %v2332_v11 = vld [vmem:[%s2469_s24 + $0x10] sm:$0x1f]   ;;  %489 = vperm.xlu0 %2325, %v1918_v9   ;;  %v2331_v14 = vld [vmem:[%s2469_s24 + $0x18] sm:$0x1f]  }
  0x14   : > { %2151 = vmatmul.mubr.msk.bf16.vlgmr.msra.gmra.mrb[0].mxu1 %vm366_vm1, %v2330_v8  ;;  %2155 = vmatpush3.bf16.msra.mxu0 %v2327_v1  ;;  %v1932_v22 = vld [vmem:[%s2469_s24 + $0x8] sm:$0x1]  ;;  %v2536_v23 = vld [vmem:[%s2469_s24] sm:$0x1]  ;;  %v1816_v26 = vld [vmem:[%s2476_s27 + $0x4] sm:$0x1] }
  0x15   : > { %2163 = vmatpush3.bf16.msra.mxu1 %v2327_v1  ;;  %2166 = vmatprep.mubr.msk.bf16.mxu1 %vm2383_vm0, %v2382_v2  ;;  %v2060_v27 = vld [vmem:[%s2476_s27 + $0xc] sm:$0x1]  ;;  %v1817_v28 = vsel %vm1815_vm5, 0, %v1816_v26  ;;  %v2343_v7 = vld [vmem:[%s2754_s5 + $0x20] sm:$0xff]   ;;  %v1968_v26 = vld [vmem:[%s2469_s24 + $0x10] sm:$0x1] }
  0x16   : > { %2164 = vmatprep.subr.bf16.mxu1 %v2382_v2  ;;  %2156 = vmatprep.subr.bf16.mxu0 %v2382_v2  ;;  %v1822_v29 = vsel %vm1815_vm5, 0, %v2060_v27  ;;  %1818 = vst [vmem:[%s2476_s27 + $0x4] sm:$0x1] %v1817_v28  ;;  %v2351_v27 = vld [vmem:[%s2750_s1 + $0x40] sm:$0xff]   ;;  %v2354_v28 = vld [vmem:[%s2754_s5 + $0x48] sm:$0xff]  }
  0x17   : > { %2158 = vmatprep.mubr.msk.bf16.mxu0 %vm2383_vm0, %v2382_v2  ;;  %633 = vperm.xlu1 %2326, %v1930_v10   ;;  %2061 = vst [vmem:[%s2476_s27 + $0xc] sm:$0x1] %v1822_v29  ;;  %v2353_v29 = vld [vmem:[%s2750_s1 + $0x48] sm:$0xff]  }
  0x18   : > { %2157 = vmatpush3.bf16.msra.mxu0 %v2328_v3  ;;  %1799 = vperm.xlu0 %2325, %v1796_v12  }
  0x19   : > { %2165 = vmatpush3.bf16.msra.mxu1 %v2328_v3  ;;  %2170 = vmatprep.subr.bf16.mxu0 %v2382_v2 }
  0x1a   : > { %2178 = vmatprep.subr.bf16.mxu1 %v2382_v2 }
  0x1b   : > { %2159 = vmatmul.mubr.msk.bf16.vlgmr.msra.gmra.mrb[4].mxu0 %vm366_vm1, %v2332_v11  ;;  %422 = vperm.xlu1 %2326, %v414_v13   ;;  %v2342_v11 = vld [vmem:[%s2750_s1 + $0x20] sm:$0xff]   ;;  %v1957_v13 = vcombine.low %v2536_v23, %v2536_v23 }
  0x1c   : > { %2167 = vmatmul.mubr.msk.bf16.vlgmr.msra.gmra.mrb[4].mxu1 %vm366_vm1, %v2331_v14  ;;  %2174 = vmatprep.mubr.msk.bf16.mxu0 %vm2383_vm0, %v2382_v2  ;;  %v2345_v14 = vld [vmem:[%s2754_s5 + $0x28] sm:$0xff]  }
  0x1d   : > { %2182 = vmatprep.mubr.msk.bf16.mxu1 %vm2383_vm0, %v2382_v2  ;;  %494 = vperm.xlu0 %2325, %v1919_v15   ;;  %v2344_v15 = vld [vmem:[%s2750_s1 + $0x28] sm:$0xff]  }
  0x1e   : > { %2171 = vmatpush3.bf16.msra.mxu0 %v2333_v18  ;;  %2179 = vmatpush3.bf16.msra.mxu1 %v2334_v19  ;;  %v2347_v18 = vld [vmem:[%s2754_s5 + $0x30] sm:$0xff]  }
  0x1f   : > { %566 = vperm.xlu1 %2326, %v1925_v16   ;;  %2172 = vmatprep.subr.bf16.mxu0 %v2382_v2 }
  0x20   : > { %2180 = vmatprep.subr.bf16.mxu1 %v2382_v2 }
  0x21   : > { %638 = vperm.xlu0 %2325, %v1931_v17   ;;  %v899_v17 = vshrl.u32 %v1957_v13, 16 }
  0x22   : > { %2173 = vmatpush3.bf16.msra.mxu0 %v2335_v20  ;;  %2181 = vmatpush3.bf16.msra.mxu1 %v2336_v21  ;;  %v2346_v20 = vld [vmem:[%s2750_s1 + $0x30] sm:$0xff]   ;;  %v2349_v21 = vld [vmem:[%s2754_s5 + $0x38] sm:$0xff]  }
  0x23   : > { %2186 = vmatprep.subr.bf16.mxu0 %v2382_v2  ;;  %2194 = vmatprep.subr.bf16.mxu1 %v2382_v2 }
  0x25   : > { %2175 = vmatmul.mubr.msk.bf16.vlgmr.msra.gmra.mrb[8].mxu0 %vm366_vm1, %v1932_v22  ;;  %2183 = vmatmul.mubr.msk.bf16.vlgmr.msra.gmra.mrb[8].mxu1 %vm366_vm1, %v2536_v23  ;;  %v2348_v23 = vld [vmem:[%s2750_s1 + $0x38] sm:$0xff]  }
  0x26   : > { %2190 = vmatprep.mubr.msk.bf16.mxu0 %vm2383_vm0, %v2382_v2  ;;  %2198 = vmatprep.mubr.msk.bf16.mxu1 %vm2383_vm0, %v2382_v2 }
  0x27   : > { %2187 = vmatpush3.bf16.msra.mxu0 %v2338_v24  ;;  %2195 = vmatpush3.bf16.msra.mxu1 %v2339_v25  ;;  %v2352_v25 = vld [vmem:[%s2754_s5 + $0x40] sm:$0xff]  }
  0x28   : > { %2188 = vmatprep.subr.bf16.mxu0 %v2382_v2  ;;  %2196 = vmatprep.subr.bf16.mxu1 %v2382_v2 }
  0x2b   : > { %2189 = vmatpush3.bf16.msra.mxu0 %v2340_v30  ;;  %2197 = vmatpush3.bf16.msra.mxu1 %v2341_v31  ;;  %v2356_v31 = vld [vmem:[%s2754_s5 + $0x50] sm:$0xff]  }
  0x2c   : > { %2202 = vmatprep.subr.bf16.mxu0 %v2382_v2  ;;  %2210 = vmatprep.subr.bf16.mxu1 %v2382_v2 }
  0x8e   : > { %v418_v32 = vpop.permute.xlu0 %417  ;;  %v562_v33 = vpop.permute.xlu1 %561 }
  0x92   : > { %v490_v34 = vpop.permute.xlu0 %489 }
  0x96   : > { %v634_v36 = vpop.permute.xlu1 %633 }
  0x97   : > { %v2568_v37 = vpop.permute.xlu0 %1799 }
  0x9a   : > { %v423_v50 = vpop.permute.xlu1 %422 }
  0x9b   : > { %v2365_v50 = vld [vmem:[%s2754_s5 + $0x70] sm:$0xff]  }
  0x9c   : > { %v495_v53 = vpop.permute.xlu0 %494 }
  0x9d   : > { %v2364_v53 = vld [vmem:[%s2750_s1 + $0x70] sm:$0xff]  }
  0x9e   : > { %v567_v1 = vpop.permute.xlu1 %566 }
  0xa0   : > { %v639_v8 = vpop.permute.xlu0 %638 }
  0xe6   : > { %v404_v38 = vpop.f32.mrb[0].mxu0 }
  0xe7   : > { %v405_v39 = vadd.f32 %v1909_v35, %v404_v38  ;;  %v475_v40 = vpop.f32.mrb[0].mxu1  ;;  %v2144_v41 = vpop.f32.mrb[1].mxu0  ;;  %v2357_v38 = vld [vmem:[%s2750_s1 + $0x58] sm:$0xff]  }
  0xe8   : > { %v476_v42 = vadd.f32 %v1909_v35, %v475_v40  ;;  %v2152_v43 = vpop.f32.mrb[1].mxu1  ;;  %v407_v44 = vpop.f32.mrb[2].mxu0  ;;  %v2360_v41 = vld [vmem:[%s2754_s5 + $0x60] sm:$0xff]  }
  0xe9   : > { %v411_v45 = vmax.f32 %v405_v39, 0.0  ;;  %v478_v46 = vpop.f32.mrb[2].mxu1  ;;  %v2145_v47 = vpop.f32.mrb[3].mxu0  ;;  %v2359_v44 = vld [vmem:[%s2750_s1 + $0x60] sm:$0xff]  }
  0xea   : > { %v482_v48 = vmax.f32 %v476_v42, 0.0  ;;  %v2153_v49 = vpop.f32.mrb[3].mxu1  ;;  %v2363_v42 = vld [vmem:[%s2469_s24] ss:$0 sps:$4 sm:$0x22]   ;;  %v2361_v47 = vld [vmem:[%s2750_s1 + $0x68] sm:$0xff]  }
  0xeb   : > { %v425_v51 = vmul.f32 %v418_v32, %v411_v45  ;;  %v1983_v32 = vld [vmem:[%s2469_s24 + $0x18] sm:$0x1]  ;;  %v2362_v45 = vld [vmem:[%s2754_s5 + $0x68] sm:$0xff]   ;;  %v1410_v46 = vshrl.u32 %v2363_v42, 16 }
  0xec   : > { %v497_v52 = vmul.f32 %v490_v34, %v482_v48  ;;  %v2355_v34 = vld [vmem:[%s2750_s1 + $0x50] sm:$0xff]  }
  0xed   : > { %427 = vst.msk [vmem:[#allocation2] sm:$0xff] %vm366_vm1, %v425_v51  ;;  %v1412_v49 = vrot.slane %v1410_v46, 1  ;;  %v2368_v51 = vld [vmem:[%s2469_s24 + $0x8] ss:$0 sps:$4 sm:$0x22]  }
  0xee   : > { %500 = vst.msk [vmem:[#allocation2 + $0x10] sm:$0xff] %vm366_vm1, %v497_v52  ;;  %v547_v54 = vpop.f32.mrb[4].mxu0 }
  0xef   : > { %v619_v55 = vpop.f32.mrb[4].mxu1  ;;  %v548_v56 = vadd.f32 %v1909_v35, %v547_v54  ;;  %v2160_v57 = vpop.f32.mrb[5].mxu0  ;;  %v2367_v54 = vld [vmem:[%s2754_s5 + $0x78] sm:$0xff]  }
  0xf0   : > { %v620_v58 = vadd.f32 %v1909_v35, %v619_v55  ;;  %v2168_v59 = vpop.f32.mrb[5].mxu1  ;;  %v550_v60 = vpop.f32.mrb[6].mxu0  ;;  %v2002_v35 = vcombine.low %v1968_v26, %v1968_v26  ;;  %v1542_v55 = vshrl.u32 %v2368_v51, 16 }
  0xf1   : > { %v622_v61 = vpop.f32.mrb[6].mxu1  ;;  %v554_v62 = vmax.f32 %v548_v56, 0.0  ;;  %v2161_v63 = vpop.f32.mrb[7].mxu0  ;;  %v2366_v56 = vld [vmem:[%s2750_s1 + $0x78] sm:$0xff]   ;;  %v2370_v59 = vld [vmem:[%s2754_s5 + $0x80] sm:$0xff]  }
  0xf2   : > { %v626_v0 = vmax.f32 %v620_v58, 0.0  ;;  %v2169_v3 = vpop.f32.mrb[7].mxu1  ;;  %v1279_v40 = vshrl.u32 %v2002_v35, 16  ;;  %v1544_v58 = vrot.slane %v1542_v55, 1  ;;  %v2369_v61 = vld [vmem:[%s2750_s1 + $0x80] sm:$0xff]  }
  0xf3   : > { %v569_v4 = vmul.f32 %v562_v33, %v554_v62  ;;  %v2372_v62 = vld [vmem:[%s2754_s5 + $0x88] sm:$0xff]   ;;  %v2373_v63 = vld [vmem:[%s2469_s24] ss:$0 sps:$4 sm:$0x44]  }
  0xf4   : > { %v641_v5 = vmul.f32 %v634_v36, %v626_v0  ;;  %v651_v6 = vld [vmem:[#allocation2] sm:$0x1]  ;;  %v957_v16 = vld [vmem:[#allocation2 + $0x1] sm:$0x1]  ;;  %v2358_v36 = vld [vmem:[%s2754_s5 + $0x58] sm:$0xff]   ;;  %v1673_v3 = vrot.slane %v2373_v63, 2 }
  0xf5   : > { %572 = vst.msk [vmem:[#allocation2 + $0x20] sm:$0xff] %vm366_vm1, %v569_v4  ;;  %v773_v9 = vld [vmem:[#allocation2 + $0x10] sm:$0x1]  ;;  %v652_v10 = vpack.c.bf16 %v651_v6, %v651_v6  ;;  %v958_v19 = vpack.c.bf16 %v957_v16, %v957_v16  ;;  %v1469_v48 = vld [vmem:[#allocation2 + $0x3] sm:$0x1]  ;;  %v2371_v0 = vld [vmem:[%s2750_s1 + $0x88] sm:$0xff]  }
  0xf6   : > { %644 = vst.msk [vmem:[#allocation2 + $0x30] sm:$0xff] %vm366_vm1, %v641_v5  ;;  %v774_v12 = vpack.c.bf16 %v773_v9, %v773_v9  ;;  %v1470_v52 = vpack.c.bf16 %v1469_v48, %v1469_v48  ;;  %v1601_v57 = vld [vmem:[#allocation2 + $0x13] sm:$0x1]  ;;  %v1730_v1 = vld [vmem:[#allocation2 + $0x4] sm:$0x1] }
  0xf7   : > { %2199 = vmatmul.mubr.msk.bf16.vlgmr.msra.gmra.mrb[12].mxu1 %vm366_vm1, %v652_v10  ;;  %v1602_v60 = vpack.c.bf16 %v1601_v57, %v1601_v57  ;;  %v1731_v4 = vpack.c.bf16 %v1730_v1, %v1730_v1 }
  0xf8   : > { %2191 = vmatmul.mubr.msk.bf16.vlgmr.msra.gmra.mrb[12].mxu0 %vm366_vm1, %v774_v12  ;;  %2211 = vmatpush3.bf16.msra.mxu1 %v2343_v7  ;;  %v712_v5 = vpop.f32.mrb[8].mxu0  ;;  %v767_v6 = vpop.f32.mrb[8].mxu1 }
  0xf9   : > { %2203 = vmatpush3.bf16.msra.mxu0 %v2342_v11  ;;  %2212 = vmatprep.subr.bf16.mxu1 %v2382_v2  ;;  %v768_v7 = vadd.f32 %v767_v6, %v712_v5  ;;  %v2176_v8 = vpop.f32.mrb[9].mxu0  ;;  %v2184_v9 = vpop.f32.mrb[9].mxu1 }
  0xfa   : > { %2204 = vmatprep.subr.bf16.mxu0 %v2382_v2  ;;  %2206 = vmatprep.mubr.msk.bf16.mxu0 %vm2383_vm0, %v2382_v2  ;;  %v715_v10 = vpop.f32.mrb[10].mxu0  ;;  %v770_v11 = vpop.f32.mrb[10].mxu1 }
  0xfb   : > { %2214 = vmatprep.mubr.msk.bf16.mxu1 %vm2383_vm0, %v2382_v2  ;;  %v2177_v12 = vpop.f32.mrb[11].mxu0  ;;  %v2185_v13 = vpop.f32.mrb[11].mxu1  ;;  %v1802_v11 = vlaneseq }
  0xfc   : > { %2213 = vmatpush3.bf16.msra.mxu1 %v2345_v14  ;;  %v1082_v22 = vld [vmem:[#allocation2 + $0x20] sm:$0x1]  ;;  %v1337_v39 = vld [vmem:[#allocation2 + $0x21] sm:$0x1] }
  0xfd   : > { %2205 = vmatpush3.bf16.msra.mxu0 %v2344_v15  ;;  %2226 = vmatprep.subr.bf16.mxu1 %v2382_v2  ;;  %v1083_v24 = vpack.c.bf16 %v1082_v22, %v1082_v22  ;;  %v1207_v30 = vld [vmem:[#allocation2 + $0x30] sm:$0x1]  ;;  %v1338_v43 = vpack.c.bf16 %v1337_v39, %v1337_v39 }
  0xfe   : > { %2218 = vmatprep.subr.bf16.mxu0 %v2382_v2  ;;  %v1208_v33 = vpack.c.bf16 %v1207_v30, %v1207_v30 }
  0xff   : > { %2215 = vmatmul.mubr.msk.bf16.vlgmr.msra.gmra.mrb[16].mxu1 %vm366_vm1, %v958_v19 }
 0x100   : > { %2207 = vmatmul.mubr.msk.bf16.vlgmr.msra.gmra.mrb[16].mxu0 %vm366_vm1, %v899_v17  ;;  %2227 = vmatpush3.bf16.msra.mxu1 %v2347_v18 }
 0x101   : > { %2219 = vmatpush3.bf16.msra.mxu0 %v2346_v20  ;;  %2228 = vmatprep.subr.bf16.mxu1 %v2382_v2 }
 0x102   : > { %2220 = vmatprep.subr.bf16.mxu0 %v2382_v2  ;;  %2222 = vmatprep.mubr.msk.bf16.mxu0 %vm2383_vm0, %v2382_v2 }
 0x103   : > { %2230 = vmatprep.mubr.msk.bf16.mxu1 %vm2383_vm0, %v2382_v2 }
 0x104   : > { %2229 = vmatpush3.bf16.msra.mxu1 %v2349_v21 }
 0x105   : > { %2221 = vmatpush3.bf16.msra.mxu0 %v2348_v23  ;;  %2242 = vmatprep.subr.bf16.mxu1 %v2382_v2 }
 0x106   : > { %2234 = vmatprep.subr.bf16.mxu0 %v2382_v2 }
 0x107   : > { %2231 = vmatmul.mubr.msk.bf16.vlgmr.msra.gmra.mrb[20].mxu1 %vm366_vm1, %v1083_v24 }
 0x108   : > { %2223 = vmatmul.mubr.msk.bf16.vlgmr.msra.gmra.mrb[20].mxu0 %vm366_vm1, %v1968_v26  ;;  %2243 = vmatpush3.bf16.msra.mxu1 %v2352_v25 }
 0x109   : > { %2235 = vmatpush3.bf16.msra.mxu0 %v2351_v27  ;;  %2244 = vmatprep.subr.bf16.mxu1 %v2382_v2 }
 0x10a   : > { %2236 = vmatprep.subr.bf16.mxu0 %v2382_v2  ;;  %2238 = vmatprep.mubr.msk.bf16.mxu0 %vm2383_vm0, %v2382_v2 }
 0x10b   : > { %2246 = vmatprep.mubr.msk.bf16.mxu1 %vm2383_vm0, %v2382_v2 }
 0x10c   : > { %2245 = vmatpush3.bf16.msra.mxu1 %v2354_v28 }
 0x10d   : > { %2237 = vmatpush3.bf16.msra.mxu0 %v2353_v29  ;;  %2258 = vmatprep.subr.bf16.mxu1 %v2382_v2 }
 0x10e   : > { %2250 = vmatprep.subr.bf16.mxu0 %v2382_v2 }
 0x10f   : > { %2247 = vmatmul.mubr.msk.bf16.vlgmr.msra.gmra.mrb[24].mxu1 %vm366_vm1, %v1208_v33 }
 0x110   : > { %2239 = vmatmul.mubr.msk.bf16.vlgmr.msra.gmra.mrb[24].mxu0 %vm366_vm1, %v1983_v32  ;;  %2259 = vmatpush3.bf16.msra.mxu1 %v2356_v31 }
 0x111   : > { %2251 = vmatpush3.bf16.msra.mxu0 %v2355_v34  ;;  %2260 = vmatprep.subr.bf16.mxu1 %v2382_v2 }
 0x112   : > { %2252 = vmatprep.subr.bf16.mxu0 %v2382_v2  ;;  %2254 = vmatprep.mubr.msk.bf16.mxu0 %vm2383_vm0, %v2382_v2 }
 0x113   : > { %2262 = vmatprep.mubr.msk.bf16.mxu1 %vm2383_vm0, %v2382_v2 }
 0x114   : > { %2261 = vmatpush3.bf16.msra.mxu1 %v2358_v36 }
 0x115   : > { %2253 = vmatpush3.bf16.msra.mxu0 %v2357_v38  ;;  %2274 = vmatprep.subr.bf16.mxu1 %v2382_v2 }
 0x116   : > { %2266 = vmatprep.subr.bf16.mxu0 %v2382_v2 }
 0x117   : > { %2263 = vmatmul.mubr.msk.bf16.vlgmr.msra.gmra.mrb[28].mxu1 %vm366_vm1, %v1338_v43 }
 0x118   : > { %2255 = vmatmul.mubr.msk.bf16.vlgmr.msra.gmra.mrb[28].mxu0 %vm366_vm1, %v1279_v40  ;;  %2275 = vmatpush3.bf16.msra.mxu1 %v2360_v41 }
 0x119   : > { %2267 = vmatpush3.bf16.msra.mxu0 %v2359_v44  ;;  %2276 = vmatprep.subr.bf16.mxu1 %v2382_v2 }
 0x11a   : > { %2268 = vmatprep.subr.bf16.mxu0 %v2382_v2  ;;  %2270 = vmatprep.mubr.msk.bf16.mxu0 %vm2383_vm0, %v2382_v2 }
 0x11b   : > { %2278 = vmatprep.mubr.msk.bf16.mxu1 %vm2383_vm0, %v2382_v2 }
 0x11c   : > { %2277 = vmatpush3.bf16.msra.mxu1 %v2362_v45 }
 0x11d   : > { %2269 = vmatpush3.bf16.msra.mxu0 %v2361_v47  ;;  %2290 = vmatprep.subr.bf16.mxu1 %v2382_v2 }
 0x11e   : > { %2282 = vmatprep.subr.bf16.mxu0 %v2382_v2 }
 0x11f   : > { %2279 = vmatmul.mubr.msk.bf16.vlgmr.msra.gmra.mrb[32].mxu1 %vm366_vm1, %v1470_v52 }
 0x120   : > { %2271 = vmatmul.mubr.msk.bf16.vlgmr.msra.gmra.mrb[32].mxu0 %vm366_vm1, %v1412_v49  ;;  %2291 = vmatpush3.bf16.msra.mxu1 %v2365_v50 }
 0x121   : > { %2283 = vmatpush3.bf16.msra.mxu0 %v2364_v53  ;;  %2292 = vmatprep.subr.bf16.mxu1 %v2382_v2 }
 0x122   : > { %2284 = vmatprep.subr.bf16.mxu0 %v2382_v2  ;;  %2286 = vmatprep.mubr.msk.bf16.mxu0 %vm2383_vm0, %v2382_v2 }
 0x123   : > { %2294 = vmatprep.mubr.msk.bf16.mxu1 %vm2383_vm0, %v2382_v2 }
 0x124   : > { %2293 = vmatpush3.bf16.msra.mxu1 %v2367_v54 }
 0x125   : > { %2285 = vmatpush3.bf16.msra.mxu0 %v2366_v56  ;;  %2306 = vmatprep.subr.bf16.mxu1 %v2382_v2 }
 0x126   : > { %2298 = vmatprep.subr.bf16.mxu0 %v2382_v2 }
 0x127   : > { %2295 = vmatmul.mubr.msk.bf16.vlgmr.msra.gmra.mrb[36].mxu1 %vm366_vm1, %v1602_v60 }
 0x128   : > { %2287 = vmatmul.mubr.msk.bf16.vlgmr.msra.gmra.mrb[36].mxu0 %vm366_vm1, %v1544_v58  ;;  %2307 = vmatpush3.bf16.msra.mxu1 %v2370_v59 }
 0x129   : > { %2299 = vmatpush3.bf16.msra.mxu0 %v2369_v61  ;;  %2308 = vmatprep.subr.bf16.mxu1 %v2382_v2 }
 0x12a   : > { %2300 = vmatprep.subr.bf16.mxu0 %v2382_v2  ;;  %2302 = vmatprep.mubr.msk.bf16.mxu0 %vm2383_vm0, %v2382_v2 }
 0x12b   : > { %2310 = vmatprep.mubr.msk.bf16.mxu1 %vm2383_vm0, %v2382_v2 }
 0x12c   : > { %2309 = vmatpush3.bf16.msra.mxu1 %v2372_v62 }
 0x12d   : > { %2301 = vmatpush3.bf16.msra.mxu0 %v2371_v0 }
 0x12f   : > { %2311 = vmatmul.mubr.msk.bf16.vlgmr.msra.gmra.mrb[40].mxu1 %vm366_vm1, %v1731_v4 }
 0x130   : > { %2303 = vmatmul.mubr.msk.bf16.vlgmr.msra.gmra.mrb[40].mxu0 %vm366_vm1, %v1673_v3 }
 0x1ca   : > { %v884_v14 = vpop.f32.mrb[12].mxu1 }
 0x1cb   : > { %v829_v15 = vpop.f32.mrb[12].mxu0  ;;  %v2200_v2 = vpop.f32.mrb[13].mxu1 }
 0x1cc   : > { %v885_v16 = vadd.f32 %v884_v14, %v829_v15  ;;  %v2192_v17 = vpop.f32.mrb[13].mxu0  ;;  %v887_v18 = vpop.f32.mrb[14].mxu1 }
 0x1cd   : > { %v832_v19 = vpop.f32.mrb[14].mxu0  ;;  %v2201_v20 = vpop.f32.mrb[15].mxu1 }
 0x1ce   : > { %v2193_v21 = vpop.f32.mrb[15].mxu0  ;;  %v1803_v20 = vshrl.u32 %v1802_v11, 7 }
 0x1d2   : > { %v1013_v22 = vpop.f32.mrb[16].mxu1 }
 0x1d3   : > { %v950_v23 = vpop.f32.mrb[16].mxu0  ;;  %v1019_v24 = vadd.f32 %v1013_v22, %v885_v16  ;;  %v2216_v25 = vpop.f32.mrb[17].mxu1  ;;  %v1807_v22 = vld [vmem:[%s2755_s6] sm:$0x1] }
 0x1d4   : > { %v956_v26 = vadd.f32 %v950_v23, %v768_v7  ;;  %v2208_v27 = vpop.f32.mrb[17].mxu0  ;;  %v1016_v28 = vpop.f32.mrb[18].mxu1  ;;  %v1804_v23 = vsub.s32 0, %v1803_v20  ;;  %v1793_v25 = vld [vmem:[%s2751_s2] sm:$0x1] }
 0x1d5   : > { %v953_v29 = vpop.f32.mrb[18].mxu0  ;;  %v2217_v30 = vpop.f32.mrb[19].mxu1 }
 0x1d6   : > { %v2209_v31 = vpop.f32.mrb[19].mxu0 }
 0x1da   : > { %v1138_v32 = vpop.f32.mrb[20].mxu1 }
 0x1db   : > { %v1075_v33 = vpop.f32.mrb[20].mxu0  ;;  %v1144_v34 = vadd.f32 %v1138_v32, %v1019_v24  ;;  %v2232_v35 = vpop.f32.mrb[21].mxu1 }
 0x1dc   : > { %v1081_v36 = vadd.f32 %v1075_v33, %v956_v26  ;;  %v2224_v38 = vpop.f32.mrb[21].mxu0  ;;  %v1141_v39 = vpop.f32.mrb[22].mxu1 }
 0x1dd   : > { %v1078_v40 = vpop.f32.mrb[22].mxu0  ;;  %v2233_v41 = vpop.f32.mrb[23].mxu1 }
 0x1de   : > { %v2225_v42 = vpop.f32.mrb[23].mxu0 }
 0x1e2   : > { %v1263_v43 = vpop.f32.mrb[24].mxu1 }
 0x1e3   : > { %v1200_v44 = vpop.f32.mrb[24].mxu0  ;;  %v1269_v45 = vadd.f32 %v1263_v43, %v1144_v34  ;;  %v2248_v46 = vpop.f32.mrb[25].mxu1 }
 0x1e4   : > { %v1206_v47 = vadd.f32 %v1200_v44, %v1081_v36  ;;  %v2240_v48 = vpop.f32.mrb[25].mxu0  ;;  %v1266_v49 = vpop.f32.mrb[26].mxu1  ;;  %v1805_v36 = vrot.slane %v2568_v37, %v1804_v23  ;;  %v2064_v44 = vld [vmem:[%s2476_s27 + $0x8] sm:$0x4] }
 0x1e5   : > { %v1203_v50 = vpop.f32.mrb[26].mxu0  ;;  %v2249_v51 = vpop.f32.mrb[27].mxu1 }
 0x1e6   : > { %v2241_v52 = vpop.f32.mrb[27].mxu0 }
 0x1ea   : > { %v1393_v53 = vpop.f32.mrb[28].mxu1 }
 0x1eb   : > { %v1330_v54 = vpop.f32.mrb[28].mxu0  ;;  %v1399_v55 = vadd.f32 %v1393_v53, %v1269_v45  ;;  %v2264_v56 = vpop.f32.mrb[29].mxu1  ;;  %v1833_v45 = vld [vmem:[%s2476_s27] sm:$0x4] }
 0x1ec   : > { %v1336_v57 = vadd.f32 %v1330_v54, %v1206_v47  ;;  %v2256_v58 = vpop.f32.mrb[29].mxu0  ;;  %v1396_v59 = vpop.f32.mrb[30].mxu1 }
 0x1ed   : > { %v1333_v60 = vpop.f32.mrb[30].mxu0  ;;  %v2265_v61 = vpop.f32.mrb[31].mxu1 }
 0x1ee   : > { %v2257_v62 = vpop.f32.mrb[31].mxu0 }
 0x1f2   : > { %v1525_v63 = vpop.f32.mrb[32].mxu1 }
 0x1f3   : > { %v1462_v0 = vpop.f32.mrb[32].mxu0  ;;  %v1531_v1 = vadd.f32 %v1525_v63, %v1399_v55  ;;  %v2280_v3 = vpop.f32.mrb[33].mxu1 }
 0x1f4   : > { %v1468_v4 = vadd.f32 %v1462_v0, %v1336_v57  ;;  %v2272_v5 = vpop.f32.mrb[33].mxu0  ;;  %v1528_v6 = vpop.f32.mrb[34].mxu1 }
 0x1f5   : > { %v1465_v7 = vpop.f32.mrb[34].mxu0  ;;  %v2281_v8 = vpop.f32.mrb[35].mxu1 }
 0x1f6   : > { %v2273_v9 = vpop.f32.mrb[35].mxu0 }
 0x1fa   : > { %v1657_v10 = vpop.f32.mrb[36].mxu1 }
 0x1fb   : > { %v1594_v12 = vpop.f32.mrb[36].mxu0  ;;  %v1663_v13 = vadd.f32 %v1657_v10, %v1531_v1  ;;  %v2296_v14 = vpop.f32.mrb[37].mxu1 }
 0x1fc   : > { %v1600_v15 = vadd.f32 %v1594_v12, %v1468_v4  ;;  %v2288_v2 = vpop.f32.mrb[37].mxu0  ;;  %v1660_v16 = vpop.f32.mrb[38].mxu1 }
 0x1fd   : > { %v1597_v17 = vpop.f32.mrb[38].mxu0  ;;  %v2297_v18 = vpop.f32.mrb[39].mxu1 }
 0x1fe   : > { %v2289_v19 = vpop.f32.mrb[39].mxu0 }
 0x202   : > { %v1786_v21 = vpop.f32.mrb[40].mxu1 }
 0x203   : > { %v1723_v24 = vpop.f32.mrb[40].mxu0  ;;  %v1792_v26 = vadd.f32 %v1786_v21, %v1663_v13  ;;  %v2312_v27 = vpop.f32.mrb[41].mxu1 }
 0x204   : > { %v1729_v28 = vadd.f32 %v1723_v24, %v1600_v15  ;;  %v2304_v29 = vpop.f32.mrb[41].mxu0  ;;  %v1789_v30 = vpop.f32.mrb[42].mxu1 }
 0x205   : > { %v1808_v31 = vadd.f32 %v1807_v22, %v1792_v26  ;;  %v1726_v32 = vpop.f32.mrb[42].mxu0  ;;  %v2313_v33 = vpop.f32.mrb[43].mxu1 }
 0x206   : > { %v1794_v34 = vadd.f32 %v1793_v25, %v1729_v28  ;;  %v2305_v35 = vpop.f32.mrb[43].mxu0 }
 0x207   : > { %v1809_v38 = vmax.f32 %v1808_v31, 0.0 }
 0x208   : > { %v1795_v39 = vmax.f32 %v1794_v34, 0.0 }
 0x209   : > { %v1810_v40 = vmul.f32 %v1809_v38, %v1805_v36 }
 0x20a   : > { %v1806_v41 = vmul.f32 %v1805_v36, %v1795_v39 }
 0x20b   : > { %v2071_v42 = vpack.c.bf16 %v1810_v40, %v1810_v40 }
 0x20c   : > { %v2070_v43 = vpack.c.bf16 %v1806_v41, %v1806_v41 }
 0x20d   : > { %v1840_v46 = vrot.slane %v2071_v42, 6 }
 0x20e   : > { %v1828_v47 = vrot.slane %v2070_v43, 6 }
 0x20f   : > { %v1843_v48 = vsel %vm1832_vm8, %v1840_v46, %v2064_v44 }
 0x210   : > { %v1834_v49 = vsel %vm1832_vm8, %v1828_v47, %v1833_v45  ;;  %2065 = vst [vmem:[%s2476_s27 + $0x8] sm:$0x4] %v1843_v48 }
 0x211   : > { %1835 = vst [vmem:[%s2476_s27] sm:$0x4] %v1834_v49 }
 0x212 PF: > { %s21_s11 = sadd.s32 1, %s2380_s11  }
 0x213   : > { %p18_p4 = scmp.ge.s32.totalorder %s21_s11, 4  }
 0x215   :  { %20 = sbr.rel (!%p18_p4) target bundleno = 3 (0x3), region = 112 }

// kernel: shufflenet_v2_forward.15
= control target key start
LH: loop header
LB: loop body
LE: loop exit
PB: predicated region body
PF: predicated region fallthrough
CT: control target
= control target key end

     0   :  { %10 = vsyncpa [#allocation3], 0  ;;  %s827_s0 = inlined_call_operand.vmem [shape: bf16[2,1,64], index: 0, kind: input, shape index: {}]   ;;  %s828_s1 = inlined_call_operand.vmem [shape: bf16[64,128], index: 1, kind: input, shape index: {}]   ;;  %s829_s2 = inlined_call_operand.vmem [shape: f32[1,128], index: 2, kind: input, shape index: {}]   ;;  %s830_s3 = inlined_call_operand.vmem [shape: bf16[128,128], index: 3, kind: input, shape index: {}]   ;;  %s831_s4 = inlined_call_operand.vmem [shape: f32[1,128], index: 4, kind: input, shape index: {}]   ;;  %s832_s5 = inlined_call_operand.hbm [shape: f32[2,1,128], index: 5, kind: output, shape index: {}]  }
   0x1   :  { %12 = vsyncpa [#allocation3 + $0x1], 0  ;;  %s685_s18 = smov 0   ;;  %s687_s19 = smov 0  }
   0x2   :  { %s689_s20 = smov 0   ;;  %s691_s21 = smov 0  }
   0x3 LB: > { %s706_s22 = sadd.s32 4294967295, %s650_s21   ;;  %s469_s23 = sadd.s32 4294967294, %s650_s21   ;;  %s650_s21 = sphi %s691_s21, %s838_s21   ;;  %s646_s20 = sphi %s689_s20, %s837_s20   ;;  %s642_s19 = sphi %s687_s19, %s836_s19   ;;  %s638_s18 = sphi %s685_s18, %s835_s18  }
   0x4   : > { %s710_s24 = sadd.s32 1, %s650_s21   ;;  %s135_s25 = sadd.s32 1, %s646_s20 }
   0x5   : > { %s132_s26 = ssub.s32 %s650_s21, %s710_s24  ;;  %p145_p0 = scmp.ne.s32.totalorder %s646_s20, %s642_s19 }
   0x6   : > { %p133_p1 = scmp.eq.s32.totalorder %s132_s26, 0  ;;  %p146_p2 = scmp.eq.s32.totalorder %s706_s22, 1 }
   0x7   : > { %p151_p3 = scmp.ne.s32.totalorder %s642_s19, %s638_s18  ;;  %p152_p4 = scmp.eq.s32.totalorder %s469_s23, 1 }
   0x8   : > { %s721_s27 = scalar_select %p133_p1, %s646_s20, %s135_s25  }
   0x9   : > { %p723_p5 = por %p146_p2, %p145_p0  ;;  %p727_p6 = por %p152_p4, %p151_p3 }
   0xa   : > { %p472_p7 = scmp.ge.s32.totalorder %s650_s21, 1  ;;  %p188_p8 = scmp.lt.s32.totalorder %s650_s21, 3 }
   0xc   : > { %p189_p9 = pnand %p472_p7, %p188_p8 }
   0xd   : > { %v576_v0 = vld [vmem:[%s828_s1] sm:$0xff] (!%p189_p9)   ;;  %v652_v1 = vmov (!%p189_p9), 0.0   ;;  %v577_v2 = vld [vmem:[%s828_s1 + $0x8] sm:$0xff] (!%p189_p9)   ;;  %vm653_vm0 = vmmov (!%p189_p9), 0   ;;  %p213_p10 = scmp.lt.s32.totalorder (!%p189_p9), %s706_s22, 1  ;;  %v578_v4 = vld [vmem:[%s828_s1 + $0x10] sm:$0xff] (!%p189_p9)  }
   0xe   : > { %192 = sbr.rel (%p189_p9) target bundleno = 476 (0x1dc), region = 40  ;;  %503 = vmatprep.subr.bf16.mxu0 (!%p189_p9), %v652_v1  ;;  %515 = vmatprep.subr.bf16.mxu1 (!%p189_p9), %v652_v1  ;;  %v580_v3 = vld [vmem:[%s830_s3] sm:$0xff] (!%p189_p9)   ;;  %v581_v5 = vld [vmem:[%s830_s3 + $0x8] sm:$0xff] (!%p189_p9)   ;;  %v579_v6 = vld [vmem:[%s828_s1 + $0x18] sm:$0xff] (!%p189_p9)   ;;  %vm251_vm1 = vcmask (!%p189_p9), 523264   ;;  %s211_s25 = sand.u32 (!%p189_p9), 1, %s642_s19  }
   0xf   : > { %504 = vmatpush3.bf16.msra.mxu0 (!%p189_p9), %v576_v0  ;;  %511 = vmatprep.mubr.msk.bf16.mxu0 (!%p189_p9), %vm653_vm0, %v652_v1  ;;  %v582_v7 = vld [vmem:[%s830_s3 + $0x10] sm:$0xff] (!%p189_p9)   ;;  %v583_v9 = vld [vmem:[%s830_s3 + $0x18] sm:$0xff] (!%p189_p9)   ;;  %v584_v10 = vld [vmem:[%s830_s3 + $0x20] sm:$0xff] (!%p189_p9)   ;;  %s212_s7 = scalar_lea.vmem (!%p189_p9), [#allocation2], %s211_s25  ;;  %s405_s12 = scalar_lea.sflag (!%p189_p9), [#allocation3], %s211_s25 }
  0x10   : > { %505 = vmatprep.subr.bf16.mxu0 (!%p189_p9), %v652_v1  ;;  %531 = vmatprep.mubr.msk.bf16.mxu1 (!%p189_p9), %vm653_vm0, %v652_v1  ;;  %v585_v11 = vld [vmem:[%s830_s3 + $0x28] sm:$0xff] (!%p189_p9)   ;;  %v586_v12 = vld [vmem:[%s830_s3 + $0x30] sm:$0xff] (!%p189_p9)   ;;  %v587_v13 = vld [vmem:[%s830_s3 + $0x38] sm:$0xff] (!%p189_p9)   ;;  %s417_s8 = sshll.u32 (!%p189_p9), %s212_s7, 4  ;;  %s654_s13 = smov (!%p189_p9), [#allocation2]   ;;  %s787_s8 = int_to_ptr.vmem [resolvable:$true] %s417_s8 }
  0x11   : > { %516 = vmatpush3.bf16.msra.mxu1 (!%p189_p9), %v580_v3  ;;  %v226_v14 = vld [vmem:[%s829_s2] sm:$0x1] (!%p189_p9)  ;;  %s592_s14 = sshll.u32 (!%p189_p9), %s654_s13, 4  ;;  %s593_s14 = int_to_ptr.vmem [resolvable:$false] %s592_s14 }
  0x12   : > { %517 = vmatprep.subr.bf16.mxu1 (!%p189_p9), %v652_v1  ;;  %v314_v22 = vld [vmem:[%s831_s4] sm:$0x1] (!%p189_p9)  ;;  %p595_p0 = scmp.lt.s32.totalorder (!%p189_p9), %s787_s8, %s593_s14 }
  0x13   : > { %506 = vmatpush3.bf16.msra.mxu0 (!%p189_p9), %v577_v2 }
  0x14   : > { %507 = vmatprep.subr.bf16.mxu0 (!%p189_p9), %v652_v1 }
  0x15   : > { %s214_s15 = scalar_select %p213_p10, %s706_s22, 1  ;;  %518 = vmatpush3.bf16.msra.mxu1 %v581_v5 }
  0x16   : > { %519 = vmatprep.subr.bf16.mxu1 %v652_v1 }
  0x17   : > { %508 = vmatpush3.bf16.msra.mxu0 %v578_v4  ;;  %s215_s6 = scalar_lea.vmem %s827_s0, %s214_s15  ;;  %s594_s15 = scalar_lea.vmem %s593_s14, 32 }
  0x18   : > { %509 = vmatprep.subr.bf16.mxu0 %v652_v1  ;;  %v217_v8 = vld [vmem:[%s215_s6] sm:$0x1]  ;;  %s486_s6 = sshll.u32 %s706_s22, 4  ;;  %s588_s22 = scalar_lea.vmem %s787_s8, 16 }
  0x19   : > { %520 = vmatpush3.bf16.msra.mxu1 %v582_v7  ;;  %s785_s11 = scalar_lea.hbm %s832_s5, %s486_s6  ;;  %p589_p11 = scmp.ne.s32.totalorder %s787_s8, %s588_s22 }
  0x1a   : > { %521 = vmatprep.subr.bf16.mxu1 %v652_v1  ;;  %p596_p1 = scmp.lt.s32.totalorder %s594_s15, %s588_s22 }
  0x1b   : > { %510 = vmatpush3.bf16.msra.mxu0 %v579_v6  ;;  %p590_p12 = pnand %p589_p11, %p723_p5 }
  0x1c   : > { %p597_p2 = por %p596_p1, %p595_p0 }
  0x1d   : > { %522 = vmatpush3.bf16.msra.mxu1 %v583_v9  ;;  %p591_p13 = pneg %p590_p12 }
  0x1e   : > { %512 = vmatmul.mubr.msk.bf16.vlgmr.msra.gmra.mrb[0].mxu0 %vm251_vm1, %v217_v8  ;;  %523 = vmatprep.subr.bf16.mxu1 %v652_v1 }
  0x1f   : > { %p598_p3 = pnand %p597_p2, %p591_p13 }
  0x21   : > { %524 = vmatpush3.bf16.msra.mxu1 %v584_v10 }
  0x22   : > { %525 = vmatprep.subr.bf16.mxu1 %v652_v1 }
  0x25   : > { %526 = vmatpush3.bf16.msra.mxu1 %v585_v11 }
  0x26   : > { %527 = vmatprep.subr.bf16.mxu1 %v652_v1 }
  0x29   : > { %528 = vmatpush3.bf16.msra.mxu1 %v586_v12 }
  0x2a   : > { %529 = vmatprep.subr.bf16.mxu1 %v652_v1 }
  0x2d   : > { %530 = vmatpush3.bf16.msra.mxu1 %v587_v13 }
  0xf1   : > { %v289_v15 = vpop.f32.mrb[0].mxu0 }
  0xf2   : > { %v290_v16 = vadd.f32 %v289_v15, %v226_v14  ;;  %v513_v17 = vpop.f32.mrb[1].mxu0 }
  0xf3   : > { %v292_v18 = vpop.f32.mrb[2].mxu0 }
  0xf4   : > { %v295_v19 = vmax.f32 %v290_v16, 0.0  ;;  %v514_v20 = vpop.f32.mrb[3].mxu0 }
  0xf6   : > { %v297_v21 = vpack.c.bf16 %v295_v19, %v295_v19 }
  0xf8   : > { %532 = vmatmul.mubr.bf16.vlgmr.msra.gmra.mrb[0].mxu1 %v297_v21 }
 0x1cb   : > { %v397_v23 = vpop.f32.mrb[0].mxu1 }
 0x1cc   : > { %v398_v24 = vadd.f32 %v397_v23, %v314_v22  ;;  %v533_v25 = vpop.f32.mrb[1].mxu1 }
 0x1cd   : > { %v400_v26 = vpop.f32.mrb[2].mxu1 }
 0x1ce   : > { %403 = vst [vmem:[%s212_s7] sm:$0x1] %v398_v24  ;;  %v534_v27 = vpop.f32.mrb[3].mxu1 }
 0x1cf   : > { %601 = shalt.err (!%p598_p3)
}
 0x1d0   : > { %s602_s16 = scalar_lea.hbm %s785_s11, 16  ;;  %s606_s25 = scalar_lea.hbm %s832_s5, 32 }
 0x1d1   : > { %p603_p4 = scmp.ne.s32.totalorder %s785_s11, %s602_s16  ;;  %p607_p9 = scmp.lt.u32.totalorder %s785_s11, %s832_s5 }
 0x1d2   : > { %p608_p10 = scmp.lt.u32.totalorder %s606_s25, %s602_s16  ;;  %p610_p12 = scmp.lt.u32.totalorder %s602_s16, %s785_s11 }
 0x1d3   : > { %p604_p7 = pnand %p603_p4, %p723_p5 }
 0x1d4   : > { %p609_p11 = por %p608_p10, %p607_p9 }
 0x1d5   : > { %p605_p8 = pneg %p604_p7 }
 0x1d6   : > { %p611_p13 = por %p610_p12, %p609_p11 }
 0x1d8   : > { %p612_p0 = pnand %p611_p13, %p605_p8 }
 0x1da   : > { %615 = shalt.err (!%p612_p0)
}
 0x1db   : > { %535 = dma.vmem_to_hbm [thread:$0]  (%p723_p5), %s787_s8, 16, %s785_s11, %s405_s12  }
 0x1dc PF: > { %p541_p1 = scmp.ge.s32.totalorder %s650_s21, 2  ;;  %s429_s6 = sand.u32 1, %s638_s18  }
 0x1dd   : > { %s430_s7 = scalar_lea.sflag [#allocation3], %s429_s6 }
 0x1de   : > { %p538_p2 = pnand %p541_p1, %p727_p6 }
 0x1e0   : > { %633 = dma.done.wait (!%p538_p2), %s430_s7, 16  }
 0x1e1   : > { %635 = vsyncadd (!%p538_p2), %s430_s7, 4294967280  ;;  %p15_p3 = scmp.ge.s32.totalorder %s710_s24, 4   ;;  %s835_s18 = smov %s642_s19 }
 0x1e2   : > { %s836_s19 = smov %s646_s20  ;;  %s837_s20 = smov %s721_s27 }
 0x1e3   : > { %s838_s21 = smov %s710_s24  ;;  %17 = sbr.rel (!%p15_p3) target bundleno = 3 (0x3), region = 75 }
 0x1ea   :  { %434 = vsyncpa [#allocation3], 1 }
 0x1eb   :  { %436 = vsyncpa [#allocation3 + $0x1], 1 }

// kernel: shufflenet_v2_forward.14
= control target key start
LH: loop header
LB: loop body
LE: loop exit
PB: predicated region body
PF: predicated region fallthrough
CT: control target
= control target key end

     0   :  { %s1322_s26 = smov 0   ;;  %s1476_s0 = inlined_call_operand.vmem [shape: bf16[2,9,64], index: 0, kind: input, shape index: {}]   ;;  %s1477_s1 = inlined_call_operand.vmem [shape: bf16[32,32], index: 1, kind: input, shape index: {}]   ;;  %s1478_s2 = inlined_call_operand.vmem [shape: f32[1,32], index: 2, kind: input, shape index: {}]   ;;  %s1479_s3 = inlined_call_operand.vmem [shape: bf16[9,32,32], index: 3, kind: input, shape index: {}]   ;;  %s1480_s4 = inlined_call_operand.vmem [shape: f32[1,32], index: 4, kind: input, shape index: {}]   ;;  %s1481_s5 = inlined_call_operand.vmem [shape: f32[9,1], index: 5, kind: input, shape index: {}]   ;;  %s1482_s6 = inlined_call_operand.<no memory space> [shape: f32[1,1], index: 6, kind: input, shape index: {}]   ;;  %s1483_s7 = inlined_call_operand.vmem [shape: bf16[2,2,9,32], index: 7, kind: output, shape index: {}]  }
   0x1   :  { %v12_v0 = vstv %s1482_s6 }
   0x2   :  { %13 = vst [vmem:[#allocation3] sm:$0x1] %v12_v0 }
   0x3 LB: > { %s1038_s27 = sadd.s32 4294967295, %s1273_s26   ;;  %p1042_p0 = scmp.ge.s32.totalorder %s1273_s26, 1  ;;  %s1273_s26 = sphi %s1322_s26, %s19_s26  }
   0x4   : > { %p239_p1 = scmp.lt.s32.totalorder %s1273_s26, 3 }
   0x6   : > { %p240_p2 = pnand %p1042_p0, %p239_p1 }
   0x7   : > { %p271_p3 = scmp.lt.s32.totalorder (!%p240_p2), %s1038_s27, 1  ;;  %v1247_v1 = vld [vmem:[%s1477_s1] sm:$0xff] (!%p240_p2)   ;;  %v1275_v2 = vmov (!%p240_p2), 0.0   ;;  %v1248_v3 = vld [vmem:[%s1477_s1 + $0x8] sm:$0xff] (!%p240_p2)   ;;  %vm1276_vm0 = vmmov (!%p240_p2), 0   ;;  %vm958_vm1 = vcmask (!%p240_p2), 257024  }
   0x8   : > { %243 = sbr.rel (%p240_p2) target bundleno = 620 (0x26c), region = 48  ;;  %1152 = vmatprep.subr.bf16.mxu0 (!%p240_p2), %v1275_v2  ;;  %1160 = vmatprep.subr.bf16.mxu1 (!%p240_p2), %v1275_v2  ;;  %v362_v4 = vld [vmem:[%s1481_s5 + $0x8] sm:$0x1] (!%p240_p2)  ;;  %v1277_v5 = vmov (!%p240_p2), 0   ;;  %v361_v9 = vld [vmem:[%s1481_s5] sm:$0xff] (!%p240_p2)  ;;  %s1278_s20 = smov (!%p240_p2), 96  }
   0x9   : > { %1153 = vmatpush3.bf16.msra.mxu0 (!%p240_p2), %v1247_v1  ;;  %1156 = vmatprep.mubr.msk.bf16.mxu0 (!%p240_p2), %vm1276_vm0, %v1275_v2  ;;  %v945_v6 = vld [vmem:[#allocation3] sm:$0x1] (!%p240_p2)  ;;  %vm314_vm2 = vcmask (!%p240_p2), 261120   ;;  %vm376_vm3 = vcmask (!%p240_p2), 253952   ;;  %vm961_vm4 = vsmask.f32 (!%p240_p2), 256 }
   0xa   : > { %1154 = vmatprep.subr.bf16.mxu0 (!%p240_p2), %v1275_v2  ;;  %1244 = vset.pattern.permute.xlu0 (!%p240_p2), %v1277_v5  ;;  %vm962_vm5 = vmand (!%p240_p2), %vm376_vm3, %vm961_vm4  ;;  %v1249_v11 = vld [vmem:[%s1479_s3 + $0x10] sm:$0xff] (!%p240_p2)   ;;  %v1250_v12 = vld [vmem:[%s1479_s3] sm:$0xff] (!%p240_p2)   ;;  %vm977_vm6 = vcmask (!%p240_p2), 256002   ;;  %vm978_vm7 = vsmask.f32 (!%p240_p2), 2304 }
   0xb   : > { %1245 = vset.pattern.permute.xlu1 (!%p240_p2), %v1277_v5  ;;  %1164 = vmatprep.mubr.msk.bf16.mxu1 (!%p240_p2), %vm1276_vm0, %v1275_v2  ;;  %v1251_v18 = vld [vmem:[%s1479_s3 + $0x18] sm:$0xff] (!%p240_p2)   ;;  %v1252_v19 = vld [vmem:[%s1479_s3 + $0x8] sm:$0xff] (!%p240_p2)   ;;  %v1047_v20 = vld [vmem:[%s1478_s2] ss:$0 sm:$0xff] (!%p240_p2) }
   0xc   : > { %370 = vperm.xlu1 (!%p240_p2), %1245, %v362_v4   ;;  %1161 = vmatpush3.bf16.msra.mxu1 (!%p240_p2), %v1249_v11  ;;  %v1253_v33 = vld [vmem:[%s1479_s3 + $0x20] sm:$0xff] (!%p240_p2)   ;;  %v1254_v36 = vld [vmem:[%s1479_s3 + $0x30] sm:$0xff] (!%p240_p2)   ;;  %v1255_v39 = vld [vmem:[%s1479_s3 + $0x28] sm:$0xff] (!%p240_p2)  }
   0xd   : > { %1155 = vmatpush3.bf16.msra.mxu0 (!%p240_p2), %v1248_v3  ;;  %1162 = vmatprep.subr.bf16.mxu1 (!%p240_p2), %v1275_v2  ;;  %v1256_v40 = vld [vmem:[%s1479_s3 + $0x38] sm:$0xff] (!%p240_p2)   ;;  %v1257_v43 = vld [vmem:[%s1479_s3 + $0x40] sm:$0xff] (!%p240_p2)   ;;  %v1258_v44 = vld [vmem:[%s1479_s3 + $0x50] sm:$0xff] (!%p240_p2)  }
   0xe   : > { %1168 = vmatprep.subr.bf16.mxu0 (!%p240_p2), %v1275_v2  ;;  %v1259_v47 = vld [vmem:[%s1479_s3 + $0x48] sm:$0xff] (!%p240_p2)   ;;  %v1260_v48 = vld [vmem:[%s1479_s3 + $0x58] sm:$0xff] (!%p240_p2)   ;;  %v1261_v51 = vld [vmem:[%s1479_s3 + $0x60] sm:$0xff] (!%p240_p2)  }
   0xf   : > { %s1485_s27 = smov (!%p271_p3, %s1038_s27), 1  ;;  %v1262_v52 = vld [vmem:[%s1479_s3 + $0x70] sm:$0xff]   ;;  %v1263_v55 = vld [vmem:[%s1479_s3 + $0x68] sm:$0xff]   ;;  %v1264_v56 = vld [vmem:[%s1479_s3 + $0x78] sm:$0xff]  }
  0x10   : > { %s1119_s10 = sshll.u32 %s1485_s27, 3  ;;  %s1120_s11 = sshll.u32 %s1485_s27, 4  ;;  %948 = vperm.xlu1 %1245, %v945_v6   ;;  %1163 = vmatpush3.bf16.msra.mxu1 %v1251_v18  ;;  %v1265_v59 = vld [vmem:[%s1479_s3 + $0x80] sm:$0xff]   ;;  %v1266_v62 = vld [vmem:[%s1479_s3 + $0x88] sm:$0xff]   ;;  %vm979_vm8 = vmand %vm977_vm6, %vm978_vm7 }
  0x11   : > { %s275_s14 = scalar_lea.vmem %s1476_s0, %s1119_s10  ;;  %s1350_s17 = scalar_lea.vmem %s1483_s7, %s1120_s11  ;;  %1176 = vmatprep.subr.bf16.mxu1 %v1275_v2 }
  0x12   : > { %v1246_v7 = vld [vmem:[%s275_s14] sm:$0x1f]   ;;  %1111 = vst.msk [vmem:[%s1350_s17 + $0x8] sm:$0xf] %vm958_vm1, %v1277_v5  ;;  %v1112_v15 = vld [vmem:[%s1350_s17 + $0xc] sm:$0x1] }
  0x13   : > { %v956_v8 = vld [vmem:[%s275_s14] sm:$0xf]  ;;  %300 = vrot.lane.b32.xlu0 %v1246_v7, %s1278_s20  ;;  %v957_v13 = vld [vmem:[%s275_s14 + $0x4] sm:$0x1]  ;;  %v969_v17 = vsel %vm962_vm5, 0, %v1112_v15 }
  0x14   : > { %959 = vst.msk [vmem:[%s1350_s17] sm:$0xf] %vm958_vm1, %v956_v8  ;;  %v963_v14 = vld [vmem:[%s1350_s17 + $0x4] sm:$0x1]  ;;  %1113 = vst [vmem:[%s1350_s17 + $0xc] sm:$0x1] %v969_v17 }
  0x15   : > { %v964_v16 = vsel %vm962_vm5, %v957_v13, %v963_v14 }
  0x16   : > { %965 = vst [vmem:[%s1350_s17 + $0x4] sm:$0x1] %v964_v16 }
  0x17   : > { %365 = vperm.xlu0 %1244, %v361_v9  }
  0x85   : > { %v301_v10 = vpop.permute.xlu0 %300 }
  0x86   : > { %1157 = vmatmul.mubr.msk.bf16.vlgmr.msra.gmra.mrb[0].mxu0 %vm314_vm2, %v301_v10 }
  0x87   : > { %1172 = vmatprep.mubr.msk.bf16.mxu0 %vm1276_vm0, %v1275_v2  ;;  %1169 = vmatpush3.bf16.msra.mxu0 %v1250_v12 }
  0x88   : > { %1170 = vmatprep.subr.bf16.mxu0 %v1275_v2 }
  0x8b   : > { %1171 = vmatpush3.bf16.msra.mxu0 %v1252_v19  ;;  %v371_v29 = vpop.permute.xlu1 %370 }
  0x8c   : > { %1184 = vmatprep.subr.bf16.mxu0 %v1275_v2 }
  0x96   : > { %v366_v25 = vpop.permute.xlu0 %365 }
 0x159   : > { %v352_v21 = vpop.f32.mrb[0].mxu0 }
 0x15a   : > { %v353_v22 = vadd.f32 %v1047_v20, %v352_v21  ;;  %v1158_v23 = vpop.f32.mrb[1].mxu0 }
 0x15b   : > { %v355_v24 = vpop.f32.mrb[2].mxu0 }
 0x15c   : > { %v359_v26 = vmax.f32 %v353_v22, 0.0  ;;  %v356_v27 = vadd.f32 %v1047_v20, %v355_v24  ;;  %v1159_v28 = vpop.f32.mrb[3].mxu0 }
 0x15e   : > { %v360_v30 = vmax.f32 %v356_v27, 0.0  ;;  %v373_v31 = vmul.f32 %v366_v25, %v359_v26 }
 0x160   : > { %375 = vst.msk [vmem:[#allocation2] sm:$0xff] %vm314_vm2, %v373_v31  ;;  %v374_v32 = vmul.f32 %v371_v29, %v360_v30 }
 0x162   : > { %377 = vst.msk [vmem:[#allocation2 + $0x8] sm:$0x1] %vm376_vm3, %v374_v32  ;;  %v951_v32 = vlaneseq }
 0x167   : > { %v384_v34 = vld [vmem:[#allocation2 + $0x1] sm:$0x1]  ;;  %v378_v35 = vld [vmem:[#allocation2] sm:$0x1]  ;;  %v501_v41 = vld [vmem:[#allocation2 + $0x2] sm:$0x1] }
 0x168   : > { %v385_v37 = vpack.c.bf16 %v384_v34, %v384_v34  ;;  %v379_v38 = vpack.c.bf16 %v378_v35, %v378_v35  ;;  %v564_v42 = vld [vmem:[#allocation2 + $0x3] sm:$0x1]  ;;  %v502_v45 = vpack.c.bf16 %v501_v41, %v501_v41  ;;  %v627_v49 = vld [vmem:[#allocation2 + $0x4] sm:$0x1]  ;;  %v690_v50 = vld [vmem:[#allocation2 + $0x5] sm:$0x1] }
 0x169   : > { %v565_v46 = vpack.c.bf16 %v564_v42, %v564_v42  ;;  %v628_v53 = vpack.c.bf16 %v627_v49, %v627_v49  ;;  %v691_v54 = vpack.c.bf16 %v690_v50, %v690_v50  ;;  %v753_v57 = vld [vmem:[#allocation2 + $0x6] sm:$0x1]  ;;  %v816_v58 = vld [vmem:[#allocation2 + $0x7] sm:$0x1]  ;;  %v879_v63 = vld [vmem:[#allocation2 + $0x8] sm:$0x1] }
 0x16a   : > { %1165 = vmatmul.mubr.msk.bf16.vlgmr.msra.gmra.mrb[0].mxu1 %vm314_vm2, %v385_v37  ;;  %1173 = vmatmul.mubr.msk.bf16.vlgmr.msra.gmra.mrb[4].mxu0 %vm314_vm2, %v379_v38  ;;  %v754_v60 = vpack.c.bf16 %v753_v57, %v753_v57  ;;  %v817_v61 = vpack.c.bf16 %v816_v58, %v816_v58  ;;  %v880_v0 = vpack.c.bf16 %v879_v63, %v879_v63  ;;  %v952_v41 = vshrl.u32 %v951_v32, 7 }
 0x16b   : > { %1177 = vmatpush3.bf16.msra.mxu1 %v1253_v33  ;;  %1185 = vmatpush3.bf16.msra.mxu0 %v1254_v36 }
 0x16c   : > { %1178 = vmatprep.subr.bf16.mxu1 %v1275_v2  ;;  %1186 = vmatprep.subr.bf16.mxu0 %v1275_v2 }
 0x16d   : > { %1180 = vmatprep.mubr.msk.bf16.mxu1 %vm1276_vm0, %v1275_v2  ;;  %1188 = vmatprep.mubr.msk.bf16.mxu0 %vm1276_vm0, %v1275_v2 }
 0x16f   : > { %1179 = vmatpush3.bf16.msra.mxu1 %v1255_v39  ;;  %1187 = vmatpush3.bf16.msra.mxu0 %v1256_v40 }
 0x170   : > { %1192 = vmatprep.subr.bf16.mxu1 %v1275_v2  ;;  %1200 = vmatprep.subr.bf16.mxu0 %v1275_v2 }
 0x172   : > { %1181 = vmatmul.mubr.msk.bf16.vlgmr.msra.gmra.mrb[4].mxu1 %vm314_vm2, %v502_v45  ;;  %1189 = vmatmul.mubr.msk.bf16.vlgmr.msra.gmra.mrb[8].mxu0 %vm314_vm2, %v565_v46 }
 0x173   : > { %1193 = vmatpush3.bf16.msra.mxu1 %v1257_v43  ;;  %1201 = vmatpush3.bf16.msra.mxu0 %v1258_v44  ;;  %v942_v43 = vld [vmem:[%s1480_s4] sm:$0x1]  ;;  %v953_v44 = vsub.s32 0, %v952_v41 }
 0x174   : > { %1194 = vmatprep.subr.bf16.mxu1 %v1275_v2  ;;  %1202 = vmatprep.subr.bf16.mxu0 %v1275_v2 }
 0x175   : > { %1196 = vmatprep.mubr.msk.bf16.mxu1 %vm1276_vm0, %v1275_v2  ;;  %1204 = vmatprep.mubr.msk.bf16.mxu0 %vm1276_vm0, %v1275_v2 }
 0x177   : > { %1195 = vmatpush3.bf16.msra.mxu1 %v1259_v47  ;;  %1203 = vmatpush3.bf16.msra.mxu0 %v1260_v48  ;;  %v949_v47 = vpop.permute.xlu1 %948 }
 0x178   : > { %1208 = vmatprep.subr.bf16.mxu1 %v1275_v2  ;;  %1216 = vmatprep.subr.bf16.mxu0 %v1275_v2 }
 0x17a   : > { %1197 = vmatmul.mubr.msk.bf16.vlgmr.msra.gmra.mrb[8].mxu1 %vm314_vm2, %v628_v53  ;;  %1205 = vmatmul.mubr.msk.bf16.vlgmr.msra.gmra.mrb[12].mxu0 %vm314_vm2, %v691_v54 }
 0x17b   : > { %1209 = vmatpush3.bf16.msra.mxu1 %v1261_v51  ;;  %1217 = vmatpush3.bf16.msra.mxu0 %v1262_v52  ;;  %v954_v51 = vrot.slane %v949_v47, %v953_v44 }
 0x17c   : > { %1210 = vmatprep.subr.bf16.mxu1 %v1275_v2  ;;  %1218 = vmatprep.subr.bf16.mxu0 %v1275_v2 }
 0x17d   : > { %1212 = vmatprep.mubr.msk.bf16.mxu1 %vm1276_vm0, %v1275_v2  ;;  %1220 = vmatprep.mubr.msk.bf16.mxu0 %vm1276_vm0, %v1275_v2 }
 0x17f   : > { %1211 = vmatpush3.bf16.msra.mxu1 %v1263_v55  ;;  %1219 = vmatpush3.bf16.msra.mxu0 %v1264_v56  ;;  %v1115_v55 = vld [vmem:[%s1350_s17 + $0x8] sm:$0x4] }
 0x180   : > { %1224 = vmatprep.subr.bf16.mxu1 %v1275_v2 }
 0x182   : > { %1213 = vmatmul.mubr.msk.bf16.vlgmr.msra.gmra.mrb[12].mxu1 %vm314_vm2, %v754_v60  ;;  %1221 = vmatmul.mubr.msk.bf16.vlgmr.msra.gmra.mrb[16].mxu0 %vm314_vm2, %v817_v61 }
 0x183   : > { %1225 = vmatpush3.bf16.msra.mxu1 %v1265_v59  ;;  %1228 = vmatprep.mubr.msk.bf16.mxu1 %vm1276_vm0, %v1275_v2 }
 0x184   : > { %1226 = vmatprep.subr.bf16.mxu1 %v1275_v2 }
 0x187   : > { %1227 = vmatpush3.bf16.msra.mxu1 %v1266_v62 }
 0x18a   : > { %1229 = vmatmul.mubr.msk.bf16.vlgmr.msra.gmra.mrb[16].mxu1 %vm314_vm2, %v880_v0 }
 0x23d   : > { %v440_v1 = vpop.f32.mrb[0].mxu1  ;;  %v495_v3 = vpop.f32.mrb[4].mxu0 }
 0x23e   : > { %v496_v4 = vadd.f32 %v495_v3, %v440_v1  ;;  %v1166_v5 = vpop.f32.mrb[1].mxu1  ;;  %v1174_v6 = vpop.f32.mrb[5].mxu0 }
 0x23f   : > { %v443_v7 = vpop.f32.mrb[2].mxu1  ;;  %v498_v8 = vpop.f32.mrb[6].mxu0 }
 0x240   : > { %v1167_v9 = vpop.f32.mrb[3].mxu1  ;;  %v1175_v10 = vpop.f32.mrb[7].mxu0 }
 0x245   : > { %v557_v11 = vpop.f32.mrb[4].mxu1  ;;  %v620_v12 = vpop.f32.mrb[8].mxu0 }
 0x246   : > { %v563_v13 = vadd.f32 %v557_v11, %v496_v4  ;;  %v1182_v14 = vpop.f32.mrb[5].mxu1  ;;  %v1190_v15 = vpop.f32.mrb[9].mxu0 }
 0x247   : > { %v560_v2 = vpop.f32.mrb[6].mxu1  ;;  %v623_v16 = vpop.f32.mrb[10].mxu0 }
 0x248   : > { %v626_v17 = vadd.f32 %v620_v12, %v563_v13  ;;  %v1183_v18 = vpop.f32.mrb[7].mxu1  ;;  %v1191_v19 = vpop.f32.mrb[11].mxu0 }
 0x24d   : > { %v683_v20 = vpop.f32.mrb[8].mxu1  ;;  %v746_v21 = vpop.f32.mrb[12].mxu0 }
 0x24e   : > { %v689_v22 = vadd.f32 %v683_v20, %v626_v17  ;;  %v1198_v23 = vpop.f32.mrb[9].mxu1  ;;  %v1206_v24 = vpop.f32.mrb[13].mxu0 }
 0x24f   : > { %v686_v25 = vpop.f32.mrb[10].mxu1  ;;  %v749_v26 = vpop.f32.mrb[14].mxu0 }
 0x250   : > { %v752_v27 = vadd.f32 %v746_v21, %v689_v22  ;;  %v1199_v28 = vpop.f32.mrb[11].mxu1  ;;  %v1207_v29 = vpop.f32.mrb[15].mxu0 }
 0x255   : > { %v809_v30 = vpop.f32.mrb[12].mxu1  ;;  %v872_v31 = vpop.f32.mrb[16].mxu0 }
 0x256   : > { %v815_v33 = vadd.f32 %v809_v30, %v752_v27  ;;  %v1214_v34 = vpop.f32.mrb[13].mxu1  ;;  %v1222_v35 = vpop.f32.mrb[17].mxu0 }
 0x257   : > { %v812_v36 = vpop.f32.mrb[14].mxu1  ;;  %v875_v37 = vpop.f32.mrb[18].mxu0 }
 0x258   : > { %v878_v38 = vadd.f32 %v872_v31, %v815_v33  ;;  %v1215_v39 = vpop.f32.mrb[15].mxu1  ;;  %v1223_v40 = vpop.f32.mrb[19].mxu0 }
 0x25d   : > { %v935_v42 = vpop.f32.mrb[16].mxu1 }
 0x25e   : > { %v941_v45 = vadd.f32 %v935_v42, %v878_v38  ;;  %v1230_v46 = vpop.f32.mrb[17].mxu1 }
 0x25f   : > { %v938_v48 = vpop.f32.mrb[18].mxu1 }
 0x260   : > { %v943_v49 = vadd.f32 %v942_v43, %v941_v45  ;;  %v1231_v50 = vpop.f32.mrb[19].mxu1 }
 0x262   : > { %v944_v52 = vmax.f32 %v943_v49, 0.0 }
 0x264   : > { %v955_v53 = vmul.f32 %v954_v51, %v944_v52 }
 0x266   : > { %v1121_v54 = vpack.c.bf16 %v955_v53, %v955_v53 }
 0x268   : > { %v975_v56 = vrot.slane %v1121_v54, 6 }
 0x26a   : > { %v981_v57 = vsel %vm979_vm8, %v975_v56, %v1115_v55 }
 0x26b   : > { %1116 = vst [vmem:[%s1350_s17 + $0x8] sm:$0x4] %v981_v57 }
 0x26c PF: > { %s19_s26 = sadd.s32 1, %s1273_s26  }
 0x26d   : > { %p16_p4 = scmp.ge.s32.totalorder %s19_s26, 4  }
 0x26f   :  { %18 = sbr.rel (!%p16_p4) target bundleno = 3 (0x3), region = 87 }

</bundles_post_ra>
